<compile_context>
chip_gen: v6e
topology: v6e:2x2x1
jax: 0.10.0
libtpu: 0.0.40
codegen_flags: <defaults>
</compile_context>

<pallas_src>
import functools
import math

import jax
import jax.numpy as jnp
from jax.experimental import pallas as pl
from jax.experimental.pallas import tpu as pltpu


_BN_EPS = 1e-5
_LANE = 128
_N_BLOCK_REFS = 10  # refs per ResAttBlock: w1,s1,sh1, w2,s2,sh2, w3,b3, w4,b4


def _rup(x, m=_LANE):
    return (x + m - 1) // m * m


# -----------------------------------------------------------------------------
# Fused whole-model kernel.
# -----------------------------------------------------------------------------
def _mm(x, w_ref):
    # bf16 MXU matmul, f32 accumulation.  Weights are already bf16 in VMEM.
    return jnp.dot(x.astype(jnp.bfloat16), w_ref[...],
                   preferred_element_type=jnp.float32)


def _res_att_block_compute(x, refs):
    (w1, s1, sh1, w2, s2, sh2, w3, b3, w4, b4) = refs
    # FcBnReLU(512 -> 1024): BN folded into scale/shift.
    h = jnp.maximum(_mm(x, w1) * s1[...] + sh1[...], 0.0)
    # FcBn(1024 -> 512)
    residual = _mm(h, w2) * s2[...] + sh2[...]
    # FcReLU(512 -> 16)  (padded to 128 lanes with zero weights/bias: exact)
    a = jnp.maximum(_mm(residual, w3) + b3[...], 0.0)
    # FcSigmoid(16 -> 512)
    g = jax.nn.sigmoid(_mm(a, w4) + b4[...])
    # x = relu(sigmoid(...) * residual); outer residual add fused here too.
    return jnp.maximum(g * residual, 0.0) + x


def _translator_kernel(*refs):
    out_ref = refs[-1]
    embed_ref, fc1_w, fc1_b = refs[0], refs[1], refs[2]

    # fc1 (512 -> 512)
    x = _mm(embed_ref[...], fc1_w) + fc1_b[...]

    idx = 3
    for _ in range(3):  # three ResAttBlocks (+ fused outer residual adds)
        x = _res_att_block_compute(x, refs[idx:idx + _N_BLOCK_REFS])
        idx += _N_BLOCK_REFS

    # fc2 (512 -> out_features, padded to 128 lanes)
    fc2_w, fc2_b = refs[idx], refs[idx + 1]
    out_ref[...] = (_mm(x, fc2_w) + fc2_b[...]).astype(out_ref.dtype)


def translator_forward(prepared_inputs, embed, *, out_features):
    """prepared_inputs: tuple from prepare_params (bf16 padded weights etc.)."""
    B, _ = embed.shape
    out_p = _rup(out_features)
    n_in = 1 + len(prepared_inputs)

    vmem_spec = pl.BlockSpec(memory_space=pltpu.MemorySpace.VMEM)
    out = pl.pallas_call(
        _translator_kernel,
        out_shape=jax.ShapeDtypeStruct((B, out_p), jnp.float32),
        in_specs=[vmem_spec] * n_in,          # everything resident in VMEM
        out_specs=vmem_spec,
        compiler_params=pltpu.CompilerParams(
            # ~7.4 MB of bf16 weights + tiny activations; leave headroom.
            vmem_limit_bytes=32 * 1024 * 1024,
        ),
    )(embed, *prepared_inputs)

    return out[:, :out_features], embed


# -----------------------------------------------------------------------------
# One-time parameter preparation (outside the forward / jit boundary).
# -----------------------------------------------------------------------------
def _fold_bn(lin, bn):
    # BN (eval mode, running stats) folded into per-feature scale/shift.
    # TODO(synk): training-mode BatchNorm1d (batch statistics) not implemented.
    s = bn["gamma"] * jax.lax.rsqrt(bn["var"] + _BN_EPS)
    shift = (lin["b"] - bn["mean"]) * s + bn["beta"]
    return s, shift


def _pack_w(w):
    """PyTorch-layout (Out, In) f32 -> padded (In_p, Out_p) bf16."""
    out_f, in_f = w.shape
    wt = jnp.pad(w.T, ((0, _rup(in_f) - in_f), (0, _rup(out_f) - out_f)))
    return wt.astype(jnp.bfloat16)


def _pack_v(v):
    """(Out,) f32 -> padded (1, Out_p) f32 (zero padding)."""
    out_f = v.shape[0]
    return jnp.pad(v, (0, _rup(out_f) - out_f)).reshape(1, -1).astype(jnp.float32)


def prepare_params(params):
    """Fold BN, transpose/pad/bf16-cast weights once; returns flat input tuple."""
    inputs = [_pack_w(params["fc1"]["w"]), _pack_v(params["fc1"]["b"])]
    for name in ("res_att1", "res_att2", "res_att3"):
        p = params[name]
        s1, sh1 = _fold_bn(p["fc_bn_relu"]["lin"], p["fc_bn_relu"]["bn"])
        s2, sh2 = _fold_bn(p["fc_bn"]["lin"], p["fc_bn"]["bn"])
        inputs += [
            _pack_w(p["fc_bn_relu"]["lin"]["w"]), _pack_v(s1), _pack_v(sh1),
            _pack_w(p["fc_bn"]["lin"]["w"]), _pack_v(s2), _pack_v(sh2),
            _pack_w(p["fc_relu"]["w"]), _pack_v(p["fc_relu"]["b"]),
            _pack_w(p["fc_sigmoid"]["w"]), _pack_v(p["fc_sigmoid"]["b"]),
        ]
    inputs += [_pack_w(params["fc2"]["w"]), _pack_v(params["fc2"]["b"])]
    return tuple(inputs)


# -----------------------------------------------------------------------------
# Pure-JAX reference with identical numerics (bf16 matmul, f32 acc/epilogue).
# -----------------------------------------------------------------------------
def translator_reference(params, embed):
    def dotg(x, w):  # w in PyTorch (Out, In) layout; contract last dims.
        return jax.lax.dot_general(
            x.astype(jnp.bfloat16), w.astype(jnp.bfloat16),
            dimension_numbers=(((1,), (1,)), ((), ())),
            preferred_element_type=jnp.float32)

    def block(p, x):
        s1, sh1 = _fold_bn(p["fc_bn_relu"]["lin"], p["fc_bn_relu"]["bn"])
        h = jnp.maximum(dotg(x, p["fc_bn_relu"]["lin"]["w"]) * s1 + sh1, 0.0)
        s2, sh2 = _fold_bn(p["fc_bn"]["lin"], p["fc_bn"]["bn"])
        residual = dotg(h, p["fc_bn"]["lin"]["w"]) * s2 + sh2
        a = jnp.maximum(dotg(residual, p["fc_relu"]["w"]) + p["fc_relu"]["b"], 0.0)
        g = jax.nn.sigmoid(dotg(a, p["fc_sigmoid"]["w"]) + p["fc_sigmoid"]["b"])
        return jnp.maximum(g * residual, 0.0)

    # TODO(synk): InceptionResnetV1(pretrained='vggface2') encoder is not
    # translated (pretrained CNN); `embed` stands in for its 512-d output.
    x = dotg(embed, params["fc1"]["w"]) + params["fc1"]["b"]
    x = block(params["res_att1"], x) + x
    x = block(params["res_att2"], x) + x
    x = block(params["res_att3"], x) + x
    out = dotg(x, params["fc2"]["w"]) + params["fc2"]["b"]
    return out, embed


# -----------------------------------------------------------------------------
# Deterministic parameter init (mirrors nn.Linear defaults; BN stats non-trivial)
# -----------------------------------------------------------------------------
def _init_linear(key, in_f, out_f):
    kw, kb = jax.random.split(key)
    bound = 1.0 / math.sqrt(in_f)
    return {
        "w": jax.random.uniform(kw, (out_f, in_f), jnp.float32, -bound, bound),
        "b": jax.random.uniform(kb, (out_f,), jnp.float32, -bound, bound),
    }


def _init_bn(key, n):
    kg, kb, km, kv = jax.random.split(key, 4)
    return {
        "gamma": jax.random.uniform(kg, (n,), jnp.float32, 0.5, 1.5),
        "beta": jax.random.uniform(kb, (n,), jnp.float32, -0.1, 0.1),
        "mean": jax.random.uniform(km, (n,), jnp.float32, -0.5, 0.5),
        "var": jax.random.uniform(kv, (n,), jnp.float32, 0.5, 1.5),
    }


def _init_res_att(key, in_f):
    k = jax.random.split(key, 6)
    return {
        "fc_bn_relu": {"lin": _init_linear(k[0], in_f, 1024),
                       "bn": _init_bn(k[1], 1024)},
        "fc_bn": {"lin": _init_linear(k[2], 1024, 512),
                  "bn": _init_bn(k[3], 512)},
        "fc_relu": _init_linear(k[4], 512, 16),
        "fc_sigmoid": _init_linear(k[5], 16, 512),
    }


def init_translator(key, out_features=37):
    k = jax.random.split(key, 5)
    return {
        "fc1": _init_linear(k[0], 512, 512),
        "res_att1": _init_res_att(k[1], 512),
        "res_att2": _init_res_att(k[2], 512),
        "res_att3": _init_res_att(k[3], 512),
        "fc2": _init_linear(k[4], 512, out_features),
    }


if __name__ == "__main__":
    batch, embed_dim, out_features = 8, 512, 37

    root = jax.random.PRNGKey(0)
    kp, kx = jax.random.split(root)
    params = init_translator(kp, out_features=out_features)
    embed = jax.random.normal(kx, (batch, embed_dim), dtype=jnp.float32)

    # One-time prep: fold BN, transpose/pad, cast weights to bf16.
    prepared = prepare_params(params)

    fwd = jax.jit(functools.partial(translator_forward,
                                    out_features=out_features))
    out, embed_out = fwd(prepared, embed)
    jax.block_until_ready(out)

    ref_out, _ = translator_reference(params, embed)

    assert out.shape == (batch, out_features)
    assert embed_out.shape == (batch, embed_dim)
    assert bool(jnp.allclose(embed_out, embed))
    max_err = float(jnp.max(jnp.abs(out - ref_out)))
    assert bool(jnp.allclose(out, ref_out, atol=1e-2, rtol=1e-2)), max_err

    print("KERNEL_OK")
</pallas_src>

<mosaic_0001>
module attributes {stable_mosaic.version = 11 : i64} {
  func.func @_translator_kernel(%arg0: memref<8x512xf32, #tpu.memory_space<vmem>>, %arg1: memref<512x512xbf16, #tpu.memory_space<vmem>>, %arg2: memref<1x512xf32, #tpu.memory_space<vmem>>, %arg3: memref<512x1024xbf16, #tpu.memory_space<vmem>>, %arg4: memref<1x1024xf32, #tpu.memory_space<vmem>>, %arg5: memref<1x1024xf32, #tpu.memory_space<vmem>>, %arg6: memref<1024x512xbf16, #tpu.memory_space<vmem>>, %arg7: memref<1x512xf32, #tpu.memory_space<vmem>>, %arg8: memref<1x512xf32, #tpu.memory_space<vmem>>, %arg9: memref<512x128xbf16, #tpu.memory_space<vmem>>, %arg10: memref<1x128xf32, #tpu.memory_space<vmem>>, %arg11: memref<128x512xbf16, #tpu.memory_space<vmem>>, %arg12: memref<1x512xf32, #tpu.memory_space<vmem>>, %arg13: memref<512x1024xbf16, #tpu.memory_space<vmem>>, %arg14: memref<1x1024xf32, #tpu.memory_space<vmem>>, %arg15: memref<1x1024xf32, #tpu.memory_space<vmem>>, %arg16: memref<1024x512xbf16, #tpu.memory_space<vmem>>, %arg17: memref<1x512xf32, #tpu.memory_space<vmem>>, %arg18: memref<1x512xf32, #tpu.memory_space<vmem>>, %arg19: memref<512x128xbf16, #tpu.memory_space<vmem>>, %arg20: memref<1x128xf32, #tpu.memory_space<vmem>>, %arg21: memref<128x512xbf16, #tpu.memory_space<vmem>>, %arg22: memref<1x512xf32, #tpu.memory_space<vmem>>, %arg23: memref<512x1024xbf16, #tpu.memory_space<vmem>>, %arg24: memref<1x1024xf32, #tpu.memory_space<vmem>>, %arg25: memref<1x1024xf32, #tpu.memory_space<vmem>>, %arg26: memref<1024x512xbf16, #tpu.memory_space<vmem>>, %arg27: memref<1x512xf32, #tpu.memory_space<vmem>>, %arg28: memref<1x512xf32, #tpu.memory_space<vmem>>, %arg29: memref<512x128xbf16, #tpu.memory_space<vmem>>, %arg30: memref<1x128xf32, #tpu.memory_space<vmem>>, %arg31: memref<128x512xbf16, #tpu.memory_space<vmem>>, %arg32: memref<1x512xf32, #tpu.memory_space<vmem>>, %arg33: memref<512x128xbf16, #tpu.memory_space<vmem>>, %arg34: memref<1x128xf32, #tpu.memory_space<vmem>>, %arg35: memref<8x128xf32, #tpu.memory_space<vmem>>) attributes {dimension_semantics = [], scalar_prefetch = 0 : i64, scratch_operands = 0 : i64, tpu.core_type = #tpu.core_type<tc>} {
    %c0 = arith.constant 0 : index
    %c0_0 = arith.constant 0 : index
    %0 = vector.load %arg0[%c0, %c0_0] : memref<8x512xf32, #tpu.memory_space<vmem>>, vector<8x512xf32>
    %1 = arith.truncf %0 : vector<8x512xf32> to vector<8x512xbf16>
    %c0_1 = arith.constant 0 : index
    %c0_2 = arith.constant 0 : index
    %2 = vector.load %arg1[%c0_1, %c0_2] : memref<512x512xbf16, #tpu.memory_space<vmem>>, vector<512x512xbf16>
    %cst = arith.constant dense<0.000000e+00> : vector<8x512xf32>
    %3 = tpu.matmul %1, %2, %cst {dimension_numbers = #tpu.dot_dimension_numbers<[1], [0], [0], [1], [0, 0, 1, 1], [], []>} : vector<8x512xbf16>, vector<512x512xbf16>, vector<8x512xf32> -> vector<8x512xf32>
    %c0_3 = arith.constant 0 : index
    %c0_4 = arith.constant 0 : index
    %4 = vector.load %arg2[%c0_3, %c0_4] : memref<1x512xf32, #tpu.memory_space<vmem>>, vector<1x512xf32>
    %5 = vector.broadcast %4 : vector<1x512xf32> to vector<8x512xf32>
    %6 = arith.addf %3, %5 : vector<8x512xf32>
    %7 = arith.truncf %6 : vector<8x512xf32> to vector<8x512xbf16>
    %c0_5 = arith.constant 0 : index
    %c0_6 = arith.constant 0 : index
    %8 = vector.load %arg3[%c0_5, %c0_6] : memref<512x1024xbf16, #tpu.memory_space<vmem>>, vector<512x1024xbf16>
    %cst_7 = arith.constant dense<0.000000e+00> : vector<8x1024xf32>
    %9 = tpu.matmul %7, %8, %cst_7 {dimension_numbers = #tpu.dot_dimension_numbers<[1], [0], [0], [1], [0, 0, 1, 1], [], []>} : vector<8x512xbf16>, vector<512x1024xbf16>, vector<8x1024xf32> -> vector<8x1024xf32>
    %c0_8 = arith.constant 0 : index
    %c0_9 = arith.constant 0 : index
    %10 = vector.load %arg4[%c0_8, %c0_9] : memref<1x1024xf32, #tpu.memory_space<vmem>>, vector<1x1024xf32>
    %11 = vector.broadcast %10 : vector<1x1024xf32> to vector<8x1024xf32>
    %12 = arith.mulf %9, %11 : vector<8x1024xf32>
    %c0_10 = arith.constant 0 : index
    %c0_11 = arith.constant 0 : index
    %13 = vector.load %arg5[%c0_10, %c0_11] : memref<1x1024xf32, #tpu.memory_space<vmem>>, vector<1x1024xf32>
    %14 = vector.broadcast %13 : vector<1x1024xf32> to vector<8x1024xf32>
    %15 = arith.addf %12, %14 : vector<8x1024xf32>
    %cst_12 = arith.constant 0.000000e+00 : f32
    %16 = vector.broadcast %cst_12 : f32 to vector<8x1024xf32>
    %17 = arith.maximumf %15, %16 : vector<8x1024xf32>
    %18 = arith.truncf %17 : vector<8x1024xf32> to vector<8x1024xbf16>
    %c0_13 = arith.constant 0 : index
    %c0_14 = arith.constant 0 : index
    %19 = vector.load %arg6[%c0_13, %c0_14] : memref<1024x512xbf16, #tpu.memory_space<vmem>>, vector<1024x512xbf16>
    %cst_15 = arith.constant dense<0.000000e+00> : vector<8x512xf32>
    %20 = tpu.matmul %18, %19, %cst_15 {dimension_numbers = #tpu.dot_dimension_numbers<[1], [0], [0], [1], [0, 0, 1, 1], [], []>} : vector<8x1024xbf16>, vector<1024x512xbf16>, vector<8x512xf32> -> vector<8x512xf32>
    %c0_16 = arith.constant 0 : index
    %c0_17 = arith.constant 0 : index
    %21 = vector.load %arg7[%c0_16, %c0_17] : memref<1x512xf32, #tpu.memory_space<vmem>>, vector<1x512xf32>
    %22 = vector.broadcast %21 : vector<1x512xf32> to vector<8x512xf32>
    %23 = arith.mulf %20, %22 : vector<8x512xf32>
    %c0_18 = arith.constant 0 : index
    %c0_19 = arith.constant 0 : index
    %24 = vector.load %arg8[%c0_18, %c0_19] : memref<1x512xf32, #tpu.memory_space<vmem>>, vector<1x512xf32>
    %25 = vector.broadcast %24 : vector<1x512xf32> to vector<8x512xf32>
    %26 = arith.addf %23, %25 : vector<8x512xf32>
    %27 = arith.truncf %26 : vector<8x512xf32> to vector<8x512xbf16>
    %c0_20 = arith.constant 0 : index
    %c0_21 = arith.constant 0 : index
    %28 = vector.load %arg9[%c0_20, %c0_21] : memref<512x128xbf16, #tpu.memory_space<vmem>>, vector<512x128xbf16>
    %cst_22 = arith.constant dense<0.000000e+00> : vector<8x128xf32>
    %29 = tpu.matmul %27, %28, %cst_22 {dimension_numbers = #tpu.dot_dimension_numbers<[1], [0], [0], [1], [0, 0, 1, 1], [], []>} : vector<8x512xbf16>, vector<512x128xbf16>, vector<8x128xf32> -> vector<8x128xf32>
    %c0_23 = arith.constant 0 : index
    %c0_24 = arith.constant 0 : index
    %30 = vector.load %arg10[%c0_23, %c0_24] : memref<1x128xf32, #tpu.memory_space<vmem>>, vector<1x128xf32>
    %31 = vector.broadcast %30 : vector<1x128xf32> to vector<8x128xf32>
    %32 = arith.addf %29, %31 : vector<8x128xf32>
    %cst_25 = arith.constant 0.000000e+00 : f32
    %33 = vector.broadcast %cst_25 : f32 to vector<8x128xf32>
    %34 = arith.maximumf %32, %33 : vector<8x128xf32>
    %35 = arith.truncf %34 : vector<8x128xf32> to vector<8x128xbf16>
    %c0_26 = arith.constant 0 : index
    %c0_27 = arith.constant 0 : index
    %36 = vector.load %arg11[%c0_26, %c0_27] : memref<128x512xbf16, #tpu.memory_space<vmem>>, vector<128x512xbf16>
    %cst_28 = arith.constant dense<0.000000e+00> : vector<8x512xf32>
    %37 = tpu.matmul %35, %36, %cst_28 {dimension_numbers = #tpu.dot_dimension_numbers<[1], [0], [0], [1], [0, 0, 1, 1], [], []>} : vector<8x128xbf16>, vector<128x512xbf16>, vector<8x512xf32> -> vector<8x512xf32>
    %c0_29 = arith.constant 0 : index
    %c0_30 = arith.constant 0 : index
    %38 = vector.load %arg12[%c0_29, %c0_30] : memref<1x512xf32, #tpu.memory_space<vmem>>, vector<1x512xf32>
    %39 = vector.broadcast %38 : vector<1x512xf32> to vector<8x512xf32>
    %40 = arith.addf %37, %39 : vector<8x512xf32>
    %41 = arith.negf %40 : vector<8x512xf32>
    %42 = math.exp %41 : vector<8x512xf32>
    %cst_31 = arith.constant 1.000000e+00 : f32
    %43 = vector.broadcast %cst_31 : f32 to vector<8x512xf32>
    %44 = arith.addf %43, %42 : vector<8x512xf32>
    %45 = arith.divf %43, %44 : vector<8x512xf32>
    %46 = arith.mulf %45, %26 : vector<8x512xf32>
    %cst_32 = arith.constant 0.000000e+00 : f32
    %47 = vector.broadcast %cst_32 : f32 to vector<8x512xf32>
    %48 = arith.maximumf %46, %47 : vector<8x512xf32>
    %49 = arith.addf %48, %6 : vector<8x512xf32>
    %50 = arith.truncf %49 : vector<8x512xf32> to vector<8x512xbf16>
    %c0_33 = arith.constant 0 : index
    %c0_34 = arith.constant 0 : index
    %51 = vector.load %arg13[%c0_33, %c0_34] : memref<512x1024xbf16, #tpu.memory_space<vmem>>, vector<512x1024xbf16>
    %cst_35 = arith.constant dense<0.000000e+00> : vector<8x1024xf32>
    %52 = tpu.matmul %50, %51, %cst_35 {dimension_numbers = #tpu.dot_dimension_numbers<[1], [0], [0], [1], [0, 0, 1, 1], [], []>} : vector<8x512xbf16>, vector<512x1024xbf16>, vector<8x1024xf32> -> vector<8x1024xf32>
    %c0_36 = arith.constant 0 : index
    %c0_37 = arith.constant 0 : index
    %53 = vector.load %arg14[%c0_36, %c0_37] : memref<1x1024xf32, #tpu.memory_space<vmem>>, vector<1x1024xf32>
    %54 = vector.broadcast %53 : vector<1x1024xf32> to vector<8x1024xf32>
    %55 = arith.mulf %52, %54 : vector<8x1024xf32>
    %c0_38 = arith.constant 0 : index
    %c0_39 = arith.constant 0 : index
    %56 = vector.load %arg15[%c0_38, %c0_39] : memref<1x1024xf32, #tpu.memory_space<vmem>>, vector<1x1024xf32>
    %57 = vector.broadcast %56 : vector<1x1024xf32> to vector<8x1024xf32>
    %58 = arith.addf %55, %57 : vector<8x1024xf32>
    %cst_40 = arith.constant 0.000000e+00 : f32
    %59 = vector.broadcast %cst_40 : f32 to vector<8x1024xf32>
    %60 = arith.maximumf %58, %59 : vector<8x1024xf32>
    %61 = arith.truncf %60 : vector<8x1024xf32> to vector<8x1024xbf16>
    %c0_41 = arith.constant 0 : index
    %c0_42 = arith.constant 0 : index
    %62 = vector.load %arg16[%c0_41, %c0_42] : memref<1024x512xbf16, #tpu.memory_space<vmem>>, vector<1024x512xbf16>
    %cst_43 = arith.constant dense<0.000000e+00> : vector<8x512xf32>
    %63 = tpu.matmul %61, %62, %cst_43 {dimension_numbers = #tpu.dot_dimension_numbers<[1], [0], [0], [1], [0, 0, 1, 1], [], []>} : vector<8x1024xbf16>, vector<1024x512xbf16>, vector<8x512xf32> -> vector<8x512xf32>
    %c0_44 = arith.constant 0 : index
    %c0_45 = arith.constant 0 : index
    %64 = vector.load %arg17[%c0_44, %c0_45] : memref<1x512xf32, #tpu.memory_space<vmem>>, vector<1x512xf32>
    %65 = vector.broadcast %64 : vector<1x512xf32> to vector<8x512xf32>
    %66 = arith.mulf %63, %65 : vector<8x512xf32>
    %c0_46 = arith.constant 0 : index
    %c0_47 = arith.constant 0 : index
    %67 = vector.load %arg18[%c0_46, %c0_47] : memref<1x512xf32, #tpu.memory_space<vmem>>, vector<1x512xf32>
    %68 = vector.broadcast %67 : vector<1x512xf32> to vector<8x512xf32>
    %69 = arith.addf %66, %68 : vector<8x512xf32>
    %70 = arith.truncf %69 : vector<8x512xf32> to vector<8x512xbf16>
    %c0_48 = arith.constant 0 : index
    %c0_49 = arith.constant 0 : index
    %71 = vector.load %arg19[%c0_48, %c0_49] : memref<512x128xbf16, #tpu.memory_space<vmem>>, vector<512x128xbf16>
    %cst_50 = arith.constant dense<0.000000e+00> : vector<8x128xf32>
    %72 = tpu.matmul %70, %71, %cst_50 {dimension_numbers = #tpu.dot_dimension_numbers<[1], [0], [0], [1], [0, 0, 1, 1], [], []>} : vector<8x512xbf16>, vector<512x128xbf16>, vector<8x128xf32> -> vector<8x128xf32>
    %c0_51 = arith.constant 0 : index
    %c0_52 = arith.constant 0 : index
    %73 = vector.load %arg20[%c0_51, %c0_52] : memref<1x128xf32, #tpu.memory_space<vmem>>, vector<1x128xf32>
    %74 = vector.broadcast %73 : vector<1x128xf32> to vector<8x128xf32>
    %75 = arith.addf %72, %74 : vector<8x128xf32>
    %cst_53 = arith.constant 0.000000e+00 : f32
    %76 = vector.broadcast %cst_53 : f32 to vector<8x128xf32>
    %77 = arith.maximumf %75, %76 : vector<8x128xf32>
    %78 = arith.truncf %77 : vector<8x128xf32> to vector<8x128xbf16>
    %c0_54 = arith.constant 0 : index
    %c0_55 = arith.constant 0 : index
    %79 = vector.load %arg21[%c0_54, %c0_55] : memref<128x512xbf16, #tpu.memory_space<vmem>>, vector<128x512xbf16>
    %cst_56 = arith.constant dense<0.000000e+00> : vector<8x512xf32>
    %80 = tpu.matmul %78, %79, %cst_56 {dimension_numbers = #tpu.dot_dimension_numbers<[1], [0], [0], [1], [0, 0, 1, 1], [], []>} : vector<8x128xbf16>, vector<128x512xbf16>, vector<8x512xf32> -> vector<8x512xf32>
    %c0_57 = arith.constant 0 : index
    %c0_58 = arith.constant 0 : index
    %81 = vector.load %arg22[%c0_57, %c0_58] : memref<1x512xf32, #tpu.memory_space<vmem>>, vector<1x512xf32>
    %82 = vector.broadcast %81 : vector<1x512xf32> to vector<8x512xf32>
    %83 = arith.addf %80, %82 : vector<8x512xf32>
    %84 = arith.negf %83 : vector<8x512xf32>
    %85 = math.exp %84 : vector<8x512xf32>
    %cst_59 = arith.constant 1.000000e+00 : f32
    %86 = vector.broadcast %cst_59 : f32 to vector<8x512xf32>
    %87 = arith.addf %86, %85 : vector<8x512xf32>
    %88 = arith.divf %86, %87 : vector<8x512xf32>
    %89 = arith.mulf %88, %69 : vector<8x512xf32>
    %cst_60 = arith.constant 0.000000e+00 : f32
    %90 = vector.broadcast %cst_60 : f32 to vector<8x512xf32>
    %91 = arith.maximumf %89, %90 : vector<8x512xf32>
    %92 = arith.addf %91, %49 : vector<8x512xf32>
    %93 = arith.truncf %92 : vector<8x512xf32> to vector<8x512xbf16>
    %c0_61 = arith.constant 0 : index
    %c0_62 = arith.constant 0 : index
    %94 = vector.load %arg23[%c0_61, %c0_62] : memref<512x1024xbf16, #tpu.memory_space<vmem>>, vector<512x1024xbf16>
    %cst_63 = arith.constant dense<0.000000e+00> : vector<8x1024xf32>
    %95 = tpu.matmul %93, %94, %cst_63 {dimension_numbers = #tpu.dot_dimension_numbers<[1], [0], [0], [1], [0, 0, 1, 1], [], []>} : vector<8x512xbf16>, vector<512x1024xbf16>, vector<8x1024xf32> -> vector<8x1024xf32>
    %c0_64 = arith.constant 0 : index
    %c0_65 = arith.constant 0 : index
    %96 = vector.load %arg24[%c0_64, %c0_65] : memref<1x1024xf32, #tpu.memory_space<vmem>>, vector<1x1024xf32>
    %97 = vector.broadcast %96 : vector<1x1024xf32> to vector<8x1024xf32>
    %98 = arith.mulf %95, %97 : vector<8x1024xf32>
    %c0_66 = arith.constant 0 : index
    %c0_67 = arith.constant 0 : index
    %99 = vector.load %arg25[%c0_66, %c0_67] : memref<1x1024xf32, #tpu.memory_space<vmem>>, vector<1x1024xf32>
    %100 = vector.broadcast %99 : vector<1x1024xf32> to vector<8x1024xf32>
    %101 = arith.addf %98, %100 : vector<8x1024xf32>
    %cst_68 = arith.constant 0.000000e+00 : f32
    %102 = vector.broadcast %cst_68 : f32 to vector<8x1024xf32>
    %103 = arith.maximumf %101, %102 : vector<8x1024xf32>
    %104 = arith.truncf %103 : vector<8x1024xf32> to vector<8x1024xbf16>
    %c0_69 = arith.constant 0 : index
    %c0_70 = arith.constant 0 : index
    %105 = vector.load %arg26[%c0_69, %c0_70] : memref<1024x512xbf16, #tpu.memory_space<vmem>>, vector<1024x512xbf16>
    %cst_71 = arith.constant dense<0.000000e+00> : vector<8x512xf32>
    %106 = tpu.matmul %104, %105, %cst_71 {dimension_numbers = #tpu.dot_dimension_numbers<[1], [0], [0], [1], [0, 0, 1, 1], [], []>} : vector<8x1024xbf16>, vector<1024x512xbf16>, vector<8x512xf32> -> vector<8x512xf32>
    %c0_72 = arith.constant 0 : index
    %c0_73 = arith.constant 0 : index
    %107 = vector.load %arg27[%c0_72, %c0_73] : memref<1x512xf32, #tpu.memory_space<vmem>>, vector<1x512xf32>
    %108 = vector.broadcast %107 : vector<1x512xf32> to vector<8x512xf32>
    %109 = arith.mulf %106, %108 : vector<8x512xf32>
    %c0_74 = arith.constant 0 : index
    %c0_75 = arith.constant 0 : index
    %110 = vector.load %arg28[%c0_74, %c0_75] : memref<1x512xf32, #tpu.memory_space<vmem>>, vector<1x512xf32>
    %111 = vector.broadcast %110 : vector<1x512xf32> to vector<8x512xf32>
    %112 = arith.addf %109, %111 : vector<8x512xf32>
    %113 = arith.truncf %112 : vector<8x512xf32> to vector<8x512xbf16>
    %c0_76 = arith.constant 0 : index
    %c0_77 = arith.constant 0 : index
    %114 = vector.load %arg29[%c0_76, %c0_77] : memref<512x128xbf16, #tpu.memory_space<vmem>>, vector<512x128xbf16>
    %cst_78 = arith.constant dense<0.000000e+00> : vector<8x128xf32>
    %115 = tpu.matmul %113, %114, %cst_78 {dimension_numbers = #tpu.dot_dimension_numbers<[1], [0], [0], [1], [0, 0, 1, 1], [], []>} : vector<8x512xbf16>, vector<512x128xbf16>, vector<8x128xf32> -> vector<8x128xf32>
    %c0_79 = arith.constant 0 : index
    %c0_80 = arith.constant 0 : index
    %116 = vector.load %arg30[%c0_79, %c0_80] : memref<1x128xf32, #tpu.memory_space<vmem>>, vector<1x128xf32>
    %117 = vector.broadcast %116 : vector<1x128xf32> to vector<8x128xf32>
    %118 = arith.addf %115, %117 : vector<8x128xf32>
    %cst_81 = arith.constant 0.000000e+00 : f32
    %119 = vector.broadcast %cst_81 : f32 to vector<8x128xf32>
    %120 = arith.maximumf %118, %119 : vector<8x128xf32>
    %121 = arith.truncf %120 : vector<8x128xf32> to vector<8x128xbf16>
    %c0_82 = arith.constant 0 : index
    %c0_83 = arith.constant 0 : index
    %122 = vector.load %arg31[%c0_82, %c0_83] : memref<128x512xbf16, #tpu.memory_space<vmem>>, vector<128x512xbf16>
    %cst_84 = arith.constant dense<0.000000e+00> : vector<8x512xf32>
    %123 = tpu.matmul %121, %122, %cst_84 {dimension_numbers = #tpu.dot_dimension_numbers<[1], [0], [0], [1], [0, 0, 1, 1], [], []>} : vector<8x128xbf16>, vector<128x512xbf16>, vector<8x512xf32> -> vector<8x512xf32>
    %c0_85 = arith.constant 0 : index
    %c0_86 = arith.constant 0 : index
    %124 = vector.load %arg32[%c0_85, %c0_86] : memref<1x512xf32, #tpu.memory_space<vmem>>, vector<1x512xf32>
    %125 = vector.broadcast %124 : vector<1x512xf32> to vector<8x512xf32>
    %126 = arith.addf %123, %125 : vector<8x512xf32>
    %127 = arith.negf %126 : vector<8x512xf32>
    %128 = math.exp %127 : vector<8x512xf32>
    %cst_87 = arith.constant 1.000000e+00 : f32
    %129 = vector.broadcast %cst_87 : f32 to vector<8x512xf32>
    %130 = arith.addf %129, %128 : vector<8x512xf32>
    %131 = arith.divf %129, %130 : vector<8x512xf32>
    %132 = arith.mulf %131, %112 : vector<8x512xf32>
    %cst_88 = arith.constant 0.000000e+00 : f32
    %133 = vector.broadcast %cst_88 : f32 to vector<8x512xf32>
    %134 = arith.maximumf %132, %133 : vector<8x512xf32>
    %135 = arith.addf %134, %92 : vector<8x512xf32>
    %136 = arith.truncf %135 : vector<8x512xf32> to vector<8x512xbf16>
    %c0_89 = arith.constant 0 : index
    %c0_90 = arith.constant 0 : index
    %137 = vector.load %arg33[%c0_89, %c0_90] : memref<512x128xbf16, #tpu.memory_space<vmem>>, vector<512x128xbf16>
    %cst_91 = arith.constant dense<0.000000e+00> : vector<8x128xf32>
    %138 = tpu.matmul %136, %137, %cst_91 {dimension_numbers = #tpu.dot_dimension_numbers<[1], [0], [0], [1], [0, 0, 1, 1], [], []>} : vector<8x512xbf16>, vector<512x128xbf16>, vector<8x128xf32> -> vector<8x128xf32>
    %c0_92 = arith.constant 0 : index
    %c0_93 = arith.constant 0 : index
    %139 = vector.load %arg34[%c0_92, %c0_93] : memref<1x128xf32, #tpu.memory_space<vmem>>, vector<1x128xf32>
    %140 = vector.broadcast %139 : vector<1x128xf32> to vector<8x128xf32>
    %141 = arith.addf %138, %140 : vector<8x128xf32>
    %c0_94 = arith.constant 0 : index
    %c0_95 = arith.constant 0 : index
    %142 = vector.load %arg35[%c0_94, %c0_95] : memref<8x128xf32, #tpu.memory_space<vmem>>, vector<8x128xf32>
    tpu.vector_store %arg35[%c0_94, %c0_95], %141 {strides = array<i32>} : memref<8x128xf32, #tpu.memory_space<vmem>>, vector<8x128xf32>,
    return
  }
}

</mosaic_0001>

<bundles_post_ra>
// kernel: translator_forward.1
= control target key start
LH: loop header
LB: loop body
LE: loop exit
PB: predicated region body
PF: predicated region fallthrough
CT: control target
= control target key end

     0   :  { %s20043_s6 = smov 1   ;;  %s20044_s10 = smov 2   ;;  %s21028_s0 = inlined_call_operand.smem [shape: u32[36], index: -1, kind: input, shape index: {}] }
   0x1   :  { %s20122_s5 = sld [smem:[%s21028_s0]]   ;;  %s20045_s14 = smov 3  }
   0x2   :  { %s20127_s9 = sld [smem:[%s21028_s0 + %s20043_s6]]   ;;  %s20046_s18 = smov 4  }
   0x3   :  { %s20132_s13 = sld [smem:[%s21028_s0 + %s20044_s10]]   ;;  %s20047_s22 = smov 5  }
   0x4   :  { %s20137_s17 = sld [smem:[%s21028_s0 + %s20045_s14]]   ;;  %s20048_s26 = smov 6  }
   0x5   :  { %s20142_s21 = sld [smem:[%s21028_s0 + %s20046_s18]]   ;;  %s20049_s30 = smov 7  }
   0x6   :  { %s20147_s25 = sld [smem:[%s21028_s0 + %s20047_s22]]   ;;  %s20050_s4 = smov 8  }
   0x7   :  { %21030 = sst [smem:[#allocation63_spill]] %s20122_s5  ;;  %s20051_s10 = smov 9  }
   0x8   :  { %s20152_s29 = sld [smem:[%s21028_s0 + %s20048_s26]]   ;;  %s20052_s15 = smov 10  }
   0x9   :  { %s20157_s3 = sld [smem:[%s21028_s0 + %s20049_s30]]   ;;  %s20053_s20 = smov 11  }
   0xa   :  { %s20162_s8 = sld [smem:[%s21028_s0 + %s20050_s4]]   ;;  %s20054_s26 = smov 12  }
   0xb   :  { %s20167_s14 = sld [smem:[%s21028_s0 + %s20051_s10]]   ;;  %s20055_s1 = smov 13  }
   0xc   :  { %21031 = sst [smem:[#allocation64_spill]] %s20147_s25  ;;  %s20056_s7 = smov 14  }
   0xd   :  { %s20172_s19 = sld [smem:[%s21028_s0 + %s20052_s15]]   ;;  %s20057_s15 = smov 15  }
   0xe   :  { %s20177_s24 = sld [smem:[%s21028_s0 + %s20053_s20]]   ;;  %s20058_s22 = smov 16  }
   0xf   :  { %21032 = sst [smem:[#allocation65_spill]] %s20157_s3  ;;  %s20059_s28 = smov 17  }
  0x10   :  { %s20182_s30 = sld [smem:[%s21028_s0 + %s20054_s26]]  }
  0x11   :  { %21033 = sst [smem:[#allocation66_spill]] %s20167_s14 }
  0x12   :  { %s20187_s6 = sld [smem:[%s21028_s0 + %s20055_s1]]  }
  0x13   :  { %s20192_s12 = sld [smem:[%s21028_s0 + %s20056_s7]]   ;;  %s20060_s7 = smov 18  }
  0x14   :  { %21034 = sst [smem:[#allocation67_spill]] %s20177_s24 }
  0x15   :  { %s20197_s20 = sld [smem:[%s21028_s0 + %s20057_s15]]   ;;  %s20061_s15 = smov 19  }
  0x16   :  { %s20202_s27 = sld [smem:[%s21028_s0 + %s20058_s22]]   ;;  %s20062_s22 = smov 20  }
  0x17   :  { %s20207_s4 = sld [smem:[%s21028_s0 + %s20059_s28]]   ;;  %s20063_s28 = smov 21  }
  0x18   :  { %21035 = sst [smem:[#allocation68_spill]] %s20187_s6 }
  0x19   :  { %21036 = sst [smem:[#allocation69_spill]] %s20192_s12 }
  0x1a   :  { %s20212_s12 = sld [smem:[%s21028_s0 + %s20060_s7]]   ;;  %s20064_s7 = smov 22  }
  0x1b   :  { %21037 = sst [smem:[#allocation70_spill]] %s20197_s20 }
  0x1c   :  { %s20217_s20 = sld [smem:[%s21028_s0 + %s20061_s15]]   ;;  %s20065_s15 = smov 23  }
  0x1d   :  { %21038 = sst [smem:[#allocation71_spill]] %s20207_s4 }
  0x1e   :  { %s20222_s5 = sld [smem:[%s21028_s0 + %s20062_s22]]   ;;  %s20066_s22 = smov 24  }
  0x1f   :  { %s20227_s4 = sld [smem:[%s21028_s0 + %s20063_s28]]   ;;  %s20067_s28 = smov 25  }
  0x20   :  { %21039 = sst [smem:[#allocation72_spill]] %s20212_s12 }
  0x21   :  { %s20232_s12 = sld [smem:[%s21028_s0 + %s20064_s7]]   ;;  %s20068_s7 = smov 26  }
  0x22   :  { %s20237_s6 = sld [smem:[%s21028_s0 + %s20065_s15]]   ;;  %s20069_s15 = smov 27  }
  0x23   :  { %s20252_s24 = sld [smem:[%s21028_s0 + %s20068_s7]]   ;;  %s20072_s7 = smov 30  }
  0x24   :  { %21040 = sst [smem:[#allocation73_spill]] %s20222_s5 }
  0x25   :  { %21041 = sst [smem:[#allocation74_spill]] %s20227_s4 }
  0x26   :  { %s20242_s5 = sld [smem:[%s21028_s0 + %s20066_s22]]   ;;  %s20070_s22 = smov 28  }
  0x27   :  { %s20247_s4 = sld [smem:[%s21028_s0 + %s20067_s28]]   ;;  %s20071_s28 = smov 29  }
  0x28   :  { %21042 = sst [smem:[#allocation75_spill]] %s20237_s6 }
  0x29   :  { %21044 = sst [smem:[#allocation77_spill]] %s20252_s24 }
  0x2a   :  { %s20257_s6 = sld [smem:[%s21028_s0 + %s20069_s15]]   ;;  %s20073_s15 = smov 31  }
  0x2b   :  { %s20267_s14 = sld [smem:[%s21028_s0 + %s20071_s28]]   ;;  %s20075_s28 = smov 33  }
  0x2c   :  { %21043 = sst [smem:[#allocation76_spill]] %s20242_s5 }
  0x2d   :  { %s20262_s5 = sld [smem:[%s21028_s0 + %s20070_s22]]   ;;  %s20074_s22 = smov 32  }
  0x2e   :  { %s20272_s24 = sld [smem:[%s21028_s0 + %s20072_s7]]   ;;  %s20076_s7 = smov 34  }
  0x2f   :  { %s20277_s3 = sld [smem:[%s21028_s0 + %s20073_s15]]   ;;  %s20077_s15 = smov 35  }
  0x30   :  { %s20287_s25 = sld [smem:[%s21028_s0 + %s20075_s28]]  }
  0x33   :  { %21045 = sst [smem:[#allocation78_spill]] %s20262_s5 }
  0x34   :  { %21046 = sst [smem:[#allocation79_spill]] %s20272_s24 }
  0x35   :  { %21047 = sst [smem:[#allocation80_spill]] %s20277_s3 }
  0x36   :  { %s20282_s5 = sld [smem:[%s21028_s0 + %s20074_s22]]  }
  0x37   :  { %s20292_s24 = sld [smem:[%s21028_s0 + %s20076_s7]]  }
  0x38   :  { %s20297_s3 = sld [smem:[%s21028_s0 + %s20077_s15]]  }
  0x39   :  { %76 = vsyncpa [#allocation3], 0 }
  0x3a   :  { %77 = vsyncpa [#allocation6], 0 }
  0x3b   :  { %78 = vsyncpa [#allocation9], 0 }
  0x3c   :  { %79 = vsyncpa [#allocation12], 0 }
  0x3d   :  { %80 = vsyncpa [#allocation15], 0 }
  0x3e   :  { %81 = vsyncpa [#allocation18], 0 }
  0x3f   :  { %82 = vsyncpa [#allocation21], 0 }
  0x40   :  { %83 = vsyncpa [#allocation24], 0 }
  0x41   :  { %84 = vsyncpa [#allocation27], 0 }
  0x42   :  { %85 = vsyncpa [#allocation30], 0 }
  0x43   :  { %86 = vsyncpa [#allocation33], 0 }
  0x44   :  { %87 = vsyncpa [#allocation36], 0 }
  0x45   :  { %88 = vsyncpa [#allocation39], 0 }
  0x46   :  { %89 = vsyncpa [#allocation42], 0 }
  0x47   :  { %90 = vsyncpa [#allocation45], 0 }
  0x48   :  { %91 = vsyncpa [#allocation4], 0  ;;  %s20078_s22 = smov [#allocation5]   ;;  %s20079_s0 = smov [#allocation8]  }
  0x49   :  { %s112_s23 = sshll.u32 %s20078_s22, 4  ;;  %s134_s26 = sshll.u32 %s20079_s0, 4  ;;  %s113_s23 = int_to_ptr.vmem [resolvable:$true] %s112_s23  ;;  %s135_s26 = int_to_ptr.vmem [resolvable:$true] %s134_s26 }
  0x4a   :  { %s19439_s28 = scalar_lea.vmem %s113_s23, 64  ;;  %p19444_p1 = scmp.lt.s32.totalorder %s113_s23, %s113_s23 }
  0x4b   :  { %p19440_p0 = scmp.ne.s32.totalorder %s113_s23, %s19439_s28  ;;  %p19445_p2 = scmp.lt.s32.totalorder %s19439_s28, %s19439_s28 }
  0x4d   :  { %p19446_p3 = por %p19445_p2, %p19444_p1 }
  0x4f   :  { %p19447_p4 = pnand %p19446_p3, %p19440_p0 }
  0x51   :  { %19450 = shalt.err (!%p19447_p4)
}
  0x52   :  { %115 = dma.hbm_to_vmem [thread:$0]  %s20132_s13, 64, %s113_s23, [#allocation6]  }
  0x53   :  { %s19459_s1 = scalar_lea.vmem %s135_s26, 128  ;;  %p19464_p6 = scmp.lt.s32.totalorder %s135_s26, %s135_s26 }
  0x54   :  { %p19460_p5 = scmp.ne.s32.totalorder %s135_s26, %s19459_s1  ;;  %p19465_p7 = scmp.lt.s32.totalorder %s19459_s1, %s19459_s1 }
  0x56   :  { %p19466_p8 = por %p19465_p7, %p19464_p6 }
  0x58   :  { %p19467_p9 = pnand %p19466_p8, %p19460_p5 }
  0x5a   :  { %19470 = shalt.err (!%p19467_p9)
}
  0x5b   :  { %137 = dma.hbm_to_vmem [thread:$0]  %s20142_s21, 128, %s135_s26, [#allocation9]  }
  0x5c   :  { %s20080_s2 = smov [#allocation11]   ;;  %s20081_s10 = smov [#allocation14]  }
  0x5d   :  { %s153_s7 = sshll.u32 %s20080_s2, 4  ;;  %s176_s11 = sshll.u32 %s20081_s10, 4  ;;  %s154_s7 = int_to_ptr.vmem [resolvable:$true] %s153_s7  ;;  %s177_s11 = int_to_ptr.vmem [resolvable:$true] %s176_s11 }
  0x5e   :  { %s19479_s15 = scalar_lea.vmem %s154_s7, 32768  ;;  %p19484_p11 = scmp.lt.s32.totalorder %s154_s7, %s154_s7 }
  0x5f   :  { %p19480_p10 = scmp.ne.s32.totalorder %s154_s7, %s19479_s15  ;;  %p19485_p12 = scmp.lt.s32.totalorder %s19479_s15, %s19479_s15 }
  0x61   :  { %p19486_p13 = por %p19485_p12, %p19484_p11 }
  0x63   :  { %p19487_p0 = pnand %p19486_p13, %p19480_p10 }
  0x65   :  { %19490 = shalt.err (!%p19487_p0)
}
  0x66   :  { %s20082_s13 = smov 256   ;;  %s20083_s16 = smov 16  }
  0x67   :  { %159 = dma.hbm_to_vmem [thread:$0]  %s20152_s29, 32768, %s154_s7, [#allocation12], %s20082_s13, %s20082_s13, %s20083_s16  }
  0x68   :  { %s19499_s21 = scalar_lea.vmem %s177_s11, 64  ;;  %p19504_p2 = scmp.lt.s32.totalorder %s177_s11, %s177_s11 }
  0x69   :  { %p19500_p1 = scmp.ne.s32.totalorder %s177_s11, %s19499_s21  ;;  %p19505_p3 = scmp.lt.s32.totalorder %s19499_s21, %s19499_s21 }
  0x6b   :  { %p19506_p4 = por %p19505_p3, %p19504_p2 }
  0x6d   :  { %p19507_p5 = pnand %p19506_p4, %p19500_p1 }
  0x6f   :  { %19510 = shalt.err (!%p19507_p5)
}
  0x70   :  { %179 = dma.hbm_to_vmem [thread:$0]  %s20162_s8, 64, %s177_s11, [#allocation15]  }
  0x71   :  { %s20084_s18 = smov [#allocation17]   ;;  %s20085_s23 = smov [#allocation20]  }
  0x72   :  { %s198_s22 = sshll.u32 %s20084_s18, 4  ;;  %s220_s0 = sshll.u32 %s20085_s23, 4  ;;  %s199_s22 = int_to_ptr.vmem [resolvable:$true] %s198_s22  ;;  %s221_s0 = int_to_ptr.vmem [resolvable:$true] %s220_s0 }
  0x73   :  { %s19519_s26 = scalar_lea.vmem %s199_s22, 16  ;;  %s19523_s28 = scalar_lea.vmem %s199_s22, 32 }
  0x74   :  { %p19520_p6 = scmp.ne.s32.totalorder %s199_s22, %s19519_s26  ;;  %p19524_p7 = scmp.lt.s32.totalorder %s199_s22, %s199_s22 }
  0x75   :  { %p19525_p8 = scmp.lt.s32.totalorder %s19523_s28, %s19519_s26 }
  0x77   :  { %p19526_p9 = por %p19525_p8, %p19524_p7 }
  0x79   :  { %p19527_p10 = pnand %p19526_p9, %p19520_p6 }
  0x7b   :  { %19530 = shalt.err (!%p19527_p10)
}
  0x7c   :  { %201 = dma.hbm_to_vmem [thread:$0]  %s20172_s19, 16, %s199_s22, [#allocation18]  }
  0x7d   :  { %s19539_s29 = scalar_lea.vmem %s221_s0, 64  ;;  %p19544_p12 = scmp.lt.s32.totalorder %s221_s0, %s221_s0 }
  0x7e   :  { %p19540_p11 = scmp.ne.s32.totalorder %s221_s0, %s19539_s29  ;;  %p19545_p13 = scmp.lt.s32.totalorder %s19539_s29, %s19539_s29 }
  0x80   :  { %p19546_p0 = por %p19545_p13, %p19544_p12 }
  0x82   :  { %p19547_p1 = pnand %p19546_p0, %p19540_p11 }
  0x84   :  { %19550 = shalt.err (!%p19547_p1)
}
  0x85   :  { %223 = dma.hbm_to_vmem [thread:$0]  %s20182_s30, 64, %s221_s0, [#allocation21]  }
  0x86   :  { %s20086_s8 = smov [#allocation23]  }
  0x87   :  { %s245_s1 = sshll.u32 %s20086_s8, 4  ;;  %s246_s1 = int_to_ptr.vmem [resolvable:$true] %s245_s1 }
  0x88   :  { %s19559_s2 = scalar_lea.vmem %s246_s1, 32768  ;;  %p19564_p3 = scmp.lt.s32.totalorder %s246_s1, %s246_s1 }
  0x89   :  { %p19560_p2 = scmp.ne.s32.totalorder %s246_s1, %s19559_s2  ;;  %p19565_p4 = scmp.lt.s32.totalorder %s19559_s2, %s19559_s2 }
  0x8b   :  { %p19566_p5 = por %p19565_p4, %p19564_p3 }
  0x8d   :  { %p19567_p6 = pnand %p19566_p5, %p19560_p2 }
  0x8f   :  { %19570 = shalt.err (!%p19567_p6)
}
  0x90   :  { %251 = dma.hbm_to_vmem [thread:$0]  %s20202_s27, 32768, %s246_s1, [#allocation24], %s20082_s13, %s20082_s13, %s20083_s16  }
  0x91   :  { %s20087_s19 = smov [#allocation26]   ;;  %s20088_s10 = smov [#allocation29]  }
  0x92   :  { %s269_s7 = sshll.u32 %s20087_s19, 4  ;;  %s296_s30 = sshll.u32 %s20088_s10, 4  ;;  %s270_s7 = int_to_ptr.vmem [resolvable:$true] %s269_s7  ;;  %s297_s30 = int_to_ptr.vmem [resolvable:$true] %s296_s30 }
  0x93   :  { %s19579_s11 = scalar_lea.vmem %s270_s7, 4096  ;;  %p19584_p8 = scmp.lt.s32.totalorder %s270_s7, %s270_s7 }
  0x94   :  { %p19580_p7 = scmp.ne.s32.totalorder %s270_s7, %s19579_s11  ;;  %p19585_p9 = scmp.lt.s32.totalorder %s19579_s11, %s19579_s11 }
  0x96   :  { %p19586_p10 = por %p19585_p9, %p19584_p8 }
  0x98   :  { %p19587_p11 = pnand %p19586_p10, %p19580_p7 }
  0x9a   :  { %19590 = shalt.err (!%p19587_p11)
}
  0x9b   :  { %s20089_s15 = smov 64   ;;  %s20090_s21 = smov 4  }
  0x9c   :  { %275 = dma.hbm_to_vmem [thread:$0]  %s20217_s20, 4096, %s270_s7, [#allocation27], %s20089_s15, %s20089_s15, %s20090_s21  }
  0x9d   :  { %s19599_s27 = scalar_lea.vmem %s297_s30, 64  ;;  %p19604_p13 = scmp.lt.s32.totalorder %s297_s30, %s297_s30 }
  0x9e   :  { %p19600_p12 = scmp.ne.s32.totalorder %s297_s30, %s19599_s27  ;;  %p19605_p0 = scmp.lt.s32.totalorder %s19599_s27, %s19599_s27 }
  0xa0   :  { %p19606_p1 = por %p19605_p0, %p19604_p13 }
  0xa2   :  { %p19607_p2 = pnand %p19606_p1, %p19600_p12 }
  0xa4   :  { %19610 = shalt.err (!%p19607_p2)
}
  0xa5   :  { %299 = dma.hbm_to_vmem [thread:$0]  %s20232_s12, 64, %s297_s30, [#allocation30]  }
  0xa6   :  { %s20091_s18 = smov [#allocation32]   ;;  %s20092_s23 = smov [#allocation35]  }
  0xa7   :  { %s320_s22 = sshll.u32 %s20091_s18, 4  ;;  %s342_s0 = sshll.u32 %s20092_s23, 4  ;;  %s321_s22 = int_to_ptr.vmem [resolvable:$true] %s320_s22  ;;  %s343_s0 = int_to_ptr.vmem [resolvable:$true] %s342_s0 }
  0xa8   :  { %s19619_s26 = scalar_lea.vmem %s321_s22, 128  ;;  %p19624_p4 = scmp.lt.s32.totalorder %s321_s22, %s321_s22 }
  0xa9   :  { %p19620_p3 = scmp.ne.s32.totalorder %s321_s22, %s19619_s26  ;;  %p19625_p5 = scmp.lt.s32.totalorder %s19619_s26, %s19619_s26 }
  0xab   :  { %p19626_p6 = por %p19625_p5, %p19624_p4 }
  0xad   :  { %p19627_p7 = pnand %p19626_p6, %p19620_p3 }
  0xaf   :  { %19630 = shalt.err (!%p19627_p7)
}
  0xb0   :  { %323 = dma.hbm_to_vmem [thread:$0]  %s20247_s4, 128, %s321_s22, [#allocation33]  }
  0xb1   :  { %s19639_s20 = scalar_lea.vmem %s343_s0, 64  ;;  %p19644_p9 = scmp.lt.s32.totalorder %s343_s0, %s343_s0 }
  0xb2   :  { %p19640_p8 = scmp.ne.s32.totalorder %s343_s0, %s19639_s20  ;;  %p19645_p10 = scmp.lt.s32.totalorder %s19639_s20, %s19639_s20 }
  0xb4   :  { %p19646_p11 = por %p19645_p10, %p19644_p9 }
  0xb6   :  { %p19647_p12 = pnand %p19646_p11, %p19640_p8 }
  0xb8   :  { %19650 = shalt.err (!%p19647_p12)
}
  0xb9   :  { %345 = dma.hbm_to_vmem [thread:$0]  %s20257_s6, 64, %s343_s0, [#allocation36]  }
  0xba   :  { %s20093_s12 = smov [#allocation38]   ;;  %s20094_s29 = smov [#allocation41]  }
  0xbb   :  { %s361_s28 = sshll.u32 %s20093_s12, 4  ;;  %s388_s8 = sshll.u32 %s20094_s29, 4  ;;  %s362_s28 = int_to_ptr.vmem [resolvable:$true] %s361_s28  ;;  %s389_s8 = int_to_ptr.vmem [resolvable:$true] %s388_s8 }
  0xbc   :  { %s19659_s1 = scalar_lea.vmem %s362_s28, 4096  ;;  %p19664_p0 = scmp.lt.s32.totalorder %s362_s28, %s362_s28 }
  0xbd   :  { %p19660_p13 = scmp.ne.s32.totalorder %s362_s28, %s19659_s1  ;;  %p19665_p1 = scmp.lt.s32.totalorder %s19659_s1, %s19659_s1 }
  0xbf   :  { %p19666_p2 = por %p19665_p1, %p19664_p0 }
  0xc1   :  { %p19667_p3 = pnand %p19666_p2, %p19660_p13 }
  0xc3   :  { %19670 = shalt.err (!%p19667_p3)
}
  0xc4   :  { %367 = dma.hbm_to_vmem [thread:$0]  %s20267_s14, 4096, %s362_s28, [#allocation39], %s20089_s15, %s20089_s15, %s20090_s21  }
  0xc5   :  { %s19679_s4 = scalar_lea.vmem %s389_s8, 64  ;;  %p19684_p5 = scmp.lt.s32.totalorder %s389_s8, %s389_s8 }
  0xc6   :  { %p19680_p4 = scmp.ne.s32.totalorder %s389_s8, %s19679_s4  ;;  %p19685_p6 = scmp.lt.s32.totalorder %s19679_s4, %s19679_s4 }
  0xc8   :  { %p19686_p7 = por %p19685_p6, %p19684_p5 }
  0xca   :  { %p19687_p8 = pnand %p19686_p7, %p19680_p4 }
  0xcc   :  { %19690 = shalt.err (!%p19687_p8)
}
  0xcd   :  { %391 = dma.hbm_to_vmem [thread:$0]  %s20282_s5, 64, %s389_s8, [#allocation42]  }
  0xce   :  { %s20095_s6 = smov [#allocation2]   ;;  %s20096_s19 = smov [#allocation7]  }
  0xcf   :  { %s99_s2 = sshll.u32 %s20095_s6, 4  ;;  %s121_s7 = sshll.u32 %s20096_s19, 4  ;;  %s100_s2 = int_to_ptr.vmem [resolvable:$true] %s99_s2  ;;  %s122_s7 = int_to_ptr.vmem [resolvable:$true] %s121_s7 }
  0xd0   :  { %s19699_s10 = scalar_lea.vmem %s100_s2, 16384  ;;  %p19704_p10 = scmp.lt.s32.totalorder %s100_s2, %s100_s2 }
  0xd1   :  { %p19700_p9 = scmp.ne.s32.totalorder %s100_s2, %s19699_s10  ;;  %p19705_p11 = scmp.lt.s32.totalorder %s19699_s10, %s19699_s10 }
  0xd3   :  { %p19706_p12 = por %p19705_p11, %p19704_p10 }
  0xd5   :  { %p19707_p13 = pnand %p19706_p12, %p19700_p9 }
  0xd7   :  { %19710 = shalt.err (!%p19707_p13)
}
  0xd8   :  { %105 = dma.hbm_to_vmem [thread:$0]  %s20127_s9, 16384, %s100_s2, [#allocation3], %s20082_s13, %s20082_s13, %s20083_s16  }
  0xd9   :  { %s19719_s14 = scalar_lea.vmem %s122_s7, 32768  ;;  %p19724_p1 = scmp.lt.s32.totalorder %s122_s7, %s122_s7 }
  0xda   :  { %p19720_p0 = scmp.ne.s32.totalorder %s122_s7, %s19719_s14  ;;  %p19725_p2 = scmp.lt.s32.totalorder %s19719_s14, %s19719_s14 }
  0xdc   :  { %p19726_p3 = por %p19725_p2, %p19724_p1 }
  0xde   :  { %p19727_p4 = pnand %p19726_p3, %p19720_p0 }
  0xe0   :  { %19730 = shalt.err (!%p19727_p4)
}
  0xe1   :  { %s20097_s5 = smov 512   ;;  %s20098_s30 = smov 32  }
  0xe2   :  { %127 = dma.hbm_to_vmem [thread:$0]  %s20137_s17, 32768, %s122_s7, [#allocation6], %s20097_s5, %s20097_s5, %s20098_s30  }
  0xe3   :  { %s20099_s11 = smov [#allocation10]   ;;  %s20100_s18 = smov [#allocation13]  }
  0xe4   :  { %s144_s27 = sshll.u32 %s20099_s11, 4  ;;  %s166_s9 = sshll.u32 %s20100_s18, 4  ;;  %s145_s27 = int_to_ptr.vmem [resolvable:$true] %s144_s27  ;;  %s167_s9 = int_to_ptr.vmem [resolvable:$true] %s166_s9 }
  0xe5   :  { %s19739_s22 = scalar_lea.vmem %s145_s27, 128  ;;  %p19744_p6 = scmp.lt.s32.totalorder %s145_s27, %s145_s27 }
  0xe6   :  { %p19740_p5 = scmp.ne.s32.totalorder %s145_s27, %s19739_s22  ;;  %p19745_p7 = scmp.lt.s32.totalorder %s19739_s22, %s19739_s22 }
  0xe8   :  { %p19746_p8 = por %p19745_p7, %p19744_p6 }
  0xea   :  { %p19747_p9 = pnand %p19746_p8, %p19740_p5 }
  0xec   :  { %19750 = shalt.err (!%p19747_p9)
}
  0xed   :  { %s21048_s23 = sld [smem:[#allocation64_spill]]  ;;  %s19759_s0 = scalar_lea.vmem %s167_s9, 64 }
  0xee   :  { %p19760_p10 = scmp.ne.s32.totalorder %s167_s9, %s19759_s0  ;;  %p19764_p11 = scmp.lt.s32.totalorder %s167_s9, %s167_s9 }
  0xef   :  { %p19765_p12 = scmp.lt.s32.totalorder %s19759_s0, %s19759_s0 }
  0xf1   :  { %p19766_p13 = por %p19765_p12, %p19764_p11 }
  0xf3   :  { %147 = dma.hbm_to_vmem [thread:$0]  %s21048_s23, 128, %s145_s27, [#allocation9]  }
  0xf4   :  { %p19767_p0 = pnand %p19766_p13, %p19760_p10 }
  0xf6   :  { %19770 = shalt.err (!%p19767_p0)
}
  0xf7   :  { %s21049_s17 = sld [smem:[#allocation65_spill]]  ;;  %s20101_s26 = smov [#allocation16]  }
  0xf8   :  { %s185_s20 = sshll.u32 %s20101_s26, 4  ;;  %s20102_s12 = smov [#allocation19]   ;;  %s186_s20 = int_to_ptr.vmem [resolvable:$true] %s185_s20 }
  0xf9   :  { %s207_s28 = sshll.u32 %s20102_s12, 4  ;;  %s19779_s29 = scalar_lea.vmem %s186_s20, 4096  ;;  %s208_s28 = int_to_ptr.vmem [resolvable:$true] %s207_s28 }
  0xfa   :  { %p19780_p1 = scmp.ne.s32.totalorder %s186_s20, %s19779_s29  ;;  %p19784_p2 = scmp.lt.s32.totalorder %s186_s20, %s186_s20 }
  0xfb   :  { %p19785_p3 = scmp.lt.s32.totalorder %s19779_s29, %s19779_s29 }
  0xfd   :  { %169 = dma.hbm_to_vmem [thread:$0]  %s21049_s17, 64, %s167_s9, [#allocation12]  }
  0xfe   :  { %p19786_p4 = por %p19785_p3, %p19784_p2 }
 0x100   :  { %p19787_p5 = pnand %p19786_p4, %p19780_p1 }
 0x102   :  { %19790 = shalt.err (!%p19787_p5)
}
 0x103   :  { %s21050_s8 = sld [smem:[#allocation66_spill]]  ;;  %s19799_s1 = scalar_lea.vmem %s208_s28, 4096 }
 0x104   :  { %p19800_p6 = scmp.ne.s32.totalorder %s208_s28, %s19799_s1  ;;  %p19804_p7 = scmp.lt.s32.totalorder %s208_s28, %s208_s28 }
 0x105   :  { %p19805_p8 = scmp.lt.s32.totalorder %s19799_s1, %s19799_s1 }
 0x107   :  { %p19806_p9 = por %p19805_p8, %p19804_p7 }
 0x109   :  { %191 = dma.hbm_to_vmem [thread:$0]  %s21050_s8, 4096, %s186_s20, [#allocation15], %s20089_s15, %s20089_s15, %s20090_s21  }
 0x10a   :  { %p19807_p10 = pnand %p19806_p9, %p19800_p6 }
 0x10c   :  { %19810 = shalt.err (!%p19807_p10)
}
 0x10d   :  { %s21051_s4 = sld [smem:[#allocation67_spill]]  ;;  %s20103_s6 = smov [#allocation22]  }
 0x10e   :  { %s229_s2 = sshll.u32 %s20103_s6, 4  ;;  %s20104_s19 = smov [#allocation25]   ;;  %s230_s2 = int_to_ptr.vmem [resolvable:$true] %s229_s2 }
 0x10f   :  { %s260_s7 = sshll.u32 %s20104_s19, 4  ;;  %s19819_s10 = scalar_lea.vmem %s230_s2, 32768  ;;  %s261_s7 = int_to_ptr.vmem [resolvable:$true] %s260_s7 }
 0x110   :  { %p19820_p11 = scmp.ne.s32.totalorder %s230_s2, %s19819_s10  ;;  %p19824_p12 = scmp.lt.s32.totalorder %s230_s2, %s230_s2 }
 0x111   :  { %p19825_p13 = scmp.lt.s32.totalorder %s19819_s10, %s19819_s10 }
 0x113   :  { %213 = dma.hbm_to_vmem [thread:$0]  %s21051_s4, 4096, %s208_s28, [#allocation18], %s20082_s13, %s20082_s13, %s20083_s16  }
 0x114   :  { %p19826_p0 = por %p19825_p13, %p19824_p12 }
 0x116   :  { %p19827_p1 = pnand %p19826_p0, %p19820_p11 }
 0x118   :  { %19830 = shalt.err (!%p19827_p1)
}
 0x119   :  { %s21052_s14 = sld [smem:[#allocation68_spill]]  ;;  %s19839_s11 = scalar_lea.vmem %s261_s7, 64 }
 0x11a   :  { %p19840_p2 = scmp.ne.s32.totalorder %s261_s7, %s19839_s11  ;;  %p19844_p3 = scmp.lt.s32.totalorder %s261_s7, %s261_s7 }
 0x11b   :  { %p19845_p4 = scmp.lt.s32.totalorder %s19839_s11, %s19839_s11 }
 0x11d   :  { %p19846_p5 = por %p19845_p4, %p19844_p3 }
 0x11f   :  { %235 = dma.hbm_to_vmem [thread:$0]  %s21052_s14, 32768, %s230_s2, [#allocation21], %s20097_s5, %s20097_s5, %s20098_s30  }
 0x120   :  { %p19847_p6 = pnand %p19846_p5, %p19840_p2 }
 0x122   :  { %19850 = shalt.err (!%p19847_p6)
}
 0x123   :  { %s21053_s27 = sld [smem:[#allocation72_spill]]  ;;  %s20105_s18 = smov [#allocation28]  }
 0x124   :  { %s283_s9 = sshll.u32 %s20105_s18, 4  ;;  %s20106_s22 = smov [#allocation31]   ;;  %s284_s9 = int_to_ptr.vmem [resolvable:$true] %s283_s9 }
 0x125   :  { %s305_s23 = sshll.u32 %s20106_s22, 4  ;;  %s19859_s0 = scalar_lea.vmem %s284_s9, 4096  ;;  %s306_s23 = int_to_ptr.vmem [resolvable:$true] %s305_s23 }
 0x126   :  { %p19860_p7 = scmp.ne.s32.totalorder %s284_s9, %s19859_s0  ;;  %p19864_p8 = scmp.lt.s32.totalorder %s284_s9, %s284_s9 }
 0x127   :  { %p19865_p9 = scmp.lt.s32.totalorder %s19859_s0, %s19859_s0 }
 0x129   :  { %263 = dma.hbm_to_vmem [thread:$0]  %s21053_s27, 64, %s261_s7, [#allocation24]  }
 0x12a   :  { %p19866_p10 = por %p19865_p9, %p19864_p8 }
 0x12c   :  { %p19867_p11 = pnand %p19866_p10, %p19860_p7 }
 0x12e   :  { %19870 = shalt.err (!%p19867_p11)
}
 0x12f   :  { %s21054_s17 = sld [smem:[#allocation74_spill]]  ;;  %s19879_s26 = scalar_lea.vmem %s306_s23, 32768 }
 0x130   :  { %p19880_p12 = scmp.ne.s32.totalorder %s306_s23, %s19879_s26  ;;  %p19884_p13 = scmp.lt.s32.totalorder %s306_s23, %s306_s23 }
 0x131   :  { %p19885_p0 = scmp.lt.s32.totalorder %s19879_s26, %s19879_s26 }
 0x133   :  { %p19886_p1 = por %p19885_p0, %p19884_p13 }
 0x135   :  { %289 = dma.hbm_to_vmem [thread:$0]  %s21054_s17, 4096, %s284_s9, [#allocation27], %s20082_s13, %s20082_s13, %s20083_s16  }
 0x136   :  { %p19887_p2 = pnand %p19886_p1, %p19880_p12 }
 0x138   :  { %19890 = shalt.err (!%p19887_p2)
}
 0x139   :  { %s21055_s20 = sld [smem:[#allocation75_spill]]  ;;  %s20107_s12 = smov [#allocation34]  }
 0x13a   :  { %s329_s28 = sshll.u32 %s20107_s12, 4  ;;  %s20108_s29 = smov [#allocation37]   ;;  %s330_s28 = int_to_ptr.vmem [resolvable:$true] %s329_s28 }
 0x13b   :  { %s352_s8 = sshll.u32 %s20108_s29, 4  ;;  %s19899_s1 = scalar_lea.vmem %s330_s28, 32768  ;;  %s353_s8 = int_to_ptr.vmem [resolvable:$true] %s352_s8 }
 0x13c   :  { %p19900_p3 = scmp.ne.s32.totalorder %s330_s28, %s19899_s1  ;;  %p19904_p4 = scmp.lt.s32.totalorder %s330_s28, %s330_s28 }
 0x13d   :  { %p19905_p5 = scmp.lt.s32.totalorder %s19899_s1, %s19899_s1 }
 0x13f   :  { %311 = dma.hbm_to_vmem [thread:$0]  %s21055_s20, 32768, %s306_s23, [#allocation30], %s20097_s5, %s20097_s5, %s20098_s30  }
 0x140   :  { %p19906_p6 = por %p19905_p5, %p19904_p4 }
 0x142   :  { %p19907_p7 = pnand %p19906_p6, %p19900_p3 }
 0x144   :  { %19910 = shalt.err (!%p19907_p7)
}
 0x145   :  { %s21056_s4 = sld [smem:[#allocation77_spill]]  ;;  %s19919_s6 = scalar_lea.vmem %s353_s8, 64 }
 0x146   :  { %p19920_p8 = scmp.ne.s32.totalorder %s353_s8, %s19919_s6  ;;  %p19924_p9 = scmp.lt.s32.totalorder %s353_s8, %s353_s8 }
 0x147   :  { %p19925_p10 = scmp.lt.s32.totalorder %s19919_s6, %s19919_s6 }
 0x149   :  { %p19926_p11 = por %p19925_p10, %p19924_p9 }
 0x14b   :  { %335 = dma.hbm_to_vmem [thread:$0]  %s21056_s4, 32768, %s330_s28, [#allocation33], %s20082_s13, %s20082_s13, %s20083_s16  }
 0x14c   :  { %p19927_p12 = pnand %p19926_p11, %p19920_p8 }
 0x14e   :  { %19930 = shalt.err (!%p19927_p12)
}
 0x14f   :  { %s21057_s5 = sld [smem:[#allocation78_spill]]  ;;  %s20109_s30 = smov [#allocation40]  }
 0x150   :  { %s375_s2 = sshll.u32 %s20109_s30, 4  ;;  %s20110_s19 = smov [#allocation43]   ;;  %s376_s2 = int_to_ptr.vmem [resolvable:$true] %s375_s2 }
 0x151   :  { %s397_s7 = sshll.u32 %s20110_s19, 4  ;;  %s19939_s10 = scalar_lea.vmem %s376_s2, 4096  ;;  %s398_s7 = int_to_ptr.vmem [resolvable:$true] %s397_s7 }
 0x152   :  { %p19940_p13 = scmp.ne.s32.totalorder %s376_s2, %s19939_s10  ;;  %p19944_p0 = scmp.lt.s32.totalorder %s376_s2, %s376_s2 }
 0x153   :  { %p19945_p1 = scmp.lt.s32.totalorder %s19939_s10, %s19939_s10 }
 0x155   :  { %355 = dma.hbm_to_vmem [thread:$0]  %s21057_s5, 64, %s353_s8, [#allocation36]  }
 0x156   :  { %p19946_p2 = por %p19945_p1, %p19944_p0 }
 0x158   :  { %p19947_p3 = pnand %p19946_p2, %p19940_p13 }
 0x15a   :  { %19950 = shalt.err (!%p19947_p3)
}
 0x15b   :  { %s21058_s14 = sld [smem:[#allocation80_spill]]  ;;  %s19959_s11 = scalar_lea.vmem %s398_s7, 4096 }
 0x15c   :  { %p19960_p4 = scmp.ne.s32.totalorder %s398_s7, %s19959_s11  ;;  %p19964_p5 = scmp.lt.s32.totalorder %s398_s7, %s398_s7 }
 0x15d   :  { %p19965_p6 = scmp.lt.s32.totalorder %s19959_s11, %s19959_s11 }
 0x15f   :  { %p19966_p7 = por %p19965_p6, %p19964_p5 }
 0x161   :  { %381 = dma.hbm_to_vmem [thread:$0]  %s21058_s14, 4096, %s376_s2, [#allocation39], %s20082_s13, %s20082_s13, %s20083_s16  }
 0x162   :  { %p19967_p8 = pnand %p19966_p7, %p19960_p4 }
 0x164   :  { %19970 = shalt.err (!%p19967_p8)
}
 0x165   :  { %403 = dma.hbm_to_vmem [thread:$0]  %s20287_s25, 4096, %s398_s7, [#allocation42], %s20089_s15, %s20089_s15, %s20090_s21  }
 0x166   :  { %s20111_s27 = smov [#allocation44]  }
 0x167   :  { %s410_s18 = sshll.u32 %s20111_s27, 4  ;;  %s411_s18 = int_to_ptr.vmem [resolvable:$true] %s410_s18 }
 0x168   :  { %s19979_s9 = scalar_lea.vmem %s411_s18, 16  ;;  %s19983_s22 = scalar_lea.vmem %s411_s18, 32 }
 0x169   :  { %p19980_p9 = scmp.ne.s32.totalorder %s411_s18, %s19979_s9  ;;  %p19984_p10 = scmp.lt.s32.totalorder %s411_s18, %s411_s18 }
 0x16a   :  { %p19985_p11 = scmp.lt.s32.totalorder %s19983_s22, %s19979_s9 }
 0x16c   :  { %p19986_p12 = por %p19985_p11, %p19984_p10 }
 0x16e   :  { %p19987_p13 = pnand %p19986_p12, %p19980_p9 }
 0x170   :  { %19990 = shalt.err (!%p19987_p13)
}
 0x171   :  { %413 = dma.hbm_to_vmem [thread:$0]  %s20292_s24, 16, %s411_s18, [#allocation45]  }
 0x172   :  { %20011 = dma.done.wait [#allocation3], 16384  }
 0x173   :  { %20012 = vsyncadd [#allocation3], 4294950912 }
 0x174   :  { %20013 = dma.done.wait [#allocation6], 32832  }
 0x175   :  { %20014 = vsyncadd [#allocation6], 4294934464 }
 0x176   :  { %20015 = dma.done.wait [#allocation9], 256  }
 0x177   :  { %20016 = vsyncadd [#allocation9], 4294967040 }
 0x178   :  { %20017 = dma.done.wait [#allocation12], 32832  }
 0x179   :  { %20018 = vsyncadd [#allocation12], 4294934464 }
 0x17a   :  { %20019 = dma.done.wait [#allocation15], 4160  }
 0x17b   :  { %20020 = vsyncadd [#allocation15], 4294963136 }
 0x17c   :  { %20021 = dma.done.wait [#allocation18], 4112  }
 0x17d   :  { %20022 = vsyncadd [#allocation18], 4294963184 }
 0x17e   :  { %20023 = dma.done.wait [#allocation21], 32832  }
 0x17f   :  { %20024 = vsyncadd [#allocation21], 4294934464 }
 0x180   :  { %20025 = dma.done.wait [#allocation24], 32832  }
 0x181   :  { %20026 = vsyncadd [#allocation24], 4294934464 }
 0x182   :  { %20027 = dma.done.wait [#allocation27], 8192  }
 0x183   :  { %20028 = vsyncadd [#allocation27], 4294959104 }
 0x184   :  { %20029 = dma.done.wait [#allocation30], 32832  }
 0x185   :  { %20030 = vsyncadd [#allocation30], 4294934464 }
 0x186   :  { %20031 = dma.done.wait [#allocation33], 32896  }
 0x187   :  { %20032 = vsyncadd [#allocation33], 4294934400 }
 0x188   :  { %20033 = dma.done.wait [#allocation36], 128  }
 0x189   :  { %20034 = vsyncadd [#allocation36], 4294967168 }
 0x18a   :  { %20035 = dma.done.wait [#allocation39], 8192  }
 0x18b   :  { %20036 = vsyncadd [#allocation39], 4294959104 }
 0x18c   :  { %20037 = dma.done.wait [#allocation42], 4160  }
 0x18d   :  { %20038 = vsyncadd [#allocation42], 4294963136 }
 0x18e   :  { %20039 = dma.done.wait [#allocation45], 16  }
 0x18f   :  { %20040 = vsyncadd [#allocation45], 4294967280  ;;  %v17767_v0 = vld [vmem:[#allocation2 + $0xe4] ss:$16 sps:$4 sm:$0xff]   ;;  %v17771_v2 = vld [vmem:[#allocation2 + $0xe0] ss:$16 sps:$4 sm:$0xff]  }
 0x190   :  { %v17769_v1 = vld [vmem:[#allocation2 + $0x2e4] ss:$16 sps:$4 sm:$0xff]   ;;  %1297 = vmatprep.subr.bf16.mxu0 %v17767_v0  ;;  %v17772_v3 = vld [vmem:[#allocation2 + $0x2e0] ss:$16 sps:$4 sm:$0xff]   ;;  %s21059_s25 = sld [smem:[#allocation63_spill]]  ;;  %s20113_s0 = smov [#allocation46]  }
 0x191   :  { %1338 = vmatprep.subr.bf16.mxu1 %v17769_v1  ;;  %v17773_v4 = vld [vmem:[#allocation2 + $0xc4] ss:$16 sps:$4 sm:$0xff]   ;;  %1298 = vmatpush1.bf16.msra.mxu0 %v17771_v2  ;;  %v17777_v6 = vld [vmem:[#allocation2 + $0xc0] ss:$16 sps:$4 sm:$0xff]   ;;  %s21060_s24 = sld [smem:[#allocation69_spill]]  ;;  %s15558_s17 = sshll.u32 %s20113_s0, 4  ;;  %s15559_s17 = int_to_ptr.vmem [resolvable:$true] %s15558_s17 }
 0x192   :  { %1339 = vmatpush1.bf16.msra.mxu1 %v17772_v3  ;;  %v17775_v5 = vld [vmem:[#allocation2 + $0x2c4] ss:$16 sps:$4 sm:$0xff]   ;;  %1299 = vmatprep.subr.bf16.mxu0 %v17773_v4  ;;  %v17778_v7 = vld [vmem:[#allocation2 + $0x2c0] ss:$16 sps:$4 sm:$0xff]   ;;  %s21061_s13 = sld [smem:[#allocation70_spill]]  ;;  %s19991_s26 = scalar_lea.vmem %s15559_s17, 128 }
 0x193   :  { %1340 = vmatprep.subr.bf16.mxu1 %v17775_v5  ;;  %v17779_v8 = vld [vmem:[#allocation2 + $0xa4] ss:$16 sps:$4 sm:$0xff]   ;;  %v17783_v10 = vld [vmem:[#allocation2 + $0xa0] ss:$16 sps:$4 sm:$0xff]   ;;  %s21062_s16 = sld [smem:[#allocation71_spill]]  ;;  %p19992_p0 = scmp.ne.s32.totalorder %s15559_s17, %s19991_s26 }
 0x194   :  { %v17781_v9 = vld [vmem:[#allocation2 + $0x2a4] ss:$16 sps:$4 sm:$0xff]   ;;  %v17784_v11 = vld [vmem:[#allocation2 + $0x2a0] ss:$16 sps:$4 sm:$0xff]   ;;  %s21063_s15 = sld [smem:[#allocation73_spill]]  ;;  %p19996_p1 = scmp.lt.s32.totalorder %s15559_s17, %s15559_s17 }
 0x195   :  { %1300 = vmatpush1.bf16.msra.mxu0 %v17777_v6  ;;  %v17785_v12 = vld [vmem:[#allocation2 + $0x84] ss:$16 sps:$4 sm:$0xff]   ;;  %v17789_v14 = vld [vmem:[#allocation2 + $0x80] ss:$16 sps:$4 sm:$0xff]   ;;  %v17865_v6 = vld [vmem:[#allocation2 + $0xec] ss:$16 sps:$4 sm:$0xff]   ;;  %p19997_p2 = scmp.lt.s32.totalorder %s19991_s26, %s19991_s26 }
 0x196   :  { %1341 = vmatpush1.bf16.msra.mxu1 %v17778_v7  ;;  %1301 = vmatprep.subr.bf16.mxu0 %v17779_v8  ;;  %v17787_v13 = vld [vmem:[#allocation2 + $0x284] ss:$16 sps:$4 sm:$0xff]   ;;  %v17790_v15 = vld [vmem:[#allocation2 + $0x280] ss:$16 sps:$4 sm:$0xff]   ;;  %v500_v46 = vld [vmem:[%s21059_s25 + $0x8] sm:$0xff]  ;;  %s21064_s21 = sld [smem:[#allocation76_spill]] }
 0x197   :  { %1342 = vmatprep.subr.bf16.mxu1 %v17781_v9  ;;  %v17791_v16 = vld [vmem:[#allocation2 + $0x64] ss:$16 sps:$4 sm:$0xff]   ;;  %v17795_v18 = vld [vmem:[#allocation2 + $0x60] ss:$16 sps:$4 sm:$0xff]   ;;  %v20370_v49 = vpack.c.bf16 %v500_v46, %v500_v46  ;;  %v502_v50 = vld [vmem:[%s21059_s25 + $0x18] sm:$0xff]  ;;  %s21065_s23 = sld [smem:[#allocation79_spill]]  ;;  %p19998_p3 = por %p19997_p2, %p19996_p1 }
 0x198   :  { %v17793_v17 = vld [vmem:[#allocation2 + $0x264] ss:$16 sps:$4 sm:$0xff]   ;;  %v17796_v19 = vld [vmem:[#allocation2 + $0x260] ss:$16 sps:$4 sm:$0xff]   ;;  %v506_v52 = vpack.c.bf16 %v502_v50, %v502_v50  ;;  %v17868_v7 = vld [vmem:[#allocation2 + $0x2ec] ss:$16 sps:$4 sm:$0xff]  }
 0x199   :  { %1302 = vmatpush1.bf16.msra.mxu0 %v17783_v10  ;;  %v17797_v20 = vld [vmem:[#allocation2 + $0x44] ss:$16 sps:$4 sm:$0xff]   ;;  %v17801_v22 = vld [vmem:[#allocation2 + $0x40] ss:$16 sps:$4 sm:$0xff]   ;;  %1329 = vmatprep.mubr.bf16.mxu0 %v20370_v49  ;;  %v17863_v10 = vld [vmem:[#allocation2 + $0xe8] ss:$16 sps:$4 sm:$0xff]   ;;  %p19999_p4 = pnand %p19998_p3, %p19992_p0 }
 0x19a   :  { %1343 = vmatpush1.bf16.msra.mxu1 %v17784_v11  ;;  %1303 = vmatprep.subr.bf16.mxu0 %v17785_v12  ;;  %v17799_v21 = vld [vmem:[#allocation2 + $0x244] ss:$16 sps:$4 sm:$0xff]   ;;  %v17802_v23 = vld [vmem:[#allocation2 + $0x240] ss:$16 sps:$4 sm:$0xff]   ;;  %v17866_v11 = vld [vmem:[#allocation2 + $0x2e8] ss:$16 sps:$4 sm:$0xff]  }
 0x19b   :  { %1344 = vmatprep.subr.bf16.mxu1 %v17787_v13  ;;  %v17803_v24 = vld [vmem:[#allocation2 + $0x24] ss:$16 sps:$4 sm:$0xff]   ;;  %v17807_v26 = vld [vmem:[#allocation2 + $0x20] ss:$16 sps:$4 sm:$0xff]   ;;  %1370 = vmatprep.mubr.bf16.mxu1 %v506_v52  ;;  %v17871_v12 = vld [vmem:[#allocation2 + $0xcc] ss:$16 sps:$4 sm:$0xff]  }
 0x19c   :  { %v17805_v25 = vld [vmem:[#allocation2 + $0x224] ss:$16 sps:$4 sm:$0xff]   ;;  %v17808_v27 = vld [vmem:[#allocation2 + $0x220] ss:$16 sps:$4 sm:$0xff]   ;;  %v17874_v13 = vld [vmem:[#allocation2 + $0x2cc] ss:$16 sps:$4 sm:$0xff]  }
 0x19d   :  { %1304 = vmatpush1.bf16.msra.mxu0 %v17789_v14  ;;  %v17809_v28 = vld [vmem:[#allocation2 + $0x4] ss:$16 sps:$4 sm:$0xff]   ;;  %v17813_v30 = vld [vmem:[#allocation2] ss:$16 sps:$4 sm:$0xff]   ;;  %v17869_v14 = vld [vmem:[#allocation2 + $0xc8] ss:$16 sps:$4 sm:$0xff]  }
 0x19e   :  { %1345 = vmatpush1.bf16.msra.mxu1 %v17790_v15  ;;  %1305 = vmatprep.subr.bf16.mxu0 %v17791_v16  ;;  %v17811_v29 = vld [vmem:[#allocation2 + $0x204] ss:$16 sps:$4 sm:$0xff]   ;;  %v17814_v31 = vld [vmem:[#allocation2 + $0x200] ss:$16 sps:$4 sm:$0xff]   ;;  %v17872_v15 = vld [vmem:[#allocation2 + $0x2c8] ss:$16 sps:$4 sm:$0xff]  }
 0x19f   :  { %1346 = vmatprep.subr.bf16.mxu1 %v17793_v17  ;;  %v17815_v32 = vld [vmem:[#allocation2 + $0x1e4] ss:$16 sps:$4 sm:$0xff]   ;;  %v17819_v34 = vld [vmem:[#allocation2 + $0x1e0] ss:$16 sps:$4 sm:$0xff]   ;;  %v17877_v16 = vld [vmem:[#allocation2 + $0xac] ss:$16 sps:$4 sm:$0xff]  }
 0x1a0   :  { %v17817_v33 = vld [vmem:[#allocation2 + $0x3e4] ss:$16 sps:$4 sm:$0xff]   ;;  %v17820_v35 = vld [vmem:[#allocation2 + $0x3e0] ss:$16 sps:$4 sm:$0xff]   ;;  %v17880_v17 = vld [vmem:[#allocation2 + $0x2ac] ss:$16 sps:$4 sm:$0xff]  }
 0x1a1   :  { %1306 = vmatpush1.bf16.msra.mxu0 %v17795_v18  ;;  %v17821_v36 = vld [vmem:[#allocation2 + $0x1c4] ss:$16 sps:$4 sm:$0xff]   ;;  %v17825_v38 = vld [vmem:[#allocation2 + $0x1c0] ss:$16 sps:$4 sm:$0xff]   ;;  %v17875_v18 = vld [vmem:[#allocation2 + $0xa8] ss:$16 sps:$4 sm:$0xff]  }
 0x1a2   :  { %1347 = vmatpush1.bf16.msra.mxu1 %v17796_v19  ;;  %1307 = vmatprep.subr.bf16.mxu0 %v17797_v20  ;;  %v17823_v37 = vld [vmem:[#allocation2 + $0x3c4] ss:$16 sps:$4 sm:$0xff]   ;;  %v17826_v39 = vld [vmem:[#allocation2 + $0x3c0] ss:$16 sps:$4 sm:$0xff]   ;;  %v17878_v19 = vld [vmem:[#allocation2 + $0x2a8] ss:$16 sps:$4 sm:$0xff]  }
 0x1a3   :  { %1348 = vmatprep.subr.bf16.mxu1 %v17799_v21  ;;  %v17827_v40 = vld [vmem:[#allocation2 + $0x1a4] ss:$16 sps:$4 sm:$0xff]   ;;  %v17831_v42 = vld [vmem:[#allocation2 + $0x1a0] ss:$16 sps:$4 sm:$0xff]   ;;  %v17883_v20 = vld [vmem:[#allocation2 + $0x8c] ss:$16 sps:$4 sm:$0xff]  }
 0x1a4   :  { %v17829_v41 = vld [vmem:[#allocation2 + $0x3a4] ss:$16 sps:$4 sm:$0xff]   ;;  %v17832_v43 = vld [vmem:[#allocation2 + $0x3a0] ss:$16 sps:$4 sm:$0xff]   ;;  %v17886_v21 = vld [vmem:[#allocation2 + $0x28c] ss:$16 sps:$4 sm:$0xff]  }
 0x1a5   :  { %1308 = vmatpush1.bf16.msra.mxu0 %v17801_v22  ;;  %v17833_v44 = vld [vmem:[#allocation2 + $0x184] ss:$16 sps:$4 sm:$0xff]   ;;  %v17837_v47 = vld [vmem:[#allocation2 + $0x180] ss:$16 sps:$4 sm:$0xff]   ;;  %v17881_v22 = vld [vmem:[#allocation2 + $0x88] ss:$16 sps:$4 sm:$0xff]  }
 0x1a6   :  { %1349 = vmatpush1.bf16.msra.mxu1 %v17802_v23  ;;  %1309 = vmatprep.subr.bf16.mxu0 %v17803_v24  ;;  %v17835_v45 = vld [vmem:[#allocation2 + $0x384] ss:$16 sps:$4 sm:$0xff]   ;;  %v17838_v48 = vld [vmem:[#allocation2 + $0x380] ss:$16 sps:$4 sm:$0xff]   ;;  %v17884_v23 = vld [vmem:[#allocation2 + $0x288] ss:$16 sps:$4 sm:$0xff]  }
 0x1a7   :  { %1350 = vmatprep.subr.bf16.mxu1 %v17805_v25  ;;  %v17839_v51 = vld [vmem:[#allocation2 + $0x164] ss:$16 sps:$4 sm:$0xff]   ;;  %v17843_v54 = vld [vmem:[#allocation2 + $0x160] ss:$16 sps:$4 sm:$0xff]   ;;  %v17889_v24 = vld [vmem:[#allocation2 + $0x6c] ss:$16 sps:$4 sm:$0xff]  }
 0x1a8   :  { %v17841_v53 = vld [vmem:[#allocation2 + $0x364] ss:$16 sps:$4 sm:$0xff]   ;;  %v17844_v55 = vld [vmem:[#allocation2 + $0x360] ss:$16 sps:$4 sm:$0xff]   ;;  %v17892_v25 = vld [vmem:[#allocation2 + $0x26c] ss:$16 sps:$4 sm:$0xff]  }
 0x1a9   :  { %1310 = vmatpush1.bf16.msra.mxu0 %v17807_v26  ;;  %v17845_v56 = vld [vmem:[#allocation2 + $0x144] ss:$16 sps:$4 sm:$0xff]   ;;  %v17849_v58 = vld [vmem:[#allocation2 + $0x140] ss:$16 sps:$4 sm:$0xff]   ;;  %v17887_v26 = vld [vmem:[#allocation2 + $0x68] ss:$16 sps:$4 sm:$0xff]  }
 0x1aa   :  { %1351 = vmatpush1.bf16.msra.mxu1 %v17808_v27  ;;  %1311 = vmatprep.subr.bf16.mxu0 %v17809_v28  ;;  %v17847_v57 = vld [vmem:[#allocation2 + $0x344] ss:$16 sps:$4 sm:$0xff]   ;;  %v17850_v59 = vld [vmem:[#allocation2 + $0x340] ss:$16 sps:$4 sm:$0xff]   ;;  %v17890_v27 = vld [vmem:[#allocation2 + $0x268] ss:$16 sps:$4 sm:$0xff]  }
 0x1ab   :  { %1352 = vmatprep.subr.bf16.mxu1 %v17811_v29  ;;  %v17851_v60 = vld [vmem:[#allocation2 + $0x124] ss:$16 sps:$4 sm:$0xff]   ;;  %v17855_v62 = vld [vmem:[#allocation2 + $0x120] ss:$16 sps:$4 sm:$0xff]   ;;  %v17895_v28 = vld [vmem:[#allocation2 + $0x4c] ss:$16 sps:$4 sm:$0xff]  }
 0x1ac   :  { %v17853_v61 = vld [vmem:[#allocation2 + $0x324] ss:$16 sps:$4 sm:$0xff]   ;;  %v17856_v63 = vld [vmem:[#allocation2 + $0x320] ss:$16 sps:$4 sm:$0xff]   ;;  %v17898_v29 = vld [vmem:[#allocation2 + $0x24c] ss:$16 sps:$4 sm:$0xff]  }
 0x1ad   :  { %1312 = vmatpush1.bf16.msra.mxu0 %v17813_v30  ;;  %v17857_v0 = vld [vmem:[#allocation2 + $0x104] ss:$16 sps:$4 sm:$0xff]   ;;  %v17861_v2 = vld [vmem:[#allocation2 + $0x100] ss:$16 sps:$4 sm:$0xff]   ;;  %v17893_v30 = vld [vmem:[#allocation2 + $0x48] ss:$16 sps:$4 sm:$0xff]  }
 0x1ae   :  { %1353 = vmatpush1.bf16.msra.mxu1 %v17814_v31  ;;  %1313 = vmatprep.subr.bf16.mxu0 %v17815_v32  ;;  %v17859_v1 = vld [vmem:[#allocation2 + $0x304] ss:$16 sps:$4 sm:$0xff]   ;;  %v17862_v3 = vld [vmem:[#allocation2 + $0x300] ss:$16 sps:$4 sm:$0xff]   ;;  %v17896_v31 = vld [vmem:[#allocation2 + $0x248] ss:$16 sps:$4 sm:$0xff]  }
 0x1af   :  { %1354 = vmatprep.subr.bf16.mxu1 %v17817_v33  ;;  %v499_v4 = vld [vmem:[%s21059_s25] sm:$0xff]  ;;  %v501_v5 = vld [vmem:[%s21059_s25 + $0x10] sm:$0xff]  ;;  %v17901_v32 = vld [vmem:[#allocation2 + $0x2c] ss:$16 sps:$4 sm:$0xff]  }
 0x1b0   :  { %v20376_v8 = vpack.c.bf16 %v499_v4, %v499_v4  ;;  %v20378_v9 = vpack.c.bf16 %v501_v5, %v501_v5  ;;  %v17904_v33 = vld [vmem:[#allocation2 + $0x22c] ss:$16 sps:$4 sm:$0xff]   ;;  %v17917_v46 = vld [vmem:[#allocation2 + $0x1c8] ss:$16 sps:$4 sm:$0xff]  }
 0x1b1   :  { %1314 = vmatpush2.bf16.msra.mxu0 %v17819_v34  ;;  %v17899_v34 = vld [vmem:[#allocation2 + $0x28] ss:$16 sps:$4 sm:$0xff]   ;;  %v17955_v4 = vld [vmem:[#allocation2 + $0x10c] ss:$16 sps:$4 sm:$0xff]  }
 0x1b2   :  { %1355 = vmatpush2.bf16.msra.mxu1 %v17820_v35  ;;  %1315 = vmatprep.subr.bf16.mxu0 %v17821_v36  ;;  %v17902_v35 = vld [vmem:[#allocation2 + $0x228] ss:$16 sps:$4 sm:$0xff]   ;;  %v17907_v36 = vld [vmem:[#allocation2 + $0xc] ss:$16 sps:$4 sm:$0xff]  }
 0x1b3   :  { %1356 = vmatprep.subr.bf16.mxu1 %v17823_v37  ;;  %v17910_v37 = vld [vmem:[#allocation2 + $0x20c] ss:$16 sps:$4 sm:$0xff]   ;;  %v17923_v50 = vld [vmem:[#allocation2 + $0x1a8] ss:$16 sps:$4 sm:$0xff]  }
 0x1b4   :  { %v17958_v5 = vld [vmem:[#allocation2 + $0x30c] ss:$16 sps:$4 sm:$0xff]  }
 0x1b5   :  { %1316 = vmatpush2.bf16.msra.mxu0 %v17825_v38  ;;  %v17905_v38 = vld [vmem:[#allocation2 + $0x8] ss:$16 sps:$4 sm:$0xff]  }
 0x1b6   :  { %1357 = vmatpush2.bf16.msra.mxu1 %v17826_v39  ;;  %1317 = vmatprep.subr.bf16.mxu0 %v17827_v40  ;;  %v17908_v39 = vld [vmem:[#allocation2 + $0x208] ss:$16 sps:$4 sm:$0xff]   ;;  %v17913_v40 = vld [vmem:[#allocation2 + $0x1ec] ss:$16 sps:$4 sm:$0xff]  }
 0x1b7   :  { %1358 = vmatprep.subr.bf16.mxu1 %v17829_v41  ;;  %v17916_v41 = vld [vmem:[#allocation2 + $0x3ec] ss:$16 sps:$4 sm:$0xff]  }
 0x1b9   :  { %1318 = vmatpush2.bf16.msra.mxu0 %v17831_v42  ;;  %v17911_v42 = vld [vmem:[#allocation2 + $0x1e8] ss:$16 sps:$4 sm:$0xff]  }
 0x1ba   :  { %1359 = vmatpush2.bf16.msra.mxu1 %v17832_v43  ;;  %1319 = vmatprep.subr.bf16.mxu0 %v17833_v44  ;;  %v17914_v43 = vld [vmem:[#allocation2 + $0x3e8] ss:$16 sps:$4 sm:$0xff]   ;;  %v17919_v44 = vld [vmem:[#allocation2 + $0x1cc] ss:$16 sps:$4 sm:$0xff]  }
 0x1bb   :  { %1360 = vmatprep.subr.bf16.mxu1 %v17835_v45  ;;  %v17922_v45 = vld [vmem:[#allocation2 + $0x3cc] ss:$16 sps:$4 sm:$0xff]  }
 0x1bd   :  { %1320 = vmatpush2.bf16.msra.mxu0 %v17837_v47  ;;  %v17920_v47 = vld [vmem:[#allocation2 + $0x3c8] ss:$16 sps:$4 sm:$0xff]  }
 0x1be   :  { %1361 = vmatpush2.bf16.msra.mxu1 %v17838_v48  ;;  %1321 = vmatprep.subr.bf16.mxu0 %v17839_v51  ;;  %v17925_v48 = vld [vmem:[#allocation2 + $0x1ac] ss:$16 sps:$4 sm:$0xff]   ;;  %v17926_v51 = vld [vmem:[#allocation2 + $0x3a8] ss:$16 sps:$4 sm:$0xff]  }
 0x1bf   :  { %1362 = vmatprep.subr.bf16.mxu1 %v17841_v53  ;;  %v17934_v53 = vld [vmem:[#allocation2 + $0x38c] ss:$16 sps:$4 sm:$0xff]  }
 0x1c1   :  { %1322 = vmatpush2.bf16.msra.mxu0 %v17843_v54  ;;  %v17929_v54 = vld [vmem:[#allocation2 + $0x188] ss:$16 sps:$4 sm:$0xff]  }
 0x1c2   :  { %1363 = vmatpush2.bf16.msra.mxu1 %v17844_v55  ;;  %1323 = vmatprep.subr.bf16.mxu0 %v17845_v56  ;;  %v17932_v55 = vld [vmem:[#allocation2 + $0x388] ss:$16 sps:$4 sm:$0xff]   ;;  %v17937_v56 = vld [vmem:[#allocation2 + $0x16c] ss:$16 sps:$4 sm:$0xff]  }
 0x1c3   :  { %1364 = vmatprep.subr.bf16.mxu1 %v17847_v57  ;;  %v17940_v57 = vld [vmem:[#allocation2 + $0x36c] ss:$16 sps:$4 sm:$0xff]  }
 0x1c5   :  { %1324 = vmatpush2.bf16.msra.mxu0 %v17849_v58  ;;  %v17935_v58 = vld [vmem:[#allocation2 + $0x168] ss:$16 sps:$4 sm:$0xff]  }
 0x1c6   :  { %1365 = vmatpush2.bf16.msra.mxu1 %v17850_v59  ;;  %1325 = vmatprep.subr.bf16.mxu0 %v17851_v60  ;;  %v17938_v59 = vld [vmem:[#allocation2 + $0x368] ss:$16 sps:$4 sm:$0xff]   ;;  %v17943_v60 = vld [vmem:[#allocation2 + $0x14c] ss:$16 sps:$4 sm:$0xff]  }
 0x1c7   :  { %1366 = vmatprep.subr.bf16.mxu1 %v17853_v61  ;;  %v17946_v61 = vld [vmem:[#allocation2 + $0x34c] ss:$16 sps:$4 sm:$0xff]  }
 0x1c9   :  { %1326 = vmatpush2.bf16.msra.mxu0 %v17855_v62  ;;  %v17941_v62 = vld [vmem:[#allocation2 + $0x148] ss:$16 sps:$4 sm:$0xff]  }
 0x1ca   :  { %1367 = vmatpush2.bf16.msra.mxu1 %v17856_v63  ;;  %1327 = vmatprep.subr.bf16.mxu0 %v17857_v0  ;;  %v17944_v63 = vld [vmem:[#allocation2 + $0x348] ss:$16 sps:$4 sm:$0xff]   ;;  %v17949_v0 = vld [vmem:[#allocation2 + $0x12c] ss:$16 sps:$4 sm:$0xff]  }
 0x1cb   :  { %1368 = vmatprep.subr.bf16.mxu1 %v17859_v1  ;;  %v17952_v1 = vld [vmem:[#allocation2 + $0x32c] ss:$16 sps:$4 sm:$0xff]  }
 0x1cd   :  { %1328 = vmatpush2.bf16.msra.mxu0 %v17861_v2  ;;  %v17947_v2 = vld [vmem:[#allocation2 + $0x128] ss:$16 sps:$4 sm:$0xff]  }
 0x1ce   :  { %1369 = vmatpush2.bf16.msra.mxu1 %v17862_v3  ;;  %1379 = vmatprep.subr.bf16.mxu0 %v17865_v6  ;;  %v17950_v3 = vld [vmem:[#allocation2 + $0x328] ss:$16 sps:$4 sm:$0xff]  }
 0x1cf   :  { %1420 = vmatprep.subr.bf16.mxu1 %v17868_v7  ;;  %v1521_v6 = vld [vmem:[#allocation7 + $0x1c0] sm:$0xff] }
 0x1d0   :  { %1330 = vmatmul.mubr.bf16.vlgmr.msra.gmra.mxu0 %v20376_v8  ;;  %v1525_v7 = vld [vmem:[#allocation7 + $0x1e0] sm:$0xff] }
 0x1d1   :  { %1371 = vmatmul.mubr.bf16.vlgmr.msra.gmra.mxu1 %v20378_v9  ;;  %1380 = vmatpush1.bf16.msra.mxu0 %v17863_v10  ;;  %v17953_v10 = vld [vmem:[#allocation2 + $0x108] ss:$16 sps:$4 sm:$0xff]  }
 0x1d2   :  { %1421 = vmatpush1.bf16.msra.mxu1 %v17866_v11  ;;  %1381 = vmatprep.subr.bf16.mxu0 %v17871_v12  ;;  %v17956_v11 = vld [vmem:[#allocation2 + $0x308] ss:$16 sps:$4 sm:$0xff]  }
 0x1d3   :  { %1422 = vmatprep.subr.bf16.mxu1 %v17874_v13  ;;  %1411 = vmatprep.mubr.bf16.mxu0 %v20370_v49  ;;  %v17928_v49 = vld [vmem:[#allocation2 + $0x3ac] ss:$16 sps:$4 sm:$0xff]   ;;  %v1513_v12 = vld [vmem:[#allocation7 + $0x180] sm:$0xff] }
 0x1d4   :  { %1452 = vmatprep.mubr.bf16.mxu1 %v506_v52  ;;  %v17931_v52 = vld [vmem:[#allocation2 + $0x18c] ss:$16 sps:$4 sm:$0xff]   ;;  %v1517_v13 = vld [vmem:[#allocation7 + $0x1a0] sm:$0xff] }
 0x1d5   :  { %1382 = vmatpush1.bf16.msra.mxu0 %v17869_v14  ;;  %v15801_v14 = vcombine.high %v1521_v6, %v1525_v7 }
 0x1d6   :  { %1423 = vmatpush1.bf16.msra.mxu1 %v17872_v15  ;;  %1383 = vmatprep.subr.bf16.mxu0 %v17877_v16  ;;  %v15800_v15 = vcombine.low %v1521_v6, %v1525_v7  ;;  %v15793_v16 = vcombine.high %v1513_v12, %v1517_v13 }
 0x1d7   :  { %1424 = vmatprep.subr.bf16.mxu1 %v17880_v17  ;;  %v1505_v17 = vld [vmem:[#allocation7 + $0x140] sm:$0xff] }
 0x1d9   :  { %1384 = vmatpush1.bf16.msra.mxu0 %v17875_v18  ;;  %v1509_v18 = vld [vmem:[#allocation7 + $0x160] sm:$0xff] }
 0x1da   :  { %1425 = vmatpush1.bf16.msra.mxu1 %v17878_v19  ;;  %1385 = vmatprep.subr.bf16.mxu0 %v17883_v20  ;;  %v15792_v19 = vcombine.low %v1513_v12, %v1517_v13  ;;  %v15785_v20 = vcombine.high %v1505_v17, %v1509_v18  ;;  %v1573_v13 = vld [vmem:[#allocation7 + $0x360] sm:$0xff] }
 0x1db   :  { %1426 = vmatprep.subr.bf16.mxu1 %v17886_v21  ;;  %v1497_v21 = vld [vmem:[#allocation7 + $0x100] sm:$0xff] }
 0x1dd   :  { %1386 = vmatpush1.bf16.msra.mxu0 %v17881_v22  ;;  %v1501_v22 = vld [vmem:[#allocation7 + $0x120] sm:$0xff] }
 0x1de   :  { %1427 = vmatpush1.bf16.msra.mxu1 %v17884_v23  ;;  %1387 = vmatprep.subr.bf16.mxu0 %v17889_v24  ;;  %v15784_v23 = vcombine.low %v1505_v17, %v1509_v18  ;;  %v1489_v24 = vld [vmem:[#allocation7 + $0xc0] sm:$0xff] }
 0x1df   :  { %1428 = vmatprep.subr.bf16.mxu1 %v17892_v25  ;;  %v1493_v25 = vld [vmem:[#allocation7 + $0xe0] sm:$0xff] }
 0x1e1   :  { %1388 = vmatpush1.bf16.msra.mxu0 %v17887_v26  ;;  %v15777_v26 = vcombine.high %v1497_v21, %v1501_v22 }
 0x1e2   :  { %1429 = vmatpush1.bf16.msra.mxu1 %v17890_v27  ;;  %1389 = vmatprep.subr.bf16.mxu0 %v17895_v28  ;;  %v1649_v27 = vld [vmem:[#allocation7 + $0x5c0] sm:$0xff] }
 0x1e3   :  { %1430 = vmatprep.subr.bf16.mxu1 %v17898_v29  ;;  %v1653_v28 = vld [vmem:[#allocation7 + $0x5e0] sm:$0xff]  ;;  %v20385_v29 = vld [vmem:[#allocation7 + $0x1c8] sm:$0xff] }
 0x1e5   :  { %1390 = vmatpush1.bf16.msra.mxu0 %v17893_v30  ;;  %v15929_v30 = vcombine.high %v1649_v27, %v1653_v28 }
 0x1e6   :  { %1431 = vmatpush1.bf16.msra.mxu1 %v17896_v31  ;;  %1391 = vmatprep.subr.bf16.mxu0 %v17901_v32  ;;  %v15776_v32 = vcombine.low %v1497_v21, %v1501_v22  ;;  %v1565_v21 = vld [vmem:[#allocation7 + $0x320] sm:$0xff] }
 0x1e7   :  { %1432 = vmatprep.subr.bf16.mxu1 %v17904_v33  ;;  %v1481_v33 = vld [vmem:[#allocation7 + $0x80] sm:$0xff] }
 0x1e8   :  { %v1593_v22 = vld [vmem:[#allocation7 + $0x400] sm:$0xff] }
 0x1e9   :  { %1392 = vmatpush1.bf16.msra.mxu0 %v17899_v34  ;;  %v15769_v34 = vcombine.high %v1489_v24, %v1493_v25 }
 0x1ea   :  { %1433 = vmatpush1.bf16.msra.mxu1 %v17902_v35  ;;  %1393 = vmatprep.subr.bf16.mxu0 %v17907_v36  ;;  %v1485_v35 = vld [vmem:[#allocation7 + $0xa0] sm:$0xff] }
 0x1eb   :  { %1434 = vmatprep.subr.bf16.mxu1 %v17910_v37  ;;  %v1641_v36 = vld [vmem:[#allocation7 + $0x580] sm:$0xff] }
 0x1ec   :  { %v1645_v37 = vld [vmem:[#allocation7 + $0x5a0] sm:$0xff] }
 0x1ed   :  { %1394 = vmatpush1.bf16.msra.mxu0 %v17905_v38  ;;  %v15920_v38 = vcombine.low %v1641_v36, %v1645_v37 }
 0x1ee   :  { %1435 = vmatpush1.bf16.msra.mxu1 %v17908_v39  ;;  %1395 = vmatprep.subr.bf16.mxu0 %v17913_v40  ;;  %v15921_v39 = vcombine.high %v1641_v36, %v1645_v37  ;;  %v15768_v40 = vcombine.low %v1489_v24, %v1493_v25  ;;  %v1545_v36 = vld [vmem:[#allocation7 + $0x280] sm:$0xff] }
 0x1ef   :  { %1436 = vmatprep.subr.bf16.mxu1 %v17916_v41  ;;  %v1473_v41 = vld [vmem:[#allocation7 + $0x40] sm:$0xff] }
 0x1f1   :  { %1396 = vmatpush2.bf16.msra.mxu0 %v17911_v42  ;;  %v15761_v42 = vcombine.high %v1481_v33, %v1485_v35 }
 0x1f2   :  { %1437 = vmatpush2.bf16.msra.mxu1 %v17914_v43  ;;  %1397 = vmatprep.subr.bf16.mxu0 %v17919_v44  ;;  %v1477_v43 = vld [vmem:[#allocation7 + $0x60] sm:$0xff] }
 0x1f3   :  { %1438 = vmatprep.subr.bf16.mxu1 %v17922_v45  ;;  %v1633_v44 = vld [vmem:[#allocation7 + $0x540] sm:$0xff] }
 0x1f4   :  { %v1637_v45 = vld [vmem:[#allocation7 + $0x560] sm:$0xff] }
 0x1f5   :  { %1398 = vmatpush2.bf16.msra.mxu0 %v17917_v46  ;;  %v15912_v46 = vcombine.low %v1633_v44, %v1637_v45 }
 0x1f6   :  { %1439 = vmatpush2.bf16.msra.mxu1 %v17920_v47  ;;  %1399 = vmatprep.subr.bf16.mxu0 %v17925_v48  ;;  %v15913_v47 = vcombine.high %v1633_v44, %v1637_v45  ;;  %v15760_v48 = vcombine.low %v1481_v33, %v1485_v35  ;;  %v1537_v44 = vld [vmem:[#allocation7 + $0x240] sm:$0xff] }
 0x1f7   :  { %1440 = vmatprep.subr.bf16.mxu1 %v17928_v49  ;;  %v1465_v49 = vld [vmem:[#allocation7] sm:$0xff] }
 0x1f9   :  { %1400 = vmatpush2.bf16.msra.mxu0 %v17923_v50  ;;  %v15753_v50 = vcombine.high %v1473_v41, %v1477_v43 }
 0x1fa   :  { %1441 = vmatpush2.bf16.msra.mxu1 %v17926_v51  ;;  %1401 = vmatprep.subr.bf16.mxu0 %v17931_v52  ;;  %v1469_v51 = vld [vmem:[#allocation7 + $0x20] sm:$0xff] }
 0x1fb   :  { %1442 = vmatprep.subr.bf16.mxu1 %v17934_v53  ;;  %v1625_v52 = vld [vmem:[#allocation7 + $0x500] sm:$0xff] }
 0x1fc   :  { %v1629_v53 = vld [vmem:[#allocation7 + $0x520] sm:$0xff] }
 0x1fd   :  { %1402 = vmatpush2.bf16.msra.mxu0 %v17929_v54  ;;  %v15904_v54 = vcombine.low %v1625_v52, %v1629_v53 }
 0x1fe   :  { %1443 = vmatpush2.bf16.msra.mxu1 %v17932_v55  ;;  %1403 = vmatprep.subr.bf16.mxu0 %v17937_v56  ;;  %v15905_v55 = vcombine.high %v1625_v52, %v1629_v53  ;;  %v15752_v56 = vcombine.low %v1473_v41, %v1477_v43  ;;  %v1529_v52 = vld [vmem:[#allocation7 + $0x200] sm:$0xff] }
 0x1ff   :  { %1444 = vmatprep.subr.bf16.mxu1 %v17940_v57  ;;  %v1585_v57 = vld [vmem:[#allocation7 + $0x3c0] sm:$0xff] }
 0x201   :  { %1404 = vmatpush2.bf16.msra.mxu0 %v17935_v58  ;;  %v15745_v58 = vcombine.high %v1465_v49, %v1469_v51 }
 0x202   :  { %1445 = vmatpush2.bf16.msra.mxu1 %v17938_v59  ;;  %1405 = vmatprep.subr.bf16.mxu0 %v17943_v60  ;;  %v1589_v59 = vld [vmem:[#allocation7 + $0x3e0] sm:$0xff] }
 0x203   :  { %1446 = vmatprep.subr.bf16.mxu1 %v17946_v61  ;;  %v1617_v60 = vld [vmem:[#allocation7 + $0x4c0] sm:$0xff] }
 0x204   :  { %v1621_v61 = vld [vmem:[#allocation7 + $0x4e0] sm:$0xff] }
 0x205   :  { %1406 = vmatpush2.bf16.msra.mxu0 %v17941_v62  ;;  %v15896_v62 = vcombine.low %v1617_v60, %v1621_v61 }
 0x206   :  { %1447 = vmatpush2.bf16.msra.mxu1 %v17944_v63  ;;  %1407 = vmatprep.subr.bf16.mxu0 %v17949_v0  ;;  %v15897_v63 = vcombine.high %v1617_v60, %v1621_v61  ;;  %v15744_v0 = vcombine.low %v1465_v49, %v1469_v51  ;;  %v1681_v61 = vld [vmem:[#allocation7 + $0x6c0] sm:$0xff] }
 0x207   :  { %1448 = vmatprep.subr.bf16.mxu1 %v17952_v1  ;;  %v1577_v1 = vld [vmem:[#allocation7 + $0x380] sm:$0xff] }
 0x209   :  { %1408 = vmatpush2.bf16.msra.mxu0 %v17947_v2  ;;  %v15865_v2 = vcombine.high %v1585_v57, %v1589_v59 }
 0x20a   :  { %1449 = vmatpush2.bf16.msra.mxu1 %v17950_v3  ;;  %1409 = vmatprep.subr.bf16.mxu0 %v17955_v4  ;;  %v1581_v3 = vld [vmem:[#allocation7 + $0x3a0] sm:$0xff] }
 0x20b   :  { %1450 = vmatprep.subr.bf16.mxu1 %v17958_v5  ;;  %v1609_v4 = vld [vmem:[#allocation7 + $0x480] sm:$0xff]  ;;  %v15857_v12 = vcombine.high %v1577_v1, %v1581_v3  ;;  %v15856_v18 = vcombine.low %v1577_v1, %v1581_v3 }
 0x20c   :  { %v1613_v5 = vld [vmem:[#allocation7 + $0x4a0] sm:$0xff] }
 0x20d   :  { %1410 = vmatpush2.bf16.msra.mxu0 %v17953_v10  ;;  %v15888_v6 = vcombine.low %v1609_v4, %v1613_v5  ;;  %v15889_v7 = vcombine.high %v1609_v4, %v1613_v5  ;;  %v15864_v10 = vcombine.low %v1585_v57, %v1589_v59  ;;  %v1673_v3 = vld [vmem:[#allocation7 + $0x680] sm:$0xff] }
 0x20e   :  { %1451 = vmatpush2.bf16.msra.mxu1 %v17956_v11  ;;  %3001 = vmatprep.subr.bf16.mxu0 %v15801_v14  ;;  %v1569_v11 = vld [vmem:[#allocation7 + $0x340] sm:$0xff] }
 0x20f   :  { %3042 = vmatprep.subr.bf16.mxu1 %v15929_v30  ;;  %v1601_v14 = vld [vmem:[#allocation7 + $0x440] sm:$0xff] }
 0x210   :  { %1412 = vmatmul.mubr.bf16.vlgmr.msra.gmra.mxu0 %v20376_v8  ;;  %v20387_v8 = vld [vmem:[#allocation7 + $0x1e8] sm:$0xff]  ;;  %v1557_v30 = vld [vmem:[#allocation7 + $0x2e0] sm:$0xff] }
 0x211   :  { %1453 = vmatmul.mubr.bf16.vlgmr.msra.gmra.mxu1 %v20378_v9  ;;  %3002 = vmatpush1.bf16.msra.mxu0 %v15800_v15  ;;  %v15928_v9 = vcombine.low %v1649_v27, %v1653_v28  ;;  %v15802_v31 = vcombine.low %v20385_v29, %v20387_v8  ;;  %v1605_v15 = vld [vmem:[#allocation7 + $0x460] sm:$0xff] }
 0x212   :  { %3003 = vmatprep.subr.bf16.mxu0 %v15793_v16  ;;  %v15880_v16 = vcombine.low %v1601_v14, %v1605_v15  ;;  %v15881_v17 = vcombine.high %v1601_v14, %v1605_v15  ;;  %v1553_v27 = vld [vmem:[#allocation7 + $0x2c0] sm:$0xff] }
 0x213   :  { %3043 = vmatpush1.bf16.msra.mxu1 %v15928_v9  ;;  %v1713_v9 = vld [vmem:[#allocation7 + $0x7c0] sm:$0xff]  ;;  %v15833_v37 = vcombine.high %v1553_v27, %v1557_v30  ;;  %v15832_v43 = vcombine.low %v1553_v27, %v1557_v30 }
 0x214   :  { %3044 = vmatprep.subr.bf16.mxu1 %v15921_v39  ;;  %v1705_v39 = vld [vmem:[#allocation7 + $0x780] sm:$0xff] }
 0x215   :  { %3004 = vmatpush1.bf16.msra.mxu0 %v15792_v19  ;;  %v1561_v19 = vld [vmem:[#allocation7 + $0x300] sm:$0xff] }
 0x216   :  { %3005 = vmatprep.subr.bf16.mxu0 %v15785_v20  ;;  %v15849_v20 = vcombine.high %v1569_v11, %v1573_v13  ;;  %v15841_v28 = vcombine.high %v1561_v19, %v1565_v21  ;;  %v15840_v35 = vcombine.low %v1561_v19, %v1565_v21  ;;  %v1677_v4 = vld [vmem:[#allocation7 + $0x6a0] sm:$0xff]  ;;  %v637_v21 = vlaneseq }
 0x217   :  { %3045 = vmatpush1.bf16.msra.mxu1 %v15920_v38  ;;  %v1549_v38 = vld [vmem:[#allocation7 + $0x2a0] sm:$0xff]  ;;  %v15952_v5 = vcombine.low %v1673_v3, %v1677_v4 }
 0x218   :  { %3046 = vmatprep.subr.bf16.mxu1 %v15913_v47  ;;  %v15825_v45 = vcombine.high %v1545_v36, %v1549_v38  ;;  %v1697_v47 = vld [vmem:[#allocation7 + $0x740] sm:$0xff]  ;;  %v15824_v51 = vcombine.low %v1545_v36, %v1549_v38  ;;  %v1514_v38 = vld [vmem:[#allocation7 + $0x188] sm:$0xff] }
 0x219   :  { %3006 = vmatpush1.bf16.msra.mxu0 %v15784_v23  ;;  %v1597_v23 = vld [vmem:[#allocation7 + $0x420] sm:$0xff] }
 0x21a   :  { %3007 = vmatprep.subr.bf16.mxu0 %v15777_v26  ;;  %v15872_v24 = vcombine.low %v1593_v22, %v1597_v23  ;;  %v15873_v25 = vcombine.high %v1593_v22, %v1597_v23  ;;  %v15848_v26 = vcombine.low %v1569_v11, %v1573_v13  ;;  %v1657_v13 = vld [vmem:[#allocation7 + $0x600] sm:$0xff]  ;;  %v20401_v22 = vshrl.u32 %v637_v21, 7  ;;  %v20403_v23 = vld [vmem:[#allocation5] sm:$0xf]  ;;  %v1566_v21 = vld [vmem:[#allocation7 + $0x328] sm:$0xff] }
 0x21b   :  { %3047 = vmatpush1.bf16.msra.mxu1 %v15912_v46  ;;  %v1541_v46 = vld [vmem:[#allocation7 + $0x260] sm:$0xff] }
 0x21c   :  { %3048 = vmatprep.subr.bf16.mxu1 %v15905_v55  ;;  %v15817_v53 = vcombine.high %v1537_v44, %v1541_v46  ;;  %v1689_v55 = vld [vmem:[#allocation7 + $0x700] sm:$0xff]  ;;  %v15816_v59 = vcombine.low %v1537_v44, %v1541_v46  ;;  %v1506_v46 = vld [vmem:[#allocation7 + $0x148] sm:$0xff] }
 0x21d   :  { %3008 = vmatpush1.bf16.msra.mxu0 %v15776_v32  ;;  %v1717_v32 = vld [vmem:[#allocation7 + $0x7e0] sm:$0xff] }
 0x21e   :  { %3009 = vmatprep.subr.bf16.mxu0 %v15769_v34  ;;  %v15992_v33 = vcombine.low %v1713_v9, %v1717_v32  ;;  %v15993_v34 = vcombine.high %v1713_v9, %v1717_v32  ;;  %v1661_v14 = vld [vmem:[#allocation7 + $0x620] sm:$0xff] }
 0x21f   :  { %3049 = vmatpush1.bf16.msra.mxu1 %v15904_v54  ;;  %v1533_v54 = vld [vmem:[#allocation7 + $0x220] sm:$0xff]  ;;  %v15937_v15 = vcombine.high %v1657_v13, %v1661_v14 }
 0x220   :  { %3050 = vmatprep.subr.bf16.mxu1 %v15897_v63  ;;  %v15809_v60 = vcombine.high %v1529_v52, %v1533_v54  ;;  %v15808_v1 = vcombine.low %v1529_v52, %v1533_v54  ;;  %v1490_v54 = vld [vmem:[#allocation7 + $0xc8] sm:$0xff] }
 0x221   :  { %3010 = vmatpush1.bf16.msra.mxu0 %v15768_v40  ;;  %v1709_v40 = vld [vmem:[#allocation7 + $0x7a0] sm:$0xff] }
 0x222   :  { %3011 = vmatprep.subr.bf16.mxu0 %v15761_v42  ;;  %v15984_v41 = vcombine.low %v1705_v39, %v1709_v40  ;;  %v15985_v42 = vcombine.high %v1705_v39, %v1709_v40  ;;  %v1518_v39 = vld [vmem:[#allocation7 + $0x1a8] sm:$0xff] }
 0x223   :  { %3051 = vmatpush1.bf16.msra.mxu1 %v15896_v62  ;;  %v1685_v62 = vld [vmem:[#allocation7 + $0x6e0] sm:$0xff] }
 0x224   :  { %3052 = vmatprep.subr.bf16.mxu1 %v15889_v7  ;;  %v15960_v63 = vcombine.low %v1681_v61, %v1685_v62  ;;  %v1665_v7 = vld [vmem:[#allocation7 + $0x640] sm:$0xff] }
 0x225   :  { %3012 = vmatpush1.bf16.msra.mxu0 %v15760_v48  ;;  %v1701_v48 = vld [vmem:[#allocation7 + $0x760] sm:$0xff] }
 0x226   :  { %3013 = vmatprep.subr.bf16.mxu0 %v15753_v50  ;;  %v15976_v49 = vcombine.low %v1697_v47, %v1701_v48  ;;  %v15977_v50 = vcombine.high %v1697_v47, %v1701_v48  ;;  %v1510_v47 = vld [vmem:[#allocation7 + $0x168] sm:$0xff]  ;;  %v15794_v48 = vcombine.low %v1514_v38, %v1518_v39 }
 0x227   :  { %3053 = vmatpush1.bf16.msra.mxu1 %v15888_v6  ;;  %v15953_v6 = vcombine.high %v1673_v3, %v1677_v4  ;;  %v15786_v52 = vcombine.low %v1506_v46, %v1510_v47  ;;  %v1586_v3 = vld [vmem:[#allocation7 + $0x3c8] sm:$0xff] }
 0x228   :  { %3054 = vmatprep.subr.bf16.mxu1 %v15881_v17  ;;  %v20393_v17 = vld [vmem:[#allocation7 + $0x5c8] sm:$0xff] }
 0x229   :  { %3014 = vmatpush1.bf16.msra.mxu0 %v15752_v56  ;;  %v1693_v56 = vld [vmem:[#allocation7 + $0x720] sm:$0xff]  ;;  %v1590_v4 = vld [vmem:[#allocation7 + $0x3e8] sm:$0xff] }
 0x22a   :  { %3015 = vmatprep.subr.bf16.mxu0 %v15745_v58  ;;  %v15968_v57 = vcombine.low %v1689_v55, %v1693_v56  ;;  %v15969_v58 = vcombine.high %v1689_v55, %v1693_v56  ;;  %v1494_v55 = vld [vmem:[#allocation7 + $0xe8] sm:$0xff] }
 0x22b   :  { %3055 = vmatpush1.bf16.msra.mxu1 %v15880_v16  ;;  %v15936_v16 = vcombine.low %v1657_v13, %v1661_v14  ;;  %v1570_v13 = vld [vmem:[#allocation7 + $0x348] sm:$0xff] }
 0x22c   :  { %3056 = vmatprep.subr.bf16.mxu1 %v15873_v25  ;;  %v20409_v25 = vsub.s32 1, %v20401_v22  ;;  %v1574_v14 = vld [vmem:[#allocation7 + $0x368] sm:$0xff] }
 0x22d   :  { %3016 = vmatpush1.bf16.msra.mxu0 %v15744_v0  ;;  %v15961_v0 = vcombine.high %v1681_v61, %v1685_v62 }
 0x22e   :  { %3017 = vmatprep.subr.bf16.mxu0 %v15865_v2  ;;  %v15803_v2 = vcombine.high %v20385_v29, %v20387_v8  ;;  %v644_v27 = vrot.slane %v20403_v23, %v20409_v25  ;;  %v1486_v29 = vld [vmem:[#allocation7 + $0xa8] sm:$0xff]  ;;  %v15770_v8 = vcombine.low %v1490_v54, %v1494_v55 }
 0x22f   :  { %3057 = vmatpush1.bf16.msra.mxu1 %v15872_v24  ;;  %v20406_v24 = vsub.s32 0, %v20401_v22 }
 0x230   :  { %3058 = vmatprep.subr.bf16.mxu1 %v15993_v34 }
 0x231   :  { %3018 = vmatpush2.bf16.msra.mxu0 %v15864_v10  ;;  %v1669_v10 = vld [vmem:[#allocation7 + $0x660] sm:$0xff] }
 0x232   :  { %3019 = vmatprep.subr.bf16.mxu0 %v15857_v12  ;;  %v15945_v11 = vcombine.high %v1665_v7, %v1669_v10  ;;  %v15944_v12 = vcombine.low %v1665_v7, %v1669_v10  ;;  %v1578_v7 = vld [vmem:[#allocation7 + $0x388] sm:$0xff] }
 0x233   :  { %3059 = vmatpush2.bf16.msra.mxu1 %v15992_v33  ;;  %v1582_v10 = vld [vmem:[#allocation7 + $0x3a8] sm:$0xff] }
 0x234   :  { %3060 = vmatprep.subr.bf16.mxu1 %v15985_v42 }
 0x235   :  { %3020 = vmatpush2.bf16.msra.mxu0 %v15856_v18  ;;  %v20395_v18 = vld [vmem:[#allocation7 + $0x5e8] sm:$0xff] }
 0x236   :  { %3021 = vmatprep.subr.bf16.mxu0 %v15849_v20  ;;  %v15931_v19 = vcombine.high %v20393_v17, %v20395_v18  ;;  %v15930_v20 = vcombine.low %v20393_v17, %v20395_v18  ;;  %v1618_v18 = vld [vmem:[#allocation7 + $0x4c8] sm:$0xff] }
 0x237   :  { %3061 = vmatpush2.bf16.msra.mxu1 %v15984_v41 }
 0x238   :  { %3062 = vmatprep.subr.bf16.mxu1 %v15977_v50  ;;  %v1498_v50 = vld [vmem:[#allocation7 + $0x108] sm:$0xff] }
 0x239   :  { %3022 = vmatpush2.bf16.msra.mxu0 %v15848_v26  ;;  %v640_v26 = vrot.slane %v20403_v23, %v20406_v24 }
 0x23a   :  { %3023 = vmatprep.subr.bf16.mxu0 %v15841_v28 }
 0x23b   :  { %3063 = vmatpush2.bf16.msra.mxu1 %v15976_v49  ;;  %v15787_v49 = vcombine.high %v1506_v46, %v1510_v47  ;;  %v1530_v47 = vld [vmem:[#allocation7 + $0x208] sm:$0xff] }
 0x23c   :  { %3064 = vmatprep.subr.bf16.mxu1 %v15969_v58  ;;  %v1482_v58 = vld [vmem:[#allocation7 + $0x88] sm:$0xff] }
 0x23d   :  { %3024 = vmatpush2.bf16.msra.mxu0 %v15840_v35  ;;  %v15762_v61 = vcombine.low %v1482_v58, %v1486_v29 }
 0x23e   :  { %3025 = vmatprep.subr.bf16.mxu0 %v15833_v37 }
 0x23f   :  { %3065 = vmatpush2.bf16.msra.mxu1 %v15968_v57  ;;  %v15771_v57 = vcombine.high %v1490_v54, %v1494_v55  ;;  %v1523_v55 = vld [vmem:[#allocation7 + $0x1d0] sm:$0xff] }
 0x240   :  { %3066 = vmatprep.subr.bf16.mxu1 %v15961_v0  ;;  %v1470_v0 = vld [vmem:[#allocation7 + $0x28] sm:$0xff] }
 0x241   :  { %3026 = vmatpush2.bf16.msra.mxu0 %v15832_v43 }
 0x242   :  { %3027 = vmatprep.subr.bf16.mxu0 %v15825_v45  ;;  %v15795_v45 = vcombine.high %v1514_v38, %v1518_v39  ;;  %v1538_v38 = vld [vmem:[#allocation7 + $0x248] sm:$0xff]  ;;  %v20434_v39 = vsub.s32 2, %v20401_v22 }
 0x243   :  { %3067 = vmatpush2.bf16.msra.mxu1 %v15960_v63  ;;  %v1466_v63 = vld [vmem:[#allocation7 + $0x8] sm:$0xff] }
 0x244   :  { %3068 = vmatprep.subr.bf16.mxu1 %v15953_v6  ;;  %v15867_v6 = vcombine.high %v1586_v3, %v1590_v4 }
 0x245   :  { %3028 = vmatpush2.bf16.msra.mxu0 %v15824_v51  ;;  %v1502_v51 = vld [vmem:[#allocation7 + $0x128] sm:$0xff] }
 0x246   :  { %3029 = vmatprep.subr.bf16.mxu0 %v15817_v53  ;;  %v15779_v53 = vcombine.high %v1498_v50, %v1502_v51  ;;  %v15778_v56 = vcombine.low %v1498_v50, %v1502_v51 }
 0x247   :  { %3069 = vmatpush2.bf16.msra.mxu1 %v15952_v5  ;;  %v15746_v5 = vcombine.low %v1466_v63, %v1470_v0 }
 0x248   :  { %3070 = vmatprep.subr.bf16.mxu1 %v15945_v11  ;;  %v15866_v11 = vcombine.low %v1586_v3, %v1590_v4 }
 0x249   :  { %3030 = vmatpush2.bf16.msra.mxu0 %v15816_v59  ;;  %v1474_v59 = vld [vmem:[#allocation7 + $0x48] sm:$0xff] }
 0x24a   :  { %3031 = vmatprep.subr.bf16.mxu0 %v15809_v60  ;;  %v1478_v60 = vld [vmem:[#allocation7 + $0x68] sm:$0xff] }
 0x24b   :  { %3071 = vmatpush2.bf16.msra.mxu1 %v15944_v12  ;;  %v15755_v62 = vcombine.high %v1474_v59, %v1478_v60  ;;  %v15859_v12 = vcombine.high %v1578_v7, %v1582_v10 }
 0x24c   :  { %3072 = vmatprep.subr.bf16.mxu1 %v15937_v15  ;;  %v15858_v15 = vcombine.low %v1578_v7, %v1582_v10  ;;  %v1634_v7 = vld [vmem:[#allocation7 + $0x548] sm:$0xff] }
 0x24d   :  { %3032 = vmatpush2.bf16.msra.mxu0 %v15808_v1  ;;  %v15754_v1 = vcombine.low %v1474_v59, %v1478_v60  ;;  %v1638_v10 = vld [vmem:[#allocation7 + $0x568] sm:$0xff] }
 0x24e   :  { %3083 = vmatprep.subr.bf16.mxu0 %v15803_v2  ;;  %v15747_v2 = vcombine.high %v1466_v63, %v1470_v0  ;;  %v1642_v63 = vld [vmem:[#allocation7 + $0x588] sm:$0xff]  ;;  %v1515_v0 = vld [vmem:[#allocation7 + $0x190] sm:$0xff] }
 0x24f   :  { %3073 = vmatpush2.bf16.msra.mxu1 %v15936_v16  ;;  %v15851_v16 = vcombine.high %v1570_v13, %v1574_v14 }
 0x250   :  { %3124 = vmatprep.subr.bf16.mxu1 %v15931_v19  ;;  %v1562_v19 = vld [vmem:[#allocation7 + $0x308] sm:$0xff] }
 0x290   :  { %v1331_v28 = vpop.f32.mrf.mxu0 }
 0x291   :  { %v1372_v30 = vpop.f32.mrf.mxu1  ;;  %v1332_v9 = vadd.f32 %v1331_v28, %v640_v26  ;;  %v15850_v26 = vcombine.low %v1570_v13, %v1574_v14  ;;  %v1554_v28 = vld [vmem:[#allocation7 + $0x2c8] sm:$0xff]  ;;  %v1511_v13 = vld [vmem:[#allocation7 + $0x170] sm:$0xff] }
 0x292   :  { %v1333_v32 = vpop.f32.mrf.mxu0 }
 0x293   :  { %v1374_v33 = vpop.f32.mrf.mxu1  ;;  %v1334_v34 = vadd.f32 %v1333_v32, %v644_v27  ;;  %v20415_v35 = vadd.f32 %v1372_v30, %v1332_v9  ;;  %v15843_v27 = vcombine.high %v1562_v19, %v1566_v21  ;;  %v1558_v30 = vld [vmem:[#allocation7 + $0x2e8] sm:$0xff]  ;;  %v15842_v9 = vcombine.low %v1562_v19, %v1566_v21 }
 0x294   :  { %v1335_v36 = vpop.f32.mrf.mxu0  ;;  %v15835_v32 = vcombine.high %v1554_v28, %v1558_v30  ;;  %v1626_v21 = vld [vmem:[#allocation7 + $0x508] sm:$0xff] }
 0x295   :  { %v1376_v37 = vpop.f32.mrf.mxu1  ;;  %v20417_v40 = vadd.f32 %v1374_v33, %v1334_v34  ;;  %v20425_v44 = vpack.c.bf16 %v20415_v35, %v20415_v35  ;;  %v1546_v33 = vld [vmem:[#allocation7 + $0x288] sm:$0xff]  ;;  %v15834_v36 = vcombine.low %v1554_v28, %v1558_v30  ;;  %v1499_v30 = vld [vmem:[#allocation7 + $0x110] sm:$0xff] }
 0x296   :  { %v1336_v41 = vpop.f32.mrf.mxu0  ;;  %v1550_v34 = vld [vmem:[#allocation7 + $0x2a8] sm:$0xff] }
 0x297   :  { %v1377_v42 = vpop.f32.mrf.mxu1  ;;  %v20421_v43 = vpack.c.bf16 %v20417_v40, %v20417_v40  ;;  %v15827_v37 = vcombine.high %v1546_v33, %v1550_v34  ;;  %v1542_v41 = vld [vmem:[#allocation7 + $0x268] sm:$0xff] }
 0x298   :  { %v15826_v42 = vcombine.low %v1546_v33, %v1550_v34  ;;  %v15819_v46 = vcombine.high %v1538_v38, %v1542_v41  ;;  %v15818_v50 = vcombine.low %v1538_v38, %v1542_v41 }
 0x299   :  { %3033 = vmatprep.mubr.bf16.mxu0 %v20421_v43 }
 0x29a   :  { %3034 = vmatmul.mubr.bf16.vlgmr.msra.gmra.mxu0 %v20425_v44 }
 0x29b   :  { %3084 = vmatpush1.bf16.msra.mxu0 %v15802_v31  ;;  %3115 = vmatprep.mubr.bf16.mxu0 %v20421_v43  ;;  %v15763_v31 = vcombine.high %v1482_v58, %v1486_v29 }
 0x29c   :  { %3085 = vmatprep.subr.bf16.mxu0 %v15795_v45  ;;  %v20437_v45 = vsub.s32 3, %v20401_v22 }
 0x29e   :  { %v652_v51 = vrot.slane %v20403_v23, %v20437_v45 }
 0x29f   :  { %3086 = vmatpush1.bf16.msra.mxu0 %v15794_v48  ;;  %v648_v48 = vrot.slane %v20403_v23, %v20434_v39  ;;  %v1646_v23 = vld [vmem:[#allocation7 + $0x5a8] sm:$0xff] }
 0x2a0   :  { %3087 = vmatprep.subr.bf16.mxu0 %v15787_v49  ;;  %v1534_v49 = vld [vmem:[#allocation7 + $0x228] sm:$0xff]  ;;  %v15923_v14 = vcombine.high %v1642_v63, %v1646_v23 }
 0x2a1   :  { %v15811_v54 = vcombine.high %v1530_v47, %v1534_v49 }
 0x2a3   :  { %3088 = vmatpush1.bf16.msra.mxu0 %v15786_v52 }
 0x2a4   :  { %3089 = vmatprep.subr.bf16.mxu0 %v15779_v53 }
 0x2a7   :  { %3090 = vmatpush1.bf16.msra.mxu0 %v15778_v56 }
 0x2a8   :  { %3091 = vmatprep.subr.bf16.mxu0 %v15771_v57  ;;  %v1527_v57 = vld [vmem:[#allocation7 + $0x1f0] sm:$0xff] }
 0x2ab   :  { %3092 = vmatpush1.bf16.msra.mxu0 %v15770_v8 }
 0x2ac   :  { %3093 = vmatprep.subr.bf16.mxu0 %v15763_v31  ;;  %v15810_v31 = vcombine.low %v1530_v47, %v1534_v49  ;;  %v1483_v47 = vld [vmem:[#allocation7 + $0x90] sm:$0xff] }
 0x2af   :  { %3094 = vmatpush1.bf16.msra.mxu0 %v15762_v61 }
 0x2b0   :  { %3095 = vmatprep.subr.bf16.mxu0 %v15755_v62  ;;  %v15805_v62 = vcombine.high %v1523_v55, %v1527_v57 }
 0x2b3   :  { %3096 = vmatpush1.bf16.msra.mxu0 %v15754_v1 }
 0x2b4   :  { %3097 = vmatprep.subr.bf16.mxu0 %v15747_v2  ;;  %v1519_v2 = vld [vmem:[#allocation7 + $0x1b0] sm:$0xff] }
 0x2b5   :  { %v15796_v19 = vcombine.low %v1515_v0, %v1519_v2 }
 0x2b7   :  { %3098 = vmatpush1.bf16.msra.mxu0 %v15746_v5 }
 0x2b8   :  { %3099 = vmatprep.subr.bf16.mxu0 %v15867_v6  ;;  %v15804_v6 = vcombine.low %v1523_v55, %v1527_v57  ;;  %v1475_v55 = vld [vmem:[#allocation7 + $0x50] sm:$0xff] }
 0x2bb   :  { %3100 = vmatpush2.bf16.msra.mxu0 %v15866_v11 }
 0x2bc   :  { %3101 = vmatprep.subr.bf16.mxu0 %v15859_v12  ;;  %v1507_v12 = vld [vmem:[#allocation7 + $0x150] sm:$0xff] }
 0x2bd   :  { %v15789_v28 = vcombine.high %v1507_v12, %v1511_v13  ;;  %v15788_v17 = vcombine.low %v1507_v12, %v1511_v13  ;;  %v1591_v12 = vld [vmem:[#allocation7 + $0x3f0] sm:$0xff] }
 0x2bf   :  { %3102 = vmatpush2.bf16.msra.mxu0 %v15858_v15  ;;  %v15797_v15 = vcombine.high %v1515_v0, %v1519_v2 }
 0x2c0   :  { %3103 = vmatprep.subr.bf16.mxu0 %v15851_v16  ;;  %v15922_v16 = vcombine.low %v1642_v63, %v1646_v23  ;;  %v1471_v23 = vld [vmem:[#allocation7 + $0x30] sm:$0xff] }
 0x2c3   :  { %3104 = vmatpush2.bf16.msra.mxu0 %v15850_v26  ;;  %v1630_v26 = vld [vmem:[#allocation7 + $0x528] sm:$0xff] }
 0x2c4   :  { %3105 = vmatprep.subr.bf16.mxu0 %v15843_v27  ;;  %v15915_v27 = vcombine.high %v1634_v7, %v1638_v10  ;;  %v15907_v33 = vcombine.high %v1626_v21, %v1630_v26  ;;  %v15906_v38 = vcombine.low %v1626_v21, %v1630_v26 }
 0x2c7   :  { %3106 = vmatpush2.bf16.msra.mxu0 %v15842_v9  ;;  %v1503_v9 = vld [vmem:[#allocation7 + $0x130] sm:$0xff] }
 0x2c8   :  { %3107 = vmatprep.subr.bf16.mxu0 %v15835_v32  ;;  %v15914_v32 = vcombine.low %v1634_v7, %v1638_v10  ;;  %v15781_v34 = vcombine.high %v1499_v30, %v1503_v9  ;;  %v15780_v41 = vcombine.low %v1499_v30, %v1503_v9  ;;  %v1698_v9 = vld [vmem:[#allocation7 + $0x748] sm:$0xff] }
 0x2cb   :  { %3108 = vmatpush2.bf16.msra.mxu0 %v15834_v36  ;;  %v1491_v36 = vld [vmem:[#allocation7 + $0xd0] sm:$0xff] }
 0x2cc   :  { %3109 = vmatprep.subr.bf16.mxu0 %v15827_v37  ;;  %v1495_v37 = vld [vmem:[#allocation7 + $0xf0] sm:$0xff] }
 0x2cf   :  { %3110 = vmatpush2.bf16.msra.mxu0 %v15826_v42  ;;  %v1610_v42 = vld [vmem:[#allocation7 + $0x488] sm:$0xff] }
 0x2d0   :  { %v1413_v52 = vpop.f32.mrf.mxu0  ;;  %3111 = vmatprep.subr.bf16.mxu0 %v15819_v46  ;;  %v1614_v46 = vld [vmem:[#allocation7 + $0x4a8] sm:$0xff] }
 0x2d1   :  { %v1454_v53 = vpop.f32.mrf.mxu1  ;;  %v1414_v56 = vadd.f32 %v1413_v52, %v648_v48  ;;  %v1487_v48 = vld [vmem:[#allocation7 + $0xb0] sm:$0xff]  ;;  %v15772_v52 = vcombine.low %v1491_v36, %v1495_v37 }
 0x2d2   :  { %v1415_v58 = vpop.f32.mrf.mxu0  ;;  %v15765_v57 = vcombine.high %v1483_v47, %v1487_v48 }
 0x2d3   :  { %v1456_v29 = vpop.f32.mrf.mxu1  ;;  %v1416_v8 = vadd.f32 %v1415_v58, %v652_v51  ;;  %3112 = vmatpush2.bf16.msra.mxu0 %v15818_v50  ;;  %v20443_v59 = vadd.f32 %v1454_v53, %v1414_v56  ;;  %v15773_v50 = vcombine.high %v1491_v36, %v1495_v37  ;;  %v1602_v53 = vld [vmem:[#allocation7 + $0x448] sm:$0xff]  ;;  %v15891_v56 = vcombine.high %v1610_v42, %v1614_v46  ;;  %v1479_v58 = vld [vmem:[#allocation7 + $0x70] sm:$0xff] }
 0x2d4   :  { %v1417_v60 = vpop.f32.mrf.mxu0  ;;  %3113 = vmatprep.subr.bf16.mxu0 %v15811_v54  ;;  %v1606_v54 = vld [vmem:[#allocation7 + $0x468] sm:$0xff]  ;;  %v15757_v63 = vcombine.high %v1475_v55, %v1479_v58  ;;  %v15756_v2 = vcombine.low %v1475_v55, %v1479_v58  ;;  %v1559_v55 = vld [vmem:[#allocation7 + $0x2f0] sm:$0xff] }
 0x2d5   :  { %v1458_v61 = vpop.f32.mrf.mxu1  ;;  %v20445_v1 = vadd.f32 %v1456_v29, %v1416_v8  ;;  %v20453_v11 = vpack.c.bf16 %v20443_v59, %v20443_v59  ;;  %v15890_v29 = vcombine.low %v1610_v42, %v1614_v46  ;;  %v15764_v8 = vcombine.low %v1483_v47, %v1487_v48  ;;  %v1598_v60 = vld [vmem:[#allocation7 + $0x428] sm:$0xff]  ;;  %v1567_v47 = vld [vmem:[#allocation7 + $0x330] sm:$0xff] }
 0x2d6   :  { %v1418_v3 = vpop.f32.mrf.mxu0  ;;  %v1467_v61 = vld [vmem:[#allocation7 + $0x10] sm:$0xff]  ;;  %v15882_v0 = vcombine.low %v1602_v53, %v1606_v54  ;;  %v1690_v37 = vld [vmem:[#allocation7 + $0x708] sm:$0xff] }
 0x2d7   :  { %v1459_v4 = vpop.f32.mrf.mxu1  ;;  %v20449_v5 = vpack.c.bf16 %v20445_v1, %v20445_v1  ;;  %3114 = vmatpush2.bf16.msra.mxu0 %v15810_v31  ;;  %v1594_v31 = vld [vmem:[#allocation7 + $0x408] sm:$0xff]  ;;  %v15749_v10 = vcombine.high %v1467_v61, %v1471_v23 }
 0x2d8   :  { %3165 = vmatprep.subr.bf16.mxu0 %v15805_v62  ;;  %v15883_v62 = vcombine.high %v1602_v53, %v1606_v54  ;;  %v1714_v3 = vld [vmem:[#allocation7 + $0x7c8] sm:$0xff]  ;;  %v15875_v7 = vcombine.high %v1594_v31, %v1598_v60  ;;  %v15874_v13 = vcombine.low %v1594_v31, %v1598_v60 }
 0x2d9   :  { %3074 = vmatprep.mubr.bf16.mxu1 %v20449_v5  ;;  %v1718_v4 = vld [vmem:[#allocation7 + $0x7e8] sm:$0xff] }
 0x2da   :  { %3116 = vmatmul.mubr.bf16.vlgmr.msra.gmra.mxu0 %v20425_v44  ;;  %3075 = vmatmul.mubr.bf16.vlgmr.msra.gmra.mxu1 %v20453_v11  ;;  %v15995_v21 = vcombine.high %v1714_v3, %v1718_v4  ;;  %v1674_v58 = vld [vmem:[#allocation7 + $0x688] sm:$0xff] }
 0x2db   :  { %3125 = vmatpush1.bf16.msra.mxu1 %v15930_v20  ;;  %3166 = vmatpush1.bf16.msra.mxu0 %v15804_v6  ;;  %v1622_v20 = vld [vmem:[#allocation7 + $0x4e8] sm:$0xff]  ;;  %v1587_v6 = vld [vmem:[#allocation7 + $0x3d0] sm:$0xff] }
 0x2dc   :  { %3197 = vmatprep.mubr.bf16.mxu0 %v20421_v43  ;;  %3156 = vmatprep.mubr.bf16.mxu1 %v20449_v5  ;;  %v15899_v49 = vcombine.high %v1618_v18, %v1622_v20  ;;  %v15898_v51 = vcombine.low %v1618_v18, %v1622_v20  ;;  %v15869_v26 = vcombine.high %v1587_v6, %v1591_v12 }
 0x2dd   :  { %3126 = vmatprep.subr.bf16.mxu1 %v15923_v14  ;;  %3167 = vmatprep.subr.bf16.mxu0 %v15797_v15  ;;  %v15748_v14 = vcombine.low %v1467_v61, %v1471_v23  ;;  %v1706_v15 = vld [vmem:[#allocation7 + $0x788] sm:$0xff]  ;;  %v15868_v30 = vcombine.low %v1587_v6, %v1591_v12  ;;  %v1551_v61 = vld [vmem:[#allocation7 + $0x2b0] sm:$0xff] }
 0x2de   :  { %v1666_v23 = vld [vmem:[#allocation7 + $0x648] sm:$0xff]  ;;  %v1543_v6 = vld [vmem:[#allocation7 + $0x270] sm:$0xff] }
 0x2df   :  { %3127 = vmatpush1.bf16.msra.mxu1 %v15922_v16  ;;  %3168 = vmatpush1.bf16.msra.mxu0 %v15796_v19  ;;  %v1710_v16 = vld [vmem:[#allocation7 + $0x7a8] sm:$0xff]  ;;  %v1579_v19 = vld [vmem:[#allocation7 + $0x390] sm:$0xff] }
 0x2e0   :  { %3128 = vmatprep.subr.bf16.mxu1 %v15915_v27  ;;  %3169 = vmatprep.subr.bf16.mxu0 %v15789_v28  ;;  %v1583_v27 = vld [vmem:[#allocation7 + $0x3b0] sm:$0xff]  ;;  %v15994_v28 = vcombine.low %v1714_v3, %v1718_v4  ;;  %v15987_v18 = vcombine.high %v1706_v15, %v1710_v16  ;;  %v1658_v12 = vld [vmem:[#allocation7 + $0x608] sm:$0xff] }
 0x2e1   :  { %v15861_v20 = vcombine.high %v1579_v19, %v1583_v27  ;;  %v15860_v36 = vcombine.low %v1579_v19, %v1583_v27  ;;  %v1535_v19 = vld [vmem:[#allocation7 + $0x230] sm:$0xff] }
 0x2e2   :  { %v1651_v27 = vld [vmem:[#allocation7 + $0x5d0] sm:$0xff] }
 0x2e3   :  { %3129 = vmatpush1.bf16.msra.mxu1 %v15914_v32  ;;  %3170 = vmatpush1.bf16.msra.mxu0 %v15788_v17  ;;  %v1702_v32 = vld [vmem:[#allocation7 + $0x768] sm:$0xff]  ;;  %v1571_v17 = vld [vmem:[#allocation7 + $0x350] sm:$0xff] }
 0x2e4   :  { %3130 = vmatprep.subr.bf16.mxu1 %v15907_v33  ;;  %3171 = vmatprep.subr.bf16.mxu0 %v15781_v34  ;;  %v1575_v33 = vld [vmem:[#allocation7 + $0x370] sm:$0xff]  ;;  %v15986_v34 = vcombine.low %v1706_v15, %v1710_v16  ;;  %v15979_v42 = vcombine.high %v1698_v9, %v1702_v32  ;;  %v15978_v48 = vcombine.low %v1698_v9, %v1702_v32 }
 0x2e5   :  { %v15853_v46 = vcombine.high %v1571_v17, %v1575_v33 }
 0x2e7   :  { %3131 = vmatpush1.bf16.msra.mxu1 %v15906_v38  ;;  %3172 = vmatpush1.bf16.msra.mxu0 %v15780_v41  ;;  %v1694_v38 = vld [vmem:[#allocation7 + $0x728] sm:$0xff]  ;;  %v1563_v41 = vld [vmem:[#allocation7 + $0x310] sm:$0xff] }
 0x2e8   :  { %3132 = vmatprep.subr.bf16.mxu1 %v15899_v49  ;;  %3173 = vmatprep.subr.bf16.mxu0 %v15773_v50  ;;  %v15852_v49 = vcombine.low %v1571_v17, %v1575_v33  ;;  %v1682_v50 = vld [vmem:[#allocation7 + $0x6c8] sm:$0xff]  ;;  %v15971_v53 = vcombine.high %v1690_v37, %v1694_v38  ;;  %v15845_v54 = vcombine.high %v1563_v41, %v1567_v47  ;;  %v1528_v17 = vld [vmem:[#allocation7 + $0x1f8] sm:$0xff] }
 0x2eb   :  { %3133 = vmatpush1.bf16.msra.mxu1 %v15898_v51  ;;  %3174 = vmatpush1.bf16.msra.mxu0 %v15772_v52  ;;  %v1686_v51 = vld [vmem:[#allocation7 + $0x6e8] sm:$0xff]  ;;  %v1555_v52 = vld [vmem:[#allocation7 + $0x2d0] sm:$0xff] }
 0x2ec   :  { %3134 = vmatprep.subr.bf16.mxu1 %v15891_v56  ;;  %3175 = vmatprep.subr.bf16.mxu0 %v15765_v57  ;;  %v15970_v56 = vcombine.low %v1690_v37, %v1694_v38  ;;  %v15844_v57 = vcombine.low %v1563_v41, %v1567_v47  ;;  %v15963_v31 = vcombine.high %v1682_v50, %v1686_v51  ;;  %v1647_v37 = vld [vmem:[#allocation7 + $0x5b0] sm:$0xff]  ;;  %v1516_v38 = vld [vmem:[#allocation7 + $0x198] sm:$0xff] }
 0x2ed   :  { %v15837_v60 = vcombine.high %v1555_v52, %v1559_v55  ;;  %v1520_v41 = vld [vmem:[#allocation7 + $0x1b8] sm:$0xff]  ;;  %v1639_v47 = vld [vmem:[#allocation7 + $0x570] sm:$0xff] }
 0x2ef   :  { %3135 = vmatpush1.bf16.msra.mxu1 %v15890_v29  ;;  %3176 = vmatpush1.bf16.msra.mxu0 %v15764_v8  ;;  %v1678_v29 = vld [vmem:[#allocation7 + $0x6a8] sm:$0xff]  ;;  %v1547_v8 = vld [vmem:[#allocation7 + $0x290] sm:$0xff] }
 0x2f0   :  { %3136 = vmatprep.subr.bf16.mxu1 %v15883_v62  ;;  %3177 = vmatprep.subr.bf16.mxu0 %v15757_v63  ;;  %v15962_v62 = vcombine.low %v1682_v50, %v1686_v51  ;;  %v15836_v63 = vcombine.low %v1555_v52, %v1559_v55  ;;  %v15955_v3 = vcombine.high %v1674_v58, %v1678_v29  ;;  %v1512_v50 = vld [vmem:[#allocation7 + $0x178] sm:$0xff] }
 0x2f1   :  { %v15829_v4 = vcombine.high %v1547_v8, %v1551_v61  ;;  %v15799_v52 = vcombine.high %v1516_v38, %v1520_v41  ;;  %v15798_v55 = vcombine.low %v1516_v38, %v1520_v41  ;;  %v1719_v38 = vld [vmem:[#allocation7 + $0x7f0] sm:$0xff] }
 0x2f3   :  { %3137 = vmatpush1.bf16.msra.mxu1 %v15882_v0  ;;  %3178 = vmatpush1.bf16.msra.mxu0 %v15756_v2  ;;  %v1670_v0 = vld [vmem:[#allocation7 + $0x668] sm:$0xff]  ;;  %v1539_v2 = vld [vmem:[#allocation7 + $0x250] sm:$0xff] }
 0x2f4   :  { %3138 = vmatprep.subr.bf16.mxu1 %v15875_v7  ;;  %3179 = vmatprep.subr.bf16.mxu0 %v15749_v10  ;;  %v15954_v7 = vcombine.low %v1674_v58, %v1678_v29  ;;  %v15828_v10 = vcombine.low %v1547_v8, %v1551_v61  ;;  %v15947_v15 = vcombine.high %v1666_v23, %v1670_v0  ;;  %v1500_v29 = vld [vmem:[#allocation7 + $0x118] sm:$0xff]  ;;  %v1623_v61 = vld [vmem:[#allocation7 + $0x4f0] sm:$0xff] }
 0x2f5   :  { %v15821_v16 = vcombine.high %v1539_v2, %v1543_v6  ;;  %v1504_v8 = vld [vmem:[#allocation7 + $0x138] sm:$0xff] }
 0x2f7   :  { %3139 = vmatpush1.bf16.msra.mxu1 %v15874_v13  ;;  %3180 = vmatpush1.bf16.msra.mxu0 %v15748_v14  ;;  %v1662_v13 = vld [vmem:[#allocation7 + $0x628] sm:$0xff]  ;;  %v1531_v14 = vld [vmem:[#allocation7 + $0x210] sm:$0xff] }
 0x2f8   :  { %3140 = vmatprep.subr.bf16.mxu1 %v15995_v21  ;;  %3181 = vmatprep.subr.bf16.mxu0 %v15869_v26  ;;  %v15946_v21 = vcombine.low %v1666_v23, %v1670_v0  ;;  %v15820_v26 = vcombine.low %v1539_v2, %v1543_v6  ;;  %v15939_v9 = vcombine.high %v1658_v12, %v1662_v13  ;;  %v1492_v23 = vld [vmem:[#allocation7 + $0xd8] sm:$0xff] }
 0x2f9   :  { %v15813_v32 = vcombine.high %v1531_v14, %v1535_v19  ;;  %v15783_v0 = vcombine.high %v1500_v29, %v1504_v8  ;;  %v15782_v6 = vcombine.low %v1500_v29, %v1504_v8  ;;  %v1703_v29 = vld [vmem:[#allocation7 + $0x770] sm:$0xff] }
 0x2fb   :  { %3141 = vmatpush2.bf16.msra.mxu1 %v15994_v28  ;;  %3182 = vmatpush2.bf16.msra.mxu0 %v15868_v30  ;;  %v1655_v28 = vld [vmem:[#allocation7 + $0x5f0] sm:$0xff]  ;;  %v1524_v30 = vld [vmem:[#allocation7 + $0x1d8] sm:$0xff] }
 0x2fc   :  { %3142 = vmatprep.subr.bf16.mxu1 %v15987_v18  ;;  %3183 = vmatprep.subr.bf16.mxu0 %v15861_v20  ;;  %v15938_v18 = vcombine.low %v1658_v12, %v1662_v13  ;;  %v15812_v20 = vcombine.low %v1531_v14, %v1535_v19  ;;  %v15933_v33 = vcombine.high %v1651_v27, %v1655_v28  ;;  %v1488_v12 = vld [vmem:[#allocation7 + $0xb8] sm:$0xff] }
 0x2ff   :  { %3143 = vmatpush2.bf16.msra.mxu1 %v15986_v34  ;;  %3184 = vmatpush2.bf16.msra.mxu0 %v15860_v36  ;;  %v15807_v34 = vcombine.high %v1524_v30, %v1528_v17  ;;  %v1643_v36 = vld [vmem:[#allocation7 + $0x590] sm:$0xff] }
 0x300   :  { %3144 = vmatprep.subr.bf16.mxu1 %v15979_v42  ;;  %3185 = vmatprep.subr.bf16.mxu0 %v15853_v46  ;;  %v15932_v42 = vcombine.low %v1651_v27, %v1655_v28  ;;  %v1635_v46 = vld [vmem:[#allocation7 + $0x550] sm:$0xff]  ;;  %v15925_v51 = vcombine.high %v1643_v36, %v1647_v37  ;;  %v1476_v27 = vld [vmem:[#allocation7 + $0x58] sm:$0xff] }
 0x301   :  { %v1480_v28 = vld [vmem:[#allocation7 + $0x78] sm:$0xff] }
 0x302   :  { %v15758_v41 = vcombine.low %v1476_v27, %v1480_v28 }
 0x303   :  { %3145 = vmatpush2.bf16.msra.mxu1 %v15978_v48  ;;  %3186 = vmatpush2.bf16.msra.mxu0 %v15852_v49  ;;  %v15806_v48 = vcombine.low %v1524_v30, %v1528_v17  ;;  %v1508_v49 = vld [vmem:[#allocation7 + $0x158] sm:$0xff] }
 0x304   :  { %3146 = vmatprep.subr.bf16.mxu1 %v15971_v53  ;;  %3187 = vmatprep.subr.bf16.mxu0 %v15845_v54  ;;  %v15924_v53 = vcombine.low %v1643_v36, %v1647_v37  ;;  %v1627_v54 = vld [vmem:[#allocation7 + $0x510] sm:$0xff]  ;;  %v15791_v58 = vcombine.high %v1508_v49, %v1512_v50 }
 0x305   :  { %v1715_v37 = vld [vmem:[#allocation7 + $0x7d0] sm:$0xff] }
 0x307   :  { %3147 = vmatpush2.bf16.msra.mxu1 %v15970_v56  ;;  %3188 = vmatpush2.bf16.msra.mxu0 %v15844_v57  ;;  %v15917_v56 = vcombine.high %v1635_v46, %v1639_v47  ;;  %v1631_v57 = vld [vmem:[#allocation7 + $0x530] sm:$0xff] }
 0x308   :  { %3148 = vmatprep.subr.bf16.mxu1 %v15963_v31  ;;  %3189 = vmatprep.subr.bf16.mxu0 %v15837_v60  ;;  %v15916_v31 = vcombine.low %v1635_v46, %v1639_v47  ;;  %v1619_v60 = vld [vmem:[#allocation7 + $0x4d0] sm:$0xff]  ;;  %v15908_v2 = vcombine.low %v1627_v54, %v1631_v57  ;;  %v1588_v46 = vld [vmem:[#allocation7 + $0x3d8] sm:$0xff] }
 0x309   :  { %v15900_v14 = vcombine.low %v1619_v60, %v1623_v61  ;;  %v1592_v47 = vld [vmem:[#allocation7 + $0x3f8] sm:$0xff] }
 0x30a   :  { %v15870_v8 = vcombine.low %v1588_v46, %v1592_v47 }
 0x30b   :  { %3149 = vmatpush2.bf16.msra.mxu1 %v15962_v62  ;;  %3190 = vmatpush2.bf16.msra.mxu0 %v15836_v63  ;;  %v15790_v62 = vcombine.low %v1508_v49, %v1512_v50  ;;  %v15909_v63 = vcombine.high %v1627_v54, %v1631_v57  ;;  %v1707_v50 = vld [vmem:[#allocation7 + $0x790] sm:$0xff]  ;;  %v1580_v54 = vld [vmem:[#allocation7 + $0x398] sm:$0xff]  ;;  %v15996_v57 = vcombine.low %v1715_v37, %v1719_v38 }
 0x30c   :  { %3150 = vmatprep.subr.bf16.mxu1 %v15955_v3  ;;  %3191 = vmatprep.subr.bf16.mxu0 %v15829_v4  ;;  %v1611_v3 = vld [vmem:[#allocation7 + $0x490] sm:$0xff] }
 0x30d   :  { %v1615_v4 = vld [vmem:[#allocation7 + $0x4b0] sm:$0xff] }
 0x30e   :  { %v15892_v30 = vcombine.low %v1611_v3, %v1615_v4 }
 0x30f   :  { %3151 = vmatpush2.bf16.msra.mxu1 %v15954_v7  ;;  %3192 = vmatpush2.bf16.msra.mxu0 %v15828_v10  ;;  %v15901_v7 = vcombine.high %v1619_v60, %v1623_v61  ;;  %v1484_v10 = vld [vmem:[#allocation7 + $0x98] sm:$0xff] }
 0x310   :  { %3152 = vmatprep.subr.bf16.mxu1 %v15947_v15  ;;  %3193 = vmatprep.subr.bf16.mxu0 %v15821_v16  ;;  %v15893_v16 = vcombine.high %v1611_v3, %v1615_v4  ;;  %v15767_v19 = vcombine.high %v1484_v10, %v1488_v12  ;;  %v15766_v17 = vcombine.low %v1484_v10, %v1488_v12  ;;  %v1572_v60 = vld [vmem:[#allocation7 + $0x358] sm:$0xff]  ;;  %v1683_v10 = vld [vmem:[#allocation7 + $0x6d0] sm:$0xff] }
 0x311   :  { %v1576_v61 = vld [vmem:[#allocation7 + $0x378] sm:$0xff]  ;;  %v1687_v12 = vld [vmem:[#allocation7 + $0x6f0] sm:$0xff] }
 0x312   :  { %v1564_v3 = vld [vmem:[#allocation7 + $0x318] sm:$0xff] }
 0x313   :  { %3153 = vmatpush2.bf16.msra.mxu1 %v15946_v21  ;;  %3194 = vmatpush2.bf16.msra.mxu0 %v15820_v26  ;;  %v1603_v21 = vld [vmem:[#allocation7 + $0x450] sm:$0xff]  ;;  %v1568_v4 = vld [vmem:[#allocation7 + $0x338] sm:$0xff] }
 0x314   :  { %3154 = vmatprep.subr.bf16.mxu1 %v15939_v9  ;;  %3195 = vmatprep.subr.bf16.mxu0 %v15813_v32  ;;  %v1607_v26 = vld [vmem:[#allocation7 + $0x470] sm:$0xff] }
 0x315   :  { %v1595_v9 = vld [vmem:[#allocation7 + $0x410] sm:$0xff]  ;;  %v15884_v36 = vcombine.low %v1603_v21, %v1607_v26 }
 0x316   :  { %v1599_v32 = vld [vmem:[#allocation7 + $0x430] sm:$0xff] }
 0x317   :  { %3155 = vmatpush2.bf16.msra.mxu1 %v15938_v18  ;;  %3196 = vmatpush2.bf16.msra.mxu0 %v15812_v20  ;;  %v15885_v18 = vcombine.high %v1603_v21, %v1607_v26  ;;  %v1468_v20 = vld [vmem:[#allocation7 + $0x18] sm:$0xff]  ;;  %v15876_v49 = vcombine.low %v1595_v9, %v1599_v32  ;;  %v1675_v26 = vld [vmem:[#allocation7 + $0x690] sm:$0xff] }
 0x318   :  { %3206 = vmatprep.subr.bf16.mxu1 %v15933_v33  ;;  %3247 = vmatprep.subr.bf16.mxu0 %v15807_v34  ;;  %v1472_v33 = vld [vmem:[#allocation7 + $0x38] sm:$0xff]  ;;  %v15759_v34 = vcombine.high %v1476_v27, %v1480_v28  ;;  %v1679_v27 = vld [vmem:[#allocation7 + $0x6b0] sm:$0xff]  ;;  %v15846_v28 = vcombine.low %v1564_v3, %v1568_v4 }
 0x31a   :  { %3157 = vmatmul.mubr.bf16.vlgmr.msra.gmra.mxu1 %v20453_v11  ;;  %3198 = vmatmul.mubr.bf16.vlgmr.msra.gmra.mxu0 %v20425_v44 }
 0x31b   :  { %3207 = vmatpush1.bf16.msra.mxu1 %v15932_v42  ;;  %3238 = vmatprep.mubr.bf16.mxu1 %v20449_v5  ;;  %v15877_v42 = vcombine.high %v1595_v9, %v1599_v32  ;;  %v1548_v9 = vld [vmem:[#allocation7 + $0x298] sm:$0xff] }
 0x31c   :  { %3248 = vmatpush1.bf16.msra.mxu0 %v15806_v48  ;;  %3279 = vmatprep.mubr.bf16.mxu0 %v20421_v43  ;;  %v1496_v43 = vld [vmem:[#allocation7 + $0xf8] sm:$0xff]  ;;  %v15751_v48 = vcombine.high %v1468_v20, %v1472_v33 }
 0x31d   :  { %3208 = vmatprep.subr.bf16.mxu1 %v15925_v51  ;;  %3249 = vmatprep.subr.bf16.mxu0 %v15799_v52  ;;  %v15775_v13 = vcombine.high %v1492_v23, %v1496_v43  ;;  %v15774_v15 = vcombine.low %v1492_v23, %v1496_v43  ;;  %v1711_v51 = vld [vmem:[#allocation7 + $0x7b0] sm:$0xff]  ;;  %v15750_v52 = vcombine.low %v1468_v20, %v1472_v33  ;;  %v1552_v32 = vld [vmem:[#allocation7 + $0x2b8] sm:$0xff] }
 0x31e   :  { %v1691_v23 = vld [vmem:[#allocation7 + $0x710] sm:$0xff] }
 0x31f   :  { %3209 = vmatpush1.bf16.msra.mxu1 %v15924_v53  ;;  %v15997_v53 = vcombine.high %v1715_v37, %v1719_v38  ;;  %v1667_v20 = vld [vmem:[#allocation7 + $0x650] sm:$0xff]  ;;  %v1540_v37 = vld [vmem:[#allocation7 + $0x258] sm:$0xff] }
 0x320   :  { %3250 = vmatpush1.bf16.msra.mxu0 %v15798_v55  ;;  %3210 = vmatprep.subr.bf16.mxu1 %v15917_v56  ;;  %v1584_v55 = vld [vmem:[#allocation7 + $0x3b8] sm:$0xff]  ;;  %v15871_v56 = vcombine.high %v1588_v46, %v1592_v47  ;;  %v1671_v33 = vld [vmem:[#allocation7 + $0x670] sm:$0xff] }
 0x321   :  { %3251 = vmatprep.subr.bf16.mxu0 %v15791_v58  ;;  %v1699_v58 = vld [vmem:[#allocation7 + $0x750] sm:$0xff]  ;;  %v15862_v43 = vcombine.low %v1580_v54, %v1584_v55  ;;  %v1544_v38 = vld [vmem:[#allocation7 + $0x278] sm:$0xff] }
 0x322   :  { %v1659_v46 = vld [vmem:[#allocation7 + $0x610] sm:$0xff] }
 0x323   :  { %3211 = vmatpush1.bf16.msra.mxu1 %v15916_v31  ;;  %v15989_v31 = vcombine.high %v1707_v50, %v1711_v51  ;;  %v1663_v47 = vld [vmem:[#allocation7 + $0x630] sm:$0xff] }
 0x324   :  { %3252 = vmatpush1.bf16.msra.mxu0 %v15790_v62  ;;  %3212 = vmatprep.subr.bf16.mxu1 %v15909_v63  ;;  %v15863_v62 = vcombine.high %v1580_v54, %v1584_v55  ;;  %v15988_v63 = vcombine.low %v1707_v50, %v1711_v51  ;;  %v1532_v50 = vld [vmem:[#allocation7 + $0x218] sm:$0xff] }
 0x325   :  { %3253 = vmatprep.subr.bf16.mxu0 %v15783_v0  ;;  %v1695_v0 = vld [vmem:[#allocation7 + $0x730] sm:$0xff]  ;;  %v1536_v51 = vld [vmem:[#allocation7 + $0x238] sm:$0xff] }
 0x326   :  { %v15972_v21 = vcombine.low %v1691_v23, %v1695_v0  ;;  %v1652_v54 = vld [vmem:[#allocation7 + $0x5d8] sm:$0xff] }
 0x327   :  { %3213 = vmatpush1.bf16.msra.mxu1 %v15908_v2  ;;  %v15981_v2 = vcombine.high %v1699_v58, %v1703_v29  ;;  %v1656_v55 = vld [vmem:[#allocation7 + $0x5f8] sm:$0xff] }
 0x328   :  { %3254 = vmatpush1.bf16.msra.mxu0 %v15782_v6  ;;  %3214 = vmatprep.subr.bf16.mxu1 %v15901_v7  ;;  %v15855_v6 = vcombine.high %v1572_v60, %v1576_v61  ;;  %v15980_v7 = vcombine.low %v1699_v58, %v1703_v29  ;;  %v15815_v58 = vcombine.high %v1532_v50, %v1536_v51 }
 0x329   :  { %3255 = vmatprep.subr.bf16.mxu0 %v15775_v13  ;;  %v15854_v13 = vcombine.low %v1572_v60, %v1576_v61  ;;  %v15940_v29 = vcombine.low %v1659_v46, %v1663_v47  ;;  %v17961_v60 = vld [vmem:[#allocation11 + $0xe4] ss:$16 sps:$4 sm:$0xff]   ;;  %v15814_v61 = vcombine.low %v1532_v50, %v1536_v51 }
 0x32a   :  { %v17979_v50 = vld [vmem:[#allocation11 + $0x24] ss:$16 sps:$4 sm:$0xff]  }
 0x32b   :  { %3215 = vmatpush1.bf16.msra.mxu1 %v15900_v14  ;;  %v15973_v14 = vcombine.high %v1691_v23, %v1695_v0  ;;  %v1636_v23 = vld [vmem:[#allocation7 + $0x558] sm:$0xff] }
 0x32c   :  { %3256 = vmatpush1.bf16.msra.mxu0 %v15774_v15  ;;  %3216 = vmatprep.subr.bf16.mxu1 %v15893_v16  ;;  %v1556_v15 = vld [vmem:[#allocation7 + $0x2d8] sm:$0xff] }
 0x32d   :  { %3257 = vmatprep.subr.bf16.mxu0 %v15767_v19  ;;  %v1560_v16 = vld [vmem:[#allocation7 + $0x2f8] sm:$0xff]  ;;  %v15847_v19 = vcombine.high %v1564_v3, %v1568_v4  ;;  %v17964_v3 = vld [vmem:[#allocation11 + $0xc4] ss:$16 sps:$4 sm:$0xff]  }
 0x32e   :  { %v1640_v0 = vld [vmem:[#allocation7 + $0x578] sm:$0xff] }
 0x32f   :  { %3217 = vmatpush1.bf16.msra.mxu1 %v15892_v30  ;;  %v15965_v30 = vcombine.high %v1683_v10, %v1687_v12 }
 0x330   :  { %3258 = vmatpush1.bf16.msra.mxu0 %v15766_v17  ;;  %3218 = vmatprep.subr.bf16.mxu1 %v15885_v18  ;;  %v15839_v17 = vcombine.high %v1556_v15, %v1560_v16  ;;  %v15964_v18 = vcombine.low %v1683_v10, %v1687_v12  ;;  %v1632_v10 = vld [vmem:[#allocation7 + $0x538] sm:$0xff]  ;;  %v17962_v12 = vld [vmem:[#allocation11 + $0xc0] ss:$16 sps:$4 sm:$0xff]  }
 0x331   :  { %3259 = vmatprep.subr.bf16.mxu0 %v15759_v34  ;;  %v15838_v34 = vcombine.low %v1556_v15, %v1560_v16  ;;  %v17967_v15 = vld [vmem:[#allocation11 + $0xa4] ss:$16 sps:$4 sm:$0xff]  }
 0x333   :  { %3219 = vmatpush1.bf16.msra.mxu1 %v15884_v36  ;;  %v15957_v36 = vcombine.high %v1675_v26, %v1679_v27 }
 0x334   :  { %3260 = vmatpush1.bf16.msra.mxu0 %v15758_v41  ;;  %3220 = vmatprep.subr.bf16.mxu1 %v15877_v42  ;;  %v15831_v41 = vcombine.high %v1548_v9, %v1552_v32  ;;  %v15956_v42 = vcombine.low %v1675_v26, %v1679_v27  ;;  %v1624_v26 = vld [vmem:[#allocation7 + $0x4f8] sm:$0xff] }
 0x335   :  { %3261 = vmatprep.subr.bf16.mxu0 %v15751_v48  ;;  %v15830_v48 = vcombine.low %v1548_v9, %v1552_v32  ;;  %v1612_v9 = vld [vmem:[#allocation7 + $0x498] sm:$0xff] }
 0x336   :  { %v1616_v32 = vld [vmem:[#allocation7 + $0x4b8] sm:$0xff] }
 0x337   :  { %3221 = vmatpush1.bf16.msra.mxu1 %v15876_v49  ;;  %v15949_v49 = vcombine.high %v1667_v20, %v1671_v33 }
 0x338   :  { %3262 = vmatpush1.bf16.msra.mxu0 %v15750_v52  ;;  %3222 = vmatprep.subr.bf16.mxu1 %v15997_v53  ;;  %v15823_v52 = vcombine.high %v1540_v37, %v1544_v38  ;;  %v15948_v53 = vcombine.low %v1667_v20, %v1671_v33  ;;  %v17973_v20 = vld [vmem:[#allocation11 + $0x64] ss:$16 sps:$4 sm:$0xff]  }
 0x339   :  { %3263 = vmatprep.subr.bf16.mxu0 %v15871_v56  ;;  %v15822_v56 = vcombine.low %v1540_v37, %v1544_v38  ;;  %v1608_v37 = vld [vmem:[#allocation7 + $0x478] sm:$0xff]  ;;  %v17971_v38 = vld [vmem:[#allocation11 + $0x60] ss:$16 sps:$4 sm:$0xff]  }
 0x33b   :  { %3223 = vmatpush2.bf16.msra.mxu1 %v15996_v57  ;;  %v15941_v57 = vcombine.high %v1659_v46, %v1663_v47  ;;  %v1596_v47 = vld [vmem:[#allocation7 + $0x418] sm:$0xff] }
 0x33c   :  { %3264 = vmatpush2.bf16.msra.mxu0 %v15870_v8  ;;  %3224 = vmatprep.subr.bf16.mxu1 %v15989_v31  ;;  %v1644_v8 = vld [vmem:[#allocation7 + $0x598] sm:$0xff] }
 0x33d   :  { %3265 = vmatprep.subr.bf16.mxu0 %v15863_v62  ;;  %v1648_v31 = vld [vmem:[#allocation7 + $0x5b8] sm:$0xff]  ;;  %v15935_v62 = vcombine.high %v1652_v54, %v1656_v55 }
 0x33f   :  { %3225 = vmatpush2.bf16.msra.mxu1 %v15988_v63  ;;  %v15934_v63 = vcombine.low %v1652_v54, %v1656_v55  ;;  %v17977_v54 = vld [vmem:[#allocation11 + $0x20] ss:$16 sps:$4 sm:$0xff]  }
 0x340   :  { %3266 = vmatpush2.bf16.msra.mxu0 %v15862_v43  ;;  %3226 = vmatprep.subr.bf16.mxu1 %v15981_v2  ;;  %v17959_v43 = vld [vmem:[#allocation11 + $0xe0] ss:$16 sps:$4 sm:$0xff]   ;;  %v15927_v2 = vcombine.high %v1644_v8, %v1648_v31 }
 0x341   :  { %3267 = vmatprep.subr.bf16.mxu0 %v15855_v6  ;;  %v15926_v6 = vcombine.low %v1644_v8, %v1648_v31  ;;  %v17980_v8 = vld [vmem:[#allocation11] ss:$16 sps:$4 sm:$0xff]  }
 0x343   :  { %3227 = vmatpush2.bf16.msra.mxu1 %v15980_v7  ;;  %v1628_v7 = vld [vmem:[#allocation7 + $0x518] sm:$0xff] }
 0x344   :  { %3268 = vmatpush2.bf16.msra.mxu0 %v15854_v13  ;;  %3228 = vmatprep.subr.bf16.mxu1 %v15973_v14  ;;  %v15919_v14 = vcombine.high %v1636_v23, %v1640_v0 }
 0x345   :  { %3269 = vmatprep.subr.bf16.mxu0 %v15847_v19  ;;  %v15918_v19 = vcombine.low %v1636_v23, %v1640_v0  ;;  %v17983_v23 = vld [vmem:[#allocation11 + $0x1e0] ss:$16 sps:$4 sm:$0xff]  }
 0x347   :  { %3229 = vmatpush2.bf16.msra.mxu1 %v15972_v21  ;;  %v1620_v21 = vld [vmem:[#allocation7 + $0x4d8] sm:$0xff] }
 0x348   :  { %3270 = vmatpush2.bf16.msra.mxu0 %v15846_v28  ;;  %3230 = vmatprep.subr.bf16.mxu1 %v15965_v30  ;;  %v15911_v28 = vcombine.high %v1628_v7, %v1632_v10  ;;  %v17970_v30 = vld [vmem:[#allocation11 + $0x84] ss:$16 sps:$4 sm:$0xff]   ;;  %v15902_v33 = vcombine.low %v1620_v21, %v1624_v26 }
 0x349   :  { %3271 = vmatprep.subr.bf16.mxu0 %v15839_v17  ;;  %v17968_v17 = vld [vmem:[#allocation11 + $0x80] ss:$16 sps:$4 sm:$0xff]  }
 0x34b   :  { %3231 = vmatpush2.bf16.msra.mxu1 %v15964_v18  ;;  %v15903_v18 = vcombine.high %v1620_v21, %v1624_v26  ;;  %v17994_v26 = vld [vmem:[#allocation11 + $0x184] ss:$16 sps:$4 sm:$0xff]  }
 0x34c   :  { %3272 = vmatpush2.bf16.msra.mxu0 %v15838_v34  ;;  %3232 = vmatprep.subr.bf16.mxu1 %v15957_v36  ;;  %v15895_v34 = vcombine.high %v1612_v9, %v1616_v32  ;;  %v1604_v36 = vld [vmem:[#allocation7 + $0x458] sm:$0xff] }
 0x34d   :  { %3273 = vmatprep.subr.bf16.mxu0 %v15831_v41  ;;  %v17976_v41 = vld [vmem:[#allocation11 + $0x44] ss:$16 sps:$4 sm:$0xff]   ;;  %v15887_v46 = vcombine.high %v1604_v36, %v1608_v37  ;;  %v15886_v51 = vcombine.low %v1604_v36, %v1608_v37  ;;  %v1660_v37 = vld [vmem:[#allocation7 + $0x618] sm:$0xff] }
 0x34f   :  { %3233 = vmatpush2.bf16.msra.mxu1 %v15956_v42  ;;  %v15894_v42 = vcombine.low %v1612_v9, %v1616_v32  ;;  %v17997_v9 = vld [vmem:[#allocation11 + $0x164] ss:$16 sps:$4 sm:$0xff]  }
 0x350   :  { %3274 = vmatpush2.bf16.msra.mxu0 %v15830_v48  ;;  %3234 = vmatprep.subr.bf16.mxu1 %v15949_v49  ;;  %v1600_v48 = vld [vmem:[#allocation7 + $0x438] sm:$0xff]  ;;  %v17974_v49 = vld [vmem:[#allocation11 + $0x40] ss:$16 sps:$4 sm:$0xff]  }
 0x351   :  { %3275 = vmatprep.subr.bf16.mxu0 %v15823_v52  ;;  %v1716_v52 = vld [vmem:[#allocation7 + $0x7d8] sm:$0xff]  ;;  %v15879_v55 = vcombine.high %v1596_v47, %v1600_v48 }
 0x353   :  { %3235 = vmatpush2.bf16.msra.mxu1 %v15948_v53  ;;  %v1720_v53 = vld [vmem:[#allocation7 + $0x7f8] sm:$0xff] }
 0x354   :  { %3276 = vmatpush2.bf16.msra.mxu0 %v15822_v56  ;;  %3236 = vmatprep.subr.bf16.mxu1 %v15941_v57  ;;  %v17982_v56 = vld [vmem:[#allocation11 + $0x4] ss:$16 sps:$4 sm:$0xff]   ;;  %v15878_v57 = vcombine.low %v1596_v47, %v1600_v48  ;;  %v15999_v31 = vcombine.high %v1716_v52, %v1720_v53  ;;  %v18001_v48 = vld [vmem:[#allocation11 + $0x120] ss:$16 sps:$4 sm:$0xff]  }
 0x355   :  { %3277 = vmatprep.subr.bf16.mxu0 %v15815_v58  ;;  %v1708_v58 = vld [vmem:[#allocation7 + $0x798] sm:$0xff] }
 0x357   :  { %3237 = vmatpush2.bf16.msra.mxu1 %v15940_v29  ;;  %v1712_v29 = vld [vmem:[#allocation7 + $0x7b8] sm:$0xff] }
 0x358   :  { %3278 = vmatpush2.bf16.msra.mxu0 %v15814_v61  ;;  %3288 = vmatprep.subr.bf16.mxu1 %v15935_v62  ;;  %v15998_v61 = vcombine.low %v1716_v52, %v1720_v53  ;;  %v1700_v62 = vld [vmem:[#allocation7 + $0x758] sm:$0xff]  ;;  %v15991_v0 = vcombine.high %v1708_v58, %v1712_v29  ;;  %v18004_v53 = vld [vmem:[#allocation11 + $0x100] ss:$16 sps:$4 sm:$0xff]  }
 0x359   :  { %4981 = vmatprep.subr.bf16.mxu0 %v17961_v60  ;;  %v17985_v60 = vld [vmem:[#allocation11 + $0x1e4] ss:$16 sps:$4 sm:$0xff]  }
 0x35a   :  { %3239 = vmatmul.mubr.bf16.vlgmr.msra.gmra.mxu1 %v20453_v11  ;;  %v20468_v4 = vpop.f32.mrf.mxu0 }
 0x35b   :  { %3280 = vmatmul.mubr.bf16.vlgmr.msra.gmra.mxu0 %v20425_v44  ;;  %3289 = vmatpush1.bf16.msra.mxu1 %v15934_v63  ;;  %v17965_v44 = vld [vmem:[#allocation11 + $0xa0] ss:$16 sps:$4 sm:$0xff]   ;;  %v1704_v63 = vld [vmem:[#allocation7 + $0x778] sm:$0xff] }
 0x35c   :  { %3320 = vmatprep.mubr.bf16.mxu1 %v20449_v5  ;;  %v20472_v13 = vpop.f32.mrf.mxu0  ;;  %3290 = vmatprep.subr.bf16.mxu1 %v15927_v2  ;;  %v15910_v5 = vcombine.low %v1628_v7, %v1632_v10  ;;  %v15990_v2 = vcombine.low %v1708_v58, %v1712_v29  ;;  %v17986_v7 = vld [vmem:[#allocation11 + $0x1c0] ss:$16 sps:$4 sm:$0xff]   ;;  %v15983_v10 = vcombine.high %v1700_v62, %v1704_v63  ;;  %v18012_v58 = vld [vmem:[#allocation11 + $0x2c4] ss:$16 sps:$4 sm:$0xff]  }
 0x35d   :  { %4982 = vmatpush1.bf16.msra.mxu0 %v17959_v43  ;;  %v17988_v43 = vld [vmem:[#allocation11 + $0x1c4] ss:$16 sps:$4 sm:$0xff]  }
 0x35e   :  { %v3039_v16 = vpop.f32.mrf.mxu0  ;;  %4983 = vmatprep.subr.bf16.mxu0 %v17964_v3  ;;  %v1692_v3 = vld [vmem:[#allocation7 + $0x718] sm:$0xff] }
 0x35f   :  { %3291 = vmatpush1.bf16.msra.mxu1 %v15926_v6  ;;  %v1696_v6 = vld [vmem:[#allocation7 + $0x738] sm:$0xff] }
 0x360   :  { %v3040_v27 = vpop.f32.mrf.mxu0  ;;  %3292 = vmatprep.subr.bf16.mxu1 %v15919_v14  ;;  %v15982_v14 = vcombine.low %v1700_v62, %v1704_v63  ;;  %v1688_v16 = vld [vmem:[#allocation7 + $0x6f8] sm:$0xff]  ;;  %v15975_v21 = vcombine.high %v1692_v3, %v1696_v6 }
 0x361   :  { %4984 = vmatpush1.bf16.msra.mxu0 %v17962_v12  ;;  %v17991_v12 = vld [vmem:[#allocation11 + $0x1a4] ss:$16 sps:$4 sm:$0xff]   ;;  %v1676_v27 = vld [vmem:[#allocation7 + $0x698] sm:$0xff] }
 0x362   :  { %4985 = vmatprep.subr.bf16.mxu0 %v17967_v15  ;;  %v1684_v15 = vld [vmem:[#allocation7 + $0x6d8] sm:$0xff] }
 0x363   :  { %3293 = vmatpush1.bf16.msra.mxu1 %v15918_v19  ;;  %v17989_v19 = vld [vmem:[#allocation11 + $0x1a0] ss:$16 sps:$4 sm:$0xff]   ;;  %v15966_v32 = vcombine.low %v1684_v15, %v1688_v16 }
 0x364   :  { %3294 = vmatprep.subr.bf16.mxu1 %v15911_v28  ;;  %v1680_v28 = vld [vmem:[#allocation7 + $0x6b8] sm:$0xff] }
 0x365   :  { %4986 = vmatpush1.bf16.msra.mxu0 %v17965_v44  ;;  %v15974_v44 = vcombine.low %v1692_v3, %v1696_v6  ;;  %v15958_v36 = vcombine.low %v1676_v27, %v1680_v28 }
 0x366   :  { %4987 = vmatprep.subr.bf16.mxu0 %v17970_v30  ;;  %v17992_v30 = vld [vmem:[#allocation11 + $0x180] ss:$16 sps:$4 sm:$0xff]  }
 0x367   :  { %3295 = vmatpush1.bf16.msra.mxu1 %v15910_v5  ;;  %v15967_v5 = vcombine.high %v1684_v15, %v1688_v16 }
 0x368   :  { %3296 = vmatprep.subr.bf16.mxu1 %v15903_v18  ;;  %v1672_v18 = vld [vmem:[#allocation7 + $0x678] sm:$0xff] }
 0x369   :  { %4988 = vmatpush1.bf16.msra.mxu0 %v17968_v17  ;;  %v1668_v17 = vld [vmem:[#allocation7 + $0x658] sm:$0xff] }
 0x36a   :  { %4989 = vmatprep.subr.bf16.mxu0 %v17973_v20  ;;  %v17995_v20 = vld [vmem:[#allocation11 + $0x160] ss:$16 sps:$4 sm:$0xff]   ;;  %v15950_v47 = vcombine.low %v1668_v17, %v1672_v18 }
 0x36b   :  { %3297 = vmatpush1.bf16.msra.mxu1 %v15902_v33  ;;  %v15959_v33 = vcombine.high %v1676_v27, %v1680_v28 }
 0x36c   :  { %3298 = vmatprep.subr.bf16.mxu1 %v15895_v34  ;;  %v18000_v34 = vld [vmem:[#allocation11 + $0x144] ss:$16 sps:$4 sm:$0xff]  }
 0x36d   :  { %4990 = vmatpush1.bf16.msra.mxu0 %v17971_v38  ;;  %v1664_v38 = vld [vmem:[#allocation7 + $0x638] sm:$0xff] }
 0x36e   :  { %4991 = vmatprep.subr.bf16.mxu0 %v17976_v41  ;;  %v17998_v41 = vld [vmem:[#allocation11 + $0x140] ss:$16 sps:$4 sm:$0xff]   ;;  %v15942_v52 = vcombine.low %v1660_v37, %v1664_v38 }
 0x36f   :  { %3299 = vmatpush1.bf16.msra.mxu1 %v15894_v42  ;;  %v15951_v42 = vcombine.high %v1668_v17, %v1672_v18  ;;  %v18022_v17 = vld [vmem:[#allocation11 + $0x240] ss:$16 sps:$4 sm:$0xff]  }
 0x370   :  { %3300 = vmatprep.subr.bf16.mxu1 %v15887_v46  ;;  %v18003_v46 = vld [vmem:[#allocation11 + $0x124] ss:$16 sps:$4 sm:$0xff]   ;;  %v18058_v18 = vld [vmem:[#allocation11 + $0x4c0] ss:$16 sps:$4 sm:$0xff]  }
 0x371   :  { %4992 = vmatpush1.bf16.msra.mxu0 %v17974_v49  ;;  %v15943_v49 = vcombine.high %v1660_v37, %v1664_v38  ;;  %v18030_v37 = vld [vmem:[#allocation11 + $0x204] ss:$16 sps:$4 sm:$0xff]  }
 0x372   :  { %4993 = vmatprep.subr.bf16.mxu0 %v17979_v50  ;;  %v18006_v50 = vld [vmem:[#allocation11 + $0x104] ss:$16 sps:$4 sm:$0xff]  }
 0x373   :  { %3301 = vmatpush1.bf16.msra.mxu1 %v15886_v51  ;;  %v18009_v51 = vld [vmem:[#allocation11 + $0x2e4] ss:$16 sps:$4 sm:$0xff]  }
 0x374   :  { %3302 = vmatprep.subr.bf16.mxu1 %v15879_v55  ;;  %v18057_v55 = vld [vmem:[#allocation11 + $0x4e4] ss:$16 sps:$4 sm:$0xff]  }
 0x375   :  { %4994 = vmatpush1.bf16.msra.mxu0 %v17977_v54  ;;  %v20474_v54 = vld [vmem:[#allocation8] sm:$0xff] }
 0x376   :  { %4995 = vmatprep.subr.bf16.mxu0 %v17982_v56  ;;  %v18007_v56 = vld [vmem:[#allocation11 + $0x2e0] ss:$16 sps:$4 sm:$0xff]   ;;  %v3334_v29 = vrot.slane %v20474_v54, %v20406_v24  ;;  %v3338_v63 = vrot.slane %v20474_v54, %v20409_v25  ;;  %v18066_v38 = vld [vmem:[#allocation11 + $0x484] ss:$16 sps:$4 sm:$0xff]  }
 0x377   :  { %3303 = vmatpush1.bf16.msra.mxu1 %v15878_v57  ;;  %v20476_v57 = vld [vmem:[#allocation10] sm:$0xff] }
 0x378   :  { %3304 = vmatprep.subr.bf16.mxu1 %v15999_v31  ;;  %v3384_v62 = vrot.slane %v20476_v57, %v20406_v24  ;;  %v3388_v3 = vrot.slane %v20476_v57, %v20409_v25 }
 0x379   :  { %4996 = vmatpush1.bf16.msra.mxu0 %v17980_v8 }
 0x37a   :  { %4997 = vmatprep.subr.bf16.mxu0 %v17985_v60  ;;  %v18010_v60 = vld [vmem:[#allocation11 + $0x2c0] ss:$16 sps:$4 sm:$0xff]  }
 0x37b   :  { %3305 = vmatpush2.bf16.msra.mxu1 %v15998_v61 }
 0x37c   :  { %3306 = vmatprep.subr.bf16.mxu1 %v15991_v0 }
 0x37d   :  { %4998 = vmatpush2.bf16.msra.mxu0 %v17983_v23  ;;  %v18015_v23 = vld [vmem:[#allocation11 + $0x2a4] ss:$16 sps:$4 sm:$0xff]  }
 0x37e   :  { %4999 = vmatprep.subr.bf16.mxu0 %v17988_v43 }
 0x37f   :  { %3307 = vmatpush2.bf16.msra.mxu1 %v15990_v2 }
 0x380   :  { %3308 = vmatprep.subr.bf16.mxu1 %v15983_v10 }
 0x381   :  { %5000 = vmatpush2.bf16.msra.mxu0 %v17986_v7  ;;  %v18013_v7 = vld [vmem:[#allocation11 + $0x2a0] ss:$16 sps:$4 sm:$0xff]  }
 0x382   :  { %5001 = vmatprep.subr.bf16.mxu0 %v17991_v12 }
 0x383   :  { %3309 = vmatpush2.bf16.msra.mxu1 %v15982_v14  ;;  %v18018_v14 = vld [vmem:[#allocation11 + $0x284] ss:$16 sps:$4 sm:$0xff]  }
 0x384   :  { %3310 = vmatprep.subr.bf16.mxu1 %v15975_v21  ;;  %v18016_v21 = vld [vmem:[#allocation11 + $0x280] ss:$16 sps:$4 sm:$0xff]  }
 0x385   :  { %5002 = vmatpush2.bf16.msra.mxu0 %v17989_v19 }
 0x386   :  { %5003 = vmatprep.subr.bf16.mxu0 %v17994_v26 }
 0x387   :  { %3311 = vmatpush2.bf16.msra.mxu1 %v15974_v44  ;;  %v18021_v44 = vld [vmem:[#allocation11 + $0x264] ss:$16 sps:$4 sm:$0xff]  }
 0x388   :  { %3312 = vmatprep.subr.bf16.mxu1 %v15967_v5  ;;  %v18060_v5 = vld [vmem:[#allocation11 + $0x4c4] ss:$16 sps:$4 sm:$0xff]  }
 0x389   :  { %5004 = vmatpush2.bf16.msra.mxu0 %v17992_v30 }
 0x38a   :  { %5005 = vmatprep.subr.bf16.mxu0 %v17997_v9  ;;  %v18019_v9 = vld [vmem:[#allocation11 + $0x260] ss:$16 sps:$4 sm:$0xff]  }
 0x38b   :  { %3313 = vmatpush2.bf16.msra.mxu1 %v15966_v32  ;;  %v18024_v32 = vld [vmem:[#allocation11 + $0x244] ss:$16 sps:$4 sm:$0xff]  }
 0x38c   :  { %3314 = vmatprep.subr.bf16.mxu1 %v15959_v33  ;;  %v18063_v33 = vld [vmem:[#allocation11 + $0x4a4] ss:$16 sps:$4 sm:$0xff]  }
 0x38d   :  { %5006 = vmatpush2.bf16.msra.mxu0 %v17995_v20  ;;  %v18027_v20 = vld [vmem:[#allocation11 + $0x224] ss:$16 sps:$4 sm:$0xff]  }
 0x38e   :  { %5007 = vmatprep.subr.bf16.mxu0 %v18000_v34  ;;  %v18025_v34 = vld [vmem:[#allocation11 + $0x220] ss:$16 sps:$4 sm:$0xff]  }
 0x38f   :  { %3315 = vmatpush2.bf16.msra.mxu1 %v15958_v36  ;;  %v18061_v36 = vld [vmem:[#allocation11 + $0x4a0] ss:$16 sps:$4 sm:$0xff]  }
 0x390   :  { %3316 = vmatprep.subr.bf16.mxu1 %v15951_v42  ;;  %v18064_v42 = vld [vmem:[#allocation11 + $0x480] ss:$16 sps:$4 sm:$0xff]  }
 0x391   :  { %5008 = vmatpush2.bf16.msra.mxu0 %v17998_v41  ;;  %v18028_v41 = vld [vmem:[#allocation11 + $0x200] ss:$16 sps:$4 sm:$0xff]  }
 0x392   :  { %5009 = vmatprep.subr.bf16.mxu0 %v18003_v46  ;;  %v18033_v46 = vld [vmem:[#allocation11 + $0x3e4] ss:$16 sps:$4 sm:$0xff]  }
 0x393   :  { %3317 = vmatpush2.bf16.msra.mxu1 %v15950_v47  ;;  %v18069_v47 = vld [vmem:[#allocation11 + $0x464] ss:$16 sps:$4 sm:$0xff]  }
 0x394   :  { %3318 = vmatprep.subr.bf16.mxu1 %v15943_v49  ;;  %v18067_v49 = vld [vmem:[#allocation11 + $0x460] ss:$16 sps:$4 sm:$0xff]  }
 0x395   :  { %5010 = vmatpush2.bf16.msra.mxu0 %v18001_v48  ;;  %v18031_v48 = vld [vmem:[#allocation11 + $0x3e0] ss:$16 sps:$4 sm:$0xff]  }
 0x396   :  { %5011 = vmatprep.subr.bf16.mxu0 %v18006_v50  ;;  %v18036_v50 = vld [vmem:[#allocation11 + $0x3c4] ss:$16 sps:$4 sm:$0xff]  }
 0x397   :  { %3319 = vmatpush2.bf16.msra.mxu1 %v15942_v52  ;;  %v18034_v52 = vld [vmem:[#allocation11 + $0x3c0] ss:$16 sps:$4 sm:$0xff]  }
 0x398   :  { %5022 = vmatprep.subr.bf16.mxu1 %v18009_v51  ;;  %v18072_v51 = vld [vmem:[#allocation11 + $0x444] ss:$16 sps:$4 sm:$0xff]  }
 0x399   :  { %5012 = vmatpush2.bf16.msra.mxu0 %v18004_v53  ;;  %v18070_v53 = vld [vmem:[#allocation11 + $0x440] ss:$16 sps:$4 sm:$0xff]  }
 0x39a   :  { %v20480_v8 = vpop.f32.mrf.mxu0  ;;  %3321 = vmatmul.mubr.bf16.vlgmr.msra.gmra.mxu1 %v20453_v11  ;;  %v3076_v31 = vpop.f32.mrf.mxu1  ;;  %5063 = vmatprep.subr.bf16.mxu0 %v18057_v55  ;;  %v18039_v55 = vld [vmem:[#allocation11 + $0x3a4] ss:$16 sps:$4 sm:$0xff]  }
 0x39b   :  { %v3077_v61 = vadd.f32 %v3076_v31, %v20468_v4  ;;  %5023 = vmatpush1.bf16.msra.mxu1 %v18007_v56  ;;  %v18075_v56 = vld [vmem:[#allocation11 + $0x424] ss:$16 sps:$4 sm:$0xff]  }
 0x39c   :  { %v20488_v0 = vpop.f32.mrf.mxu0  ;;  %v3078_v43 = vpop.f32.mrf.mxu1  ;;  %5024 = vmatprep.subr.bf16.mxu1 %v18012_v58  ;;  %v18037_v58 = vld [vmem:[#allocation11 + $0x3a0] ss:$16 sps:$4 sm:$0xff]   ;;  %v18042_v31 = vld [vmem:[#allocation11 + $0x384] ss:$16 sps:$4 sm:$0xff]  }
 0x39d   :  { %v3371_v2 = vmul.f32 %v3334_v29, %v3077_v61  ;;  %v3079_v11 = vadd.f32 %v3078_v43, %v20472_v13  ;;  %v18055_v13 = vld [vmem:[#allocation11 + $0x4e0] ss:$16 sps:$4 sm:$0xff]  }
 0x39e   :  { %v3121_v6 = vpop.f32.mrf.mxu0  ;;  %v3080_v4 = vpop.f32.mrf.mxu1  ;;  %v18073_v29 = vld [vmem:[#allocation11 + $0x420] ss:$16 sps:$4 sm:$0xff]  }
 0x39f   :  { %v3421_v10 = vadd.f32 %v3384_v62, %v3371_v2  ;;  %v3372_v12 = vmul.f32 %v3338_v63, %v3079_v11  ;;  %5025 = vmatpush1.bf16.msra.mxu1 %v18010_v60  ;;  %v18078_v60 = vld [vmem:[#allocation11 + $0x404] ss:$16 sps:$4 sm:$0xff]   ;;  %v18040_v61 = vld [vmem:[#allocation11 + $0x380] ss:$16 sps:$4 sm:$0xff]  }
 0x3a0   :  { %v3122_v15 = vpop.f32.mrf.mxu0  ;;  %v3081_v16 = vpop.f32.mrf.mxu1  ;;  %5026 = vmatprep.subr.bf16.mxu1 %v18015_v23  ;;  %v18076_v62 = vld [vmem:[#allocation11 + $0x400] ss:$16 sps:$4 sm:$0xff]   ;;  %v18045_v63 = vld [vmem:[#allocation11 + $0x364] ss:$16 sps:$4 sm:$0xff]  }
 0x3a1   :  { %v3422_v19 = vadd.f32 %v3388_v3, %v3372_v12  ;;  %v3429_v26 = vmax.f32 %v3421_v10, 0.0  ;;  %v18081_v23 = vld [vmem:[#allocation11 + $0x5e4] ss:$16 sps:$4 sm:$0xff]   ;;  %v18043_v43 = vld [vmem:[#allocation11 + $0x360] ss:$16 sps:$4 sm:$0xff]  }
 0x3a2   :  { %v18079_v2 = vld [vmem:[#allocation11 + $0x5e0] ss:$16 sps:$4 sm:$0xff]   ;;  %v18048_v11 = vld [vmem:[#allocation11 + $0x344] ss:$16 sps:$4 sm:$0xff]  }
 0x3a3   :  { %v3430_v27 = vmax.f32 %v3422_v19, 0.0  ;;  %5027 = vmatpush1.bf16.msra.mxu1 %v18013_v7  ;;  %v20495_v30 = vpack.c.bf16 %v3429_v26, %v3429_v26  ;;  %v18084_v3 = vld [vmem:[#allocation11 + $0x5c4] ss:$16 sps:$4 sm:$0xff]   ;;  %v18046_v6 = vld [vmem:[#allocation11 + $0x340] ss:$16 sps:$4 sm:$0xff]  }
 0x3a4   :  { %5028 = vmatprep.subr.bf16.mxu1 %v18018_v14  ;;  %v18082_v4 = vld [vmem:[#allocation11 + $0x5c0] ss:$16 sps:$4 sm:$0xff]   ;;  %v18051_v7 = vld [vmem:[#allocation11 + $0x324] ss:$16 sps:$4 sm:$0xff]  }
 0x3a5   :  { %v20493_v28 = vpack.c.bf16 %v3430_v27, %v3430_v27  ;;  %v18087_v10 = vld [vmem:[#allocation11 + $0x5a4] ss:$16 sps:$4 sm:$0xff]   ;;  %v18049_v12 = vld [vmem:[#allocation11 + $0x320] ss:$16 sps:$4 sm:$0xff]  }
 0x3a6   :  { %v18085_v14 = vld [vmem:[#allocation11 + $0x5a0] ss:$16 sps:$4 sm:$0xff]   ;;  %v18054_v15 = vld [vmem:[#allocation11 + $0x304] ss:$16 sps:$4 sm:$0xff]  }
 0x3a7   :  { %5013 = vmatprep.mubr.bf16.mxu0 %v20493_v28  ;;  %5029 = vmatpush1.bf16.msra.mxu1 %v18016_v21  ;;  %v18090_v16 = vld [vmem:[#allocation11 + $0x584] ss:$16 sps:$4 sm:$0xff]   ;;  %v18052_v19 = vld [vmem:[#allocation11 + $0x300] ss:$16 sps:$4 sm:$0xff]  }
 0x3a8   :  { %5014 = vmatmul.mubr.bf16.vlgmr.msra.gmra.mxu0 %v20495_v30  ;;  %5030 = vmatprep.subr.bf16.mxu1 %v18021_v44  ;;  %v18088_v21 = vld [vmem:[#allocation11 + $0x580] ss:$16 sps:$4 sm:$0xff]   ;;  %v18093_v26 = vld [vmem:[#allocation11 + $0x564] ss:$16 sps:$4 sm:$0xff]  }
 0x3a9   :  { %5064 = vmatpush1.bf16.msra.mxu0 %v18055_v13  ;;  %v18105_v44 = vld [vmem:[#allocation11 + $0x6e4] ss:$16 sps:$4 sm:$0xff]   ;;  %v18091_v27 = vld [vmem:[#allocation11 + $0x560] ss:$16 sps:$4 sm:$0xff]  }
 0x3aa   :  { %5065 = vmatprep.subr.bf16.mxu0 %v18060_v5  ;;  %v18096_v13 = vld [vmem:[#allocation11 + $0x544] ss:$16 sps:$4 sm:$0xff]   ;;  %v18094_v5 = vld [vmem:[#allocation11 + $0x540] ss:$16 sps:$4 sm:$0xff]  }
 0x3ab   :  { %5031 = vmatpush1.bf16.msra.mxu1 %v18019_v9  ;;  %v3342_v9 = vrot.slane %v20474_v54, %v20434_v39 }
 0x3ac   :  { %5032 = vmatprep.subr.bf16.mxu1 %v18024_v32 }
 0x3ad   :  { %5066 = vmatpush1.bf16.msra.mxu0 %v18058_v18  ;;  %v18099_v18 = vld [vmem:[#allocation11 + $0x524] ss:$16 sps:$4 sm:$0xff]  }
 0x3ae   :  { %5067 = vmatprep.subr.bf16.mxu0 %v18063_v33  ;;  %v3392_v33 = vrot.slane %v20476_v57, %v20434_v39 }
 0x3af   :  { %5033 = vmatpush1.bf16.msra.mxu1 %v18022_v17 }
 0x3b0   :  { %5034 = vmatprep.subr.bf16.mxu1 %v18027_v20 }
 0x3b1   :  { %5068 = vmatpush1.bf16.msra.mxu0 %v18061_v36 }
 0x3b2   :  { %5069 = vmatprep.subr.bf16.mxu0 %v18066_v38  ;;  %v18097_v38 = vld [vmem:[#allocation11 + $0x520] ss:$16 sps:$4 sm:$0xff]  }
 0x3b3   :  { %5035 = vmatpush1.bf16.msra.mxu1 %v18025_v34  ;;  %v3346_v34 = vrot.slane %v20474_v54, %v20437_v45 }
 0x3b4   :  { %5036 = vmatprep.subr.bf16.mxu1 %v18030_v37 }
 0x3b5   :  { %5070 = vmatpush1.bf16.msra.mxu0 %v18064_v42 }
 0x3b6   :  { %5071 = vmatprep.subr.bf16.mxu0 %v18069_v47 }
 0x3b7   :  { %5037 = vmatpush1.bf16.msra.mxu1 %v18028_v41 }
 0x3b8   :  { %5038 = vmatprep.subr.bf16.mxu1 %v18033_v46  ;;  %v3396_v46 = vrot.slane %v20476_v57, %v20437_v45 }
 0x3b9   :  { %5072 = vmatpush1.bf16.msra.mxu0 %v18067_v49 }
 0x3ba   :  { %5073 = vmatprep.subr.bf16.mxu0 %v18072_v51 }
 0x3bb   :  { %5039 = vmatpush2.bf16.msra.mxu1 %v18031_v48 }
 0x3bc   :  { %5040 = vmatprep.subr.bf16.mxu1 %v18036_v50 }
 0x3bd   :  { %5074 = vmatpush1.bf16.msra.mxu0 %v18070_v53 }
 0x3be   :  { %5075 = vmatprep.subr.bf16.mxu0 %v18075_v56 }
 0x3bf   :  { %5041 = vmatpush2.bf16.msra.mxu1 %v18034_v52 }
 0x3c0   :  { %5042 = vmatprep.subr.bf16.mxu1 %v18039_v55  ;;  %v18100_v55 = vld [vmem:[#allocation11 + $0x500] ss:$16 sps:$4 sm:$0xff]  }
 0x3c1   :  { %5076 = vmatpush1.bf16.msra.mxu0 %v18073_v29 }
 0x3c2   :  { %5077 = vmatprep.subr.bf16.mxu0 %v18078_v60 }
 0x3c3   :  { %5043 = vmatpush2.bf16.msra.mxu1 %v18037_v58  ;;  %v18108_v58 = vld [vmem:[#allocation11 + $0xec] ss:$16 sps:$4 sm:$0xff]  }
 0x3c4   :  { %5044 = vmatprep.subr.bf16.mxu1 %v18042_v31 }
 0x3c5   :  { %5078 = vmatpush1.bf16.msra.mxu0 %v18076_v62  ;;  %v18109_v62 = vld [vmem:[#allocation11 + $0x6c0] ss:$16 sps:$4 sm:$0xff]  }
 0x3c6   :  { %5079 = vmatprep.subr.bf16.mxu0 %v18081_v23  ;;  %v18115_v23 = vld [vmem:[#allocation11 + $0x6a0] ss:$16 sps:$4 sm:$0xff]  }
 0x3c7   :  { %5045 = vmatpush2.bf16.msra.mxu1 %v18040_v61  ;;  %v18111_v61 = vld [vmem:[#allocation11 + $0x6c4] ss:$16 sps:$4 sm:$0xff]  }
 0x3c8   :  { %5046 = vmatprep.subr.bf16.mxu1 %v18045_v63  ;;  %v18117_v63 = vld [vmem:[#allocation11 + $0x6a4] ss:$16 sps:$4 sm:$0xff]  }
 0x3c9   :  { %5080 = vmatpush2.bf16.msra.mxu0 %v18079_v2  ;;  %v18121_v2 = vld [vmem:[#allocation11 + $0x680] ss:$16 sps:$4 sm:$0xff]  }
 0x3ca   :  { %5081 = vmatprep.subr.bf16.mxu0 %v18084_v3  ;;  %v18127_v3 = vld [vmem:[#allocation11 + $0x660] ss:$16 sps:$4 sm:$0xff]  }
 0x3cb   :  { %5047 = vmatpush2.bf16.msra.mxu1 %v18043_v43  ;;  %v18123_v43 = vld [vmem:[#allocation11 + $0x684] ss:$16 sps:$4 sm:$0xff]  }
 0x3cc   :  { %5048 = vmatprep.subr.bf16.mxu1 %v18048_v11  ;;  %v18129_v11 = vld [vmem:[#allocation11 + $0x664] ss:$16 sps:$4 sm:$0xff]  }
 0x3cd   :  { %5082 = vmatpush2.bf16.msra.mxu0 %v18082_v4  ;;  %v18133_v4 = vld [vmem:[#allocation11 + $0x640] ss:$16 sps:$4 sm:$0xff]  }
 0x3ce   :  { %5083 = vmatprep.subr.bf16.mxu0 %v18087_v10  ;;  %v18139_v10 = vld [vmem:[#allocation11 + $0x620] ss:$16 sps:$4 sm:$0xff]  }
 0x3cf   :  { %5049 = vmatpush2.bf16.msra.mxu1 %v18046_v6  ;;  %v18135_v6 = vld [vmem:[#allocation11 + $0x644] ss:$16 sps:$4 sm:$0xff]  }
 0x3d0   :  { %5050 = vmatprep.subr.bf16.mxu1 %v18051_v7  ;;  %v18141_v7 = vld [vmem:[#allocation11 + $0x624] ss:$16 sps:$4 sm:$0xff]  }
 0x3d1   :  { %5084 = vmatpush2.bf16.msra.mxu0 %v18085_v14  ;;  %v18145_v14 = vld [vmem:[#allocation11 + $0x600] ss:$16 sps:$4 sm:$0xff]  }
 0x3d2   :  { %5085 = vmatprep.subr.bf16.mxu0 %v18090_v16  ;;  %v18151_v16 = vld [vmem:[#allocation11 + $0x7e0] ss:$16 sps:$4 sm:$0xff]  }
 0x3d3   :  { %5051 = vmatpush2.bf16.msra.mxu1 %v18049_v12  ;;  %v18147_v12 = vld [vmem:[#allocation11 + $0x604] ss:$16 sps:$4 sm:$0xff]  }
 0x3d4   :  { %5052 = vmatprep.subr.bf16.mxu1 %v18054_v15  ;;  %v18153_v15 = vld [vmem:[#allocation11 + $0x7e4] ss:$16 sps:$4 sm:$0xff]  }
 0x3d5   :  { %5086 = vmatpush2.bf16.msra.mxu0 %v18088_v21  ;;  %v18157_v21 = vld [vmem:[#allocation11 + $0x7c0] ss:$16 sps:$4 sm:$0xff]  }
 0x3d6   :  { %5087 = vmatprep.subr.bf16.mxu0 %v18093_v26  ;;  %v18165_v26 = vld [vmem:[#allocation11 + $0x7a4] ss:$16 sps:$4 sm:$0xff]  }
 0x3d7   :  { %5053 = vmatpush2.bf16.msra.mxu1 %v18052_v19  ;;  %v18159_v19 = vld [vmem:[#allocation11 + $0x7c4] ss:$16 sps:$4 sm:$0xff]  }
 0x3d8   :  { %5104 = vmatprep.subr.bf16.mxu1 %v18105_v44  ;;  %v18163_v44 = vld [vmem:[#allocation11 + $0x7a0] ss:$16 sps:$4 sm:$0xff]  }
 0x3d9   :  { %5088 = vmatpush2.bf16.msra.mxu0 %v18091_v27  ;;  %v18171_v27 = vld [vmem:[#allocation11 + $0x784] ss:$16 sps:$4 sm:$0xff]  }
 0x3da   :  { %v3158_v32 = vpop.f32.mrf.mxu1  ;;  %v20501_v17 = vpop.f32.mrf.mxu0  ;;  %5089 = vmatprep.subr.bf16.mxu0 %v18096_v13  ;;  %v18169_v13 = vld [vmem:[#allocation11 + $0x780] ss:$16 sps:$4 sm:$0xff]  }
 0x3db   :  { %v3159_v20 = vadd.f32 %v3158_v32, %v20480_v8  ;;  %v18102_v8 = vld [vmem:[#allocation11 + $0x504] ss:$16 sps:$4 sm:$0xff]   ;;  %v18175_v32 = vld [vmem:[#allocation11 + $0x760] ss:$16 sps:$4 sm:$0xff]  }
 0x3dc   :  { %v3160_v36 = vpop.f32.mrf.mxu1  ;;  %v20508_v37 = vpop.f32.mrf.mxu0 }
 0x3dd   :  { %v3373_v41 = vmul.f32 %v3342_v9, %v3159_v20  ;;  %v3161_v42 = vadd.f32 %v3160_v36, %v20488_v0  ;;  %5090 = vmatpush2.bf16.msra.mxu0 %v18094_v5  ;;  %v18103_v0 = vld [vmem:[#allocation11 + $0x6e0] ss:$16 sps:$4 sm:$0xff]   ;;  %v18177_v5 = vld [vmem:[#allocation11 + $0x764] ss:$16 sps:$4 sm:$0xff]   ;;  %v20520_v9 = vsub.s32 4, %v20401_v22  ;;  %v20523_v20 = vsub.s32 5, %v20401_v22 }
 0x3de   :  { %v3162_v47 = vpop.f32.mrf.mxu1  ;;  %v3203_v48 = vpop.f32.mrf.mxu0  ;;  %5091 = vmatprep.subr.bf16.mxu0 %v18099_v18  ;;  %v18183_v18 = vld [vmem:[#allocation11 + $0x744] ss:$16 sps:$4 sm:$0xff]  }
 0x3df   :  { %v3423_v49 = vadd.f32 %v3392_v33, %v3373_v41  ;;  %v3374_v50 = vmul.f32 %v3346_v34, %v3161_v42  ;;  %v3350_v33 = vrot.slane %v20474_v54, %v20520_v9  ;;  %v18181_v34 = vld [vmem:[#allocation11 + $0x740] ss:$16 sps:$4 sm:$0xff]   ;;  %v3400_v42 = vrot.slane %v20476_v57, %v20520_v9 }
 0x3e0   :  { %v3163_v51 = vpop.f32.mrf.mxu1  ;;  %v3204_v52 = vpop.f32.mrf.mxu0  ;;  %v3354_v47 = vrot.slane %v20474_v54, %v20523_v20 }
 0x3e1   :  { %v3424_v53 = vadd.f32 %v3396_v46, %v3374_v50  ;;  %5092 = vmatpush2.bf16.msra.mxu0 %v18097_v38  ;;  %v3431_v56 = vmax.f32 %v3423_v49, 0.0  ;;  %v18189_v38 = vld [vmem:[#allocation11 + $0x724] ss:$16 sps:$4 sm:$0xff]   ;;  %v3404_v50 = vrot.slane %v20476_v57, %v20523_v20  ;;  %v18187_v52 = vld [vmem:[#allocation11 + $0x720] ss:$16 sps:$4 sm:$0xff]  }
 0x3e2   :  { %5093 = vmatprep.subr.bf16.mxu0 %v18102_v8 }
 0x3e3   :  { %v3432_v29 = vmax.f32 %v3424_v53, 0.0  ;;  %v20515_v60 = vpack.c.bf16 %v3431_v56, %v3431_v56  ;;  %v18195_v53 = vld [vmem:[#allocation11 + $0x704] ss:$16 sps:$4 sm:$0xff]  }
 0x3e5   :  { %v20513_v31 = vpack.c.bf16 %v3432_v29, %v3432_v29  ;;  %5094 = vmatpush2.bf16.msra.mxu0 %v18100_v55 }
 0x3e6   :  { %5145 = vmatprep.subr.bf16.mxu0 %v18108_v58 }
 0x3e7   :  { %5054 = vmatprep.mubr.bf16.mxu1 %v20513_v31 }
 0x3e8   :  { %5055 = vmatmul.mubr.bf16.vlgmr.msra.gmra.mxu1 %v20515_v60 }
 0x3e9   :  { %5105 = vmatpush1.bf16.msra.mxu1 %v18103_v0 }
 0x3ea   :  { %5106 = vmatprep.subr.bf16.mxu1 %v18111_v61 }
 0x3ed   :  { %5107 = vmatpush1.bf16.msra.mxu1 %v18109_v62  ;;  %v18193_v62 = vld [vmem:[#allocation11 + $0x700] ss:$16 sps:$4 sm:$0xff]  }
 0x3ee   :  { %5108 = vmatprep.subr.bf16.mxu1 %v18117_v63 }
 0x3f1   :  { %5109 = vmatpush1.bf16.msra.mxu1 %v18115_v23 }
 0x3f2   :  { %5110 = vmatprep.subr.bf16.mxu1 %v18123_v43 }
 0x3f5   :  { %5111 = vmatpush1.bf16.msra.mxu1 %v18121_v2  ;;  %v18106_v2 = vld [vmem:[#allocation11 + $0xe8] ss:$16 sps:$4 sm:$0xff]  }
 0x3f6   :  { %5112 = vmatprep.subr.bf16.mxu1 %v18129_v11 }
 0x3f9   :  { %5113 = vmatpush1.bf16.msra.mxu1 %v18127_v3  ;;  %v18114_v3 = vld [vmem:[#allocation11 + $0xcc] ss:$16 sps:$4 sm:$0xff]  }
 0x3fa   :  { %5114 = vmatprep.subr.bf16.mxu1 %v18135_v6  ;;  %v18112_v6 = vld [vmem:[#allocation11 + $0xc8] ss:$16 sps:$4 sm:$0xff]  }
 0x3fd   :  { %5115 = vmatpush1.bf16.msra.mxu1 %v18133_v4  ;;  %v18120_v4 = vld [vmem:[#allocation11 + $0xac] ss:$16 sps:$4 sm:$0xff]  }
 0x3fe   :  { %5116 = vmatprep.subr.bf16.mxu1 %v18141_v7  ;;  %v18118_v7 = vld [vmem:[#allocation11 + $0xa8] ss:$16 sps:$4 sm:$0xff]  }
 0x401   :  { %5117 = vmatpush1.bf16.msra.mxu1 %v18139_v10  ;;  %v18126_v10 = vld [vmem:[#allocation11 + $0x8c] ss:$16 sps:$4 sm:$0xff]  }
 0x402   :  { %5118 = vmatprep.subr.bf16.mxu1 %v18147_v12  ;;  %v18124_v12 = vld [vmem:[#allocation11 + $0x88] ss:$16 sps:$4 sm:$0xff]  }
 0x405   :  { %5119 = vmatpush1.bf16.msra.mxu1 %v18145_v14  ;;  %v18132_v14 = vld [vmem:[#allocation11 + $0x6c] ss:$16 sps:$4 sm:$0xff]  }
 0x406   :  { %5120 = vmatprep.subr.bf16.mxu1 %v18153_v15  ;;  %v18130_v15 = vld [vmem:[#allocation11 + $0x68] ss:$16 sps:$4 sm:$0xff]  }
 0x409   :  { %5121 = vmatpush2.bf16.msra.mxu1 %v18151_v16  ;;  %v18138_v16 = vld [vmem:[#allocation11 + $0x4c] ss:$16 sps:$4 sm:$0xff]  }
 0x40a   :  { %5122 = vmatprep.subr.bf16.mxu1 %v18159_v19  ;;  %v18136_v19 = vld [vmem:[#allocation11 + $0x48] ss:$16 sps:$4 sm:$0xff]  }
 0x40d   :  { %5123 = vmatpush2.bf16.msra.mxu1 %v18157_v21  ;;  %v18144_v21 = vld [vmem:[#allocation11 + $0x2c] ss:$16 sps:$4 sm:$0xff]  }
 0x40e   :  { %5124 = vmatprep.subr.bf16.mxu1 %v18165_v26  ;;  %v18150_v26 = vld [vmem:[#allocation11 + $0xc] ss:$16 sps:$4 sm:$0xff]  }
 0x411   :  { %5125 = vmatpush2.bf16.msra.mxu1 %v18163_v44  ;;  %v18148_v44 = vld [vmem:[#allocation11 + $0x8] ss:$16 sps:$4 sm:$0xff]  }
 0x412   :  { %5126 = vmatprep.subr.bf16.mxu1 %v18171_v27  ;;  %v18156_v27 = vld [vmem:[#allocation11 + $0x1ec] ss:$16 sps:$4 sm:$0xff]  }
 0x415   :  { %5127 = vmatpush2.bf16.msra.mxu1 %v18169_v13  ;;  %v18154_v13 = vld [vmem:[#allocation11 + $0x1e8] ss:$16 sps:$4 sm:$0xff]  }
 0x416   :  { %5128 = vmatprep.subr.bf16.mxu1 %v18177_v5  ;;  %v18162_v5 = vld [vmem:[#allocation11 + $0x1cc] ss:$16 sps:$4 sm:$0xff]  }
 0x419   :  { %5129 = vmatpush2.bf16.msra.mxu1 %v18175_v32  ;;  %v18160_v32 = vld [vmem:[#allocation11 + $0x1c8] ss:$16 sps:$4 sm:$0xff]  }
 0x41a   :  { %v3240_v36 = vpop.f32.mrf.mxu1  ;;  %5130 = vmatprep.subr.bf16.mxu1 %v18183_v18  ;;  %v18168_v18 = vld [vmem:[#allocation11 + $0x1ac] ss:$16 sps:$4 sm:$0xff]  }
 0x41b   :  { %v3241_v41 = vadd.f32 %v3240_v36, %v20501_v17  ;;  %v20530_v46 = vpop.f32.mrf.mxu0  ;;  %v18172_v36 = vld [vmem:[#allocation11 + $0x188] ss:$16 sps:$4 sm:$0xff]  }
 0x41c   :  { %v3242_v48 = vpop.f32.mrf.mxu1 }
 0x41d   :  { %v3375_v8 = vmul.f32 %v3350_v33, %v3241_v41  ;;  %v3243_v49 = vadd.f32 %v3242_v48, %v20508_v37  ;;  %v20537_v51 = vpop.f32.mrf.mxu0  ;;  %5131 = vmatpush2.bf16.msra.mxu1 %v18181_v34  ;;  %v18201_v37 = vld [vmem:[#allocation11 + $0x2ec] ss:$16 sps:$4 sm:$0xff]   ;;  %v18166_v33 = vld [vmem:[#allocation11 + $0x1a8] ss:$16 sps:$4 sm:$0xff]   ;;  %v20550_v48 = vsub.s32 7, %v20401_v22 }
 0x41e   :  { %v3244_v17 = vpop.f32.mrf.mxu1  ;;  %5132 = vmatprep.subr.bf16.mxu1 %v18189_v38  ;;  %v18174_v34 = vld [vmem:[#allocation11 + $0x18c] ss:$16 sps:$4 sm:$0xff]   ;;  %v18178_v41 = vld [vmem:[#allocation11 + $0x168] ss:$16 sps:$4 sm:$0xff]  }
 0x41f   :  { %v3425_v55 = vadd.f32 %v3400_v42, %v3375_v8  ;;  %v3376_v56 = vmul.f32 %v3354_v47, %v3243_v49  ;;  %v3285_v58 = vpop.f32.mrf.mxu0  ;;  %v18180_v38 = vld [vmem:[#allocation11 + $0x16c] ss:$16 sps:$4 sm:$0xff]   ;;  %v20547_v42 = vsub.s32 6, %v20401_v22  ;;  %v18184_v49 = vld [vmem:[#allocation11 + $0x148] ss:$16 sps:$4 sm:$0xff]  }
 0x420   :  { %v3245_v29 = vpop.f32.mrf.mxu1  ;;  %v18186_v47 = vld [vmem:[#allocation11 + $0x14c] ss:$16 sps:$4 sm:$0xff]  }
 0x421   :  { %v3426_v0 = vadd.f32 %v3404_v50, %v3376_v56  ;;  %v3286_v61 = vpop.f32.mrf.mxu0  ;;  %5133 = vmatpush2.bf16.msra.mxu1 %v18187_v52  ;;  %v3433_v63 = vmax.f32 %v3425_v55, 0.0  ;;  %v3358_v8 = vrot.slane %v20474_v54, %v20547_v42  ;;  %v18192_v52 = vld [vmem:[#allocation11 + $0x12c] ss:$16 sps:$4 sm:$0xff]   ;;  %v3362_v55 = vrot.slane %v20474_v54, %v20550_v48 }
 0x422   :  { %5134 = vmatprep.subr.bf16.mxu1 %v18195_v53  ;;  %v3408_v53 = vrot.slane %v20476_v57, %v20547_v42  ;;  %v3412_v29 = vrot.slane %v20476_v57, %v20550_v48  ;;  %v18204_v54 = vld [vmem:[#allocation11 + $0x4ec] ss:$16 sps:$4 sm:$0xff]   ;;  %v18202_v57 = vld [vmem:[#allocation11 + $0x4e8] ss:$16 sps:$4 sm:$0xff]  }
 0x423   :  { %v3434_v23 = vmax.f32 %v3426_v0, 0.0  ;;  %v20541_v11 = vpack.c.bf16 %v3433_v63, %v3433_v63  ;;  %v18190_v0 = vld [vmem:[#allocation11 + $0x128] ss:$16 sps:$4 sm:$0xff]  }
 0x425   :  { %v20539_v43 = vpack.c.bf16 %v3434_v23, %v3434_v23  ;;  %5135 = vmatpush2.bf16.msra.mxu1 %v18193_v62  ;;  %v18198_v62 = vld [vmem:[#allocation11 + $0x10c] ss:$16 sps:$4 sm:$0xff]  }
 0x426   :  { %5186 = vmatprep.subr.bf16.mxu1 %v18201_v37 }
 0x427   :  { %5095 = vmatprep.mubr.bf16.mxu0 %v20539_v43 }
 0x428   :  { %5096 = vmatmul.mubr.bf16.vlgmr.msra.gmra.mxu0 %v20541_v11 }
 0x429   :  { %5146 = vmatpush1.bf16.msra.mxu0 %v18106_v2  ;;  %5177 = vmatprep.mubr.bf16.mxu0 %v20493_v28  ;;  %v18142_v28 = vld [vmem:[#allocation11 + $0x28] ss:$16 sps:$4 sm:$0xff]  }
 0x42a   :  { %5147 = vmatprep.subr.bf16.mxu0 %v18114_v3  ;;  %v18196_v2 = vld [vmem:[#allocation11 + $0x108] ss:$16 sps:$4 sm:$0xff]  }
 0x42d   :  { %5148 = vmatpush1.bf16.msra.mxu0 %v18112_v6 }
 0x42e   :  { %5149 = vmatprep.subr.bf16.mxu0 %v18120_v4  ;;  %v18199_v4 = vld [vmem:[#allocation11 + $0x2e8] ss:$16 sps:$4 sm:$0xff]  }
 0x431   :  { %5150 = vmatpush1.bf16.msra.mxu0 %v18118_v7 }
 0x432   :  { %5151 = vmatprep.subr.bf16.mxu0 %v18126_v10  ;;  %v18207_v10 = vld [vmem:[#allocation11 + $0x2cc] ss:$16 sps:$4 sm:$0xff]  }
 0x435   :  { %5152 = vmatpush1.bf16.msra.mxu0 %v18124_v12  ;;  %v18210_v12 = vld [vmem:[#allocation11 + $0x4cc] ss:$16 sps:$4 sm:$0xff]  }
 0x436   :  { %5153 = vmatprep.subr.bf16.mxu0 %v18132_v14 }
 0x439   :  { %5154 = vmatpush1.bf16.msra.mxu0 %v18130_v15  ;;  %v18205_v15 = vld [vmem:[#allocation11 + $0x2c8] ss:$16 sps:$4 sm:$0xff]  }
 0x43a   :  { %5155 = vmatprep.subr.bf16.mxu0 %v18138_v16  ;;  %v18208_v16 = vld [vmem:[#allocation11 + $0x4c8] ss:$16 sps:$4 sm:$0xff]  }
 0x43d   :  { %5156 = vmatpush1.bf16.msra.mxu0 %v18136_v19 }
 0x43e   :  { %5157 = vmatprep.subr.bf16.mxu0 %v18144_v21  ;;  %v18213_v21 = vld [vmem:[#allocation11 + $0x2ac] ss:$16 sps:$4 sm:$0xff]  }
 0x441   :  { %5158 = vmatpush1.bf16.msra.mxu0 %v18142_v28  ;;  %v18216_v28 = vld [vmem:[#allocation11 + $0x4ac] ss:$16 sps:$4 sm:$0xff]  }
 0x442   :  { %5159 = vmatprep.subr.bf16.mxu0 %v18150_v26 }
 0x445   :  { %5160 = vmatpush1.bf16.msra.mxu0 %v18148_v44  ;;  %v18214_v44 = vld [vmem:[#allocation11 + $0x4a8] ss:$16 sps:$4 sm:$0xff]  }
 0x446   :  { %5161 = vmatprep.subr.bf16.mxu0 %v18156_v27 }
 0x449   :  { %5162 = vmatpush2.bf16.msra.mxu0 %v18154_v13  ;;  %v18219_v13 = vld [vmem:[#allocation11 + $0x28c] ss:$16 sps:$4 sm:$0xff]  }
 0x44a   :  { %5163 = vmatprep.subr.bf16.mxu0 %v18162_v5  ;;  %v18222_v5 = vld [vmem:[#allocation11 + $0x48c] ss:$16 sps:$4 sm:$0xff]  }
 0x44d   :  { %5164 = vmatpush2.bf16.msra.mxu0 %v18160_v32  ;;  %v18225_v32 = vld [vmem:[#allocation11 + $0x26c] ss:$16 sps:$4 sm:$0xff]  }
 0x44e   :  { %5165 = vmatprep.subr.bf16.mxu0 %v18168_v18  ;;  %v18228_v18 = vld [vmem:[#allocation11 + $0x46c] ss:$16 sps:$4 sm:$0xff]  }
 0x451   :  { %5166 = vmatpush2.bf16.msra.mxu0 %v18166_v33  ;;  %v18223_v33 = vld [vmem:[#allocation11 + $0x268] ss:$16 sps:$4 sm:$0xff]  }
 0x452   :  { %5167 = vmatprep.subr.bf16.mxu0 %v18174_v34  ;;  %v18226_v34 = vld [vmem:[#allocation11 + $0x468] ss:$16 sps:$4 sm:$0xff]  }
 0x455   :  { %5168 = vmatpush2.bf16.msra.mxu0 %v18172_v36  ;;  %v18231_v36 = vld [vmem:[#allocation11 + $0x24c] ss:$16 sps:$4 sm:$0xff]  }
 0x456   :  { %5169 = vmatprep.subr.bf16.mxu0 %v18180_v38  ;;  %v18234_v38 = vld [vmem:[#allocation11 + $0x44c] ss:$16 sps:$4 sm:$0xff]  }
 0x459   :  { %5170 = vmatpush2.bf16.msra.mxu0 %v18178_v41  ;;  %v18229_v41 = vld [vmem:[#allocation11 + $0x248] ss:$16 sps:$4 sm:$0xff]  }
 0x45a   :  { %v3322_v50 = vpop.f32.mrf.mxu1  ;;  %5171 = vmatprep.subr.bf16.mxu0 %v18186_v47  ;;  %v18232_v47 = vld [vmem:[#allocation11 + $0x448] ss:$16 sps:$4 sm:$0xff]  }
 0x45b   :  { %v3323_v17 = vadd.f32 %v3322_v50, %v20530_v46  ;;  %v18235_v50 = vld [vmem:[#allocation11 + $0x228] ss:$16 sps:$4 sm:$0xff]  }
 0x45c   :  { %v3324_v56 = vpop.f32.mrf.mxu1 }
 0x45d   :  { %v3377_v58 = vmul.f32 %v3358_v8, %v3323_v17  ;;  %v3325_v22 = vadd.f32 %v3324_v56, %v20537_v51  ;;  %5172 = vmatpush2.bf16.msra.mxu0 %v18184_v49  ;;  %v18237_v8 = vld [vmem:[#allocation11 + $0x22c] ss:$16 sps:$4 sm:$0xff]   ;;  %v18244_v56 = vld [vmem:[#allocation11 + $0x408] ss:$16 sps:$4 sm:$0xff]  }
 0x45e   :  { %v3326_v61 = vpop.f32.mrf.mxu1  ;;  %5173 = vmatprep.subr.bf16.mxu0 %v18192_v52  ;;  %v18240_v49 = vld [vmem:[#allocation11 + $0x42c] ss:$16 sps:$4 sm:$0xff]   ;;  %v18238_v52 = vld [vmem:[#allocation11 + $0x428] ss:$16 sps:$4 sm:$0xff]  }
 0x45f   :  { %v3427_v63 = vadd.f32 %v3408_v53, %v3377_v58  ;;  %v3378_v46 = vmul.f32 %v3362_v55, %v3325_v22  ;;  %v18243_v17 = vld [vmem:[#allocation11 + $0x20c] ss:$16 sps:$4 sm:$0xff]   ;;  %v18241_v55 = vld [vmem:[#allocation11 + $0x208] ss:$16 sps:$4 sm:$0xff]  }
 0x460   :  { %v3327_v37 = vpop.f32.mrf.mxu1  ;;  %v18246_v53 = vld [vmem:[#allocation11 + $0x40c] ss:$16 sps:$4 sm:$0xff]  }
 0x461   :  { %v3428_v23 = vadd.f32 %v3412_v29, %v3378_v46  ;;  %5174 = vmatpush2.bf16.msra.mxu0 %v18190_v0  ;;  %v3435_v3 = vmax.f32 %v3427_v63, 0.0  ;;  %v18249_v58 = vld [vmem:[#allocation11 + $0x3ec] ss:$16 sps:$4 sm:$0xff]   ;;  %v18247_v29 = vld [vmem:[#allocation11 + $0x3e8] ss:$16 sps:$4 sm:$0xff]  }
 0x462   :  { %5175 = vmatprep.subr.bf16.mxu0 %v18198_v62  ;;  %v18252_v22 = vld [vmem:[#allocation11 + $0x5ec] ss:$16 sps:$4 sm:$0xff]   ;;  %v18250_v0 = vld [vmem:[#allocation11 + $0x5e8] ss:$16 sps:$4 sm:$0xff]  }
 0x463   :  { %v3436_v6 = vmax.f32 %v3428_v23, 0.0  ;;  %v20564_v7 = vpack.c.bf16 %v3435_v3, %v3435_v3  ;;  %v18255_v61 = vld [vmem:[#allocation11 + $0x3cc] ss:$16 sps:$4 sm:$0xff]   ;;  %v18253_v63 = vld [vmem:[#allocation11 + $0x3c8] ss:$16 sps:$4 sm:$0xff]  }
 0x464   :  { %v18258_v62 = vld [vmem:[#allocation11 + $0x5cc] ss:$16 sps:$4 sm:$0xff]   ;;  %v18256_v46 = vld [vmem:[#allocation11 + $0x5c8] ss:$16 sps:$4 sm:$0xff]  }
 0x465   :  { %5176 = vmatpush2.bf16.msra.mxu0 %v18196_v2  ;;  %v20562_v51 = vpack.c.bf16 %v3436_v6, %v3436_v6  ;;  %v18261_v37 = vld [vmem:[#allocation11 + $0x3ac] ss:$16 sps:$4 sm:$0xff]   ;;  %v18259_v2 = vld [vmem:[#allocation11 + $0x3a8] ss:$16 sps:$4 sm:$0xff]  }
 0x466   :  { %5227 = vmatprep.subr.bf16.mxu0 %v18204_v54  ;;  %v18264_v23 = vld [vmem:[#allocation11 + $0x5ac] ss:$16 sps:$4 sm:$0xff]   ;;  %v18262_v3 = vld [vmem:[#allocation11 + $0x5a8] ss:$16 sps:$4 sm:$0xff]  }
 0x467   :  { %5136 = vmatprep.mubr.bf16.mxu1 %v20562_v51  ;;  %v18267_v54 = vld [vmem:[#allocation11 + $0x38c] ss:$16 sps:$4 sm:$0xff]  }
 0x468   :  { %5178 = vmatmul.mubr.bf16.vlgmr.msra.gmra.mxu0 %v20495_v30  ;;  %5137 = vmatmul.mubr.bf16.vlgmr.msra.gmra.mxu1 %v20564_v7  ;;  %v20569_v14 = vpop.f32.mrf.mxu0  ;;  %v18211_v30 = vld [vmem:[#allocation11 + $0x2a8] ss:$16 sps:$4 sm:$0xff]   ;;  %v18270_v6 = vld [vmem:[#allocation11 + $0x58c] ss:$16 sps:$4 sm:$0xff]  }
 0x469   :  { %5187 = vmatpush1.bf16.msra.mxu1 %v18199_v4  ;;  %5228 = vmatpush1.bf16.msra.mxu0 %v18202_v57  ;;  %v18265_v4 = vld [vmem:[#allocation11 + $0x388] ss:$16 sps:$4 sm:$0xff]  }
 0x46a   :  { %5259 = vmatprep.mubr.bf16.mxu0 %v20539_v43  ;;  %5218 = vmatprep.mubr.bf16.mxu1 %v20513_v31  ;;  %v20573_v19 = vpop.f32.mrf.mxu0  ;;  %v18217_v43 = vld [vmem:[#allocation11 + $0x288] ss:$16 sps:$4 sm:$0xff]  }
 0x46b   :  { %5188 = vmatprep.subr.bf16.mxu1 %v18207_v10  ;;  %5229 = vmatprep.subr.bf16.mxu0 %v18210_v12  ;;  %v18220_v31 = vld [vmem:[#allocation11 + $0x488] ss:$16 sps:$4 sm:$0xff]   ;;  %v18273_v10 = vld [vmem:[#allocation11 + $0x36c] ss:$16 sps:$4 sm:$0xff]  }
 0x46c   :  { %v5019_v26 = vpop.f32.mrf.mxu0  ;;  %v18268_v57 = vld [vmem:[#allocation11 + $0x588] ss:$16 sps:$4 sm:$0xff]   ;;  %v18276_v12 = vld [vmem:[#allocation11 + $0x56c] ss:$16 sps:$4 sm:$0xff]  }
 0x46d   :  { %5189 = vmatpush1.bf16.msra.mxu1 %v18205_v15  ;;  %5230 = vmatpush1.bf16.msra.mxu0 %v18208_v16  ;;  %v18271_v15 = vld [vmem:[#allocation11 + $0x368] ss:$16 sps:$4 sm:$0xff]  }
 0x46e   :  { %v5020_v27 = vpop.f32.mrf.mxu0  ;;  %5190 = vmatprep.subr.bf16.mxu1 %v18213_v21  ;;  %5231 = vmatprep.subr.bf16.mxu0 %v18216_v28  ;;  %v18274_v16 = vld [vmem:[#allocation11 + $0x568] ss:$16 sps:$4 sm:$0xff]   ;;  %v18279_v21 = vld [vmem:[#allocation11 + $0x34c] ss:$16 sps:$4 sm:$0xff]  }
 0x46f   :  { %v18282_v28 = vld [vmem:[#allocation11 + $0x54c] ss:$16 sps:$4 sm:$0xff]   ;;  %v18277_v26 = vld [vmem:[#allocation11 + $0x348] ss:$16 sps:$4 sm:$0xff]  }
 0x470   :  { %v18288_v27 = vld [vmem:[#allocation11 + $0x52c] ss:$16 sps:$4 sm:$0xff]  }
 0x471   :  { %5191 = vmatpush1.bf16.msra.mxu1 %v18211_v30  ;;  %5232 = vmatpush1.bf16.msra.mxu0 %v18214_v44  ;;  %v18280_v30 = vld [vmem:[#allocation11 + $0x548] ss:$16 sps:$4 sm:$0xff]   ;;  %v18285_v44 = vld [vmem:[#allocation11 + $0x32c] ss:$16 sps:$4 sm:$0xff]  }
 0x472   :  { %5192 = vmatprep.subr.bf16.mxu1 %v18219_v13  ;;  %5233 = vmatprep.subr.bf16.mxu0 %v18222_v5  ;;  %v18283_v13 = vld [vmem:[#allocation11 + $0x328] ss:$16 sps:$4 sm:$0xff]  }
 0x473   :  { %v18286_v5 = vld [vmem:[#allocation11 + $0x528] ss:$16 sps:$4 sm:$0xff]  }
 0x475   :  { %5193 = vmatpush1.bf16.msra.mxu1 %v18217_v43  ;;  %5234 = vmatpush1.bf16.msra.mxu0 %v18220_v31  ;;  %v18291_v43 = vld [vmem:[#allocation11 + $0x30c] ss:$16 sps:$4 sm:$0xff]  }
 0x476   :  { %5194 = vmatprep.subr.bf16.mxu1 %v18225_v32  ;;  %5235 = vmatprep.subr.bf16.mxu0 %v18228_v18  ;;  %v18294_v31 = vld [vmem:[#allocation11 + $0x50c] ss:$16 sps:$4 sm:$0xff]   ;;  %v18289_v32 = vld [vmem:[#allocation11 + $0x308] ss:$16 sps:$4 sm:$0xff]  }
 0x477   :  { %v18292_v18 = vld [vmem:[#allocation11 + $0x508] ss:$16 sps:$4 sm:$0xff]  }
 0x479   :  { %5195 = vmatpush1.bf16.msra.mxu1 %v18223_v33  ;;  %5236 = vmatpush1.bf16.msra.mxu0 %v18226_v34  ;;  %v18297_v33 = vld [vmem:[#allocation11 + $0x6ec] ss:$16 sps:$4 sm:$0xff]   ;;  %v18343_v34 = vld [vmem:[#allocation16 + $0x78] sm:$0xff]  }
 0x47a   :  { %5196 = vmatprep.subr.bf16.mxu1 %v18231_v36  ;;  %5237 = vmatprep.subr.bf16.mxu0 %v18234_v38  ;;  %v18295_v36 = vld [vmem:[#allocation11 + $0x6e8] ss:$16 sps:$4 sm:$0xff]   ;;  %v18300_v38 = vld [vmem:[#allocation11 + $0x6cc] ss:$16 sps:$4 sm:$0xff]  }
 0x47d   :  { %5197 = vmatpush1.bf16.msra.mxu1 %v18229_v41  ;;  %5238 = vmatpush1.bf16.msra.mxu0 %v18232_v47  ;;  %v18344_v41 = vld [vmem:[#allocation16 + $0x38] sm:$0xff]   ;;  %v18345_v47 = vld [vmem:[#allocation16 + $0x70] sm:$0xff]  }
 0x47e   :  { %5198 = vmatprep.subr.bf16.mxu1 %v18237_v8  ;;  %5239 = vmatprep.subr.bf16.mxu0 %v18240_v49 }
 0x481   :  { %5199 = vmatpush1.bf16.msra.mxu1 %v18235_v50  ;;  %5240 = vmatpush1.bf16.msra.mxu0 %v18238_v52  ;;  %v18298_v50 = vld [vmem:[#allocation11 + $0x6c8] ss:$16 sps:$4 sm:$0xff]  }
 0x482   :  { %5200 = vmatprep.subr.bf16.mxu1 %v18243_v17  ;;  %5241 = vmatprep.subr.bf16.mxu0 %v18246_v53  ;;  %v18303_v17 = vld [vmem:[#allocation11 + $0x6ac] ss:$16 sps:$4 sm:$0xff]  }
 0x483   :  { %v18346_v53 = vld [vmem:[#allocation16 + $0x30] sm:$0xff]  }
 0x485   :  { %5201 = vmatpush1.bf16.msra.mxu1 %v18241_v55  ;;  %5242 = vmatpush1.bf16.msra.mxu0 %v18244_v56 }
 0x486   :  { %5202 = vmatprep.subr.bf16.mxu1 %v18249_v58  ;;  %5243 = vmatprep.subr.bf16.mxu0 %v18252_v22  ;;  %v18348_v22 = vld [vmem:[#allocation16 + $0x28] sm:$0xff]  }
 0x489   :  { %5203 = vmatpush2.bf16.msra.mxu1 %v18247_v29  ;;  %5244 = vmatpush2.bf16.msra.mxu0 %v18250_v0  ;;  %v18304_v29 = vld [vmem:[#allocation11 + $0x688] ss:$16 sps:$4 sm:$0xff]   ;;  %v18309_v0 = vld [vmem:[#allocation11 + $0x66c] ss:$16 sps:$4 sm:$0xff]  }
 0x48a   :  { %5204 = vmatprep.subr.bf16.mxu1 %v18255_v61  ;;  %5245 = vmatprep.subr.bf16.mxu0 %v18258_v62  ;;  %v18350_v61 = vld [vmem:[#allocation16 + $0x20] sm:$0xff]  }
 0x48b   :  { %v18307_v62 = vld [vmem:[#allocation11 + $0x668] ss:$16 sps:$4 sm:$0xff]  }
 0x48d   :  { %5205 = vmatpush2.bf16.msra.mxu1 %v18253_v63  ;;  %5246 = vmatpush2.bf16.msra.mxu0 %v18256_v46  ;;  %v18312_v63 = vld [vmem:[#allocation11 + $0x64c] ss:$16 sps:$4 sm:$0xff]   ;;  %v18352_v46 = vld [vmem:[#allocation16 + $0x18] sm:$0xff]  }
 0x48e   :  { %5206 = vmatprep.subr.bf16.mxu1 %v18261_v37  ;;  %5247 = vmatprep.subr.bf16.mxu0 %v18264_v23  ;;  %v18353_v37 = vld [vmem:[#allocation16 + $0x50] sm:$0xff]  }
 0x48f   :  { %v18310_v23 = vld [vmem:[#allocation11 + $0x648] ss:$16 sps:$4 sm:$0xff]  }
 0x491   :  { %5207 = vmatpush2.bf16.msra.mxu1 %v18259_v2  ;;  %5248 = vmatpush2.bf16.msra.mxu0 %v18262_v3  ;;  %v18315_v2 = vld [vmem:[#allocation11 + $0x62c] ss:$16 sps:$4 sm:$0xff]  }
 0x492   :  { %5208 = vmatprep.subr.bf16.mxu1 %v18267_v54  ;;  %5249 = vmatprep.subr.bf16.mxu0 %v18270_v6  ;;  %v18354_v3 = vld [vmem:[#allocation16 + $0x10] sm:$0xff]   ;;  %v18355_v54 = vld [vmem:[#allocation16 + $0x48] sm:$0xff]  }
 0x493   :  { %v18313_v6 = vld [vmem:[#allocation11 + $0x628] ss:$16 sps:$4 sm:$0xff]  }
 0x495   :  { %5209 = vmatpush2.bf16.msra.mxu1 %v18265_v4  ;;  %5250 = vmatpush2.bf16.msra.mxu0 %v18268_v57  ;;  %v18318_v4 = vld [vmem:[#allocation11 + $0x60c] ss:$16 sps:$4 sm:$0xff]   ;;  %v18356_v57 = vld [vmem:[#allocation16 + $0x8] sm:$0xff]  }
 0x496   :  { %5210 = vmatprep.subr.bf16.mxu1 %v18273_v10  ;;  %5251 = vmatprep.subr.bf16.mxu0 %v18276_v12  ;;  %v18357_v10 = vld [vmem:[#allocation16 + $0x40] sm:$0xff]  }
 0x497   :  { %v18316_v12 = vld [vmem:[#allocation11 + $0x608] ss:$16 sps:$4 sm:$0xff]  }
 0x499   :  { %5211 = vmatpush2.bf16.msra.mxu1 %v18271_v15  ;;  %5252 = vmatpush2.bf16.msra.mxu0 %v18274_v16  ;;  %v18321_v15 = vld [vmem:[#allocation11 + $0x7ec] ss:$16 sps:$4 sm:$0xff]  }
 0x49a   :  { %5212 = vmatprep.subr.bf16.mxu1 %v18279_v21  ;;  %5253 = vmatprep.subr.bf16.mxu0 %v18282_v28  ;;  %v18358_v16 = vld [vmem:[#allocation16] sm:$0xff]  }
 0x49b   :  { %v18319_v21 = vld [vmem:[#allocation11 + $0x7e8] ss:$16 sps:$4 sm:$0xff]   ;;  %v18324_v28 = vld [vmem:[#allocation11 + $0x7cc] ss:$16 sps:$4 sm:$0xff]  }
 0x49d   :  { %5213 = vmatpush2.bf16.msra.mxu1 %v18277_v26  ;;  %5254 = vmatpush2.bf16.msra.mxu0 %v18280_v30  ;;  %v18322_v26 = vld [vmem:[#allocation11 + $0x7c8] ss:$16 sps:$4 sm:$0xff]   ;;  %v18327_v30 = vld [vmem:[#allocation11 + $0x7ac] ss:$16 sps:$4 sm:$0xff]  }
 0x49e   :  { %5214 = vmatprep.subr.bf16.mxu1 %v18285_v44  ;;  %5255 = vmatprep.subr.bf16.mxu0 %v18288_v27  ;;  %v18325_v44 = vld [vmem:[#allocation11 + $0x7a8] ss:$16 sps:$4 sm:$0xff]   ;;  %v18330_v27 = vld [vmem:[#allocation11 + $0x78c] ss:$16 sps:$4 sm:$0xff]  }
 0x4a1   :  { %5215 = vmatpush2.bf16.msra.mxu1 %v18283_v13  ;;  %5256 = vmatpush2.bf16.msra.mxu0 %v18286_v5  ;;  %v18328_v13 = vld [vmem:[#allocation11 + $0x788] ss:$16 sps:$4 sm:$0xff]   ;;  %v18333_v5 = vld [vmem:[#allocation11 + $0x76c] ss:$16 sps:$4 sm:$0xff]  }
 0x4a2   :  { %5216 = vmatprep.subr.bf16.mxu1 %v18291_v43  ;;  %5257 = vmatprep.subr.bf16.mxu0 %v18294_v31  ;;  %v18331_v43 = vld [vmem:[#allocation11 + $0x768] ss:$16 sps:$4 sm:$0xff]   ;;  %v18336_v31 = vld [vmem:[#allocation11 + $0x74c] ss:$16 sps:$4 sm:$0xff]  }
 0x4a5   :  { %5217 = vmatpush2.bf16.msra.mxu1 %v18289_v32  ;;  %5258 = vmatpush2.bf16.msra.mxu0 %v18292_v18  ;;  %v18334_v32 = vld [vmem:[#allocation11 + $0x748] ss:$16 sps:$4 sm:$0xff]   ;;  %v18339_v18 = vld [vmem:[#allocation11 + $0x72c] ss:$16 sps:$4 sm:$0xff]  }
 0x4a6   :  { %5268 = vmatprep.subr.bf16.mxu1 %v18297_v33  ;;  %17520 = vmatprep.subr.bf16.mxu0 %v18343_v34  ;;  %v18337_v33 = vld [vmem:[#allocation11 + $0x728] ss:$16 sps:$4 sm:$0xff]   ;;  %v18342_v34 = vld [vmem:[#allocation11 + $0x70c] ss:$16 sps:$4 sm:$0xff]  }
 0x4a8   :  { %5219 = vmatmul.mubr.bf16.vlgmr.msra.gmra.mxu1 %v20515_v60  ;;  %5260 = vmatmul.mubr.bf16.vlgmr.msra.gmra.mxu0 %v20541_v11  ;;  %v5056_v8 = vpop.f32.mrf.mxu1  ;;  %v18347_v60 = vld [vmem:[#allocation16 + $0x68] sm:$0xff]   ;;  %v18301_v11 = vld [vmem:[#allocation11 + $0x6a8] ss:$16 sps:$4 sm:$0xff]  }
 0x4a9   :  { %v20578_v49 = vadd.f32 %v5056_v8, %v20569_v14  ;;  %5269 = vmatpush1.bf16.msra.mxu1 %v18295_v36  ;;  %5300 = vmatprep.mubr.bf16.mxu1 %v20562_v51  ;;  %v18306_v14 = vld [vmem:[#allocation11 + $0x68c] ss:$16 sps:$4 sm:$0xff]   ;;  %v18340_v36 = vld [vmem:[#allocation11 + $0x708] ss:$16 sps:$4 sm:$0xff]  }
 0x4aa   :  { %v5058_v52 = vpop.f32.mrf.mxu1  ;;  %5270 = vmatprep.subr.bf16.mxu1 %v18300_v38  ;;  %17521 = vmatpush3.bf16.msra.mxu0 %v18344_v41  ;;  %v18349_v51 = vld [vmem:[#allocation16 + $0x60] sm:$0xff]  }
 0x4ab   :  { %v20582_v55 = vadd.f32 %v5058_v52, %v20573_v19  ;;  %17522 = vmatprep.subr.bf16.mxu0 %v18345_v47  ;;  %v18351_v19 = vld [vmem:[#allocation16 + $0x58] sm:$0xff]  }
 0x4ac   :  { %v5060_v56 = vpop.f32.mrf.mxu1  ;;  %v18359_v52 = vld [vmem:[#allocation16 + $0xf8] sm:$0xff]  }
 0x4ad   :  { %5271 = vmatpush1.bf16.msra.mxu1 %v18298_v50  ;;  %v18363_v56 = vld [vmem:[#allocation16 + $0xe8] sm:$0xff]  }
 0x4ae   :  { %v5061_v58 = vpop.f32.mrf.mxu1  ;;  %5272 = vmatprep.subr.bf16.mxu1 %v18303_v17  ;;  %17523 = vmatpush3.bf16.msra.mxu0 %v18346_v53  ;;  %v18360_v17 = vld [vmem:[#allocation16 + $0xb8] sm:$0xff]   ;;  %v18361_v53 = vld [vmem:[#allocation16 + $0xf0] sm:$0xff]  }
 0x4af   :  { %17524 = vmatprep.subr.bf16.mxu0 %v18347_v60  ;;  %v18362_v60 = vld [vmem:[#allocation16 + $0xb0] sm:$0xff]   ;;  %v18365_v58 = vld [vmem:[#allocation16 + $0xe0] sm:$0xff]  }
 0x4b1   :  { %5273 = vmatpush1.bf16.msra.mxu1 %v18301_v11  ;;  %v18364_v11 = vld [vmem:[#allocation16 + $0xa8] sm:$0xff]  }
 0x4b2   :  { %5274 = vmatprep.subr.bf16.mxu1 %v18306_v14  ;;  %17525 = vmatpush3.bf16.msra.mxu0 %v18348_v22  ;;  %v18367_v14 = vld [vmem:[#allocation16 + $0xd8] sm:$0xff]  }
 0x4b3   :  { %17526 = vmatprep.subr.bf16.mxu0 %v18349_v51  ;;  %v20586_v22 = vld [vmem:[#allocation13] sm:$0xf] }
 0x4b4   :  { %v5314_v51 = vrot.slane %v20586_v22, %v20406_v24 }
 0x4b5   :  { %5275 = vmatpush1.bf16.msra.mxu1 %v18304_v29  ;;  %v20590_v29 = vld [vmem:[#allocation14] sm:$0xf] }
 0x4b6   :  { %5276 = vmatprep.subr.bf16.mxu1 %v18309_v0  ;;  %17527 = vmatpush3.bf16.msra.mxu0 %v18350_v61  ;;  %v18369_v0 = vld [vmem:[#allocation16 + $0xd0] sm:$0xff]  }
 0x4b7   :  { %17528 = vmatprep.subr.bf16.mxu0 %v18351_v19 }
 0x4b9   :  { %5277 = vmatpush1.bf16.msra.mxu1 %v18307_v62  ;;  %v18370_v62 = vld [vmem:[#allocation16 + $0x90] sm:$0xff]  }
 0x4ba   :  { %5278 = vmatprep.subr.bf16.mxu1 %v18312_v63  ;;  %17529 = vmatpush3.bf16.msra.mxu0 %v18352_v46 }
 0x4bb   :  { %17530 = vmatprep.subr.bf16.mxu0 %v18353_v37  ;;  %v5318_v37 = vrot.slane %v20586_v22, %v20409_v25 }
 0x4bd   :  { %5279 = vmatpush1.bf16.msra.mxu1 %v18310_v23  ;;  %v5340_v23 = vrot.slane %v20590_v29, %v20406_v24 }
 0x4be   :  { %5280 = vmatprep.subr.bf16.mxu1 %v18315_v2  ;;  %17531 = vmatpush3.bf16.msra.mxu0 %v18354_v3 }
 0x4bf   :  { %17532 = vmatprep.subr.bf16.mxu0 %v18355_v54 }
 0x4c1   :  { %5281 = vmatpush1.bf16.msra.mxu1 %v18313_v6 }
 0x4c2   :  { %5282 = vmatprep.subr.bf16.mxu1 %v18318_v4  ;;  %17533 = vmatpush3.bf16.msra.mxu0 %v18356_v57  ;;  %v5344_v4 = vrot.slane %v20590_v29, %v20409_v25  ;;  %v18371_v57 = vld [vmem:[#allocation16 + $0xc8] sm:$0xff]  }
 0x4c3   :  { %17534 = vmatprep.subr.bf16.mxu0 %v18357_v10 }
 0x4c5   :  { %5283 = vmatpush1.bf16.msra.mxu1 %v18316_v12 }
 0x4c6   :  { %5284 = vmatprep.subr.bf16.mxu1 %v18321_v15  ;;  %17535 = vmatpush3.bf16.msra.mxu0 %v18358_v16 }
 0x4c9   :  { %5285 = vmatpush2.bf16.msra.mxu1 %v18319_v21 }
 0x4ca   :  { %5286 = vmatprep.subr.bf16.mxu1 %v18324_v28 }
 0x4cd   :  { %5287 = vmatpush2.bf16.msra.mxu1 %v18322_v26 }
 0x4ce   :  { %5288 = vmatprep.subr.bf16.mxu1 %v18327_v30  ;;  %v18373_v30 = vld [vmem:[#allocation16 + $0xc0] sm:$0xff]  }
 0x4d1   :  { %5289 = vmatpush2.bf16.msra.mxu1 %v18325_v44  ;;  %v18374_v44 = vld [vmem:[#allocation16 + $0x80] sm:$0xff]  }
 0x4d2   :  { %5290 = vmatprep.subr.bf16.mxu1 %v18330_v27 }
 0x4d5   :  { %5291 = vmatpush2.bf16.msra.mxu1 %v18328_v13 }
 0x4d6   :  { %5292 = vmatprep.subr.bf16.mxu1 %v18333_v5 }
 0x4d9   :  { %5293 = vmatpush2.bf16.msra.mxu1 %v18331_v43 }
 0x4da   :  { %5294 = vmatprep.subr.bf16.mxu1 %v18336_v31 }
 0x4dd   :  { %5295 = vmatpush2.bf16.msra.mxu1 %v18334_v32 }
 0x4de   :  { %5296 = vmatprep.subr.bf16.mxu1 %v18339_v18 }
 0x4e1   :  { %5297 = vmatpush2.bf16.msra.mxu1 %v18337_v33 }
 0x4e2   :  { %5298 = vmatprep.subr.bf16.mxu1 %v18342_v34 }
 0x4e5   :  { %5299 = vmatpush2.bf16.msra.mxu1 %v18340_v36 }
 0x4e6   :  { %17542 = vmatprep.subr.bf16.mxu1 %v18359_v52  ;;  %v18383_v52 = vld [vmem:[#allocation19 + $0xc4] ss:$16 sps:$4 sm:$0xff]  }
 0x4e8   :  { %5301 = vmatmul.mubr.bf16.vlgmr.msra.gmra.mxu1 %v20564_v7  ;;  %v5097_v38 = vpop.f32.mrf.mxu0  ;;  %v18366_v7 = vld [vmem:[#allocation16 + $0xa0] sm:$0xff]  }
 0x4e9   :  { %v5098_v41 = vadd.f32 %v5097_v38, %v20578_v49  ;;  %17543 = vmatpush3.bf16.msra.mxu1 %v18360_v17  ;;  %v18368_v49 = vld [vmem:[#allocation16 + $0x98] sm:$0xff]   ;;  %v18381_v17 = vld [vmem:[#allocation19 + $0xc0] ss:$16 sps:$4 sm:$0xff]  }
 0x4ea   :  { %v5099_v47 = vpop.f32.mrf.mxu0  ;;  %17544 = vmatprep.subr.bf16.mxu1 %v18361_v53  ;;  %v18389_v53 = vld [vmem:[#allocation19 + $0xa4] ss:$16 sps:$4 sm:$0xff]  }
 0x4eb   :  { %v5100_v63 = vadd.f32 %v5099_v47, %v20582_v55  ;;  %v18372_v55 = vld [vmem:[#allocation16 + $0x88] sm:$0xff]   ;;  %v18375_v47 = vld [vmem:[#allocation19 + $0xe0] ss:$16 sps:$4 sm:$0xff]  }
 0x4ec   :  { %v5101_v8 = vpop.f32.mrf.mxu0 }
 0x4ed   :  { %17545 = vmatpush3.bf16.msra.mxu1 %v18362_v60  ;;  %v18377_v8 = vld [vmem:[#allocation19 + $0xe4] ss:$16 sps:$4 sm:$0xff]   ;;  %v18387_v60 = vld [vmem:[#allocation19 + $0xa0] ss:$16 sps:$4 sm:$0xff]  }
 0x4ee   :  { %v5102_v50 = vpop.f32.mrf.mxu0  ;;  %17546 = vmatprep.subr.bf16.mxu1 %v18363_v56  ;;  %5924 = vmatprep.subr.bf16.mxu0 %v18377_v8  ;;  %v18395_v56 = vld [vmem:[#allocation19 + $0x84] ss:$16 sps:$4 sm:$0xff]  }
 0x4ef   :  { %v18380_v50 = vld [vmem:[#allocation19 + $0xec] ss:$16 sps:$4 sm:$0xff]   ;;  %v18419_v8 = vld [vmem:[#allocation19 + $0x4] ss:$16 sps:$4 sm:$0xff]  }
 0x4f1   :  { %17547 = vmatpush3.bf16.msra.mxu1 %v18364_v11  ;;  %v18393_v11 = vld [vmem:[#allocation19 + $0x80] ss:$16 sps:$4 sm:$0xff]  }
 0x4f2   :  { %17548 = vmatprep.subr.bf16.mxu1 %v18365_v58  ;;  %v18401_v58 = vld [vmem:[#allocation19 + $0x64] ss:$16 sps:$4 sm:$0xff]  }
 0x4f5   :  { %17549 = vmatpush3.bf16.msra.mxu1 %v18366_v7  ;;  %v18399_v7 = vld [vmem:[#allocation19 + $0x60] ss:$16 sps:$4 sm:$0xff]  }
 0x4f6   :  { %17550 = vmatprep.subr.bf16.mxu1 %v18367_v14  ;;  %v18407_v14 = vld [vmem:[#allocation19 + $0x44] ss:$16 sps:$4 sm:$0xff]  }
 0x4f9   :  { %17551 = vmatpush3.bf16.msra.mxu1 %v18368_v49  ;;  %v18405_v49 = vld [vmem:[#allocation19 + $0x40] ss:$16 sps:$4 sm:$0xff]  }
 0x4fa   :  { %17552 = vmatprep.subr.bf16.mxu1 %v18369_v0  ;;  %v5322_v0 = vrot.slane %v20586_v22, %v20434_v39 }
 0x4fd   :  { %17553 = vmatpush3.bf16.msra.mxu1 %v18370_v62 }
 0x4fe   :  { %17554 = vmatprep.subr.bf16.mxu1 %v18371_v57 }
 0x501   :  { %17555 = vmatpush3.bf16.msra.mxu1 %v18372_v55 }
 0x502   :  { %17556 = vmatprep.subr.bf16.mxu1 %v18373_v30  ;;  %v18398_v30 = vld [vmem:[#allocation19 + $0x8c] ss:$16 sps:$4 sm:$0xff]  }
 0x505   :  { %17557 = vmatpush3.bf16.msra.mxu1 %v18374_v44  ;;  %v18396_v44 = vld [vmem:[#allocation19 + $0x88] ss:$16 sps:$4 sm:$0xff]  }
 0x506   :  { %5965 = vmatprep.subr.bf16.mxu1 %v18380_v50  ;;  %v18422_v50 = vld [vmem:[#allocation19 + $0xc] ss:$16 sps:$4 sm:$0xff]  }
 0x528   :  { %v5179_v61 = vpop.f32.mrf.mxu0  ;;  %v5138_v19 = vpop.f32.mrf.mxu1 }
 0x529   :  { %v5139_v46 = vadd.f32 %v5138_v19, %v5098_v41 }
 0x52a   :  { %v5181_v2 = vpop.f32.mrf.mxu0  ;;  %v5140_v3 = vpop.f32.mrf.mxu1 }
 0x52b   :  { %v5331_v54 = vmul.f32 %v5314_v51, %v5139_v46  ;;  %v5141_v6 = vadd.f32 %v5140_v3, %v5100_v63  ;;  %v5326_v63 = vrot.slane %v20586_v22, %v20437_v45  ;;  %v5348_v46 = vrot.slane %v20590_v29, %v20434_v39  ;;  %v18378_v22 = vld [vmem:[#allocation19 + $0xe8] ss:$16 sps:$4 sm:$0xff]  }
 0x52c   :  { %v5183_v10 = vpop.f32.mrf.mxu0  ;;  %v5142_v12 = vpop.f32.mrf.mxu1 }
 0x52d   :  { %v5332_v15 = vmul.f32 %v5318_v37, %v5141_v6  ;;  %v20599_v16 = vadd.f32 %v5340_v23, %v5331_v54  ;;  %v5352_v54 = vrot.slane %v20590_v29, %v20437_v45  ;;  %v18392_v29 = vld [vmem:[#allocation19 + $0xac] ss:$16 sps:$4 sm:$0xff]  }
 0x52e   :  { %v5184_v21 = vpop.f32.mrf.mxu0  ;;  %v5143_v28 = vpop.f32.mrf.mxu1 }
 0x52f   :  { %v20601_v26 = vadd.f32 %v5344_v4, %v5332_v15  ;;  %v5361_v13 = vpack.c.bf16 %v20599_v16, %v20599_v16  ;;  %v18386_v15 = vld [vmem:[#allocation19 + $0xcc] ss:$16 sps:$4 sm:$0xff]   ;;  %v18384_v21 = vld [vmem:[#allocation19 + $0xc8] ss:$16 sps:$4 sm:$0xff]  }
 0x530   :  { %v18390_v28 = vld [vmem:[#allocation19 + $0xa8] ss:$16 sps:$4 sm:$0xff]  }
 0x531   :  { %v5362_v27 = vpack.c.bf16 %v20601_v26, %v20601_v26 }
 0x533   :  { %5660 = vmatprep.mubr.bf16.mxu0 %v5362_v27  ;;  %v18404_v27 = vld [vmem:[#allocation19 + $0x6c] ss:$16 sps:$4 sm:$0xff]  }
 0x534   :  { %5661 = vmatmul.mubr.bf16.vlgmr.msra.gmra.mxu0 %v5361_v13  ;;  %v18402_v13 = vld [vmem:[#allocation19 + $0x68] ss:$16 sps:$4 sm:$0xff]  }
 0x535   :  { %5925 = vmatpush1.bf16.msra.mxu0 %v18375_v47 }
 0x536   :  { %5926 = vmatprep.subr.bf16.mxu0 %v18383_v52  ;;  %v18417_v52 = vld [vmem:[#allocation19] ss:$16 sps:$4 sm:$0xff]  }
 0x539   :  { %5927 = vmatpush1.bf16.msra.mxu0 %v18381_v17  ;;  %v18420_v17 = vld [vmem:[#allocation19 + $0x8] ss:$16 sps:$4 sm:$0xff]  }
 0x53a   :  { %5928 = vmatprep.subr.bf16.mxu0 %v18389_v53  ;;  %v20112_v53 = vmov 0  }
 0x53b   :  { %5956 = vmatprep.mubr.bf16.mxu0 %v20112_v53 }
 0x53d   :  { %5929 = vmatpush1.bf16.msra.mxu0 %v18387_v60  ;;  %v6102_v60 = vld [vmem:[#allocation22 + $0x1c0] sm:$0xff] }
 0x53e   :  { %5930 = vmatprep.subr.bf16.mxu0 %v18395_v56  ;;  %v6106_v56 = vld [vmem:[#allocation22 + $0x1e0] sm:$0xff] }
 0x541   :  { %5931 = vmatpush1.bf16.msra.mxu0 %v18393_v11  ;;  %v6230_v11 = vld [vmem:[#allocation22 + $0x5c0] sm:$0xff] }
 0x542   :  { %5932 = vmatprep.subr.bf16.mxu0 %v18401_v58  ;;  %v16381_v58 = vcombine.low %v6102_v60, %v6106_v56 }
 0x545   :  { %5933 = vmatpush1.bf16.msra.mxu0 %v18399_v7  ;;  %v16382_v7 = vcombine.high %v6102_v60, %v6106_v56 }
 0x546   :  { %5934 = vmatprep.subr.bf16.mxu0 %v18407_v14  ;;  %v6234_v14 = vld [vmem:[#allocation22 + $0x5e0] sm:$0xff] }
 0x549   :  { %5935 = vmatpush1.bf16.msra.mxu0 %v18405_v49  ;;  %v16509_v49 = vcombine.low %v6230_v11, %v6234_v14 }
 0x568   :  { %v5220_v5 = vpop.f32.mrf.mxu1  ;;  %v5261_v43 = vpop.f32.mrf.mxu0 }
 0x569   :  { %v5221_v31 = vadd.f32 %v5220_v5, %v5179_v61  ;;  %v18410_v5 = vld [vmem:[#allocation19 + $0x4c] ss:$16 sps:$4 sm:$0xff]  }
 0x56a   :  { %v5222_v32 = vpop.f32.mrf.mxu1  ;;  %v5263_v18 = vpop.f32.mrf.mxu0 }
 0x56b   :  { %v5262_v33 = vadd.f32 %v5261_v43, %v5221_v31  ;;  %v5223_v51 = vadd.f32 %v5222_v32, %v5181_v2  ;;  %v18408_v43 = vld [vmem:[#allocation19 + $0x48] ss:$16 sps:$4 sm:$0xff]  }
 0x56c   :  { %v5224_v34 = vpop.f32.mrf.mxu1  ;;  %v5265_v36 = vpop.f32.mrf.mxu0 }
 0x56d   :  { %v5264_v19 = vadd.f32 %v5263_v18, %v5223_v51  ;;  %v18413_v18 = vld [vmem:[#allocation19 + $0x24] ss:$16 sps:$4 sm:$0xff]   ;;  %v18411_v36 = vld [vmem:[#allocation19 + $0x20] ss:$16 sps:$4 sm:$0xff]   ;;  %v16510_v51 = vcombine.high %v6230_v11, %v6234_v14 }
 0x56e   :  { %v5225_v38 = vpop.f32.mrf.mxu1  ;;  %v5266_v41 = vpop.f32.mrf.mxu0  ;;  %5936 = vmatprep.subr.bf16.mxu0 %v18413_v18  ;;  %v6190_v14 = vld [vmem:[#allocation22 + $0x480] sm:$0xff] }
 0x56f   :  { %v18414_v38 = vld [vmem:[#allocation19 + $0x28] ss:$16 sps:$4 sm:$0xff]   ;;  %5937 = vmatpush1.bf16.msra.mxu0 %v18411_v36 }
 0x570   :  { %5938 = vmatprep.subr.bf16.mxu0 %v18419_v8  ;;  %v6202_v8 = vld [vmem:[#allocation22 + $0x4e0] sm:$0xff] }
 0x573   :  { %5939 = vmatpush1.bf16.msra.mxu0 %v18417_v52 }
 0x574   :  { %7582 = vmatprep.subr.bf16.mxu0 %v16382_v7  ;;  %v6066_v7 = vld [vmem:[#allocation22 + $0xa0] sm:$0xff] }
 0x5a8   :  { %v5302_v61 = vpop.f32.mrf.mxu1 }
 0x5a9   :  { %v5303_v62 = vadd.f32 %v5302_v61, %v5262_v33  ;;  %v18416_v33 = vld [vmem:[#allocation19 + $0x2c] ss:$16 sps:$4 sm:$0xff]  }
 0x5aa   :  { %v5304_v37 = vpop.f32.mrf.mxu1 }
 0x5ab   :  { %v5333_v23 = vmul.f32 %v5322_v0, %v5303_v62  ;;  %v5305_v3 = vadd.f32 %v5304_v37, %v5264_v19  ;;  %v16256_v0 = vld [vmem:[#allocation17] ss:$0 sm:$0xff] }
 0x5ac   :  { %v5306_v6 = vpop.f32.mrf.mxu1 }
 0x5ad   :  { %v5334_v2 = vmul.f32 %v5326_v63, %v5305_v3  ;;  %v20615_v4 = vadd.f32 %v5348_v46, %v5333_v23  ;;  %v6094_v23 = vld [vmem:[#allocation22 + $0x180] sm:$0xff] }
 0x5ae   :  { %v5307_v57 = vpop.f32.mrf.mxu1  ;;  %v6222_v6 = vld [vmem:[#allocation22 + $0x580] sm:$0xff] }
 0x5af   :  { %v20617_v10 = vadd.f32 %v5352_v54, %v5334_v2  ;;  %v5363_v55 = vpack.c.bf16 %v20615_v4, %v20615_v4  ;;  %v6098_v54 = vld [vmem:[#allocation22 + $0x1a0] sm:$0xff] }
 0x5b0   :  { %v6226_v2 = vld [vmem:[#allocation22 + $0x5a0] sm:$0xff] }
 0x5b1   :  { %v5364_v12 = vpack.c.bf16 %v20617_v10, %v20617_v10 }
 0x5b3   :  { %5700 = vmatprep.mubr.bf16.mxu1 %v5364_v12 }
 0x5b4   :  { %5701 = vmatmul.mubr.bf16.vlgmr.msra.gmra.mxu1 %v5363_v55  ;;  %v16502_v55 = vcombine.high %v6222_v6, %v6226_v2 }
 0x5b5   :  { %5966 = vmatpush1.bf16.msra.mxu1 %v18378_v22  ;;  %5997 = vmatprep.mubr.bf16.mxu1 %v20112_v53  ;;  %v16374_v22 = vcombine.high %v6094_v23, %v6098_v54 }
 0x5b6   :  { %5967 = vmatprep.subr.bf16.mxu1 %v18386_v15  ;;  %v6086_v15 = vld [vmem:[#allocation22 + $0x140] sm:$0xff] }
 0x5b9   :  { %5968 = vmatpush1.bf16.msra.mxu1 %v18384_v21  ;;  %v6090_v21 = vld [vmem:[#allocation22 + $0x160] sm:$0xff] }
 0x5ba   :  { %5969 = vmatprep.subr.bf16.mxu1 %v18392_v29  ;;  %v6214_v29 = vld [vmem:[#allocation22 + $0x540] sm:$0xff]  ;;  %v16365_v18 = vcombine.low %v6086_v15, %v6090_v21 }
 0x5bd   :  { %5970 = vmatpush1.bf16.msra.mxu1 %v18390_v28  ;;  %v6218_v28 = vld [vmem:[#allocation22 + $0x560] sm:$0xff] }
 0x5be   :  { %5971 = vmatprep.subr.bf16.mxu1 %v18398_v30  ;;  %v16373_v30 = vcombine.low %v6094_v23, %v6098_v54  ;;  %v6186_v23 = vld [vmem:[#allocation22 + $0x460] sm:$0xff] }
 0x5c1   :  { %5972 = vmatpush1.bf16.msra.mxu1 %v18396_v44  ;;  %v16501_v44 = vcombine.low %v6222_v6, %v6226_v2  ;;  %v6046_v2 = vld [vmem:[#allocation22] sm:$0xff] }
 0x5c2   :  { %5973 = vmatprep.subr.bf16.mxu1 %v18404_v27  ;;  %v16366_v27 = vcombine.high %v6086_v15, %v6090_v21 }
 0x5c5   :  { %5974 = vmatpush1.bf16.msra.mxu1 %v18402_v13  ;;  %v16494_v13 = vcombine.high %v6214_v29, %v6218_v28 }
 0x5c6   :  { %5975 = vmatprep.subr.bf16.mxu1 %v18410_v5  ;;  %v6078_v5 = vld [vmem:[#allocation22 + $0x100] sm:$0xff] }
 0x5c9   :  { %5976 = vmatpush1.bf16.msra.mxu1 %v18408_v43  ;;  %v6082_v43 = vld [vmem:[#allocation22 + $0x120] sm:$0xff] }
 0x5ca   :  { %5977 = vmatprep.subr.bf16.mxu1 %v18416_v33  ;;  %v16493_v33 = vcombine.low %v6214_v29, %v6218_v28  ;;  %v6166_v28 = vld [vmem:[#allocation22 + $0x3c0] sm:$0xff] }
 0x5cd   :  { %5978 = vmatpush1.bf16.msra.mxu1 %v18414_v38  ;;  %v6070_v38 = vld [vmem:[#allocation22 + $0xc0] sm:$0xff] }
 0x5ce   :  { %5979 = vmatprep.subr.bf16.mxu1 %v18422_v50  ;;  %v16357_v50 = vcombine.low %v6078_v5, %v6082_v43 }
 0x5d1   :  { %5980 = vmatpush1.bf16.msra.mxu1 %v18420_v17 }
 0x5d2   :  { %7623 = vmatprep.subr.bf16.mxu1 %v16510_v51  ;;  %v6194_v51 = vld [vmem:[#allocation22 + $0x4a0] sm:$0xff] }
 0x5f4   :  { %v17536_v31 = vpop.f32.mrf.mxu0 }
 0x5f6   :  { %v17537_v32 = vpop.f32.mrf.mxu0 }
 0x5f7   :  { %v17538_v34 = vadd.f32 %v17537_v32, %v17536_v31  ;;  %v6206_v31 = vld [vmem:[#allocation22 + $0x500] sm:$0xff] }
 0x5f8   :  { %v17539_v41 = vpop.f32.mrf.mxu0  ;;  %v6210_v32 = vld [vmem:[#allocation22 + $0x520] sm:$0xff] }
 0x5f9   :  { %v5663_v62 = vadd.f32 %v17538_v34, %v16256_v0  ;;  %v16358_v34 = vcombine.high %v6078_v5, %v6082_v43  ;;  %v16486_v36 = vcombine.high %v6206_v31, %v6210_v32  ;;  %v6074_v41 = vld [vmem:[#allocation22 + $0xe0] sm:$0xff]  ;;  %v16485_v52 = vcombine.low %v6206_v31, %v6210_v32 }
 0x5fa   :  { %v17540_v47 = vpop.f32.mrf.mxu0  ;;  %v16350_v17 = vcombine.high %v6070_v38, %v6074_v41  ;;  %v16349_v56 = vcombine.low %v6070_v38, %v6074_v41  ;;  %v6158_v32 = vld [vmem:[#allocation22 + $0x380] sm:$0xff] }
 0x5fb   :  { %v6198_v47 = vld [vmem:[#allocation22 + $0x4c0] sm:$0xff] }
 0x5fc   :  { %v16478_v60 = vcombine.high %v6198_v47, %v6202_v8  ;;  %v16477_v11 = vcombine.low %v6198_v47, %v6202_v8  ;;  %v6150_v8 = vld [vmem:[#allocation22 + $0x340] sm:$0xff] }
 0x674   :  { %v17558_v61 = vpop.f32.mrf.mxu1 }
 0x676   :  { %v17559_v19 = vpop.f32.mrf.mxu1 }
 0x677   :  { %v17560_v63 = vadd.f32 %v17559_v19, %v17558_v61  ;;  %v16469_v61 = vcombine.low %v6190_v14, %v6194_v51  ;;  %v16470_v19 = vcombine.high %v6190_v14, %v6194_v51  ;;  %v6146_v14 = vld [vmem:[#allocation22 + $0x320] sm:$0xff] }
 0x678   :  { %v17561_v46 = vpop.f32.mrf.mxu1 }
 0x679   :  { %v5703_v37 = vadd.f32 %v17560_v63, %v5663_v62  ;;  %v6054_v62 = vld [vmem:[#allocation22 + $0x40] sm:$0xff] }
 0x67a   :  { %v17562_v3 = vpop.f32.mrf.mxu1  ;;  %v6058_v63 = vld [vmem:[#allocation22 + $0x60] sm:$0xff] }
 0x67b   :  { %v5708_v57 = vmax.f32 %v5703_v37, 0.0  ;;  %v6182_v46 = vld [vmem:[#allocation22 + $0x440] sm:$0xff]  ;;  %v16334_v37 = vcombine.high %v6054_v62, %v6058_v63  ;;  %v16333_v3 = vcombine.low %v6054_v62, %v6058_v63 }
 0x67c   :  { %v16461_v54 = vcombine.low %v6182_v46, %v6186_v23  ;;  %v16462_v6 = vcombine.high %v6182_v46, %v6186_v23  ;;  %v6138_v62 = vld [vmem:[#allocation22 + $0x2e0] sm:$0xff] }
 0x67d   :  { %v5709_v12 = vpack.c.bf16 %v5708_v57, %v5708_v57  ;;  %v6050_v57 = vld [vmem:[#allocation22 + $0x20] sm:$0xff] }
 0x67e   :  { %v16325_v15 = vcombine.low %v6046_v2, %v6050_v57  ;;  %v6262_v23 = vld [vmem:[#allocation22 + $0x6c0] sm:$0xff] }
 0x67f   :  { %5957 = vmatmul.mubr.bf16.vlgmr.msra.gmra.mxu0 %v5709_v12  ;;  %5998 = vmatmul.mubr.bf16.vlgmr.msra.gmra.mxu1 %v5709_v12  ;;  %v6174_v12 = vld [vmem:[#allocation22 + $0x400] sm:$0xff] }
 0x680   :  { %7583 = vmatpush1.bf16.msra.mxu0 %v16381_v58  ;;  %7624 = vmatpush1.bf16.msra.mxu1 %v16509_v49  ;;  %v6062_v58 = vld [vmem:[#allocation22 + $0x80] sm:$0xff] }
 0x681   :  { %7584 = vmatprep.subr.bf16.mxu0 %v16374_v22  ;;  %7625 = vmatprep.subr.bf16.mxu1 %v16502_v55  ;;  %v16342_v49 = vcombine.high %v6062_v58, %v6066_v7  ;;  %v16341_v0 = vcombine.low %v6062_v58, %v6066_v7  ;;  %v16326_v22 = vcombine.high %v6046_v2, %v6050_v57  ;;  %v6178_v55 = vld [vmem:[#allocation22 + $0x420] sm:$0xff] }
 0x682   :  { %v16453_v21 = vcombine.low %v6174_v12, %v6178_v55  ;;  %v16454_v29 = vcombine.high %v6174_v12, %v6178_v55  ;;  %v6142_v7 = vld [vmem:[#allocation22 + $0x300] sm:$0xff] }
 0x683   :  { %v16421_v51 = vcombine.low %v6142_v7, %v6146_v14  ;;  %v6130_v2 = vld [vmem:[#allocation22 + $0x2a0] sm:$0xff] }
 0x684   :  { %7585 = vmatpush1.bf16.msra.mxu0 %v16373_v30  ;;  %7626 = vmatpush1.bf16.msra.mxu1 %v16501_v44  ;;  %v6170_v30 = vld [vmem:[#allocation22 + $0x3e0] sm:$0xff] }
 0x685   :  { %7586 = vmatprep.subr.bf16.mxu0 %v16366_v27  ;;  %7627 = vmatprep.subr.bf16.mxu1 %v16494_v13  ;;  %v6294_v44 = vld [vmem:[#allocation22 + $0x7c0] sm:$0xff]  ;;  %v16446_v27 = vcombine.high %v6166_v28, %v6170_v30  ;;  %v16445_v5 = vcombine.low %v6166_v28, %v6170_v30 }
 0x686   :  { %v6298_v13 = vld [vmem:[#allocation22 + $0x7e0] sm:$0xff] }
 0x687   :  { %v16573_v43 = vcombine.low %v6294_v44, %v6298_v13  ;;  %v16574_v31 = vcombine.high %v6294_v44, %v6298_v13  ;;  %v6254_v57 = vld [vmem:[#allocation22 + $0x680] sm:$0xff] }
 0x688   :  { %7587 = vmatpush1.bf16.msra.mxu0 %v16365_v18  ;;  %7628 = vmatpush1.bf16.msra.mxu1 %v16493_v33  ;;  %v6162_v18 = vld [vmem:[#allocation22 + $0x3a0] sm:$0xff] }
 0x689   :  { %7588 = vmatprep.subr.bf16.mxu0 %v16358_v34  ;;  %7629 = vmatprep.subr.bf16.mxu1 %v16486_v36  ;;  %v6286_v33 = vld [vmem:[#allocation22 + $0x780] sm:$0xff]  ;;  %v16438_v34 = vcombine.high %v6158_v32, %v6162_v18  ;;  %v16437_v38 = vcombine.low %v6158_v32, %v6162_v18 }
 0x68a   :  { %v6290_v36 = vld [vmem:[#allocation22 + $0x7a0] sm:$0xff] }
 0x68b   :  { %v16565_v41 = vcombine.low %v6286_v33, %v6290_v36  ;;  %v16566_v47 = vcombine.high %v6286_v33, %v6290_v36  ;;  %v6258_v12 = vld [vmem:[#allocation22 + $0x6a0] sm:$0xff] }
 0x68c   :  { %7589 = vmatpush1.bf16.msra.mxu0 %v16357_v50  ;;  %7630 = vmatpush1.bf16.msra.mxu1 %v16485_v52  ;;  %v6154_v50 = vld [vmem:[#allocation22 + $0x360] sm:$0xff]  ;;  %v16533_v13 = vcombine.low %v6254_v57, %v6258_v12 }
 0x68d   :  { %7590 = vmatprep.subr.bf16.mxu0 %v16350_v17  ;;  %7631 = vmatprep.subr.bf16.mxu1 %v16478_v60  ;;  %v6278_v52 = vld [vmem:[#allocation22 + $0x740] sm:$0xff]  ;;  %v16430_v17 = vcombine.high %v6150_v8, %v6154_v50 }
 0x68e   :  { %v6282_v60 = vld [vmem:[#allocation22 + $0x760] sm:$0xff] }
 0x68f   :  { %v16558_v58 = vcombine.high %v6278_v52, %v6282_v60  ;;  %v6122_v28 = vld [vmem:[#allocation22 + $0x260] sm:$0xff] }
 0x690   :  { %7591 = vmatpush1.bf16.msra.mxu0 %v16349_v56  ;;  %7632 = vmatpush1.bf16.msra.mxu1 %v16477_v11  ;;  %v16429_v56 = vcombine.low %v6150_v8, %v6154_v50  ;;  %v16557_v11 = vcombine.low %v6278_v52, %v6282_v60  ;;  %v6246_v30 = vld [vmem:[#allocation22 + $0x640] sm:$0xff]  ;;  %v20625_v50 = vld [vmem:[#allocation22 + $0x1c8] sm:$0xff] }
 0x691   :  { %7592 = vmatprep.subr.bf16.mxu0 %v16342_v49  ;;  %7633 = vmatprep.subr.bf16.mxu1 %v16470_v19  ;;  %v6270_v49 = vld [vmem:[#allocation22 + $0x700] sm:$0xff]  ;;  %v20627_v52 = vld [vmem:[#allocation22 + $0x1e8] sm:$0xff] }
 0x692   :  { %v6134_v19 = vld [vmem:[#allocation22 + $0x2c0] sm:$0xff]  ;;  %v16384_v60 = vcombine.high %v20625_v50, %v20627_v52 }
 0x693   :  { %v6250_v44 = vld [vmem:[#allocation22 + $0x660] sm:$0xff] }
 0x694   :  { %7593 = vmatpush1.bf16.msra.mxu0 %v16341_v0  ;;  %7634 = vmatpush1.bf16.msra.mxu1 %v16469_v61  ;;  %v16422_v0 = vcombine.high %v6142_v7, %v6146_v14  ;;  %v6274_v61 = vld [vmem:[#allocation22 + $0x720] sm:$0xff]  ;;  %v16525_v36 = vcombine.low %v6246_v30, %v6250_v44  ;;  %v5742_v14 = vld [vmem:[#allocation20] sm:$0xf] }
 0x695   :  { %7594 = vmatprep.subr.bf16.mxu0 %v16334_v37  ;;  %7635 = vmatprep.subr.bf16.mxu1 %v16462_v6  ;;  %v16549_v63 = vcombine.low %v6270_v49, %v6274_v61  ;;  %v16550_v46 = vcombine.high %v6270_v49, %v6274_v61  ;;  %v16414_v37 = vcombine.high %v6134_v19, %v6138_v62  ;;  %v6114_v32 = vld [vmem:[#allocation22 + $0x220] sm:$0xff] }
 0x696   :  { %v6238_v18 = vld [vmem:[#allocation22 + $0x600] sm:$0xff]  ;;  %v5747_v49 = vrot.slane %v5742_v14, %v20406_v24  ;;  %v5759_v61 = vrot.slane %v5742_v14, %v20437_v45 }
 0x697   :  { %v6242_v33 = vld [vmem:[#allocation22 + $0x620] sm:$0xff] }
 0x698   :  { %7595 = vmatpush1.bf16.msra.mxu0 %v16333_v3  ;;  %7636 = vmatpush1.bf16.msra.mxu1 %v16461_v54  ;;  %v6266_v3 = vld [vmem:[#allocation22 + $0x6e0] sm:$0xff]  ;;  %v16517_v8 = vcombine.low %v6238_v18, %v6242_v33 }
 0x699   :  { %7596 = vmatprep.subr.bf16.mxu0 %v16326_v22  ;;  %7637 = vmatprep.subr.bf16.mxu1 %v16454_v29  ;;  %v6126_v54 = vld [vmem:[#allocation22 + $0x280] sm:$0xff]  ;;  %v16542_v6 = vcombine.high %v6262_v23, %v6266_v3  ;;  %v16413_v22 = vcombine.low %v6134_v19, %v6138_v62  ;;  %v16541_v55 = vcombine.low %v6262_v23, %v6266_v3 }
 0x69a   :  { %v6118_v29 = vld [vmem:[#allocation22 + $0x240] sm:$0xff] }
 0x69c   :  { %7597 = vmatpush1.bf16.msra.mxu0 %v16325_v15  ;;  %7638 = vmatpush1.bf16.msra.mxu1 %v16453_v21  ;;  %v16406_v15 = vcombine.high %v6126_v54, %v6130_v2  ;;  %v16534_v21 = vcombine.high %v6254_v57, %v6258_v12 }
 0x69d   :  { %7598 = vmatprep.subr.bf16.mxu0 %v16446_v27  ;;  %7639 = vmatprep.subr.bf16.mxu1 %v16574_v31  ;;  %v16405_v27 = vcombine.low %v6126_v54, %v6130_v2  ;;  %v6110_v31 = vld [vmem:[#allocation22 + $0x200] sm:$0xff] }
 0x6a0   :  { %7599 = vmatpush2.bf16.msra.mxu0 %v16445_v5  ;;  %7640 = vmatpush2.bf16.msra.mxu1 %v16573_v43  ;;  %v16398_v5 = vcombine.high %v6118_v29, %v6122_v28  ;;  %v16526_v43 = vcombine.high %v6246_v30, %v6250_v44 }
 0x6a1   :  { %7600 = vmatprep.subr.bf16.mxu0 %v16438_v34  ;;  %7641 = vmatprep.subr.bf16.mxu1 %v16566_v47  ;;  %v16397_v34 = vcombine.low %v6118_v29, %v6122_v28  ;;  %v16389_v47 = vcombine.low %v6110_v31, %v6114_v32 }
 0x6a4   :  { %7601 = vmatpush2.bf16.msra.mxu0 %v16437_v38  ;;  %7642 = vmatpush2.bf16.msra.mxu1 %v16565_v41  ;;  %v16390_v38 = vcombine.high %v6110_v31, %v6114_v32  ;;  %v16518_v41 = vcombine.high %v6238_v18, %v6242_v33 }
 0x6a5   :  { %7602 = vmatprep.subr.bf16.mxu0 %v16430_v17  ;;  %7643 = vmatprep.subr.bf16.mxu1 %v16558_v58  ;;  %v20629_v17 = vld [vmem:[#allocation22 + $0x5c8] sm:$0xff] }
 0x6a8   :  { %7603 = vmatpush2.bf16.msra.mxu0 %v16429_v56  ;;  %7644 = vmatpush2.bf16.msra.mxu1 %v16557_v11  ;;  %v20633_v56 = vld [vmem:[#allocation22 + $0x5e8] sm:$0xff]  ;;  %v16383_v11 = vcombine.low %v20625_v50, %v20627_v52 }
 0x6a9   :  { %7604 = vmatprep.subr.bf16.mxu0 %v16422_v0  ;;  %7645 = vmatprep.subr.bf16.mxu1 %v16550_v46  ;;  %v16511_v58 = vcombine.low %v20629_v17, %v20633_v56  ;;  %v16512_v7 = vcombine.high %v20629_v17, %v20633_v56  ;;  %v5751_v0 = vrot.slane %v5742_v14, %v20409_v25 }
 0x6ac   :  { %7605 = vmatpush2.bf16.msra.mxu0 %v16421_v51  ;;  %7646 = vmatpush2.bf16.msra.mxu1 %v16549_v63  ;;  %v5755_v51 = vrot.slane %v5742_v14, %v20434_v39 }
 0x6ad   :  { %7606 = vmatprep.subr.bf16.mxu0 %v16414_v37  ;;  %7647 = vmatprep.subr.bf16.mxu1 %v16542_v6 }
 0x6b0   :  { %7607 = vmatpush2.bf16.msra.mxu0 %v16413_v22  ;;  %7648 = vmatpush2.bf16.msra.mxu1 %v16541_v55 }
 0x6b1   :  { %7608 = vmatprep.subr.bf16.mxu0 %v16406_v15  ;;  %7649 = vmatprep.subr.bf16.mxu1 %v16534_v21 }
 0x6b4   :  { %7609 = vmatpush2.bf16.msra.mxu0 %v16405_v27  ;;  %7650 = vmatpush2.bf16.msra.mxu1 %v16533_v13 }
 0x6b5   :  { %7610 = vmatprep.subr.bf16.mxu0 %v16398_v5  ;;  %7651 = vmatprep.subr.bf16.mxu1 %v16526_v43 }
 0x6b8   :  { %7611 = vmatpush2.bf16.msra.mxu0 %v16397_v34  ;;  %7652 = vmatpush2.bf16.msra.mxu1 %v16525_v36 }
 0x6b9   :  { %7612 = vmatprep.subr.bf16.mxu0 %v16390_v38  ;;  %7653 = vmatprep.subr.bf16.mxu1 %v16518_v41 }
 0x6bc   :  { %7613 = vmatpush2.bf16.msra.mxu0 %v16389_v47  ;;  %7654 = vmatpush2.bf16.msra.mxu1 %v16517_v8 }
 0x6bd   :  { %7664 = vmatprep.subr.bf16.mxu0 %v16384_v60  ;;  %7705 = vmatprep.subr.bf16.mxu1 %v16512_v7 }
 0x73f   :  { %v5958_v19 = vpop.f32.mrf.mxu0  ;;  %v5999_v62 = vpop.f32.mrf.mxu1 }
 0x740   :  { %v5959_v63 = vadd.f32 %v5958_v19, %v5747_v49  ;;  %v6000_v46 = vadd.f32 %v5999_v62, %v5755_v51  ;;  %v6095_v51 = vld [vmem:[#allocation22 + $0x188] sm:$0xff] }
 0x741   :  { %v5960_v37 = vpop.f32.mrf.mxu0  ;;  %v6001_v23 = vpop.f32.mrf.mxu1  ;;  %v6087_v19 = vld [vmem:[#allocation22 + $0x148] sm:$0xff] }
 0x742   :  { %v16321_v3 = vmul.f32 -1.442695, %v5959_v63  ;;  %v16323_v54 = vmul.f32 -1.442695, %v6000_v46  ;;  %v5961_v6 = vadd.f32 %v5960_v37, %v5751_v0  ;;  %v6002_v2 = vadd.f32 %v6001_v23, %v5759_v61  ;;  %v6223_v0 = vld [vmem:[#allocation22 + $0x588] sm:$0xff] }
 0x743   :  { %v5962_v57 = vpop.f32.mrf.mxu0  ;;  %v6003_v12 = vpop.f32.mrf.mxu1  ;;  %v6227_v61 = vld [vmem:[#allocation22 + $0x5a8] sm:$0xff] }
 0x744   :  { %19383 = vpow2.f32 %v16321_v3  ;;  %v16322_v22 = vmul.f32 -1.442695, %v5961_v6  ;;  %v16324_v55 = vmul.f32 -1.442695, %v6002_v2  ;;  %v6091_v62 = vld [vmem:[#allocation22 + $0x168] sm:$0xff]  ;;  %v16504_v63 = vcombine.high %v6223_v0, %v6227_v61 }
 0x745   :  { %19385 = vpow2.f32 %v16323_v54  ;;  %v5963_v15 = vpop.f32.mrf.mxu0  ;;  %v6004_v21 = vpop.f32.mrf.mxu1  ;;  %v6215_v46 = vld [vmem:[#allocation22 + $0x548] sm:$0xff]  ;;  %v16503_v3 = vcombine.low %v6223_v0, %v6227_v61  ;;  %v16368_v54 = vcombine.high %v6087_v19, %v6091_v62  ;;  %v16367_v50 = vcombine.low %v6087_v19, %v6091_v62 }
 0x746   :  { %19387 = vpow2.f32 %v16322_v22  ;;  %v6219_v37 = vld [vmem:[#allocation22 + $0x568] sm:$0xff] }
 0x747   :  { %19389 = vpow2.f32 %v16324_v55  ;;  %v16496_v6 = vcombine.high %v6215_v46, %v6219_v37  ;;  %v6079_v2 = vld [vmem:[#allocation22 + $0x108] sm:$0xff]  ;;  %v16495_v52 = vcombine.low %v6215_v46, %v6219_v37 }
 0x748   :  { %v6083_v57 = vld [vmem:[#allocation22 + $0x128] sm:$0xff] }
 0x749   :  { %v6207_v12 = vld [vmem:[#allocation22 + $0x508] sm:$0xff]  ;;  %v16360_v17 = vcombine.high %v6079_v2, %v6083_v57  ;;  %v16359_v21 = vcombine.low %v6079_v2, %v6083_v57 }
 0x74a   :  { %v6211_v22 = vld [vmem:[#allocation22 + $0x528] sm:$0xff] }
 0x74b   :  { %v16488_v56 = vcombine.high %v6207_v12, %v6211_v22  ;;  %v6199_v55 = vld [vmem:[#allocation22 + $0x4c8] sm:$0xff] }
 0x74c   :  { %v6203_v15 = vld [vmem:[#allocation22 + $0x4e8] sm:$0xff] }
 0x74d   :  { %v6179_v0 = vld [vmem:[#allocation22 + $0x428] sm:$0xff] }
 0x74e   :  { %v6171_v46 = vld [vmem:[#allocation22 + $0x3e8] sm:$0xff] }
 0x74f   :  { %v6295_v37 = vld [vmem:[#allocation22 + $0x7c8] sm:$0xff] }
 0x750   :  { %v6159_v57 = vld [vmem:[#allocation22 + $0x388] sm:$0xff] }
 0x751   :  { %v19384_v29 = vpop.eup %19383 }
 0x752   :  { %v19386_v28 = vpop.eup %19385  ;;  %v6018_v30 = vadd.f32 1.0, %v19384_v29  ;;  %v16487_v29 = vcombine.low %v6207_v12, %v6211_v22  ;;  %v6163_v12 = vld [vmem:[#allocation22 + $0x3a8] sm:$0xff] }
 0x753   :  { %v19388_v44 = vpop.eup %19387  ;;  %v6020_v27 = vadd.f32 1.0, %v19386_v28  ;;  %v6287_v22 = vld [vmem:[#allocation22 + $0x788] sm:$0xff] }
 0x754   :  { %v19390_v13 = vpop.eup %19389  ;;  %19391 = vrcp.f32 %v6018_v30  ;;  %v6019_v5 = vadd.f32 1.0, %v19388_v44  ;;  %v16480_v30 = vcombine.high %v6199_v55, %v6203_v15  ;;  %v6063_v44 = vld [vmem:[#allocation22 + $0x88] sm:$0xff] }
 0x755   :  { %19393 = vrcp.f32 %v6020_v27  ;;  %v6021_v43 = vadd.f32 1.0, %v19390_v13  ;;  %v6067_v27 = vld [vmem:[#allocation22 + $0xa8] sm:$0xff] }
 0x756   :  { %19395 = vrcp.f32 %v6019_v5  ;;  %v6191_v13 = vld [vmem:[#allocation22 + $0x488] sm:$0xff] }
 0x757   :  { %19397 = vrcp.f32 %v6021_v43  ;;  %v6195_v5 = vld [vmem:[#allocation22 + $0x4a8] sm:$0xff] }
 0x761   :  { %v19392_v31 = vpop.eup %19391 }
 0x762   :  { %v19394_v32 = vpop.eup %19393  ;;  %v6030_v18 = vmul.f32 %v19392_v31, %v20599_v16  ;;  %v16479_v31 = vcombine.low %v6199_v55, %v6203_v15  ;;  %v6155_v55 = vld [vmem:[#allocation22 + $0x368] sm:$0xff] }
 0x763   :  { %v19396_v33 = vpop.eup %19395  ;;  %v6032_v34 = vmul.f32 %v19394_v32, %v20615_v4  ;;  %v16344_v32 = vcombine.high %v6063_v44, %v6067_v27  ;;  %v6279_v15 = vld [vmem:[#allocation22 + $0x748] sm:$0xff] }
 0x764   :  { %v19398_v36 = vpop.eup %19397  ;;  %v6031_v38 = vmul.f32 %v19396_v33, %v20601_v26  ;;  %v6034_v41 = vmax.f32 %v6030_v18, 0.0  ;;  %v6099_v26 = vld [vmem:[#allocation22 + $0x1a8] sm:$0xff]  ;;  %v16472_v18 = vcombine.high %v6191_v13, %v6195_v5 }
 0x765   :  { %v6033_v47 = vmul.f32 %v19398_v36, %v20617_v10  ;;  %v6036_v8 = vmax.f32 %v6032_v34, 0.0  ;;  %v16375_v23 = vcombine.low %v6095_v51, %v6099_v26  ;;  %v6055_v33 = vld [vmem:[#allocation22 + $0x48] sm:$0xff] }
 0x766   :  { %v6035_v60 = vmax.f32 %v6031_v38, 0.0  ;;  %v20650_v14 = vadd.f32 %v6034_v41, %v20415_v35  ;;  %v6059_v34 = vld [vmem:[#allocation22 + $0x68] sm:$0xff]  ;;  %v16343_v41 = vcombine.low %v6063_v44, %v6067_v27 }
 0x767   :  { %v6037_v7 = vmax.f32 %v6033_v47, 0.0  ;;  %v20656_v16 = vadd.f32 %v6036_v8, %v20443_v59  ;;  %v6183_v36 = vld [vmem:[#allocation22 + $0x448] sm:$0xff]  ;;  %v16471_v47 = vcombine.low %v6191_v13, %v6195_v5  ;;  %v16336_v8 = vcombine.high %v6055_v33, %v6059_v34 }
 0x768   :  { %v20653_v49 = vadd.f32 %v6035_v60, %v20417_v40  ;;  %v20671_v40 = vpack.c.bf16 %v20650_v14, %v20650_v14  ;;  %v6187_v38 = vld [vmem:[#allocation22 + $0x468] sm:$0xff]  ;;  %v16335_v61 = vcombine.low %v6055_v33, %v6059_v34 }
 0x769   :  { %v20659_v4 = vadd.f32 %v6037_v7, %v20445_v1  ;;  %v20676_v59 = vpack.c.bf16 %v20656_v16, %v20656_v16  ;;  %v16376_v1 = vcombine.high %v6095_v51, %v6099_v26  ;;  %v16464_v60 = vcombine.high %v6183_v36, %v6187_v38  ;;  %v6047_v7 = vld [vmem:[#allocation22 + $0x8] sm:$0xff] }
 0x76a   :  { %v20663_v10 = vpack.c.bf16 %v20653_v49, %v20653_v49  ;;  %v6051_v51 = vld [vmem:[#allocation22 + $0x28] sm:$0xff] }
 0x76b   :  { %v20667_v35 = vpack.c.bf16 %v20659_v4, %v20659_v4  ;;  %v6175_v26 = vld [vmem:[#allocation22 + $0x408] sm:$0xff]  ;;  %v16328_v19 = vcombine.high %v6047_v7, %v6051_v51 }
 0x76c   :  { %7614 = vmatprep.mubr.bf16.mxu0 %v20663_v10  ;;  %v16456_v62 = vcombine.high %v6175_v26, %v6179_v0  ;;  %v6143_v27 = vld [vmem:[#allocation22 + $0x308] sm:$0xff] }
 0x76d   :  { %7655 = vmatprep.mubr.bf16.mxu1 %v20667_v35  ;;  %7615 = vmatmul.mubr.bf16.vlgmr.msra.gmra.mxu0 %v20671_v40  ;;  %v6147_v13 = vld [vmem:[#allocation22 + $0x328] sm:$0xff] }
 0x76e   :  { %7656 = vmatmul.mubr.bf16.vlgmr.msra.gmra.mxu1 %v20676_v59  ;;  %7665 = vmatpush1.bf16.msra.mxu0 %v16383_v11  ;;  %v6071_v11 = vld [vmem:[#allocation22 + $0xc8] sm:$0xff] }
 0x76f   :  { %7706 = vmatpush1.bf16.msra.mxu1 %v16511_v58  ;;  %7696 = vmatprep.mubr.bf16.mxu0 %v20663_v10  ;;  %v6075_v58 = vld [vmem:[#allocation22 + $0xe8] sm:$0xff] }
 0x770   :  { %7737 = vmatprep.mubr.bf16.mxu1 %v20667_v35  ;;  %7666 = vmatprep.subr.bf16.mxu0 %v16376_v1  ;;  %v16352_v28 = vcombine.high %v6071_v11, %v6075_v58  ;;  %v16351_v43 = vcombine.low %v6071_v11, %v6075_v58  ;;  %v16463_v1 = vcombine.low %v6183_v36, %v6187_v38  ;;  %v6151_v58 = vld [vmem:[#allocation22 + $0x348] sm:$0xff] }
 0x771   :  { %7707 = vmatprep.subr.bf16.mxu1 %v16504_v63  ;;  %v6167_v63 = vld [vmem:[#allocation22 + $0x3c8] sm:$0xff] }
 0x772   :  { %7667 = vmatpush1.bf16.msra.mxu0 %v16375_v23  ;;  %v6299_v23 = vld [vmem:[#allocation22 + $0x7e8] sm:$0xff] }
 0x773   :  { %7708 = vmatpush1.bf16.msra.mxu1 %v16503_v3  ;;  %7668 = vmatprep.subr.bf16.mxu0 %v16368_v54  ;;  %v16327_v3 = vcombine.low %v6047_v7, %v6051_v51  ;;  %v16455_v54 = vcombine.low %v6175_v26, %v6179_v0  ;;  %v16576_v2 = vcombine.high %v6295_v37, %v6299_v23  ;;  %v6271_v5 = vld [vmem:[#allocation22 + $0x708] sm:$0xff] }
 0x774   :  { %7709 = vmatprep.subr.bf16.mxu1 %v16496_v6  ;;  %v16448_v6 = vcombine.high %v6167_v63, %v6171_v46  ;;  %v6135_v34 = vld [vmem:[#allocation22 + $0x2c8] sm:$0xff] }
 0x775   :  { %v6139_v36 = vld [vmem:[#allocation22 + $0x2e8] sm:$0xff] }
 0x776   :  { %7669 = vmatpush1.bf16.msra.mxu0 %v16367_v50  ;;  %v6291_v50 = vld [vmem:[#allocation22 + $0x7a8] sm:$0xff] }
 0x777   :  { %7710 = vmatpush1.bf16.msra.mxu1 %v16495_v52  ;;  %7670 = vmatprep.subr.bf16.mxu0 %v16360_v17  ;;  %v16447_v52 = vcombine.low %v6167_v63, %v6171_v46  ;;  %v16575_v17 = vcombine.low %v6295_v37, %v6299_v23  ;;  %v16568_v11 = vcombine.high %v6287_v22, %v6291_v50  ;;  %v6263_v38 = vld [vmem:[#allocation22 + $0x6c8] sm:$0xff] }
 0x778   :  { %7711 = vmatprep.subr.bf16.mxu1 %v16488_v56  ;;  %v16440_v56 = vcombine.high %v6159_v57, %v6163_v12  ;;  %v6127_v51 = vld [vmem:[#allocation22 + $0x288] sm:$0xff] }
 0x779   :  { %v6131_v26 = vld [vmem:[#allocation22 + $0x2a8] sm:$0xff] }
 0x77a   :  { %7671 = vmatpush1.bf16.msra.mxu0 %v16359_v21  ;;  %v6283_v21 = vld [vmem:[#allocation22 + $0x768] sm:$0xff] }
 0x77b   :  { %7712 = vmatpush1.bf16.msra.mxu1 %v16487_v29  ;;  %7672 = vmatprep.subr.bf16.mxu0 %v16352_v28  ;;  %v16439_v29 = vcombine.low %v6159_v57, %v6163_v12  ;;  %v16567_v28 = vcombine.low %v6287_v22, %v6291_v50  ;;  %v16560_v44 = vcombine.high %v6279_v15, %v6283_v21  ;;  %v6255_v0 = vld [vmem:[#allocation22 + $0x688] sm:$0xff] }
 0x77c   :  { %7713 = vmatprep.subr.bf16.mxu1 %v16480_v30  ;;  %v16432_v30 = vcombine.high %v6151_v58, %v6155_v55  ;;  %v6119_v46 = vld [vmem:[#allocation22 + $0x248] sm:$0xff] }
 0x77d   :  { %v6123_v37 = vld [vmem:[#allocation22 + $0x268] sm:$0xff] }
 0x77e   :  { %7673 = vmatpush1.bf16.msra.mxu0 %v16351_v43  ;;  %v6275_v43 = vld [vmem:[#allocation22 + $0x728] sm:$0xff] }
 0x77f   :  { %7714 = vmatpush1.bf16.msra.mxu1 %v16479_v31  ;;  %7674 = vmatprep.subr.bf16.mxu0 %v16344_v32  ;;  %v16431_v31 = vcombine.low %v6151_v58, %v6155_v55  ;;  %v16559_v32 = vcombine.low %v6279_v15, %v6283_v21  ;;  %v16552_v33 = vcombine.high %v6271_v5, %v6275_v43  ;;  %v6247_v23 = vld [vmem:[#allocation22 + $0x648] sm:$0xff]  ;;  %v6104_v55 = vld [vmem:[#allocation22 + $0x1d0] sm:$0xff] }
 0x780   :  { %7715 = vmatprep.subr.bf16.mxu1 %v16472_v18  ;;  %v16424_v18 = vcombine.high %v6143_v27, %v6147_v13  ;;  %v6111_v12 = vld [vmem:[#allocation22 + $0x208] sm:$0xff]  ;;  %v6108_v15 = vld [vmem:[#allocation22 + $0x1f0] sm:$0xff] }
 0x781   :  { %v6115_v22 = vld [vmem:[#allocation22 + $0x228] sm:$0xff]  ;;  %v6232_v21 = vld [vmem:[#allocation22 + $0x5d0] sm:$0xff] }
 0x782   :  { %7675 = vmatpush1.bf16.msra.mxu0 %v16343_v41  ;;  %v6267_v41 = vld [vmem:[#allocation22 + $0x6e8] sm:$0xff] }
 0x783   :  { %7716 = vmatpush1.bf16.msra.mxu1 %v16471_v47  ;;  %7676 = vmatprep.subr.bf16.mxu0 %v16336_v8  ;;  %v16423_v47 = vcombine.low %v6143_v27, %v6147_v13  ;;  %v16551_v8 = vcombine.low %v6271_v5, %v6275_v43  ;;  %v16544_v7 = vcombine.high %v6263_v38, %v6267_v41  ;;  %v6239_v50 = vld [vmem:[#allocation22 + $0x608] sm:$0xff]  ;;  %v6096_v13 = vld [vmem:[#allocation22 + $0x190] sm:$0xff] }
 0x784   :  { %7717 = vmatprep.subr.bf16.mxu1 %v16464_v60  ;;  %v16416_v60 = vcombine.high %v6135_v34, %v6139_v36  ;;  %v6100_v5 = vld [vmem:[#allocation22 + $0x1b0] sm:$0xff]  ;;  %v16385_v43 = vcombine.low %v6104_v55, %v6108_v15 }
 0x786   :  { %7677 = vmatpush1.bf16.msra.mxu0 %v16335_v61  ;;  %v6259_v61 = vld [vmem:[#allocation22 + $0x6a8] sm:$0xff] }
 0x787   :  { %7718 = vmatpush1.bf16.msra.mxu1 %v16463_v1  ;;  %7678 = vmatprep.subr.bf16.mxu0 %v16328_v19  ;;  %v16415_v1 = vcombine.low %v6135_v34, %v6139_v36  ;;  %v16543_v19 = vcombine.low %v6263_v38, %v6267_v41  ;;  %v16536_v63 = vcombine.high %v6255_v0, %v6259_v61  ;;  %v6088_v34 = vld [vmem:[#allocation22 + $0x150] sm:$0xff] }
 0x788   :  { %7719 = vmatprep.subr.bf16.mxu1 %v16456_v62  ;;  %v16408_v62 = vcombine.high %v6127_v51, %v6131_v26  ;;  %v6092_v36 = vld [vmem:[#allocation22 + $0x170] sm:$0xff] }
 0x789   :  { %v6216_v41 = vld [vmem:[#allocation22 + $0x550] sm:$0xff] }
 0x78a   :  { %7679 = vmatpush1.bf16.msra.mxu0 %v16327_v3  ;;  %v6251_v3 = vld [vmem:[#allocation22 + $0x668] sm:$0xff] }
 0x78b   :  { %7720 = vmatpush1.bf16.msra.mxu1 %v16455_v54  ;;  %7680 = vmatprep.subr.bf16.mxu0 %v16448_v6  ;;  %v16407_v54 = vcombine.low %v6127_v51, %v6131_v26  ;;  %v16535_v6 = vcombine.low %v6255_v0, %v6259_v61  ;;  %v16528_v57 = vcombine.high %v6247_v23, %v6251_v3  ;;  %v6080_v26 = vld [vmem:[#allocation22 + $0x110] sm:$0xff] }
 0x78c   :  { %7721 = vmatprep.subr.bf16.mxu1 %v16576_v2  ;;  %v16400_v2 = vcombine.high %v6119_v46, %v6123_v37  ;;  %v6084_v0 = vld [vmem:[#allocation22 + $0x130] sm:$0xff] }
 0x78d   :  { %v6208_v61 = vld [vmem:[#allocation22 + $0x510] sm:$0xff] }
 0x78e   :  { %7681 = vmatpush2.bf16.msra.mxu0 %v16447_v52  ;;  %v6243_v52 = vld [vmem:[#allocation22 + $0x628] sm:$0xff] }
 0x78f   :  { %7722 = vmatpush2.bf16.msra.mxu1 %v16575_v17  ;;  %7682 = vmatprep.subr.bf16.mxu0 %v16440_v56  ;;  %v16399_v17 = vcombine.low %v6119_v46, %v6123_v37  ;;  %v16527_v56 = vcombine.low %v6247_v23, %v6251_v3  ;;  %v16520_v58 = vcombine.high %v6239_v50, %v6243_v52  ;;  %v6072_v37 = vld [vmem:[#allocation22 + $0xd0] sm:$0xff] }
 0x790   :  { %7723 = vmatprep.subr.bf16.mxu1 %v16568_v11  ;;  %v16392_v11 = vcombine.high %v6111_v12, %v6115_v22  ;;  %v6076_v23 = vld [vmem:[#allocation22 + $0xf0] sm:$0xff] }
 0x791   :  { %v6200_v3 = vld [vmem:[#allocation22 + $0x4d0] sm:$0xff] }
 0x792   :  { %7683 = vmatpush2.bf16.msra.mxu0 %v16439_v29  ;;  %v6236_v29 = vld [vmem:[#allocation22 + $0x5f0] sm:$0xff] }
 0x793   :  { %7724 = vmatpush2.bf16.msra.mxu1 %v16567_v28  ;;  %7684 = vmatprep.subr.bf16.mxu0 %v16432_v30  ;;  %v16391_v28 = vcombine.low %v6111_v12, %v6115_v22  ;;  %v16519_v30 = vcombine.low %v6239_v50, %v6243_v52  ;;  %v16514_v27 = vcombine.high %v6232_v21, %v6236_v29  ;;  %v6064_v22 = vld [vmem:[#allocation22 + $0x90] sm:$0xff] }
 0x794   :  { %7725 = vmatprep.subr.bf16.mxu1 %v16560_v44  ;;  %v16386_v44 = vcombine.high %v6104_v55, %v6108_v15  ;;  %v6068_v50 = vld [vmem:[#allocation22 + $0xb0] sm:$0xff] }
 0x795   :  { %v6192_v52 = vld [vmem:[#allocation22 + $0x490] sm:$0xff] }
 0x796   :  { %7685 = vmatpush2.bf16.msra.mxu0 %v16431_v31  ;;  %v6224_v31 = vld [vmem:[#allocation22 + $0x590] sm:$0xff] }
 0x797   :  { %7726 = vmatpush2.bf16.msra.mxu1 %v16559_v32  ;;  %7686 = vmatprep.subr.bf16.mxu0 %v16424_v18  ;;  %v6228_v32 = vld [vmem:[#allocation22 + $0x5b0] sm:$0xff]  ;;  %v16513_v18 = vcombine.low %v6232_v21, %v6236_v29 }
 0x798   :  { %7727 = vmatprep.subr.bf16.mxu1 %v16552_v33  ;;  %v16378_v33 = vcombine.high %v6096_v13, %v6100_v5  ;;  %v16506_v38 = vcombine.high %v6224_v31, %v6228_v32  ;;  %v6056_v15 = vld [vmem:[#allocation22 + $0x50] sm:$0xff] }
 0x799   :  { %v6060_v21 = vld [vmem:[#allocation22 + $0x70] sm:$0xff] }
 0x79a   :  { %7687 = vmatpush2.bf16.msra.mxu0 %v16423_v47  ;;  %v6220_v47 = vld [vmem:[#allocation22 + $0x570] sm:$0xff] }
 0x79b   :  { %7728 = vmatpush2.bf16.msra.mxu1 %v16551_v8  ;;  %7688 = vmatprep.subr.bf16.mxu0 %v16416_v60  ;;  %v16377_v8 = vcombine.low %v6096_v13, %v6100_v5  ;;  %v16505_v60 = vcombine.low %v6224_v31, %v6228_v32  ;;  %v16498_v51 = vcombine.high %v6216_v41, %v6220_v47  ;;  %v6184_v29 = vld [vmem:[#allocation22 + $0x450] sm:$0xff] }
 0x79c   :  { %7729 = vmatprep.subr.bf16.mxu1 %v16544_v7  ;;  %v16370_v7 = vcombine.high %v6088_v34, %v6092_v36  ;;  %v6048_v5 = vld [vmem:[#allocation22 + $0x10] sm:$0xff] }
 0x79d   :  { %v6176_v31 = vld [vmem:[#allocation22 + $0x410] sm:$0xff] }
 0x79e   :  { %7689 = vmatpush2.bf16.msra.mxu0 %v16415_v1  ;;  %v6212_v1 = vld [vmem:[#allocation22 + $0x530] sm:$0xff] }
 0x79f   :  { %7730 = vmatpush2.bf16.msra.mxu1 %v16543_v19  ;;  %7690 = vmatprep.subr.bf16.mxu0 %v16408_v62  ;;  %v16369_v19 = vcombine.low %v6088_v34, %v6092_v36  ;;  %v16497_v62 = vcombine.low %v6216_v41, %v6220_v47  ;;  %v16490_v46 = vcombine.high %v6208_v61, %v6212_v1  ;;  %v6180_v32 = vld [vmem:[#allocation22 + $0x430] sm:$0xff] }
 0x7a0   :  { %7731 = vmatprep.subr.bf16.mxu1 %v16536_v63  ;;  %v16362_v63 = vcombine.high %v6080_v26, %v6084_v0  ;;  %v16458_v36 = vcombine.high %v6176_v31, %v6180_v32  ;;  %v6172_v41 = vld [vmem:[#allocation22 + $0x3f0] sm:$0xff] }
 0x7a1   :  { %v6296_v47 = vld [vmem:[#allocation22 + $0x7d0] sm:$0xff] }
 0x7a2   :  { %7691 = vmatpush2.bf16.msra.mxu0 %v16407_v54  ;;  %v6204_v54 = vld [vmem:[#allocation22 + $0x4f0] sm:$0xff] }
 0x7a3   :  { %7732 = vmatpush2.bf16.msra.mxu1 %v16535_v6  ;;  %7692 = vmatprep.subr.bf16.mxu0 %v16400_v2  ;;  %v16361_v6 = vcombine.low %v6080_v26, %v6084_v0  ;;  %v16489_v2 = vcombine.low %v6208_v61, %v6212_v1  ;;  %v16482_v12 = vcombine.high %v6200_v3, %v6204_v54  ;;  %v6160_v0 = vld [vmem:[#allocation22 + $0x390] sm:$0xff] }
 0x7a4   :  { %7733 = vmatprep.subr.bf16.mxu1 %v16528_v57  ;;  %v16354_v57 = vcombine.high %v6072_v37, %v6076_v23  ;;  %v6164_v61 = vld [vmem:[#allocation22 + $0x3b0] sm:$0xff] }
 0x7a5   :  { %v6288_v1 = vld [vmem:[#allocation22 + $0x790] sm:$0xff] }
 0x7a6   :  { %7693 = vmatpush2.bf16.msra.mxu0 %v16399_v17  ;;  %v6196_v17 = vld [vmem:[#allocation22 + $0x4b0] sm:$0xff] }
 0x7a7   :  { %7734 = vmatpush2.bf16.msra.mxu1 %v16527_v56  ;;  %7694 = vmatprep.subr.bf16.mxu0 %v16392_v11  ;;  %v16353_v56 = vcombine.low %v6072_v37, %v6076_v23  ;;  %v16481_v11 = vcombine.low %v6200_v3, %v6204_v54  ;;  %v16474_v55 = vcombine.high %v6192_v52, %v6196_v17  ;;  %v6152_v23 = vld [vmem:[#allocation22 + $0x350] sm:$0xff] }
 0x7a8   :  { %7735 = vmatprep.subr.bf16.mxu1 %v16520_v58  ;;  %v16346_v58 = vcombine.high %v6064_v22, %v6068_v50  ;;  %v6156_v3 = vld [vmem:[#allocation22 + $0x370] sm:$0xff] }
 0x7a9   :  { %v6280_v54 = vld [vmem:[#allocation22 + $0x750] sm:$0xff] }
 0x7aa   :  { %7695 = vmatpush2.bf16.msra.mxu0 %v16391_v28  ;;  %v6188_v28 = vld [vmem:[#allocation22 + $0x470] sm:$0xff] }
 0x7ab   :  { %7736 = vmatpush2.bf16.msra.mxu1 %v16519_v30  ;;  %7746 = vmatprep.subr.bf16.mxu0 %v16386_v44  ;;  %v16345_v30 = vcombine.low %v6064_v22, %v6068_v50  ;;  %v16473_v44 = vcombine.low %v6192_v52, %v6196_v17  ;;  %v16466_v13 = vcombine.high %v6184_v29, %v6188_v28  ;;  %v6144_v50 = vld [vmem:[#allocation22 + $0x310] sm:$0xff] }
 0x7ac   :  { %7787 = vmatprep.subr.bf16.mxu1 %v16514_v27  ;;  %v16338_v27 = vcombine.high %v6056_v15, %v6060_v21  ;;  %v6148_v52 = vld [vmem:[#allocation22 + $0x330] sm:$0xff] }
 0x7ad   :  { %7697 = vmatmul.mubr.bf16.vlgmr.msra.gmra.mxu0 %v20671_v40  ;;  %v6272_v17 = vld [vmem:[#allocation22 + $0x710] sm:$0xff] }
 0x7ae   :  { %7738 = vmatmul.mubr.bf16.vlgmr.msra.gmra.mxu1 %v20676_v59  ;;  %7747 = vmatpush1.bf16.msra.mxu0 %v16385_v43  ;;  %v6052_v43 = vld [vmem:[#allocation22 + $0x30] sm:$0xff] }
 0x7af   :  { %7778 = vmatprep.mubr.bf16.mxu0 %v20663_v10  ;;  %7788 = vmatpush1.bf16.msra.mxu1 %v16513_v18  ;;  %v16337_v18 = vcombine.low %v6056_v15, %v6060_v21  ;;  %v16330_v34 = vcombine.high %v6048_v5, %v6052_v43  ;;  %v6136_v21 = vld [vmem:[#allocation22 + $0x2d0] sm:$0xff] }
 0x7b0   :  { %7819 = vmatprep.mubr.bf16.mxu1 %v20667_v35  ;;  %7748 = vmatprep.subr.bf16.mxu0 %v16378_v33  ;;  %v16465_v33 = vcombine.low %v6184_v29, %v6188_v28  ;;  %v6140_v29 = vld [vmem:[#allocation22 + $0x2f0] sm:$0xff] }
 0x7b1   :  { %7789 = vmatprep.subr.bf16.mxu1 %v16506_v38  ;;  %v6168_v38 = vld [vmem:[#allocation22 + $0x3d0] sm:$0xff] }
 0x7b2   :  { %7749 = vmatpush1.bf16.msra.mxu0 %v16377_v8  ;;  %v6300_v8 = vld [vmem:[#allocation22 + $0x7f0] sm:$0xff] }
 0x7b3   :  { %7790 = vmatpush1.bf16.msra.mxu1 %v16505_v60  ;;  %7750 = vmatprep.subr.bf16.mxu0 %v16370_v7  ;;  %v16329_v60 = vcombine.low %v6048_v5, %v6052_v43  ;;  %v16457_v7 = vcombine.low %v6176_v31, %v6180_v32  ;;  %v16578_v26 = vcombine.high %v6296_v47, %v6300_v8  ;;  %v6264_v28 = vld [vmem:[#allocation22 + $0x6d0] sm:$0xff] }
 0x7b4   :  { %7791 = vmatprep.subr.bf16.mxu1 %v16498_v51  ;;  %v16450_v51 = vcombine.high %v6168_v38, %v6172_v41  ;;  %v6128_v43 = vld [vmem:[#allocation22 + $0x290] sm:$0xff] }
 0x7b5   :  { %v6132_v31 = vld [vmem:[#allocation22 + $0x2b0] sm:$0xff] }
 0x7b6   :  { %7751 = vmatpush1.bf16.msra.mxu0 %v16369_v19  ;;  %v6292_v19 = vld [vmem:[#allocation22 + $0x7b0] sm:$0xff] }
 0x7b7   :  { %7792 = vmatpush1.bf16.msra.mxu1 %v16497_v62  ;;  %7752 = vmatprep.subr.bf16.mxu0 %v16362_v63  ;;  %v16449_v62 = vcombine.low %v6168_v38, %v6172_v41  ;;  %v16577_v63 = vcombine.low %v6296_v47, %v6300_v8  ;;  %v16570_v37 = vcombine.high %v6288_v1, %v6292_v19  ;;  %v6256_v32 = vld [vmem:[#allocation22 + $0x690] sm:$0xff] }
 0x7b8   :  { %7793 = vmatprep.subr.bf16.mxu1 %v16490_v46  ;;  %v16442_v46 = vcombine.high %v6160_v0, %v6164_v61  ;;  %v6120_v41 = vld [vmem:[#allocation22 + $0x250] sm:$0xff] }
 0x7b9   :  { %v6124_v47 = vld [vmem:[#allocation22 + $0x270] sm:$0xff] }
 0x7ba   :  { %7753 = vmatpush1.bf16.msra.mxu0 %v16361_v6  ;;  %v6284_v6 = vld [vmem:[#allocation22 + $0x770] sm:$0xff] }
 0x7bb   :  { %7794 = vmatpush1.bf16.msra.mxu1 %v16489_v2  ;;  %7754 = vmatprep.subr.bf16.mxu0 %v16354_v57  ;;  %v16441_v2 = vcombine.low %v6160_v0, %v6164_v61  ;;  %v16569_v57 = vcombine.low %v6288_v1, %v6292_v19  ;;  %v16562_v22 = vcombine.high %v6280_v54, %v6284_v6  ;;  %v6248_v8 = vld [vmem:[#allocation22 + $0x650] sm:$0xff] }
 0x7bc   :  { %7795 = vmatprep.subr.bf16.mxu1 %v16482_v12  ;;  %v16434_v12 = vcombine.high %v6152_v23, %v6156_v3  ;;  %v6112_v61 = vld [vmem:[#allocation22 + $0x210] sm:$0xff] }
 0x7bd   :  { %v6116_v1 = vld [vmem:[#allocation22 + $0x230] sm:$0xff] }
 0x7be   :  { %7755 = vmatpush1.bf16.msra.mxu0 %v16353_v56  ;;  %v6276_v56 = vld [vmem:[#allocation22 + $0x730] sm:$0xff] }
 0x7bf   :  { %7796 = vmatpush1.bf16.msra.mxu1 %v16481_v11  ;;  %7756 = vmatprep.subr.bf16.mxu0 %v16346_v58  ;;  %v16433_v11 = vcombine.low %v6152_v23, %v6156_v3  ;;  %v16561_v58 = vcombine.low %v6280_v54, %v6284_v6  ;;  %v16554_v15 = vcombine.high %v6272_v17, %v6276_v56  ;;  %v6240_v19 = vld [vmem:[#allocation22 + $0x610] sm:$0xff]  ;;  %v6105_v3 = vld [vmem:[#allocation22 + $0x1d8] sm:$0xff] }
 0x7c0   :  { %7797 = vmatprep.subr.bf16.mxu1 %v16474_v55  ;;  %v16426_v55 = vcombine.high %v6144_v50, %v6148_v52  ;;  %v6109_v54 = vld [vmem:[#allocation22 + $0x1f8] sm:$0xff] }
 0x7c1   :  { %v6233_v6 = vld [vmem:[#allocation22 + $0x5d8] sm:$0xff] }
 0x7c2   :  { %7757 = vmatpush1.bf16.msra.mxu0 %v16345_v30  ;;  %v6268_v30 = vld [vmem:[#allocation22 + $0x6f0] sm:$0xff] }
 0x7c3   :  { %7798 = vmatpush1.bf16.msra.mxu1 %v16473_v44  ;;  %7758 = vmatprep.subr.bf16.mxu0 %v16338_v27  ;;  %v16425_v44 = vcombine.low %v6144_v50, %v6148_v52  ;;  %v16553_v27 = vcombine.low %v6272_v17, %v6276_v56  ;;  %v16546_v5 = vcombine.high %v6264_v28, %v6268_v30  ;;  %v6097_v52 = vld [vmem:[#allocation22 + $0x198] sm:$0xff] }
 0x7c4   :  { %7799 = vmatprep.subr.bf16.mxu1 %v16466_v13  ;;  %v16418_v13 = vcombine.high %v6136_v21, %v6140_v29  ;;  %v6101_v17 = vld [vmem:[#allocation22 + $0x1b8] sm:$0xff]  ;;  %v16387_v56 = vcombine.low %v6105_v3, %v6109_v54 }
 0x7c6   :  { %7759 = vmatpush1.bf16.msra.mxu0 %v16337_v18  ;;  %v6260_v18 = vld [vmem:[#allocation22 + $0x6b0] sm:$0xff] }
 0x7c7   :  { %7800 = vmatpush1.bf16.msra.mxu1 %v16465_v33  ;;  %7760 = vmatprep.subr.bf16.mxu0 %v16330_v34  ;;  %v16417_v33 = vcombine.low %v6136_v21, %v6140_v29  ;;  %v16545_v34 = vcombine.low %v6264_v28, %v6268_v30  ;;  %v16538_v38 = vcombine.high %v6256_v32, %v6260_v18  ;;  %v6089_v21 = vld [vmem:[#allocation22 + $0x158] sm:$0xff] }
 0x7c8   :  { %7801 = vmatprep.subr.bf16.mxu1 %v16458_v36  ;;  %v16410_v36 = vcombine.high %v6128_v43, %v6132_v31  ;;  %v6093_v29 = vld [vmem:[#allocation22 + $0x178] sm:$0xff] }
 0x7c9   :  { %v6217_v30 = vld [vmem:[#allocation22 + $0x558] sm:$0xff] }
 0x7ca   :  { %7761 = vmatpush1.bf16.msra.mxu0 %v16329_v60  ;;  %v6252_v60 = vld [vmem:[#allocation22 + $0x670] sm:$0xff] }
 0x7cb   :  { %7802 = vmatpush1.bf16.msra.mxu1 %v16457_v7  ;;  %7762 = vmatprep.subr.bf16.mxu0 %v16450_v51  ;;  %v16409_v7 = vcombine.low %v6128_v43, %v6132_v31  ;;  %v16537_v51 = vcombine.low %v6256_v32, %v6260_v18  ;;  %v16530_v0 = vcombine.high %v6248_v8, %v6252_v60  ;;  %v6081_v31 = vld [vmem:[#allocation22 + $0x118] sm:$0xff] }
 0x7cc   :  { %7803 = vmatprep.subr.bf16.mxu1 %v16578_v26  ;;  %v16402_v26 = vcombine.high %v6120_v41, %v6124_v47  ;;  %v6085_v32 = vld [vmem:[#allocation22 + $0x138] sm:$0xff] }
 0x7cd   :  { %v6209_v18 = vld [vmem:[#allocation22 + $0x518] sm:$0xff] }
 0x7ce   :  { %7763 = vmatpush2.bf16.msra.mxu0 %v16449_v62  ;;  %v6244_v62 = vld [vmem:[#allocation22 + $0x630] sm:$0xff] }
 0x7cf   :  { %7804 = vmatpush2.bf16.msra.mxu1 %v16577_v63  ;;  %7764 = vmatprep.subr.bf16.mxu0 %v16442_v46  ;;  %v16401_v63 = vcombine.low %v6120_v41, %v6124_v47  ;;  %v16529_v46 = vcombine.low %v6248_v8, %v6252_v60  ;;  %v16522_v23 = vcombine.high %v6240_v19, %v6244_v62  ;;  %v6073_v41 = vld [vmem:[#allocation22 + $0xd8] sm:$0xff] }
 0x7d0   :  { %7805 = vmatprep.subr.bf16.mxu1 %v16570_v37  ;;  %v16394_v37 = vcombine.high %v6112_v61, %v6116_v1  ;;  %v6077_v47 = vld [vmem:[#allocation22 + $0xf8] sm:$0xff] }
 0x7d1   :  { %v6201_v8 = vld [vmem:[#allocation22 + $0x4d8] sm:$0xff] }
 0x7d2   :  { %7765 = vmatpush2.bf16.msra.mxu0 %v16441_v2  ;;  %v6237_v2 = vld [vmem:[#allocation22 + $0x5f8] sm:$0xff] }
 0x7d3   :  { %7806 = vmatpush2.bf16.msra.mxu1 %v16569_v57  ;;  %7766 = vmatprep.subr.bf16.mxu0 %v16434_v12  ;;  %v16393_v57 = vcombine.low %v6112_v61, %v6116_v1  ;;  %v16521_v12 = vcombine.low %v6240_v19, %v6244_v62  ;;  %v16516_v50 = vcombine.high %v6233_v6, %v6237_v2  ;;  %v6205_v60 = vld [vmem:[#allocation22 + $0x4f8] sm:$0xff] }
 0x7d4   :  { %7807 = vmatprep.subr.bf16.mxu1 %v16562_v22  ;;  %v16388_v22 = vcombine.high %v6105_v3, %v6109_v54  ;;  %v6069_v61 = vld [vmem:[#allocation22 + $0xb8] sm:$0xff]  ;;  %v16355_v62 = vcombine.low %v6073_v41, %v6077_v47 }
 0x7d5   :  { %v6193_v1 = vld [vmem:[#allocation22 + $0x498] sm:$0xff] }
 0x7d6   :  { %7767 = vmatpush2.bf16.msra.mxu0 %v16433_v11  ;;  %v6225_v11 = vld [vmem:[#allocation22 + $0x598] sm:$0xff] }
 0x7d7   :  { %7808 = vmatpush2.bf16.msra.mxu1 %v16561_v58  ;;  %7768 = vmatprep.subr.bf16.mxu0 %v16426_v55  ;;  %v6229_v58 = vld [vmem:[#allocation22 + $0x5b8] sm:$0xff]  ;;  %v16515_v55 = vcombine.low %v6233_v6, %v6237_v2 }
 0x7d8   :  { %7809 = vmatprep.subr.bf16.mxu1 %v16554_v15  ;;  %v16380_v15 = vcombine.high %v6097_v52, %v6101_v17  ;;  %v16508_v28 = vcombine.high %v6225_v11, %v6229_v58  ;;  %v6197_v19 = vld [vmem:[#allocation22 + $0x4b8] sm:$0xff] }
 0x7d9   :  { %v6061_v3 = vld [vmem:[#allocation22 + $0x78] sm:$0xff] }
 0x7da   :  { %7769 = vmatpush2.bf16.msra.mxu0 %v16425_v44  ;;  %v6221_v44 = vld [vmem:[#allocation22 + $0x578] sm:$0xff] }
 0x7db   :  { %7810 = vmatpush2.bf16.msra.mxu1 %v16553_v27  ;;  %7770 = vmatprep.subr.bf16.mxu0 %v16418_v13  ;;  %v16379_v27 = vcombine.low %v6097_v52, %v6101_v17  ;;  %v16507_v13 = vcombine.low %v6225_v11, %v6229_v58  ;;  %v16500_v43 = vcombine.high %v6217_v30, %v6221_v44  ;;  %v6185_v54 = vld [vmem:[#allocation22 + $0x458] sm:$0xff] }
 0x7dc   :  { %7811 = vmatprep.subr.bf16.mxu1 %v16546_v5  ;;  %v16372_v5 = vcombine.high %v6089_v21, %v6093_v29  ;;  %v6189_v6 = vld [vmem:[#allocation22 + $0x478] sm:$0xff] }
 0x7dd   :  { %v6053_v52 = vld [vmem:[#allocation22 + $0x38] sm:$0xff]  ;;  %v16467_v58 = vcombine.low %v6185_v54, %v6189_v6 }
 0x7de   :  { %7771 = vmatpush2.bf16.msra.mxu0 %v16417_v33  ;;  %v6213_v33 = vld [vmem:[#allocation22 + $0x538] sm:$0xff] }
 0x7df   :  { %7812 = vmatpush2.bf16.msra.mxu1 %v16545_v34  ;;  %7772 = vmatprep.subr.bf16.mxu0 %v16410_v36  ;;  %v16371_v34 = vcombine.low %v6089_v21, %v6093_v29  ;;  %v16499_v36 = vcombine.low %v6217_v30, %v6221_v44  ;;  %v6177_v17 = vld [vmem:[#allocation22 + $0x418] sm:$0xff] }
 0x7e0   :  { %7813 = vmatprep.subr.bf16.mxu1 %v16538_v38  ;;  %v16364_v38 = vcombine.high %v6081_v31, %v6085_v32  ;;  %v6169_v21 = vld [vmem:[#allocation22 + $0x3d8] sm:$0xff] }
 0x7e1   :  { %v6173_v29 = vld [vmem:[#allocation22 + $0x3f8] sm:$0xff] }
 0x7e2   :  { %7773 = vmatpush2.bf16.msra.mxu0 %v16409_v7  ;;  %v16491_v7 = vcombine.low %v6209_v18, %v6213_v33  ;;  %v6301_v30 = vld [vmem:[#allocation22 + $0x7f8] sm:$0xff] }
 0x7e3   :  { %7814 = vmatpush2.bf16.msra.mxu1 %v16537_v51  ;;  %7774 = vmatprep.subr.bf16.mxu0 %v16402_v26  ;;  %v16356_v51 = vcombine.high %v6073_v41, %v6077_v47  ;;  %v16484_v26 = vcombine.high %v6201_v8, %v6205_v60  ;;  %v6157_v41 = vld [vmem:[#allocation22 + $0x378] sm:$0xff] }
 0x7e4   :  { %7815 = vmatprep.subr.bf16.mxu1 %v16530_v0  ;;  %v6065_v0 = vld [vmem:[#allocation22 + $0x98] sm:$0xff] }
 0x7e5   :  { %v16347_v2 = vcombine.low %v6065_v0, %v6069_v61  ;;  %v6281_v47 = vld [vmem:[#allocation22 + $0x758] sm:$0xff] }
 0x7e6   :  { %7775 = vmatpush2.bf16.msra.mxu0 %v16401_v63  ;;  %v16483_v63 = vcombine.low %v6201_v8, %v6205_v60  ;;  %v6285_v8 = vld [vmem:[#allocation22 + $0x778] sm:$0xff] }
 0x7e7   :  { %7816 = vmatpush2.bf16.msra.mxu1 %v16529_v46  ;;  %7776 = vmatprep.subr.bf16.mxu0 %v16394_v37  ;;  %v16348_v46 = vcombine.high %v6065_v0, %v6069_v61  ;;  %v16476_v37 = vcombine.high %v6193_v1, %v6197_v19  ;;  %v6149_v0 = vld [vmem:[#allocation22 + $0x338] sm:$0xff] }
 0x7e8   :  { %7817 = vmatprep.subr.bf16.mxu1 %v16522_v23  ;;  %v6057_v23 = vld [vmem:[#allocation22 + $0x58] sm:$0xff] }
 0x7e9   :  { %v16339_v11 = vcombine.low %v6057_v23, %v6061_v3  ;;  %v6273_v61 = vld [vmem:[#allocation22 + $0x718] sm:$0xff] }
 0x7ea   :  { %7777 = vmatpush2.bf16.msra.mxu0 %v16393_v57  ;;  %v16475_v57 = vcombine.low %v6193_v1, %v6197_v19  ;;  %v6277_v1 = vld [vmem:[#allocation22 + $0x738] sm:$0xff] }
 0x7eb   :  { %7818 = vmatpush2.bf16.msra.mxu1 %v16521_v12  ;;  %7828 = vmatprep.subr.bf16.mxu0 %v16388_v22  ;;  %v16340_v12 = vcombine.high %v6057_v23, %v6061_v3  ;;  %v16468_v22 = vcombine.high %v6185_v54, %v6189_v6  ;;  %v6141_v23 = vld [vmem:[#allocation22 + $0x2f8] sm:$0xff] }
 0x7ec   :  { %7869 = vmatprep.subr.bf16.mxu1 %v16516_v50  ;;  %v6049_v50 = vld [vmem:[#allocation22 + $0x18] sm:$0xff] }
 0x7ed   :  { %7779 = vmatmul.mubr.bf16.vlgmr.msra.gmra.mxu0 %v20671_v40  ;;  %v16331_v44 = vcombine.low %v6049_v50, %v6053_v52  ;;  %v6265_v3 = vld [vmem:[#allocation22 + $0x6d8] sm:$0xff] }
 0x7ee   :  { %7820 = vmatmul.mubr.bf16.vlgmr.msra.gmra.mxu1 %v20676_v59  ;;  %7829 = vmatpush1.bf16.msra.mxu0 %v16387_v56  ;;  %v6181_v56 = vld [vmem:[#allocation22 + $0x438] sm:$0xff] }
 0x7ef   :  { %7860 = vmatprep.mubr.bf16.mxu0 %v20663_v10  ;;  %7870 = vmatpush1.bf16.msra.mxu1 %v16515_v55  ;;  %v16492_v10 = vcombine.high %v6209_v18, %v6213_v33  ;;  %v16332_v55 = vcombine.high %v6049_v50, %v6053_v52  ;;  %v6293_v18 = vld [vmem:[#allocation22 + $0x7b8] sm:$0xff]  ;;  %v16451_v33 = vcombine.low %v6169_v21, %v6173_v29 }
 0x7f0   :  { %7901 = vmatprep.mubr.bf16.mxu1 %v20667_v35  ;;  %7830 = vmatprep.subr.bf16.mxu0 %v16380_v15  ;;  %v16363_v35 = vcombine.low %v6081_v31, %v6085_v32  ;;  %v16460_v15 = vcombine.high %v6177_v17, %v6181_v56  ;;  %v6165_v31 = vld [vmem:[#allocation22 + $0x3b8] sm:$0xff] }
 0x7f1   :  { %7871 = vmatprep.subr.bf16.mxu1 %v16508_v28  ;;  %v6297_v28 = vld [vmem:[#allocation22 + $0x7d8] sm:$0xff] }
 0x7f2   :  { %7831 = vmatpush1.bf16.msra.mxu0 %v16379_v27  ;;  %v16459_v27 = vcombine.low %v6177_v17, %v6181_v56  ;;  %v6289_v32 = vld [vmem:[#allocation22 + $0x798] sm:$0xff] }
 0x7f3   :  { %7872 = vmatpush1.bf16.msra.mxu1 %v16507_v13  ;;  %7832 = vmatprep.subr.bf16.mxu0 %v16372_v5  ;;  %v16452_v13 = vcombine.high %v6169_v21, %v6173_v29  ;;  %v16580_v5 = vcombine.high %v6297_v28, %v6301_v30  ;;  %v6269_v54 = vld [vmem:[#allocation22 + $0x6f8] sm:$0xff] }
 0x7f4   :  { %7873 = vmatprep.subr.bf16.mxu1 %v16500_v43  ;;  %v6161_v43 = vld [vmem:[#allocation22 + $0x398] sm:$0xff] }
 0x7f5   :  { %v16443_v60 = vcombine.low %v6161_v43, %v6165_v31  ;;  %v6133_v50 = vld [vmem:[#allocation22 + $0x2b8] sm:$0xff] }
 0x7f6   :  { %7833 = vmatpush1.bf16.msra.mxu0 %v16371_v34  ;;  %v16579_v34 = vcombine.low %v6297_v28, %v6301_v30  ;;  %v6257_v52 = vld [vmem:[#allocation22 + $0x698] sm:$0xff] }
 0x7f7   :  { %7874 = vmatpush1.bf16.msra.mxu1 %v16499_v36  ;;  %7834 = vmatprep.subr.bf16.mxu0 %v16364_v38  ;;  %v16444_v36 = vcombine.high %v6161_v43, %v6165_v31  ;;  %v16572_v38 = vcombine.high %v6289_v32, %v6293_v18  ;;  %v6261_v17 = vld [vmem:[#allocation22 + $0x6b8] sm:$0xff] }
 0x7f8   :  { %7875 = vmatprep.subr.bf16.mxu1 %v16492_v10  ;;  %v6153_v10 = vld [vmem:[#allocation22 + $0x358] sm:$0xff] }
 0x7f9   :  { %v16435_v19 = vcombine.low %v6153_v10, %v6157_v41  ;;  %v6125_v21 = vld [vmem:[#allocation22 + $0x278] sm:$0xff] }
 0x7fa   :  { %7835 = vmatpush1.bf16.msra.mxu0 %v16363_v35  ;;  %v16571_v35 = vcombine.low %v6289_v32, %v6293_v18  ;;  %v6249_v29 = vld [vmem:[#allocation22 + $0x658] sm:$0xff] }
 0x7fb   :  { %7876 = vmatpush1.bf16.msra.mxu1 %v16491_v7  ;;  %7836 = vmatprep.subr.bf16.mxu0 %v16356_v51  ;;  %v16436_v7 = vcombine.high %v6153_v10, %v6157_v41  ;;  %v16564_v51 = vcombine.high %v6281_v47, %v6285_v8  ;;  %v6253_v28 = vld [vmem:[#allocation22 + $0x678] sm:$0xff]  ;;  %v18425_v41 = vld [vmem:[#allocation23 + $0xe4] ss:$16 sps:$4 sm:$0xff]  }
 0x7fc   :  { %7877 = vmatprep.subr.bf16.mxu1 %v16484_v26  ;;  %v6145_v26 = vld [vmem:[#allocation22 + $0x318] sm:$0xff] }
 0x7fd   :  { %v16427_v6 = vcombine.low %v6145_v26, %v6149_v0  ;;  %v6117_v43 = vld [vmem:[#allocation22 + $0x238] sm:$0xff] }
 0x7fe   :  { %7837 = vmatpush1.bf16.msra.mxu0 %v16355_v62  ;;  %v16563_v62 = vcombine.low %v6281_v47, %v6285_v8  ;;  %v6241_v31 = vld [vmem:[#allocation22 + $0x618] sm:$0xff]  ;;  %v18437_v47 = vld [vmem:[#allocation23 + $0x2e4] ss:$16 sps:$4 sm:$0xff]   ;;  %v18423_v8 = vld [vmem:[#allocation23 + $0xe0] ss:$16 sps:$4 sm:$0xff]  }
 0x7ff   :  { %7878 = vmatpush1.bf16.msra.mxu1 %v16483_v63  ;;  %7838 = vmatprep.subr.bf16.mxu0 %v16348_v46  ;;  %v16428_v63 = vcombine.high %v6145_v26, %v6149_v0  ;;  %v16556_v46 = vcombine.high %v6273_v61, %v6277_v1  ;;  %v6245_v32 = vld [vmem:[#allocation22 + $0x638] sm:$0xff] }
 0x800   :  { %7879 = vmatprep.subr.bf16.mxu1 %v16476_v37  ;;  %v6137_v37 = vld [vmem:[#allocation22 + $0x2d8] sm:$0xff]  ;;  %v16523_v10 = vcombine.low %v6241_v31, %v6245_v32 }
 0x801   :  { %v16419_v56 = vcombine.low %v6137_v37, %v6141_v23  ;;  %v20704_v0 = vld [vmem:[%s21060_s24] sm:$0xff] }
 0x802   :  { %7839 = vmatpush1.bf16.msra.mxu0 %v16347_v2  ;;  %v16555_v2 = vcombine.low %v6273_v61, %v6277_v1  ;;  %v18426_v61 = vld [vmem:[#allocation23 + $0xc0] ss:$16 sps:$4 sm:$0xff]  }
 0x803   :  { %7880 = vmatpush1.bf16.msra.mxu1 %v16475_v57  ;;  %7840 = vmatprep.subr.bf16.mxu0 %v16340_v12  ;;  %v16420_v57 = vcombine.high %v6137_v37, %v6141_v23  ;;  %v16548_v12 = vcombine.high %v6265_v3, %v6269_v54  ;;  %v18449_v37 = vld [vmem:[#allocation23 + $0x2a4] ss:$16 sps:$4 sm:$0xff]  }
 0x804   :  { %7881 = vmatprep.subr.bf16.mxu1 %v16468_v22  ;;  %v6129_v22 = vld [vmem:[#allocation22 + $0x298] sm:$0xff] }
 0x805   :  { %v16411_v30 = vcombine.low %v6129_v22, %v6133_v50 }
 0x806   :  { %7841 = vmatpush1.bf16.msra.mxu0 %v16339_v11  ;;  %v16547_v11 = vcombine.low %v6265_v3, %v6269_v54 }
 0x807   :  { %7882 = vmatpush1.bf16.msra.mxu1 %v16467_v58  ;;  %7842 = vmatprep.subr.bf16.mxu0 %v16332_v55  ;;  %v16412_v58 = vcombine.high %v6129_v22, %v6133_v50  ;;  %v16540_v55 = vcombine.high %v6257_v52, %v6261_v17  ;;  %v18447_v22 = vld [vmem:[#allocation23 + $0x2a0] ss:$16 sps:$4 sm:$0xff]  }
 0x808   :  { %7883 = vmatprep.subr.bf16.mxu1 %v16460_v15  ;;  %v6121_v15 = vld [vmem:[#allocation22 + $0x258] sm:$0xff] }
 0x809   :  { %v16403_v18 = vcombine.low %v6121_v15, %v6125_v21 }
 0x80a   :  { %7843 = vmatpush1.bf16.msra.mxu0 %v16331_v44  ;;  %v16539_v44 = vcombine.low %v6257_v52, %v6261_v17  ;;  %v18455_v52 = vld [vmem:[#allocation23 + $0x284] ss:$16 sps:$4 sm:$0xff]  }
 0x80b   :  { %7884 = vmatpush1.bf16.msra.mxu1 %v16459_v27  ;;  %7844 = vmatprep.subr.bf16.mxu0 %v16452_v13  ;;  %v16404_v27 = vcombine.high %v6121_v15, %v6125_v21  ;;  %v16532_v13 = vcombine.high %v6249_v29, %v6253_v28  ;;  %v18461_v21 = vld [vmem:[#allocation23 + $0x264] ss:$16 sps:$4 sm:$0xff]  }
 0x80c   :  { %7885 = vmatprep.subr.bf16.mxu1 %v16580_v5  ;;  %v6113_v5 = vld [vmem:[#allocation22 + $0x218] sm:$0xff] }
 0x80e   :  { %7845 = vmatpush2.bf16.msra.mxu0 %v16451_v33  ;;  %v16531_v33 = vcombine.low %v6249_v29, %v6253_v28  ;;  %v18438_v29 = vld [vmem:[#allocation23 + $0x60] ss:$16 sps:$4 sm:$0xff]   ;;  %v18446_v28 = vld [vmem:[#allocation23 + $0x44] ss:$16 sps:$4 sm:$0xff]  }
 0x80f   :  { %7886 = vmatpush2.bf16.msra.mxu1 %v16579_v34  ;;  %7846 = vmatprep.subr.bf16.mxu0 %v16444_v36  ;;  %v16396_v34 = vcombine.high %v6113_v5, %v6117_v43  ;;  %v16524_v36 = vcombine.high %v6241_v31, %v6245_v32  ;;  %v18450_v31 = vld [vmem:[#allocation23 + $0x20] ss:$16 sps:$4 sm:$0xff]   ;;  %v18458_v32 = vld [vmem:[#allocation23 + $0x4] ss:$16 sps:$4 sm:$0xff]  }
 0x810   :  { %7887 = vmatprep.subr.bf16.mxu1 %v16572_v38  ;;  %v16395_v38 = vcombine.low %v6113_v5, %v6117_v43  ;;  %v18465_v5 = vld [vmem:[#allocation23 + $0x240] ss:$16 sps:$4 sm:$0xff]   ;;  %v18473_v43 = vld [vmem:[#allocation23 + $0x224] ss:$16 sps:$4 sm:$0xff]  }
 0x812   :  { %7847 = vmatpush2.bf16.msra.mxu0 %v16443_v60  ;;  %v18428_v60 = vld [vmem:[#allocation23 + $0xc4] ss:$16 sps:$4 sm:$0xff]  }
 0x813   :  { %7888 = vmatpush2.bf16.msra.mxu1 %v16571_v35  ;;  %7848 = vmatprep.subr.bf16.mxu0 %v16436_v7  ;;  %v18435_v35 = vld [vmem:[#allocation23 + $0x2e0] ss:$16 sps:$4 sm:$0xff]   ;;  %v18443_v7 = vld [vmem:[#allocation23 + $0x2c4] ss:$16 sps:$4 sm:$0xff]  }
 0x814   :  { %7889 = vmatprep.subr.bf16.mxu1 %v16564_v51 }
 0x816   :  { %7849 = vmatpush2.bf16.msra.mxu0 %v16435_v19  ;;  %v7919_v19 = vrot.slane %v20704_v0, %v20409_v25 }
 0x817   :  { %7890 = vmatpush2.bf16.msra.mxu1 %v16563_v62  ;;  %7850 = vmatprep.subr.bf16.mxu0 %v16428_v63  ;;  %v18431_v62 = vld [vmem:[#allocation23 + $0xa4] ss:$16 sps:$4 sm:$0xff]   ;;  %v18441_v63 = vld [vmem:[#allocation23 + $0x2c0] ss:$16 sps:$4 sm:$0xff]  }
 0x818   :  { %7891 = vmatprep.subr.bf16.mxu1 %v16556_v46  ;;  %v20709_v46 = vld [vmem:[%s21061_s13] sm:$0xff] }
 0x819   :  { %v7969_v23 = vrot.slane %v20709_v46, %v20409_v25 }
 0x81a   :  { %7851 = vmatpush2.bf16.msra.mxu0 %v16427_v6  ;;  %v18429_v6 = vld [vmem:[#allocation23 + $0xa0] ss:$16 sps:$4 sm:$0xff]  }
 0x81b   :  { %7892 = vmatpush2.bf16.msra.mxu1 %v16555_v2  ;;  %7852 = vmatprep.subr.bf16.mxu0 %v16420_v57 }
 0x81c   :  { %7893 = vmatprep.subr.bf16.mxu1 %v16548_v12  ;;  %v18434_v12 = vld [vmem:[#allocation23 + $0x84] ss:$16 sps:$4 sm:$0xff]  }
 0x81e   :  { %7853 = vmatpush2.bf16.msra.mxu0 %v16419_v56  ;;  %v18432_v56 = vld [vmem:[#allocation23 + $0x80] ss:$16 sps:$4 sm:$0xff]  }
 0x81f   :  { %7894 = vmatpush2.bf16.msra.mxu1 %v16547_v11  ;;  %7854 = vmatprep.subr.bf16.mxu0 %v16412_v58  ;;  %v18440_v58 = vld [vmem:[#allocation23 + $0x64] ss:$16 sps:$4 sm:$0xff]  }
 0x820   :  { %7895 = vmatprep.subr.bf16.mxu1 %v16540_v55  ;;  %v18453_v55 = vld [vmem:[#allocation23 + $0x280] ss:$16 sps:$4 sm:$0xff]  }
 0x822   :  { %7855 = vmatpush2.bf16.msra.mxu0 %v16411_v30  ;;  %v18459_v30 = vld [vmem:[#allocation23 + $0x260] ss:$16 sps:$4 sm:$0xff]  }
 0x823   :  { %7896 = vmatpush2.bf16.msra.mxu1 %v16539_v44  ;;  %7856 = vmatprep.subr.bf16.mxu0 %v16404_v27  ;;  %v18467_v44 = vld [vmem:[#allocation23 + $0x244] ss:$16 sps:$4 sm:$0xff]   ;;  %v18444_v27 = vld [vmem:[#allocation23 + $0x40] ss:$16 sps:$4 sm:$0xff]  }
 0x824   :  { %7897 = vmatprep.subr.bf16.mxu1 %v16532_v13  ;;  %v18452_v13 = vld [vmem:[#allocation23 + $0x24] ss:$16 sps:$4 sm:$0xff]  }
 0x826   :  { %7857 = vmatpush2.bf16.msra.mxu0 %v16403_v18  ;;  %v18471_v18 = vld [vmem:[#allocation23 + $0x220] ss:$16 sps:$4 sm:$0xff]  }
 0x827   :  { %7898 = vmatpush2.bf16.msra.mxu1 %v16531_v33  ;;  %7858 = vmatprep.subr.bf16.mxu0 %v16396_v34  ;;  %v18479_v33 = vld [vmem:[#allocation23 + $0x204] ss:$16 sps:$4 sm:$0xff]   ;;  %v18456_v34 = vld [vmem:[#allocation23] ss:$16 sps:$4 sm:$0xff]  }
 0x828   :  { %7899 = vmatprep.subr.bf16.mxu1 %v16524_v36  ;;  %v18464_v36 = vld [vmem:[#allocation23 + $0x1e4] ss:$16 sps:$4 sm:$0xff]  }
 0x82a   :  { %7859 = vmatpush2.bf16.msra.mxu0 %v16395_v38  ;;  %v18477_v38 = vld [vmem:[#allocation23 + $0x200] ss:$16 sps:$4 sm:$0xff]  }
 0x82b   :  { %7900 = vmatpush2.bf16.msra.mxu1 %v16523_v10  ;;  %9562 = vmatprep.subr.bf16.mxu0 %v18425_v41  ;;  %v18485_v10 = vld [vmem:[#allocation23 + $0x3e4] ss:$16 sps:$4 sm:$0xff]   ;;  %v18462_v41 = vld [vmem:[#allocation23 + $0x1e0] ss:$16 sps:$4 sm:$0xff]  }
 0x82c   :  { %9603 = vmatprep.subr.bf16.mxu1 %v18437_v47  ;;  %v18470_v47 = vld [vmem:[#allocation23 + $0x1c4] ss:$16 sps:$4 sm:$0xff]  }
 0x82d   :  { %7861 = vmatmul.mubr.bf16.vlgmr.msra.gmra.mxu0 %v20671_v40  ;;  %v20698_v51 = vpop.f32.mrf.mxu0 }
 0x82e   :  { %7902 = vmatmul.mubr.bf16.vlgmr.msra.gmra.mxu1 %v20676_v59  ;;  %v20701_v26 = vpop.f32.mrf.mxu1  ;;  %9563 = vmatpush1.bf16.msra.mxu0 %v18423_v8  ;;  %v18483_v8 = vld [vmem:[#allocation23 + $0x3e0] ss:$16 sps:$4 sm:$0xff]  }
 0x82f   :  { %v7618_v1 = vpop.f32.mrf.mxu0  ;;  %9564 = vmatprep.subr.bf16.mxu0 %v18428_v60  ;;  %9604 = vmatpush1.bf16.msra.mxu1 %v18435_v35  ;;  %v18491_v60 = vld [vmem:[#allocation23 + $0x3c4] ss:$16 sps:$4 sm:$0xff]   ;;  %v18468_v35 = vld [vmem:[#allocation23 + $0x1c0] ss:$16 sps:$4 sm:$0xff]  }
 0x830   :  { %v7659_v40 = vpop.f32.mrf.mxu1  ;;  %9605 = vmatprep.subr.bf16.mxu1 %v18443_v7  ;;  %v18476_v7 = vld [vmem:[#allocation23 + $0x1a4] ss:$16 sps:$4 sm:$0xff]  }
 0x831   :  { %v7660_v59 = vadd.f32 %v7659_v40, %v7618_v1  ;;  %v7620_v3 = vpop.f32.mrf.mxu0  ;;  %v18497_v1 = vld [vmem:[#allocation23 + $0x3a4] ss:$16 sps:$4 sm:$0xff]  }
 0x832   :  { %v7661_v54 = vpop.f32.mrf.mxu1  ;;  %9565 = vmatpush1.bf16.msra.mxu0 %v18426_v61  ;;  %v18489_v61 = vld [vmem:[#allocation23 + $0x3c0] ss:$16 sps:$4 sm:$0xff]   ;;  %v18503_v40 = vld [vmem:[#allocation23 + $0x384] ss:$16 sps:$4 sm:$0xff]  }
 0x833   :  { %v7953_v2 = vmul.f32 %v7919_v19, %v7660_v59  ;;  %v7621_v57 = vpop.f32.mrf.mxu0  ;;  %9566 = vmatprep.subr.bf16.mxu0 %v18431_v62  ;;  %9606 = vmatpush1.bf16.msra.mxu1 %v18441_v63  ;;  %v18474_v19 = vld [vmem:[#allocation23 + $0x1a0] ss:$16 sps:$4 sm:$0xff]   ;;  %v18482_v62 = vld [vmem:[#allocation23 + $0x184] ss:$16 sps:$4 sm:$0xff]  }
 0x834   :  { %v7662_v50 = vpop.f32.mrf.mxu1  ;;  %9607 = vmatprep.subr.bf16.mxu1 %v18449_v37  ;;  %v18495_v63 = vld [vmem:[#allocation23 + $0x3a0] ss:$16 sps:$4 sm:$0xff]   ;;  %v18488_v59 = vld [vmem:[#allocation23 + $0x164] ss:$16 sps:$4 sm:$0xff]  }
 0x835   :  { %v8003_v17 = vadd.f32 %v7969_v23, %v7953_v2  ;;  %v18480_v37 = vld [vmem:[#allocation23 + $0x180] ss:$16 sps:$4 sm:$0xff]   ;;  %v18509_v3 = vld [vmem:[#allocation23 + $0x364] ss:$16 sps:$4 sm:$0xff]   ;;  %v7915_v2 = vrot.slane %v20704_v0, %v20406_v24 }
 0x836   :  { %9567 = vmatpush1.bf16.msra.mxu0 %v18429_v6  ;;  %v18501_v23 = vld [vmem:[#allocation23 + $0x380] ss:$16 sps:$4 sm:$0xff]   ;;  %v7658_v6 = vadd.f32 %v20701_v26, %v20698_v51  ;;  %v18494_v57 = vld [vmem:[#allocation23 + $0x144] ss:$16 sps:$4 sm:$0xff]  }
 0x837   :  { %9568 = vmatprep.subr.bf16.mxu0 %v18434_v12  ;;  %v8011_v11 = vmax.f32 %v8003_v17, 0.0  ;;  %9608 = vmatpush1.bf16.msra.mxu1 %v18447_v22  ;;  %v18486_v54 = vld [vmem:[#allocation23 + $0x160] ss:$16 sps:$4 sm:$0xff]   ;;  %v18512_v22 = vld [vmem:[#allocation23 + $0x344] ss:$16 sps:$4 sm:$0xff]   ;;  %v7965_v17 = vrot.slane %v20709_v46, %v20406_v24 }
 0x838   :  { %9609 = vmatprep.subr.bf16.mxu1 %v18455_v52  ;;  %v18507_v12 = vld [vmem:[#allocation23 + $0x360] ss:$16 sps:$4 sm:$0xff]   ;;  %v7952_v52 = vmul.f32 %v7915_v2, %v7658_v6  ;;  %v18515_v51 = vld [vmem:[#allocation23 + $0x324] ss:$16 sps:$4 sm:$0xff]  }
 0x839   :  { %v20713_v15 = vpack.c.bf16 %v8011_v11, %v8011_v11  ;;  %v18492_v50 = vld [vmem:[#allocation23 + $0x140] ss:$16 sps:$4 sm:$0xff]   ;;  %v18533_v2 = vld [vmem:[#allocation23 + $0x464] ss:$16 sps:$4 sm:$0xff]  }
 0x83a   :  { %9569 = vmatpush1.bf16.msra.mxu0 %v18432_v56  ;;  %v18500_v56 = vld [vmem:[#allocation23 + $0x124] ss:$16 sps:$4 sm:$0xff]   ;;  %v18510_v11 = vld [vmem:[#allocation23 + $0x340] ss:$16 sps:$4 sm:$0xff]  }
 0x83b   :  { %9594 = vmatprep.mubr.bf16.mxu0 %v20713_v15  ;;  %9570 = vmatprep.subr.bf16.mxu0 %v18440_v58  ;;  %v18498_v26 = vld [vmem:[#allocation23 + $0x120] ss:$16 sps:$4 sm:$0xff]   ;;  %v8002_v58 = vadd.f32 %v7965_v17, %v7952_v52  ;;  %v18575_v52 = vld [vmem:[#allocation23 + $0x6c4] ss:$16 sps:$4 sm:$0xff]  }
 0x83c   :  { %9610 = vmatpush1.bf16.msra.mxu1 %v18453_v55  ;;  %v18506_v55 = vld [vmem:[#allocation23 + $0x104] ss:$16 sps:$4 sm:$0xff]  }
 0x83d   :  { %9611 = vmatprep.subr.bf16.mxu1 %v18461_v21  ;;  %v18513_v21 = vld [vmem:[#allocation23 + $0x320] ss:$16 sps:$4 sm:$0xff]   ;;  %v18536_v17 = vld [vmem:[#allocation23 + $0x444] ss:$16 sps:$4 sm:$0xff]  }
 0x83e   :  { %9571 = vmatpush1.bf16.msra.mxu0 %v18438_v29  ;;  %v18518_v29 = vld [vmem:[#allocation23 + $0x304] ss:$16 sps:$4 sm:$0xff]  }
 0x83f   :  { %9572 = vmatprep.subr.bf16.mxu0 %v18446_v28  ;;  %v18504_v28 = vld [vmem:[#allocation23 + $0x100] ss:$16 sps:$4 sm:$0xff]  }
 0x840   :  { %9612 = vmatpush1.bf16.msra.mxu1 %v18459_v30  ;;  %v8010_v30 = vmax.f32 %v8002_v58, 0.0  ;;  %v18579_v58 = vld [vmem:[#allocation23 + $0x6a0] ss:$16 sps:$4 sm:$0xff]  }
 0x841   :  { %9613 = vmatprep.subr.bf16.mxu1 %v18467_v44  ;;  %v18521_v44 = vld [vmem:[#allocation23 + $0x4e4] ss:$16 sps:$4 sm:$0xff]  }
 0x842   :  { %9573 = vmatpush1.bf16.msra.mxu0 %v18444_v27  ;;  %v18516_v27 = vld [vmem:[#allocation23 + $0x300] ss:$16 sps:$4 sm:$0xff]  }
 0x843   :  { %9574 = vmatprep.subr.bf16.mxu0 %v18452_v13  ;;  %v18569_v13 = vld [vmem:[#allocation23 + $0x6e4] ss:$16 sps:$4 sm:$0xff]  }
 0x844   :  { %9614 = vmatpush1.bf16.msra.mxu1 %v18465_v5  ;;  %v18519_v5 = vld [vmem:[#allocation23 + $0x4e0] ss:$16 sps:$4 sm:$0xff]  }
 0x845   :  { %9615 = vmatprep.subr.bf16.mxu1 %v18473_v43  ;;  %v20722_v43 = vpack.c.bf16 %v8010_v30, %v8010_v30  ;;  %v18540_v30 = vld [vmem:[#allocation23 + $0x400] ss:$16 sps:$4 sm:$0xff]  }
 0x846   :  { %9575 = vmatpush1.bf16.msra.mxu0 %v18450_v31  ;;  %v18524_v31 = vld [vmem:[#allocation23 + $0x4c4] ss:$16 sps:$4 sm:$0xff]  }
 0x847   :  { %9576 = vmatprep.subr.bf16.mxu0 %v18458_v32 }
 0x848   :  { %9616 = vmatpush1.bf16.msra.mxu1 %v18471_v18  ;;  %v7923_v18 = vrot.slane %v20704_v0, %v20434_v39 }
 0x849   :  { %9617 = vmatprep.subr.bf16.mxu1 %v18479_v33 }
 0x84a   :  { %9577 = vmatpush1.bf16.msra.mxu0 %v18456_v34  ;;  %v18522_v34 = vld [vmem:[#allocation23 + $0x4c0] ss:$16 sps:$4 sm:$0xff]  }
 0x84b   :  { %9578 = vmatprep.subr.bf16.mxu0 %v18464_v36 }
 0x84c   :  { %9618 = vmatpush1.bf16.msra.mxu1 %v18477_v38  ;;  %v7973_v38 = vrot.slane %v20709_v46, %v20434_v39 }
 0x84d   :  { %9619 = vmatprep.subr.bf16.mxu1 %v18485_v10 }
 0x84e   :  { %9579 = vmatpush2.bf16.msra.mxu0 %v18462_v41  ;;  %v7927_v41 = vrot.slane %v20704_v0, %v20437_v45 }
 0x84f   :  { %9580 = vmatprep.subr.bf16.mxu0 %v18470_v47  ;;  %v18527_v47 = vld [vmem:[#allocation23 + $0x4a4] ss:$16 sps:$4 sm:$0xff]  }
 0x850   :  { %9620 = vmatpush2.bf16.msra.mxu1 %v18483_v8 }
 0x851   :  { %9621 = vmatprep.subr.bf16.mxu1 %v18491_v60 }
 0x852   :  { %9581 = vmatpush2.bf16.msra.mxu0 %v18468_v35 }
 0x853   :  { %9582 = vmatprep.subr.bf16.mxu0 %v18476_v7  ;;  %v7977_v7 = vrot.slane %v20709_v46, %v20437_v45 }
 0x854   :  { %9622 = vmatpush2.bf16.msra.mxu1 %v18489_v61 }
 0x855   :  { %9623 = vmatprep.subr.bf16.mxu1 %v18497_v1 }
 0x856   :  { %9583 = vmatpush2.bf16.msra.mxu0 %v18474_v19  ;;  %v18525_v19 = vld [vmem:[#allocation23 + $0x4a0] ss:$16 sps:$4 sm:$0xff]  }
 0x857   :  { %9584 = vmatprep.subr.bf16.mxu0 %v18482_v62 }
 0x858   :  { %9624 = vmatpush2.bf16.msra.mxu1 %v18495_v63 }
 0x859   :  { %9625 = vmatprep.subr.bf16.mxu1 %v18503_v40 }
 0x85a   :  { %9585 = vmatpush2.bf16.msra.mxu0 %v18480_v37  ;;  %v18530_v37 = vld [vmem:[#allocation23 + $0x484] ss:$16 sps:$4 sm:$0xff]  }
 0x85b   :  { %9586 = vmatprep.subr.bf16.mxu0 %v18488_v59 }
 0x85c   :  { %9626 = vmatpush2.bf16.msra.mxu1 %v18501_v23 }
 0x85d   :  { %9627 = vmatprep.subr.bf16.mxu1 %v18509_v3 }
 0x85e   :  { %9587 = vmatpush2.bf16.msra.mxu0 %v18486_v54  ;;  %v18528_v54 = vld [vmem:[#allocation23 + $0x480] ss:$16 sps:$4 sm:$0xff]  }
 0x85f   :  { %9588 = vmatprep.subr.bf16.mxu0 %v18494_v57 }
 0x860   :  { %9628 = vmatpush2.bf16.msra.mxu1 %v18507_v12  ;;  %v18567_v12 = vld [vmem:[#allocation23 + $0x6e0] ss:$16 sps:$4 sm:$0xff]  }
 0x861   :  { %9629 = vmatprep.subr.bf16.mxu1 %v18512_v22 }
 0x862   :  { %9589 = vmatpush2.bf16.msra.mxu0 %v18492_v50  ;;  %v18531_v50 = vld [vmem:[#allocation23 + $0x460] ss:$16 sps:$4 sm:$0xff]  }
 0x863   :  { %9590 = vmatprep.subr.bf16.mxu0 %v18500_v56  ;;  %v18573_v56 = vld [vmem:[#allocation23 + $0x6c0] ss:$16 sps:$4 sm:$0xff]  }
 0x864   :  { %9630 = vmatpush2.bf16.msra.mxu1 %v18510_v11  ;;  %v18534_v11 = vld [vmem:[#allocation23 + $0x440] ss:$16 sps:$4 sm:$0xff]  }
 0x865   :  { %9631 = vmatprep.subr.bf16.mxu1 %v18515_v51  ;;  %v18581_v51 = vld [vmem:[#allocation23 + $0x6a4] ss:$16 sps:$4 sm:$0xff]  }
 0x866   :  { %9591 = vmatpush2.bf16.msra.mxu0 %v18498_v26  ;;  %v18539_v26 = vld [vmem:[#allocation23 + $0x424] ss:$16 sps:$4 sm:$0xff]  }
 0x867   :  { %9592 = vmatprep.subr.bf16.mxu0 %v18506_v55  ;;  %v18537_v55 = vld [vmem:[#allocation23 + $0x420] ss:$16 sps:$4 sm:$0xff]  }
 0x868   :  { %9632 = vmatpush2.bf16.msra.mxu1 %v18513_v21  ;;  %v18587_v21 = vld [vmem:[#allocation23 + $0x684] ss:$16 sps:$4 sm:$0xff]  }
 0x869   :  { %9633 = vmatprep.subr.bf16.mxu1 %v18518_v29  ;;  %v18542_v29 = vld [vmem:[#allocation23 + $0x404] ss:$16 sps:$4 sm:$0xff]  }
 0x86a   :  { %9593 = vmatpush2.bf16.msra.mxu0 %v18504_v28  ;;  %v18585_v28 = vld [vmem:[#allocation23 + $0x680] ss:$16 sps:$4 sm:$0xff]  }
 0x86b   :  { %9644 = vmatprep.subr.bf16.mxu0 %v18521_v44  ;;  %v18593_v44 = vld [vmem:[#allocation23 + $0x664] ss:$16 sps:$4 sm:$0xff]  }
 0x86c   :  { %9634 = vmatpush2.bf16.msra.mxu1 %v18516_v27  ;;  %v18545_v27 = vld [vmem:[#allocation23 + $0x5e4] ss:$16 sps:$4 sm:$0xff]  }
 0x86d   :  { %v7698_v32 = vpop.f32.mrf.mxu0  ;;  %9595 = vmatmul.mubr.bf16.vlgmr.msra.gmra.mxu0 %v20722_v43  ;;  %9685 = vmatprep.subr.bf16.mxu1 %v18569_v13  ;;  %v18591_v13 = vld [vmem:[#allocation23 + $0x660] ss:$16 sps:$4 sm:$0xff]  }
 0x86e   :  { %v7739_v33 = vpop.f32.mrf.mxu1  ;;  %9645 = vmatpush1.bf16.msra.mxu0 %v18519_v5  ;;  %v18543_v5 = vld [vmem:[#allocation23 + $0x5e0] ss:$16 sps:$4 sm:$0xff]  }
 0x86f   :  { %v7740_v36 = vadd.f32 %v7739_v33, %v7698_v32  ;;  %v7700_v10 = vpop.f32.mrf.mxu0  ;;  %9646 = vmatprep.subr.bf16.mxu0 %v18524_v31  ;;  %v18599_v31 = vld [vmem:[#allocation23 + $0x644] ss:$16 sps:$4 sm:$0xff]   ;;  %v18546_v33 = vld [vmem:[#allocation23 + $0x5c0] ss:$16 sps:$4 sm:$0xff]  }
 0x870   :  { %v7741_v8 = vpop.f32.mrf.mxu1  ;;  %v18548_v32 = vld [vmem:[#allocation23 + $0x5c4] ss:$16 sps:$4 sm:$0xff]  }
 0x871   :  { %v7954_v60 = vmul.f32 %v7923_v18, %v7740_v36  ;;  %v7742_v35 = vadd.f32 %v7741_v8, %v7700_v10  ;;  %v7702_v61 = vpop.f32.mrf.mxu0  ;;  %v18597_v18 = vld [vmem:[#allocation23 + $0x640] ss:$16 sps:$4 sm:$0xff]   ;;  %v18551_v36 = vld [vmem:[#allocation23 + $0x5a4] ss:$16 sps:$4 sm:$0xff]  }
 0x872   :  { %v7743_v1 = vpop.f32.mrf.mxu1  ;;  %9647 = vmatpush1.bf16.msra.mxu0 %v18522_v34  ;;  %v18605_v34 = vld [vmem:[#allocation23 + $0x624] ss:$16 sps:$4 sm:$0xff]   ;;  %v18549_v10 = vld [vmem:[#allocation23 + $0x5a0] ss:$16 sps:$4 sm:$0xff]  }
 0x873   :  { %v8004_v62 = vadd.f32 %v7973_v38, %v7954_v60  ;;  %v7955_v63 = vmul.f32 %v7927_v41, %v7742_v35  ;;  %v7703_v40 = vpop.f32.mrf.mxu0  ;;  %9648 = vmatprep.subr.bf16.mxu0 %v18527_v47  ;;  %v18603_v38 = vld [vmem:[#allocation23 + $0x620] ss:$16 sps:$4 sm:$0xff]   ;;  %v18611_v41 = vld [vmem:[#allocation23 + $0x604] ss:$16 sps:$4 sm:$0xff]  }
 0x874   :  { %v7744_v59 = vpop.f32.mrf.mxu1  ;;  %v18554_v47 = vld [vmem:[#allocation23 + $0x584] ss:$16 sps:$4 sm:$0xff]   ;;  %v18609_v8 = vld [vmem:[#allocation23 + $0x600] ss:$16 sps:$4 sm:$0xff]  }
 0x875   :  { %v8005_v23 = vadd.f32 %v7977_v7, %v7955_v63  ;;  %v8012_v3 = vmax.f32 %v8004_v62, 0.0  ;;  %v18552_v60 = vld [vmem:[#allocation23 + $0x580] ss:$16 sps:$4 sm:$0xff]   ;;  %v18617_v35 = vld [vmem:[#allocation23 + $0x7e4] ss:$16 sps:$4 sm:$0xff]  }
 0x876   :  { %9649 = vmatpush1.bf16.msra.mxu0 %v18525_v19  ;;  %v18557_v7 = vld [vmem:[#allocation23 + $0x564] ss:$16 sps:$4 sm:$0xff]   ;;  %v18615_v61 = vld [vmem:[#allocation23 + $0x7e0] ss:$16 sps:$4 sm:$0xff]  }
 0x877   :  { %v8013_v6 = vmax.f32 %v8005_v23, 0.0  ;;  %9650 = vmatprep.subr.bf16.mxu0 %v18530_v37  ;;  %v20735_v22 = vpack.c.bf16 %v8012_v3, %v8012_v3  ;;  %v18555_v1 = vld [vmem:[#allocation23 + $0x560] ss:$16 sps:$4 sm:$0xff]   ;;  %v18623_v19 = vld [vmem:[#allocation23 + $0x7c4] ss:$16 sps:$4 sm:$0xff]  }
 0x878   :  { %v18560_v62 = vld [vmem:[#allocation23 + $0x544] ss:$16 sps:$4 sm:$0xff]   ;;  %v18621_v63 = vld [vmem:[#allocation23 + $0x7c0] ss:$16 sps:$4 sm:$0xff]  }
 0x879   :  { %v20733_v57 = vpack.c.bf16 %v8013_v6, %v8013_v6  ;;  %v18558_v40 = vld [vmem:[#allocation23 + $0x540] ss:$16 sps:$4 sm:$0xff]   ;;  %v18629_v37 = vld [vmem:[#allocation23 + $0x7a4] ss:$16 sps:$4 sm:$0xff]  }
 0x87a   :  { %9651 = vmatpush1.bf16.msra.mxu0 %v18528_v54  ;;  %v18563_v59 = vld [vmem:[#allocation23 + $0x524] ss:$16 sps:$4 sm:$0xff]   ;;  %v18627_v23 = vld [vmem:[#allocation23 + $0x7a0] ss:$16 sps:$4 sm:$0xff]  }
 0x87b   :  { %9635 = vmatprep.mubr.bf16.mxu1 %v20733_v57  ;;  %9652 = vmatprep.subr.bf16.mxu0 %v18533_v2  ;;  %v18561_v3 = vld [vmem:[#allocation23 + $0x520] ss:$16 sps:$4 sm:$0xff]   ;;  %v18635_v54 = vld [vmem:[#allocation23 + $0x784] ss:$16 sps:$4 sm:$0xff]  }
 0x87c   :  { %9636 = vmatmul.mubr.bf16.vlgmr.msra.gmra.mxu1 %v20735_v22  ;;  %v18566_v6 = vld [vmem:[#allocation23 + $0x504] ss:$16 sps:$4 sm:$0xff]   ;;  %v18633_v2 = vld [vmem:[#allocation23 + $0x780] ss:$16 sps:$4 sm:$0xff]  }
 0x87d   :  { %9686 = vmatpush1.bf16.msra.mxu1 %v18567_v12  ;;  %v18564_v12 = vld [vmem:[#allocation23 + $0x500] ss:$16 sps:$4 sm:$0xff]  }
 0x87e   :  { %9653 = vmatpush1.bf16.msra.mxu0 %v18531_v50  ;;  %9687 = vmatprep.subr.bf16.mxu1 %v18575_v52  ;;  %v18641_v50 = vld [vmem:[#allocation23 + $0x764] ss:$16 sps:$4 sm:$0xff]   ;;  %v18572_v52 = vld [vmem:[#allocation23 + $0xec] ss:$16 sps:$4 sm:$0xff]  }
 0x87f   :  { %9654 = vmatprep.subr.bf16.mxu0 %v18536_v17  ;;  %v18639_v17 = vld [vmem:[#allocation23 + $0x760] ss:$16 sps:$4 sm:$0xff]  }
 0x881   :  { %9688 = vmatpush1.bf16.msra.mxu1 %v18573_v56  ;;  %v18647_v56 = vld [vmem:[#allocation23 + $0x744] ss:$16 sps:$4 sm:$0xff]  }
 0x882   :  { %9655 = vmatpush1.bf16.msra.mxu0 %v18534_v11  ;;  %9689 = vmatprep.subr.bf16.mxu1 %v18581_v51  ;;  %v7931_v51 = vrot.slane %v20704_v0, %v20520_v9 }
 0x883   :  { %9656 = vmatprep.subr.bf16.mxu0 %v18539_v26  ;;  %v18645_v26 = vld [vmem:[#allocation23 + $0x740] ss:$16 sps:$4 sm:$0xff]  }
 0x885   :  { %9690 = vmatpush1.bf16.msra.mxu1 %v18579_v58 }
 0x886   :  { %9657 = vmatpush1.bf16.msra.mxu0 %v18537_v55  ;;  %9691 = vmatprep.subr.bf16.mxu1 %v18587_v21  ;;  %v18653_v55 = vld [vmem:[#allocation23 + $0x724] ss:$16 sps:$4 sm:$0xff]  }
 0x887   :  { %9658 = vmatprep.subr.bf16.mxu0 %v18542_v29  ;;  %v7981_v29 = vrot.slane %v20709_v46, %v20520_v9 }
 0x889   :  { %9692 = vmatpush1.bf16.msra.mxu1 %v18585_v28 }
 0x88a   :  { %9659 = vmatpush1.bf16.msra.mxu0 %v18540_v30  ;;  %9693 = vmatprep.subr.bf16.mxu1 %v18593_v44  ;;  %v7935_v30 = vrot.slane %v20704_v0, %v20523_v20 }
 0x88b   :  { %9660 = vmatprep.subr.bf16.mxu0 %v18545_v27 }
 0x88d   :  { %9694 = vmatpush1.bf16.msra.mxu1 %v18591_v13 }
 0x88e   :  { %9661 = vmatpush2.bf16.msra.mxu0 %v18543_v5  ;;  %9695 = vmatprep.subr.bf16.mxu1 %v18599_v31  ;;  %v7985_v5 = vrot.slane %v20709_v46, %v20523_v20 }
 0x88f   :  { %9662 = vmatprep.subr.bf16.mxu0 %v18548_v32  ;;  %v18651_v32 = vld [vmem:[#allocation23 + $0x720] ss:$16 sps:$4 sm:$0xff]  }
 0x891   :  { %9696 = vmatpush1.bf16.msra.mxu1 %v18597_v18 }
 0x892   :  { %9663 = vmatpush2.bf16.msra.mxu0 %v18546_v33  ;;  %9697 = vmatprep.subr.bf16.mxu1 %v18605_v34  ;;  %v18659_v33 = vld [vmem:[#allocation23 + $0x704] ss:$16 sps:$4 sm:$0xff]  }
 0x893   :  { %9664 = vmatprep.subr.bf16.mxu0 %v18551_v36 }
 0x895   :  { %9698 = vmatpush1.bf16.msra.mxu1 %v18603_v38 }
 0x896   :  { %9665 = vmatpush2.bf16.msra.mxu0 %v18549_v10  ;;  %9699 = vmatprep.subr.bf16.mxu1 %v18611_v41 }
 0x897   :  { %9666 = vmatprep.subr.bf16.mxu0 %v18554_v47  ;;  %v18657_v47 = vld [vmem:[#allocation23 + $0x700] ss:$16 sps:$4 sm:$0xff]  }
 0x899   :  { %9700 = vmatpush1.bf16.msra.mxu1 %v18609_v8 }
 0x89a   :  { %9667 = vmatpush2.bf16.msra.mxu0 %v18552_v60  ;;  %9701 = vmatprep.subr.bf16.mxu1 %v18617_v35  ;;  %v18665_v60 = vld [vmem:[#allocation23 + $0x2ec] ss:$16 sps:$4 sm:$0xff]  }
 0x89b   :  { %9668 = vmatprep.subr.bf16.mxu0 %v18557_v7 }
 0x89d   :  { %9702 = vmatpush2.bf16.msra.mxu1 %v18615_v61  ;;  %v18570_v61 = vld [vmem:[#allocation23 + $0xe8] ss:$16 sps:$4 sm:$0xff]  }
 0x89e   :  { %9669 = vmatpush2.bf16.msra.mxu0 %v18555_v1  ;;  %9703 = vmatprep.subr.bf16.mxu1 %v18623_v19  ;;  %v18578_v19 = vld [vmem:[#allocation23 + $0xcc] ss:$16 sps:$4 sm:$0xff]  }
 0x89f   :  { %9670 = vmatprep.subr.bf16.mxu0 %v18560_v62  ;;  %v18576_v62 = vld [vmem:[#allocation23 + $0xc8] ss:$16 sps:$4 sm:$0xff]  }
 0x8a1   :  { %9704 = vmatpush2.bf16.msra.mxu1 %v18621_v63  ;;  %v18584_v63 = vld [vmem:[#allocation23 + $0xac] ss:$16 sps:$4 sm:$0xff]  }
 0x8a2   :  { %9671 = vmatpush2.bf16.msra.mxu0 %v18558_v40  ;;  %9705 = vmatprep.subr.bf16.mxu1 %v18629_v37  ;;  %v18582_v40 = vld [vmem:[#allocation23 + $0xa8] ss:$16 sps:$4 sm:$0xff]   ;;  %v18590_v37 = vld [vmem:[#allocation23 + $0x8c] ss:$16 sps:$4 sm:$0xff]  }
 0x8a3   :  { %9672 = vmatprep.subr.bf16.mxu0 %v18563_v59  ;;  %v18588_v59 = vld [vmem:[#allocation23 + $0x88] ss:$16 sps:$4 sm:$0xff]  }
 0x8a5   :  { %9706 = vmatpush2.bf16.msra.mxu1 %v18627_v23  ;;  %v18596_v23 = vld [vmem:[#allocation23 + $0x6c] ss:$16 sps:$4 sm:$0xff]  }
 0x8a6   :  { %9673 = vmatpush2.bf16.msra.mxu0 %v18561_v3  ;;  %9707 = vmatprep.subr.bf16.mxu1 %v18635_v54  ;;  %v18594_v3 = vld [vmem:[#allocation23 + $0x68] ss:$16 sps:$4 sm:$0xff]   ;;  %v18602_v54 = vld [vmem:[#allocation23 + $0x4c] ss:$16 sps:$4 sm:$0xff]  }
 0x8a7   :  { %9674 = vmatprep.subr.bf16.mxu0 %v18566_v6  ;;  %v18600_v6 = vld [vmem:[#allocation23 + $0x48] ss:$16 sps:$4 sm:$0xff]  }
 0x8a9   :  { %9708 = vmatpush2.bf16.msra.mxu1 %v18633_v2  ;;  %v18608_v2 = vld [vmem:[#allocation23 + $0x2c] ss:$16 sps:$4 sm:$0xff]  }
 0x8aa   :  { %9675 = vmatpush2.bf16.msra.mxu0 %v18564_v12  ;;  %9709 = vmatprep.subr.bf16.mxu1 %v18641_v50  ;;  %v18614_v12 = vld [vmem:[#allocation23 + $0xc] ss:$16 sps:$4 sm:$0xff]   ;;  %v18612_v50 = vld [vmem:[#allocation23 + $0x8] ss:$16 sps:$4 sm:$0xff]  }
 0x8ab   :  { %9726 = vmatprep.subr.bf16.mxu0 %v18572_v52  ;;  %v18620_v52 = vld [vmem:[#allocation23 + $0x1ec] ss:$16 sps:$4 sm:$0xff]  }
 0x8ad   :  { %v7780_v11 = vpop.f32.mrf.mxu0  ;;  %9710 = vmatpush2.bf16.msra.mxu1 %v18639_v17  ;;  %v18618_v17 = vld [vmem:[#allocation23 + $0x1e8] ss:$16 sps:$4 sm:$0xff]  }
 0x8ae   :  { %v7821_v58 = vpop.f32.mrf.mxu1  ;;  %9711 = vmatprep.subr.bf16.mxu1 %v18647_v56  ;;  %v18626_v56 = vld [vmem:[#allocation23 + $0x1cc] ss:$16 sps:$4 sm:$0xff]  }
 0x8af   :  { %v7822_v21 = vadd.f32 %v7821_v58, %v7780_v11  ;;  %v7782_v28 = vpop.f32.mrf.mxu0  ;;  %v18624_v11 = vld [vmem:[#allocation23 + $0x1c8] ss:$16 sps:$4 sm:$0xff]   ;;  %v18638_v58 = vld [vmem:[#allocation23 + $0x18c] ss:$16 sps:$4 sm:$0xff]  }
 0x8b0   :  { %v7823_v44 = vpop.f32.mrf.mxu1 }
 0x8b1   :  { %v7956_v27 = vmul.f32 %v7931_v51, %v7822_v21  ;;  %v7824_v13 = vadd.f32 %v7823_v44, %v7782_v28  ;;  %v7784_v31 = vpop.f32.mrf.mxu0  ;;  %9712 = vmatpush2.bf16.msra.mxu1 %v18645_v26  ;;  %v18632_v51 = vld [vmem:[#allocation23 + $0x1ac] ss:$16 sps:$4 sm:$0xff]   ;;  %v18630_v26 = vld [vmem:[#allocation23 + $0x1a8] ss:$16 sps:$4 sm:$0xff]   ;;  %v7939_v44 = vrot.slane %v20704_v0, %v20547_v42 }
 0x8b2   :  { %v7825_v18 = vpop.f32.mrf.mxu1  ;;  %9713 = vmatprep.subr.bf16.mxu1 %v18653_v55  ;;  %v18636_v55 = vld [vmem:[#allocation23 + $0x188] ss:$16 sps:$4 sm:$0xff]   ;;  %v18644_v21 = vld [vmem:[#allocation23 + $0x16c] ss:$16 sps:$4 sm:$0xff]  }
 0x8b3   :  { %v8006_v34 = vadd.f32 %v7981_v29, %v7956_v27  ;;  %v7957_v36 = vmul.f32 %v7935_v30, %v7824_v13  ;;  %v7785_v38 = vpop.f32.mrf.mxu0  ;;  %v18642_v29 = vld [vmem:[#allocation23 + $0x168] ss:$16 sps:$4 sm:$0xff]   ;;  %v18650_v28 = vld [vmem:[#allocation23 + $0x14c] ss:$16 sps:$4 sm:$0xff]  }
 0x8b4   :  { %v7826_v10 = vpop.f32.mrf.mxu1  ;;  %v18648_v27 = vld [vmem:[#allocation23 + $0x148] ss:$16 sps:$4 sm:$0xff]  }
 0x8b5   :  { %v8007_v41 = vadd.f32 %v7985_v5, %v7957_v36  ;;  %9714 = vmatpush2.bf16.msra.mxu1 %v18651_v32  ;;  %v8014_v8 = vmax.f32 %v8006_v34, 0.0  ;;  %v18656_v5 = vld [vmem:[#allocation23 + $0x12c] ss:$16 sps:$4 sm:$0xff]   ;;  %v7989_v32 = vrot.slane %v20709_v46, %v20547_v42  ;;  %v7993_v10 = vrot.slane %v20709_v46, %v20550_v48  ;;  %v18663_v46 = vld [vmem:[#allocation23 + $0x2e8] ss:$16 sps:$4 sm:$0xff]  }
 0x8b6   :  { %9715 = vmatprep.subr.bf16.mxu1 %v18659_v33  ;;  %v7943_v33 = vrot.slane %v20704_v0, %v20550_v48 }
 0x8b7   :  { %v8015_v35 = vmax.f32 %v8007_v41, 0.0  ;;  %v20749_v1 = vpack.c.bf16 %v8014_v8, %v8014_v8 }
 0x8b9   :  { %v20747_v7 = vpack.c.bf16 %v8015_v35, %v8015_v35  ;;  %9716 = vmatpush2.bf16.msra.mxu1 %v18657_v47  ;;  %v18654_v47 = vld [vmem:[#allocation23 + $0x128] ss:$16 sps:$4 sm:$0xff]  }
 0x8ba   :  { %9767 = vmatprep.subr.bf16.mxu1 %v18665_v60  ;;  %v18662_v60 = vld [vmem:[#allocation23 + $0x10c] ss:$16 sps:$4 sm:$0xff]  }
 0x8bb   :  { %9676 = vmatprep.mubr.bf16.mxu0 %v20747_v7 }
 0x8bc   :  { %9677 = vmatmul.mubr.bf16.vlgmr.msra.gmra.mxu0 %v20749_v1 }
 0x8bd   :  { %9727 = vmatpush1.bf16.msra.mxu0 %v18570_v61  ;;  %9758 = vmatprep.mubr.bf16.mxu0 %v20713_v15  ;;  %v18606_v15 = vld [vmem:[#allocation23 + $0x28] ss:$16 sps:$4 sm:$0xff]  }
 0x8be   :  { %9728 = vmatprep.subr.bf16.mxu0 %v18578_v19 }
 0x8c1   :  { %9729 = vmatpush1.bf16.msra.mxu0 %v18576_v62 }
 0x8c2   :  { %9730 = vmatprep.subr.bf16.mxu0 %v18584_v63 }
 0x8c5   :  { %9731 = vmatpush1.bf16.msra.mxu0 %v18582_v40  ;;  %v18660_v40 = vld [vmem:[#allocation23 + $0x108] ss:$16 sps:$4 sm:$0xff]  }
 0x8c6   :  { %9732 = vmatprep.subr.bf16.mxu0 %v18590_v37  ;;  %v18668_v37 = vld [vmem:[#allocation23 + $0x4ec] ss:$16 sps:$4 sm:$0xff]  }
 0x8c9   :  { %9733 = vmatpush1.bf16.msra.mxu0 %v18588_v59 }
 0x8ca   :  { %9734 = vmatprep.subr.bf16.mxu0 %v18596_v23 }
 0x8cd   :  { %9735 = vmatpush1.bf16.msra.mxu0 %v18594_v3  ;;  %v18666_v3 = vld [vmem:[#allocation23 + $0x4e8] ss:$16 sps:$4 sm:$0xff]  }
 0x8ce   :  { %9736 = vmatprep.subr.bf16.mxu0 %v18602_v54 }
 0x8d1   :  { %9737 = vmatpush1.bf16.msra.mxu0 %v18600_v6  ;;  %v18671_v6 = vld [vmem:[#allocation23 + $0x2cc] ss:$16 sps:$4 sm:$0xff]  }
 0x8d2   :  { %9738 = vmatprep.subr.bf16.mxu0 %v18608_v2  ;;  %v18674_v2 = vld [vmem:[#allocation23 + $0x4cc] ss:$16 sps:$4 sm:$0xff]  }
 0x8d5   :  { %9739 = vmatpush1.bf16.msra.mxu0 %v18606_v15  ;;  %v18669_v15 = vld [vmem:[#allocation23 + $0x2c8] ss:$16 sps:$4 sm:$0xff]  }
 0x8d6   :  { %9740 = vmatprep.subr.bf16.mxu0 %v18614_v12  ;;  %v18672_v12 = vld [vmem:[#allocation23 + $0x4c8] ss:$16 sps:$4 sm:$0xff]  }
 0x8d9   :  { %9741 = vmatpush1.bf16.msra.mxu0 %v18612_v50  ;;  %v18677_v50 = vld [vmem:[#allocation23 + $0x2ac] ss:$16 sps:$4 sm:$0xff]  }
 0x8da   :  { %9742 = vmatprep.subr.bf16.mxu0 %v18620_v52  ;;  %v18680_v52 = vld [vmem:[#allocation23 + $0x4ac] ss:$16 sps:$4 sm:$0xff]  }
 0x8dd   :  { %9743 = vmatpush2.bf16.msra.mxu0 %v18618_v17  ;;  %v18675_v17 = vld [vmem:[#allocation23 + $0x2a8] ss:$16 sps:$4 sm:$0xff]  }
 0x8de   :  { %9744 = vmatprep.subr.bf16.mxu0 %v18626_v56  ;;  %v18678_v56 = vld [vmem:[#allocation23 + $0x4a8] ss:$16 sps:$4 sm:$0xff]  }
 0x8e1   :  { %9745 = vmatpush2.bf16.msra.mxu0 %v18624_v11  ;;  %v18686_v11 = vld [vmem:[#allocation23 + $0x48c] ss:$16 sps:$4 sm:$0xff]  }
 0x8e2   :  { %9746 = vmatprep.subr.bf16.mxu0 %v18632_v51  ;;  %v18681_v51 = vld [vmem:[#allocation23 + $0x288] ss:$16 sps:$4 sm:$0xff]  }
 0x8e5   :  { %9747 = vmatpush2.bf16.msra.mxu0 %v18630_v26  ;;  %v18684_v26 = vld [vmem:[#allocation23 + $0x488] ss:$16 sps:$4 sm:$0xff]  }
 0x8e6   :  { %9748 = vmatprep.subr.bf16.mxu0 %v18638_v58  ;;  %v18687_v58 = vld [vmem:[#allocation23 + $0x268] ss:$16 sps:$4 sm:$0xff]  }
 0x8e9   :  { %9749 = vmatpush2.bf16.msra.mxu0 %v18636_v55  ;;  %v18690_v55 = vld [vmem:[#allocation23 + $0x468] ss:$16 sps:$4 sm:$0xff]  }
 0x8ea   :  { %9750 = vmatprep.subr.bf16.mxu0 %v18644_v21  ;;  %v18695_v21 = vld [vmem:[#allocation23 + $0x24c] ss:$16 sps:$4 sm:$0xff]  }
 0x8ed   :  { %9751 = vmatpush2.bf16.msra.mxu0 %v18642_v29  ;;  %v7862_v30 = vpop.f32.mrf.mxu0  ;;  %v18698_v29 = vld [vmem:[#allocation23 + $0x44c] ss:$16 sps:$4 sm:$0xff]  }
 0x8ee   :  { %v7903_v13 = vpop.f32.mrf.mxu1  ;;  %9752 = vmatprep.subr.bf16.mxu0 %v18650_v28  ;;  %v18693_v28 = vld [vmem:[#allocation23 + $0x248] ss:$16 sps:$4 sm:$0xff]  }
 0x8ef   :  { %v7904_v31 = vadd.f32 %v7903_v13, %v7862_v30  ;;  %v7864_v18 = vpop.f32.mrf.mxu0  ;;  %v18696_v30 = vld [vmem:[#allocation23 + $0x448] ss:$16 sps:$4 sm:$0xff]  }
 0x8f0   :  { %v7905_v34 = vpop.f32.mrf.mxu1  ;;  %v18699_v13 = vld [vmem:[#allocation23 + $0x228] ss:$16 sps:$4 sm:$0xff]  }
 0x8f1   :  { %v7958_v36 = vmul.f32 %v7939_v44, %v7904_v31  ;;  %v7906_v38 = vadd.f32 %v7905_v34, %v7864_v18  ;;  %9753 = vmatpush2.bf16.msra.mxu0 %v18648_v27  ;;  %v7866_v41 = vpop.f32.mrf.mxu0  ;;  %v18701_v44 = vld [vmem:[#allocation23 + $0x22c] ss:$16 sps:$4 sm:$0xff]   ;;  %v18705_v18 = vld [vmem:[#allocation23 + $0x208] ss:$16 sps:$4 sm:$0xff]  }
 0x8f2   :  { %v7907_v8 = vpop.f32.mrf.mxu1  ;;  %9754 = vmatprep.subr.bf16.mxu0 %v18656_v5  ;;  %v18704_v27 = vld [vmem:[#allocation23 + $0x42c] ss:$16 sps:$4 sm:$0xff]   ;;  %v18702_v5 = vld [vmem:[#allocation23 + $0x428] ss:$16 sps:$4 sm:$0xff]  }
 0x8f3   :  { %v8008_v35 = vadd.f32 %v7989_v32, %v7958_v36  ;;  %v7959_v61 = vmul.f32 %v7943_v33, %v7906_v38  ;;  %v7867_v19 = vpop.f32.mrf.mxu0  ;;  %v18707_v31 = vld [vmem:[#allocation23 + $0x20c] ss:$16 sps:$4 sm:$0xff]   ;;  %v18708_v33 = vld [vmem:[#allocation23 + $0x408] ss:$16 sps:$4 sm:$0xff]  }
 0x8f4   :  { %v7908_v62 = vpop.f32.mrf.mxu1  ;;  %v18710_v32 = vld [vmem:[#allocation23 + $0x40c] ss:$16 sps:$4 sm:$0xff]   ;;  %v18711_v38 = vld [vmem:[#allocation23 + $0x3e8] ss:$16 sps:$4 sm:$0xff]  }
 0x8f5   :  { %v8009_v63 = vadd.f32 %v7993_v10, %v7959_v61  ;;  %9755 = vmatpush2.bf16.msra.mxu0 %v18654_v47  ;;  %v8016_v0 = vmax.f32 %v8008_v35, 0.0  ;;  %v18713_v34 = vld [vmem:[#allocation23 + $0x3ec] ss:$16 sps:$4 sm:$0xff]   ;;  %v18714_v10 = vld [vmem:[#allocation23 + $0x5e8] ss:$16 sps:$4 sm:$0xff]  }
 0x8f6   :  { %9756 = vmatprep.subr.bf16.mxu0 %v18662_v60  ;;  %v18716_v36 = vld [vmem:[#allocation23 + $0x5ec] ss:$16 sps:$4 sm:$0xff]   ;;  %v18717_v8 = vld [vmem:[#allocation23 + $0x3c8] ss:$16 sps:$4 sm:$0xff]  }
 0x8f7   :  { %v8017_v59 = vmax.f32 %v8009_v63, 0.0  ;;  %v20764_v54 = vpack.c.bf16 %v8016_v0, %v8016_v0  ;;  %v18719_v41 = vld [vmem:[#allocation23 + $0x3cc] ss:$16 sps:$4 sm:$0xff]   ;;  %v18720_v60 = vld [vmem:[#allocation23 + $0x5c8] ss:$16 sps:$4 sm:$0xff]  }
 0x8f8   :  { %v18722_v47 = vld [vmem:[#allocation23 + $0x5cc] ss:$16 sps:$4 sm:$0xff]   ;;  %v18723_v19 = vld [vmem:[#allocation23 + $0x3a8] ss:$16 sps:$4 sm:$0xff]  }
 0x8f9   :  { %9757 = vmatpush2.bf16.msra.mxu0 %v18660_v40  ;;  %v20762_v23 = vpack.c.bf16 %v8017_v59, %v8017_v59  ;;  %v18725_v35 = vld [vmem:[#allocation23 + $0x3ac] ss:$16 sps:$4 sm:$0xff]   ;;  %v18726_v62 = vld [vmem:[#allocation23 + $0x5a8] ss:$16 sps:$4 sm:$0xff]  }
 0x8fa   :  { %9808 = vmatprep.subr.bf16.mxu0 %v18668_v37  ;;  %v18728_v61 = vld [vmem:[#allocation23 + $0x5ac] ss:$16 sps:$4 sm:$0xff]   ;;  %v18729_v0 = vld [vmem:[#allocation23 + $0x388] ss:$16 sps:$4 sm:$0xff]  }
 0x8fb   :  { %9717 = vmatprep.mubr.bf16.mxu1 %v20762_v23  ;;  %v18731_v63 = vld [vmem:[#allocation23 + $0x38c] ss:$16 sps:$4 sm:$0xff]   ;;  %v18732_v37 = vld [vmem:[#allocation23 + $0x588] ss:$16 sps:$4 sm:$0xff]  }
 0x8fc   :  { %9759 = vmatmul.mubr.bf16.vlgmr.msra.gmra.mxu0 %v20722_v43  ;;  %9718 = vmatmul.mubr.bf16.vlgmr.msra.gmra.mxu1 %v20764_v54  ;;  %v18683_v43 = vld [vmem:[#allocation23 + $0x28c] ss:$16 sps:$4 sm:$0xff]  }
 0x8fd   :  { %9768 = vmatpush1.bf16.msra.mxu1 %v18663_v46  ;;  %9809 = vmatpush1.bf16.msra.mxu0 %v18666_v3  ;;  %v18734_v40 = vld [vmem:[#allocation23 + $0x58c] ss:$16 sps:$4 sm:$0xff]   ;;  %v18735_v3 = vld [vmem:[#allocation23 + $0x368] ss:$16 sps:$4 sm:$0xff]  }
 0x8fe   :  { %9840 = vmatprep.mubr.bf16.mxu0 %v20747_v7  ;;  %9799 = vmatprep.mubr.bf16.mxu1 %v20733_v57  ;;  %v18689_v7 = vld [vmem:[#allocation23 + $0x26c] ss:$16 sps:$4 sm:$0xff]  }
 0x8ff   :  { %9769 = vmatprep.subr.bf16.mxu1 %v18671_v6  ;;  %9810 = vmatprep.subr.bf16.mxu0 %v18674_v2  ;;  %v18692_v57 = vld [vmem:[#allocation23 + $0x46c] ss:$16 sps:$4 sm:$0xff]   ;;  %v18738_v6 = vld [vmem:[#allocation23 + $0x568] ss:$16 sps:$4 sm:$0xff]  }
 0x900   :  { %v18737_v59 = vld [vmem:[#allocation23 + $0x36c] ss:$16 sps:$4 sm:$0xff]  }
 0x901   :  { %9770 = vmatpush1.bf16.msra.mxu1 %v18669_v15  ;;  %9811 = vmatpush1.bf16.msra.mxu0 %v18672_v12  ;;  %v18740_v46 = vld [vmem:[#allocation23 + $0x56c] ss:$16 sps:$4 sm:$0xff]  }
 0x902   :  { %9771 = vmatprep.subr.bf16.mxu1 %v18677_v50  ;;  %9812 = vmatprep.subr.bf16.mxu0 %v18680_v52  ;;  %v18743_v2 = vld [vmem:[#allocation23 + $0x34c] ss:$16 sps:$4 sm:$0xff]   ;;  %v18741_v50 = vld [vmem:[#allocation23 + $0x348] ss:$16 sps:$4 sm:$0xff]  }
 0x903   :  { %v18746_v15 = vld [vmem:[#allocation23 + $0x54c] ss:$16 sps:$4 sm:$0xff]   ;;  %v18744_v52 = vld [vmem:[#allocation23 + $0x548] ss:$16 sps:$4 sm:$0xff]  }
 0x905   :  { %9772 = vmatpush1.bf16.msra.mxu1 %v18675_v17  ;;  %9813 = vmatpush1.bf16.msra.mxu0 %v18678_v56  ;;  %v18749_v17 = vld [vmem:[#allocation23 + $0x32c] ss:$16 sps:$4 sm:$0xff]  }
 0x906   :  { %9773 = vmatprep.subr.bf16.mxu1 %v18683_v43  ;;  %9814 = vmatprep.subr.bf16.mxu0 %v18686_v11  ;;  %v18752_v56 = vld [vmem:[#allocation23 + $0x52c] ss:$16 sps:$4 sm:$0xff]  }
 0x909   :  { %9774 = vmatpush1.bf16.msra.mxu1 %v18681_v51  ;;  %9815 = vmatpush1.bf16.msra.mxu0 %v18684_v26  ;;  %v18747_v51 = vld [vmem:[#allocation23 + $0x328] ss:$16 sps:$4 sm:$0xff]  }
 0x90a   :  { %9775 = vmatprep.subr.bf16.mxu1 %v18689_v7  ;;  %9816 = vmatprep.subr.bf16.mxu0 %v18692_v57  ;;  %v18750_v26 = vld [vmem:[#allocation23 + $0x528] ss:$16 sps:$4 sm:$0xff]   ;;  %v18755_v7 = vld [vmem:[#allocation23 + $0x30c] ss:$16 sps:$4 sm:$0xff]  }
 0x90b   :  { %v18758_v57 = vld [vmem:[#allocation23 + $0x50c] ss:$16 sps:$4 sm:$0xff]  }
 0x90d   :  { %9776 = vmatpush1.bf16.msra.mxu1 %v18687_v58  ;;  %9817 = vmatpush1.bf16.msra.mxu0 %v18690_v55  ;;  %v18753_v55 = vld [vmem:[#allocation23 + $0x308] ss:$16 sps:$4 sm:$0xff]  }
 0x90e   :  { %9777 = vmatprep.subr.bf16.mxu1 %v18695_v21  ;;  %9818 = vmatprep.subr.bf16.mxu0 %v18698_v29  ;;  %v18756_v21 = vld [vmem:[#allocation23 + $0x508] ss:$16 sps:$4 sm:$0xff]   ;;  %v18761_v29 = vld [vmem:[#allocation23 + $0x6ec] ss:$16 sps:$4 sm:$0xff]  }
 0x911   :  { %9778 = vmatpush1.bf16.msra.mxu1 %v18693_v28  ;;  %9819 = vmatpush1.bf16.msra.mxu0 %v18696_v30  ;;  %v18807_v28 = vld [vmem:[#allocation26 + $0x78] sm:$0xff]   ;;  %v18759_v30 = vld [vmem:[#allocation23 + $0x6e8] ss:$16 sps:$4 sm:$0xff]  }
 0x912   :  { %9779 = vmatprep.subr.bf16.mxu1 %v18701_v44  ;;  %9820 = vmatprep.subr.bf16.mxu0 %v18704_v27  ;;  %v18764_v44 = vld [vmem:[#allocation23 + $0x6cc] ss:$16 sps:$4 sm:$0xff]  }
 0x913   :  { %v18808_v27 = vld [vmem:[#allocation26 + $0x38] sm:$0xff]  }
 0x915   :  { %9780 = vmatpush1.bf16.msra.mxu1 %v18699_v13  ;;  %9821 = vmatpush1.bf16.msra.mxu0 %v18702_v5  ;;  %v18809_v13 = vld [vmem:[#allocation26 + $0x70] sm:$0xff]  }
 0x916   :  { %9781 = vmatprep.subr.bf16.mxu1 %v18707_v31  ;;  %9822 = vmatprep.subr.bf16.mxu0 %v18710_v32  ;;  %v18762_v32 = vld [vmem:[#allocation23 + $0x6c8] ss:$16 sps:$4 sm:$0xff]  }
 0x919   :  { %9782 = vmatpush1.bf16.msra.mxu1 %v18705_v18  ;;  %9823 = vmatpush1.bf16.msra.mxu0 %v18708_v33  ;;  %v18767_v33 = vld [vmem:[#allocation23 + $0x6ac] ss:$16 sps:$4 sm:$0xff]  }
 0x91a   :  { %9783 = vmatprep.subr.bf16.mxu1 %v18713_v34  ;;  %9824 = vmatprep.subr.bf16.mxu0 %v18716_v36  ;;  %v18810_v34 = vld [vmem:[#allocation26 + $0x30] sm:$0xff]  }
 0x91d   :  { %9784 = vmatpush2.bf16.msra.mxu1 %v18711_v38  ;;  %9825 = vmatpush2.bf16.msra.mxu0 %v18714_v10  ;;  %v18811_v38 = vld [vmem:[#allocation26 + $0x68] sm:$0xff]  }
 0x91e   :  { %9785 = vmatprep.subr.bf16.mxu1 %v18719_v41  ;;  %9826 = vmatprep.subr.bf16.mxu0 %v18722_v47  ;;  %v18770_v41 = vld [vmem:[#allocation23 + $0x68c] ss:$16 sps:$4 sm:$0xff]  }
 0x91f   :  { %v18812_v47 = vld [vmem:[#allocation26 + $0x28] sm:$0xff]  }
 0x921   :  { %9786 = vmatpush2.bf16.msra.mxu1 %v18717_v8  ;;  %9827 = vmatpush2.bf16.msra.mxu0 %v18720_v60  ;;  %v18768_v8 = vld [vmem:[#allocation23 + $0x688] ss:$16 sps:$4 sm:$0xff]   ;;  %v18773_v60 = vld [vmem:[#allocation23 + $0x66c] ss:$16 sps:$4 sm:$0xff]  }
 0x922   :  { %9787 = vmatprep.subr.bf16.mxu1 %v18725_v35  ;;  %9828 = vmatprep.subr.bf16.mxu0 %v18728_v61  ;;  %v18814_v35 = vld [vmem:[#allocation26 + $0x20] sm:$0xff]   ;;  %v18815_v61 = vld [vmem:[#allocation26 + $0x58] sm:$0xff]  }
 0x925   :  { %9788 = vmatpush2.bf16.msra.mxu1 %v18723_v19  ;;  %9829 = vmatpush2.bf16.msra.mxu0 %v18726_v62  ;;  %v18771_v19 = vld [vmem:[#allocation23 + $0x668] ss:$16 sps:$4 sm:$0xff]   ;;  %v18776_v62 = vld [vmem:[#allocation23 + $0x64c] ss:$16 sps:$4 sm:$0xff]  }
 0x926   :  { %9789 = vmatprep.subr.bf16.mxu1 %v18731_v63  ;;  %9830 = vmatprep.subr.bf16.mxu0 %v18734_v40  ;;  %v18816_v63 = vld [vmem:[#allocation26 + $0x18] sm:$0xff]   ;;  %v18817_v40 = vld [vmem:[#allocation26 + $0x50] sm:$0xff]  }
 0x929   :  { %9790 = vmatpush2.bf16.msra.mxu1 %v18729_v0  ;;  %9831 = vmatpush2.bf16.msra.mxu0 %v18732_v37  ;;  %v18774_v0 = vld [vmem:[#allocation23 + $0x648] ss:$16 sps:$4 sm:$0xff]   ;;  %v18779_v37 = vld [vmem:[#allocation23 + $0x62c] ss:$16 sps:$4 sm:$0xff]  }
 0x92a   :  { %9791 = vmatprep.subr.bf16.mxu1 %v18737_v59  ;;  %9832 = vmatprep.subr.bf16.mxu0 %v18740_v46  ;;  %v18818_v59 = vld [vmem:[#allocation26 + $0x10] sm:$0xff]   ;;  %v18819_v46 = vld [vmem:[#allocation26 + $0x48] sm:$0xff]  }
 0x92d   :  { %9792 = vmatpush2.bf16.msra.mxu1 %v18735_v3  ;;  %9833 = vmatpush2.bf16.msra.mxu0 %v18738_v6  ;;  %v9596_v12 = vpop.f32.mrf.mxu0  ;;  %v18777_v3 = vld [vmem:[#allocation23 + $0x628] ss:$16 sps:$4 sm:$0xff]   ;;  %v18782_v6 = vld [vmem:[#allocation23 + $0x60c] ss:$16 sps:$4 sm:$0xff]  }
 0x92e   :  { %9793 = vmatprep.subr.bf16.mxu1 %v18743_v2  ;;  %9834 = vmatprep.subr.bf16.mxu0 %v18746_v15  ;;  %v18820_v2 = vld [vmem:[#allocation26 + $0x8] sm:$0xff]   ;;  %v18821_v15 = vld [vmem:[#allocation26 + $0x40] sm:$0xff]  }
 0x92f   :  { %v9598_v43 = vpop.f32.mrf.mxu0 }
 0x931   :  { %9794 = vmatpush2.bf16.msra.mxu1 %v18741_v50  ;;  %9835 = vmatpush2.bf16.msra.mxu0 %v18744_v52  ;;  %v9600_v11 = vpop.f32.mrf.mxu0  ;;  %v18785_v50 = vld [vmem:[#allocation23 + $0x7ec] ss:$16 sps:$4 sm:$0xff]   ;;  %v18822_v52 = vld [vmem:[#allocation26] sm:$0xff]  }
 0x932   :  { %9795 = vmatprep.subr.bf16.mxu1 %v18749_v17  ;;  %9836 = vmatprep.subr.bf16.mxu0 %v18752_v56  ;;  %v18783_v17 = vld [vmem:[#allocation23 + $0x7e8] ss:$16 sps:$4 sm:$0xff]   ;;  %v18788_v56 = vld [vmem:[#allocation23 + $0x7cc] ss:$16 sps:$4 sm:$0xff]  }
 0x933   :  { %v9601_v58 = vpop.f32.mrf.mxu0  ;;  %v18791_v11 = vld [vmem:[#allocation23 + $0x7ac] ss:$16 sps:$4 sm:$0xff]  }
 0x934   :  { %v18795_v58 = vld [vmem:[#allocation23 + $0x768] ss:$16 sps:$4 sm:$0xff]  }
 0x935   :  { %9796 = vmatpush2.bf16.msra.mxu1 %v18747_v51  ;;  %9837 = vmatpush2.bf16.msra.mxu0 %v18750_v26  ;;  %v18789_v51 = vld [vmem:[#allocation23 + $0x7a8] ss:$16 sps:$4 sm:$0xff]   ;;  %v18794_v26 = vld [vmem:[#allocation23 + $0x78c] ss:$16 sps:$4 sm:$0xff]  }
 0x936   :  { %9797 = vmatprep.subr.bf16.mxu1 %v18755_v7  ;;  %9838 = vmatprep.subr.bf16.mxu0 %v18758_v57  ;;  %v18792_v7 = vld [vmem:[#allocation23 + $0x788] ss:$16 sps:$4 sm:$0xff]   ;;  %v18797_v57 = vld [vmem:[#allocation23 + $0x76c] ss:$16 sps:$4 sm:$0xff]  }
 0x939   :  { %9798 = vmatpush2.bf16.msra.mxu1 %v18753_v55  ;;  %9839 = vmatpush2.bf16.msra.mxu0 %v18756_v21  ;;  %v18800_v55 = vld [vmem:[#allocation23 + $0x74c] ss:$16 sps:$4 sm:$0xff]   ;;  %v18798_v21 = vld [vmem:[#allocation23 + $0x748] ss:$16 sps:$4 sm:$0xff]  }
 0x93a   :  { %9849 = vmatprep.subr.bf16.mxu1 %v18761_v29  ;;  %17564 = vmatprep.subr.bf16.mxu0 %v18807_v28  ;;  %v18803_v29 = vld [vmem:[#allocation23 + $0x72c] ss:$16 sps:$4 sm:$0xff]   ;;  %v18801_v28 = vld [vmem:[#allocation23 + $0x728] ss:$16 sps:$4 sm:$0xff]  }
 0x93c   :  { %9800 = vmatmul.mubr.bf16.vlgmr.msra.gmra.mxu1 %v20735_v22  ;;  %9841 = vmatmul.mubr.bf16.vlgmr.msra.gmra.mxu0 %v20749_v1  ;;  %v9637_v5 = vpop.f32.mrf.mxu1  ;;  %v18765_v22 = vld [vmem:[#allocation23 + $0x6a8] ss:$16 sps:$4 sm:$0xff]  }
 0x93d   :  { %v20773_v31 = vadd.f32 %v9637_v5, %v9596_v12  ;;  %9850 = vmatpush1.bf16.msra.mxu1 %v18759_v30  ;;  %9881 = vmatprep.mubr.bf16.mxu1 %v20762_v23  ;;  %v18813_v23 = vld [vmem:[#allocation26 + $0x60] sm:$0xff]   ;;  %v18806_v30 = vld [vmem:[#allocation23 + $0x70c] ss:$16 sps:$4 sm:$0xff]  }
 0x93e   :  { %v9639_v18 = vpop.f32.mrf.mxu1  ;;  %9851 = vmatprep.subr.bf16.mxu1 %v18764_v44  ;;  %17565 = vmatpush3.bf16.msra.mxu0 %v18808_v27  ;;  %v18780_v12 = vld [vmem:[#allocation23 + $0x608] ss:$16 sps:$4 sm:$0xff]  }
 0x93f   :  { %v20776_v36 = vadd.f32 %v9639_v18, %v9598_v43  ;;  %17566 = vmatprep.subr.bf16.mxu0 %v18809_v13  ;;  %v18786_v43 = vld [vmem:[#allocation23 + $0x7c8] ss:$16 sps:$4 sm:$0xff]  }
 0x940   :  { %v9641_v10 = vpop.f32.mrf.mxu1  ;;  %v18804_v44 = vld [vmem:[#allocation23 + $0x708] ss:$16 sps:$4 sm:$0xff]  }
 0x941   :  { %9852 = vmatpush1.bf16.msra.mxu1 %v18762_v32  ;;  %v18826_v10 = vld [vmem:[#allocation26 + $0xb0] sm:$0xff]  }
 0x942   :  { %v9642_v1 = vpop.f32.mrf.mxu1  ;;  %9853 = vmatprep.subr.bf16.mxu1 %v18767_v33  ;;  %17567 = vmatpush3.bf16.msra.mxu0 %v18810_v34  ;;  %v18823_v33 = vld [vmem:[#allocation26 + $0xf8] sm:$0xff]  }
 0x943   :  { %17568 = vmatprep.subr.bf16.mxu0 %v18811_v38  ;;  %v18824_v34 = vld [vmem:[#allocation26 + $0xb8] sm:$0xff]   ;;  %v18825_v38 = vld [vmem:[#allocation26 + $0xf0] sm:$0xff]   ;;  %v18828_v1 = vld [vmem:[#allocation26 + $0xa8] sm:$0xff]  }
 0x945   :  { %9854 = vmatpush1.bf16.msra.mxu1 %v18765_v22  ;;  %v18827_v22 = vld [vmem:[#allocation26 + $0xe8] sm:$0xff]  }
 0x946   :  { %9855 = vmatprep.subr.bf16.mxu1 %v18770_v41  ;;  %17569 = vmatpush3.bf16.msra.mxu0 %v18812_v47  ;;  %v18829_v41 = vld [vmem:[#allocation26 + $0xe0] sm:$0xff]   ;;  %v18832_v47 = vld [vmem:[#allocation26 + $0x98] sm:$0xff]  }
 0x947   :  { %17570 = vmatprep.subr.bf16.mxu0 %v18813_v23  ;;  %v20781_v23 = vld [vmem:[%s21062_s16] sm:$0xf] }
 0x949   :  { %9856 = vmatpush1.bf16.msra.mxu1 %v18768_v8  ;;  %v9895_v8 = vrot.slane %v20781_v23, %v20406_v24 }
 0x94a   :  { %9857 = vmatprep.subr.bf16.mxu1 %v18773_v60  ;;  %17571 = vmatpush3.bf16.msra.mxu0 %v18814_v35  ;;  %v20785_v60 = vld [vmem:[#allocation25] sm:$0xf]  ;;  %v18833_v35 = vld [vmem:[#allocation26 + $0xd0] sm:$0xff]  }
 0x94b   :  { %17572 = vmatprep.subr.bf16.mxu0 %v18815_v61 }
 0x94d   :  { %9858 = vmatpush1.bf16.msra.mxu1 %v18771_v19 }
 0x94e   :  { %9859 = vmatprep.subr.bf16.mxu1 %v18776_v62  ;;  %17573 = vmatpush3.bf16.msra.mxu0 %v18816_v63  ;;  %v18834_v62 = vld [vmem:[#allocation26 + $0x90] sm:$0xff]  }
 0x94f   :  { %17574 = vmatprep.subr.bf16.mxu0 %v18817_v40 }
 0x951   :  { %9860 = vmatpush1.bf16.msra.mxu1 %v18774_v0  ;;  %v9899_v0 = vrot.slane %v20781_v23, %v20409_v25 }
 0x952   :  { %9861 = vmatprep.subr.bf16.mxu1 %v18779_v37  ;;  %17575 = vmatpush3.bf16.msra.mxu0 %v18818_v59  ;;  %v9921_v37 = vrot.slane %v20785_v60, %v20406_v24 }
 0x953   :  { %17576 = vmatprep.subr.bf16.mxu0 %v18819_v46 }
 0x955   :  { %9862 = vmatpush1.bf16.msra.mxu1 %v18777_v3 }
 0x956   :  { %9863 = vmatprep.subr.bf16.mxu1 %v18782_v6  ;;  %17577 = vmatpush3.bf16.msra.mxu0 %v18820_v2  ;;  %v9925_v2 = vrot.slane %v20785_v60, %v20409_v25 }
 0x957   :  { %17578 = vmatprep.subr.bf16.mxu0 %v18821_v15  ;;  %v18835_v15 = vld [vmem:[#allocation26 + $0xc8] sm:$0xff]  }
 0x959   :  { %9864 = vmatpush1.bf16.msra.mxu1 %v18780_v12 }
 0x95a   :  { %9865 = vmatprep.subr.bf16.mxu1 %v18785_v50  ;;  %17579 = vmatpush3.bf16.msra.mxu0 %v18822_v52 }
 0x95d   :  { %9866 = vmatpush2.bf16.msra.mxu1 %v18783_v17 }
 0x95e   :  { %9867 = vmatprep.subr.bf16.mxu1 %v18788_v56 }
 0x961   :  { %9868 = vmatpush2.bf16.msra.mxu1 %v18786_v43 }
 0x962   :  { %9869 = vmatprep.subr.bf16.mxu1 %v18791_v11 }
 0x965   :  { %9870 = vmatpush2.bf16.msra.mxu1 %v18789_v51  ;;  %v18837_v51 = vld [vmem:[#allocation26 + $0xc0] sm:$0xff]  }
 0x966   :  { %9871 = vmatprep.subr.bf16.mxu1 %v18794_v26  ;;  %v18838_v26 = vld [vmem:[#allocation26 + $0x80] sm:$0xff]  }
 0x969   :  { %9872 = vmatpush2.bf16.msra.mxu1 %v18792_v7 }
 0x96a   :  { %9873 = vmatprep.subr.bf16.mxu1 %v18797_v57 }
 0x96d   :  { %9874 = vmatpush2.bf16.msra.mxu1 %v18795_v58 }
 0x96e   :  { %9875 = vmatprep.subr.bf16.mxu1 %v18800_v55 }
 0x971   :  { %9876 = vmatpush2.bf16.msra.mxu1 %v18798_v21 }
 0x972   :  { %9877 = vmatprep.subr.bf16.mxu1 %v18803_v29 }
 0x975   :  { %9878 = vmatpush2.bf16.msra.mxu1 %v18801_v28 }
 0x976   :  { %9879 = vmatprep.subr.bf16.mxu1 %v18806_v30 }
 0x979   :  { %9880 = vmatpush2.bf16.msra.mxu1 %v18804_v44 }
 0x97a   :  { %17586 = vmatprep.subr.bf16.mxu1 %v18823_v33  ;;  %v18844_v33 = vld [vmem:[#allocation28 + $0xec] ss:$16 sps:$4 sm:$0xff]  }
 0x97c   :  { %9882 = vmatmul.mubr.bf16.vlgmr.msra.gmra.mxu1 %v20764_v54  ;;  %v9678_v27 = vpop.f32.mrf.mxu0  ;;  %v18830_v54 = vld [vmem:[#allocation26 + $0xa0] sm:$0xff]  }
 0x97d   :  { %v9679_v13 = vadd.f32 %v9678_v27, %v20773_v31  ;;  %17587 = vmatpush3.bf16.msra.mxu1 %v18824_v34  ;;  %v18831_v31 = vld [vmem:[#allocation26 + $0xd8] sm:$0xff]   ;;  %v18847_v34 = vld [vmem:[#allocation28 + $0xc4] ss:$16 sps:$4 sm:$0xff]  }
 0x97e   :  { %v9680_v5 = vpop.f32.mrf.mxu0  ;;  %17588 = vmatprep.subr.bf16.mxu1 %v18825_v38  ;;  %v18845_v38 = vld [vmem:[#allocation28 + $0xc0] ss:$16 sps:$4 sm:$0xff]  }
 0x97f   :  { %v9681_v63 = vadd.f32 %v9680_v5, %v20776_v36  ;;  %v18836_v36 = vld [vmem:[#allocation26 + $0x88] sm:$0xff]  }
 0x980   :  { %v9682_v32 = vpop.f32.mrf.mxu0 }
 0x981   :  { %17589 = vmatpush3.bf16.msra.mxu1 %v18826_v10  ;;  %v18839_v32 = vld [vmem:[#allocation28 + $0xe0] ss:$16 sps:$4 sm:$0xff]   ;;  %v18853_v10 = vld [vmem:[#allocation28 + $0xa4] ss:$16 sps:$4 sm:$0xff]  }
 0x982   :  { %v9683_v18 = vpop.f32.mrf.mxu0  ;;  %17590 = vmatprep.subr.bf16.mxu1 %v18827_v22  ;;  %v18851_v22 = vld [vmem:[#allocation28 + $0xa0] ss:$16 sps:$4 sm:$0xff]  }
 0x983   :  { %v18841_v18 = vld [vmem:[#allocation28 + $0xe4] ss:$16 sps:$4 sm:$0xff]  }
 0x984   :  { %10505 = vmatprep.subr.bf16.mxu0 %v18841_v18 }
 0x985   :  { %17591 = vmatpush3.bf16.msra.mxu1 %v18828_v1  ;;  %v18859_v1 = vld [vmem:[#allocation28 + $0x84] ss:$16 sps:$4 sm:$0xff]  }
 0x986   :  { %17592 = vmatprep.subr.bf16.mxu1 %v18829_v41  ;;  %v18857_v41 = vld [vmem:[#allocation28 + $0x80] ss:$16 sps:$4 sm:$0xff]  }
 0x989   :  { %17593 = vmatpush3.bf16.msra.mxu1 %v18830_v54  ;;  %v18865_v54 = vld [vmem:[#allocation28 + $0x64] ss:$16 sps:$4 sm:$0xff]  }
 0x98a   :  { %17594 = vmatprep.subr.bf16.mxu1 %v18831_v31  ;;  %v18863_v31 = vld [vmem:[#allocation28 + $0x60] ss:$16 sps:$4 sm:$0xff]  }
 0x98d   :  { %17595 = vmatpush3.bf16.msra.mxu1 %v18832_v47  ;;  %v18871_v47 = vld [vmem:[#allocation28 + $0x44] ss:$16 sps:$4 sm:$0xff]  }
 0x98e   :  { %17596 = vmatprep.subr.bf16.mxu1 %v18833_v35 }
 0x991   :  { %17597 = vmatpush3.bf16.msra.mxu1 %v18834_v62 }
 0x992   :  { %17598 = vmatprep.subr.bf16.mxu1 %v18835_v15 }
 0x995   :  { %17599 = vmatpush3.bf16.msra.mxu1 %v18836_v36 }
 0x996   :  { %17600 = vmatprep.subr.bf16.mxu1 %v18837_v51  ;;  %v18854_v51 = vld [vmem:[#allocation28 + $0xa8] ss:$16 sps:$4 sm:$0xff]  }
 0x999   :  { %17601 = vmatpush3.bf16.msra.mxu1 %v18838_v26  ;;  %v18862_v26 = vld [vmem:[#allocation28 + $0x8c] ss:$16 sps:$4 sm:$0xff]  }
 0x99a   :  { %10546 = vmatprep.subr.bf16.mxu1 %v18844_v33  ;;  %v18883_v33 = vld [vmem:[#allocation28 + $0x4] ss:$16 sps:$4 sm:$0xff]  }
 0x9bc   :  { %v9760_v61 = vpop.f32.mrf.mxu0  ;;  %v9719_v19 = vpop.f32.mrf.mxu1 }
 0x9bd   :  { %v9720_v40 = vadd.f32 %v9719_v19, %v9679_v13 }
 0x9be   :  { %v9762_v59 = vpop.f32.mrf.mxu0  ;;  %v9721_v46 = vpop.f32.mrf.mxu1 }
 0x9bf   :  { %v9912_v3 = vmul.f32 %v9895_v8, %v9720_v40  ;;  %v9722_v6 = vadd.f32 %v9721_v46, %v9681_v63  ;;  %v18869_v8 = vld [vmem:[#allocation28 + $0x40] ss:$16 sps:$4 sm:$0xff]   ;;  %v9907_v40 = vrot.slane %v20781_v23, %v20437_v45 }
 0x9c0   :  { %v9764_v12 = vpop.f32.mrf.mxu0  ;;  %v9723_v50 = vpop.f32.mrf.mxu1 }
 0x9c1   :  { %v9913_v52 = vmul.f32 %v9899_v0, %v9722_v6  ;;  %v20794_v17 = vadd.f32 %v9921_v37, %v9912_v3  ;;  %v9929_v0 = vrot.slane %v20785_v60, %v20434_v39  ;;  %v9933_v6 = vrot.slane %v20785_v60, %v20437_v45  ;;  %v18856_v60 = vld [vmem:[#allocation28 + $0xac] ss:$16 sps:$4 sm:$0xff]  }
 0x9c2   :  { %v9765_v56 = vpop.f32.mrf.mxu0  ;;  %v9724_v43 = vpop.f32.mrf.mxu1 }
 0x9c3   :  { %v20796_v11 = vadd.f32 %v9925_v2, %v9913_v52  ;;  %v9942_v57 = vpack.c.bf16 %v20794_v17, %v20794_v17  ;;  %v18850_v56 = vld [vmem:[#allocation28 + $0xcc] ss:$16 sps:$4 sm:$0xff]   ;;  %v18848_v43 = vld [vmem:[#allocation28 + $0xc8] ss:$16 sps:$4 sm:$0xff]  }
 0x9c5   :  { %v9943_v7 = vpack.c.bf16 %v20796_v11, %v20796_v11 }
 0x9c7   :  { %10241 = vmatprep.mubr.bf16.mxu0 %v9943_v7  ;;  %v18860_v7 = vld [vmem:[#allocation28 + $0x88] ss:$16 sps:$4 sm:$0xff]  }
 0x9c8   :  { %10242 = vmatmul.mubr.bf16.vlgmr.msra.gmra.mxu0 %v9942_v57  ;;  %v18868_v57 = vld [vmem:[#allocation28 + $0x6c] ss:$16 sps:$4 sm:$0xff]  }
 0x9c9   :  { %10537 = vmatprep.mubr.bf16.mxu0 %v20112_v53  ;;  %10506 = vmatpush1.bf16.msra.mxu0 %v18839_v32 }
 0x9ca   :  { %10507 = vmatprep.subr.bf16.mxu0 %v18847_v34  ;;  %v18886_v34 = vld [vmem:[#allocation28 + $0xc] ss:$16 sps:$4 sm:$0xff]  }
 0x9cd   :  { %10508 = vmatpush1.bf16.msra.mxu0 %v18845_v38  ;;  %v18881_v38 = vld [vmem:[#allocation28] ss:$16 sps:$4 sm:$0xff]  }
 0x9ce   :  { %10509 = vmatprep.subr.bf16.mxu0 %v18853_v10  ;;  %v18884_v10 = vld [vmem:[#allocation28 + $0x8] ss:$16 sps:$4 sm:$0xff]  }
 0x9d1   :  { %10510 = vmatpush1.bf16.msra.mxu0 %v18851_v22  ;;  %v10683_v22 = vld [vmem:[#allocation31 + $0x1c0] sm:$0xff] }
 0x9d2   :  { %10511 = vmatprep.subr.bf16.mxu0 %v18859_v1  ;;  %v10687_v1 = vld [vmem:[#allocation31 + $0x1e0] sm:$0xff] }
 0x9d5   :  { %10512 = vmatpush1.bf16.msra.mxu0 %v18857_v41  ;;  %v10811_v41 = vld [vmem:[#allocation31 + $0x5c0] sm:$0xff] }
 0x9d6   :  { %10513 = vmatprep.subr.bf16.mxu0 %v18865_v54  ;;  %v16962_v54 = vcombine.low %v10683_v22, %v10687_v1 }
 0x9d9   :  { %10514 = vmatpush1.bf16.msra.mxu0 %v18863_v31  ;;  %v16963_v31 = vcombine.high %v10683_v22, %v10687_v1 }
 0x9da   :  { %10515 = vmatprep.subr.bf16.mxu0 %v18871_v47  ;;  %v10815_v47 = vld [vmem:[#allocation31 + $0x5e0] sm:$0xff] }
 0x9dd   :  { %10516 = vmatpush1.bf16.msra.mxu0 %v18869_v8  ;;  %v17090_v8 = vcombine.low %v10811_v41, %v10815_v47 }
 0x9fc   :  { %v9801_v58 = vpop.f32.mrf.mxu1  ;;  %v9842_v55 = vpop.f32.mrf.mxu0 }
 0x9fd   :  { %v9802_v21 = vadd.f32 %v9801_v58, %v9760_v61  ;;  %v9903_v61 = vrot.slane %v20781_v23, %v20434_v39  ;;  %v18842_v23 = vld [vmem:[#allocation28 + $0xe8] ss:$16 sps:$4 sm:$0xff]  }
 0x9fe   :  { %v9803_v29 = vpop.f32.mrf.mxu1  ;;  %v9844_v28 = vpop.f32.mrf.mxu0  ;;  %v18866_v58 = vld [vmem:[#allocation28 + $0x68] ss:$16 sps:$4 sm:$0xff]  }
 0x9ff   :  { %v9843_v30 = vadd.f32 %v9842_v55, %v9802_v21  ;;  %v9804_v35 = vadd.f32 %v9803_v29, %v9762_v59  ;;  %v18874_v55 = vld [vmem:[#allocation28 + $0x4c] ss:$16 sps:$4 sm:$0xff]   ;;  %v18872_v21 = vld [vmem:[#allocation28 + $0x48] ss:$16 sps:$4 sm:$0xff]  }
 0xa00   :  { %v9805_v44 = vpop.f32.mrf.mxu1  ;;  %v9846_v27 = vpop.f32.mrf.mxu0 }
 0xa01   :  { %v9845_v62 = vadd.f32 %v9844_v28, %v9804_v35  ;;  %v18880_v44 = vld [vmem:[#allocation28 + $0x2c] ss:$16 sps:$4 sm:$0xff]   ;;  %v17091_v35 = vcombine.high %v10811_v41, %v10815_v47  ;;  %v10771_v47 = vld [vmem:[#allocation31 + $0x480] sm:$0xff] }
 0xa02   :  { %v9806_v13 = vpop.f32.mrf.mxu1  ;;  %v9847_v5 = vpop.f32.mrf.mxu0 }
 0xa03   :  { %v18875_v13 = vld [vmem:[#allocation28 + $0x20] ss:$16 sps:$4 sm:$0xff]   ;;  %v18878_v5 = vld [vmem:[#allocation28 + $0x28] ss:$16 sps:$4 sm:$0xff]  }
 0xa3c   :  { %v9883_v19 = vpop.f32.mrf.mxu1 }
 0xa3d   :  { %v9884_v63 = vadd.f32 %v9883_v19, %v9843_v30  ;;  %v18877_v30 = vld [vmem:[#allocation28 + $0x24] ss:$16 sps:$4 sm:$0xff]  }
 0xa3e   :  { %v9885_v37 = vpop.f32.mrf.mxu1  ;;  %10517 = vmatprep.subr.bf16.mxu0 %v18877_v30 }
 0xa3f   :  { %v9914_v46 = vmul.f32 %v9903_v61, %v9884_v63  ;;  %v9886_v3 = vadd.f32 %v9885_v37, %v9845_v62  ;;  %10518 = vmatpush1.bf16.msra.mxu0 %v18875_v13  ;;  %v16837_v61 = vld [vmem:[%s21063_s15] ss:$0 sm:$0xff] }
 0xa40   :  { %v9887_v2 = vpop.f32.mrf.mxu1  ;;  %10519 = vmatprep.subr.bf16.mxu0 %v18883_v33  ;;  %v10783_v33 = vld [vmem:[#allocation31 + $0x4e0] sm:$0xff] }
 0xa41   :  { %v9915_v59 = vmul.f32 %v9907_v40, %v9886_v3  ;;  %v20811_v15 = vadd.f32 %v9929_v0, %v9914_v46  ;;  %v10675_v46 = vld [vmem:[#allocation31 + $0x180] sm:$0xff] }
 0xa42   :  { %v9888_v12 = vpop.f32.mrf.mxu1  ;;  %v10803_v2 = vld [vmem:[#allocation31 + $0x580] sm:$0xff] }
 0xa43   :  { %v20813_v50 = vadd.f32 %v9933_v6, %v9915_v59  ;;  %v9944_v52 = vpack.c.bf16 %v20811_v15, %v20811_v15  ;;  %10520 = vmatpush1.bf16.msra.mxu0 %v18881_v38  ;;  %v10679_v6 = vld [vmem:[#allocation31 + $0x1a0] sm:$0xff] }
 0xa44   :  { %12163 = vmatprep.subr.bf16.mxu0 %v16963_v31  ;;  %v10807_v59 = vld [vmem:[#allocation31 + $0x5a0] sm:$0xff] }
 0xa45   :  { %v9945_v36 = vpack.c.bf16 %v20813_v50, %v20813_v50  ;;  %v10647_v31 = vld [vmem:[#allocation31 + $0xa0] sm:$0xff] }
 0xa47   :  { %10281 = vmatprep.mubr.bf16.mxu1 %v9945_v36 }
 0xa48   :  { %10282 = vmatmul.mubr.bf16.vlgmr.msra.gmra.mxu1 %v9944_v52  ;;  %v17083_v52 = vcombine.high %v10803_v2, %v10807_v59 }
 0xa49   :  { %10547 = vmatpush1.bf16.msra.mxu1 %v18842_v23  ;;  %10578 = vmatprep.mubr.bf16.mxu1 %v20112_v53  ;;  %v16955_v23 = vcombine.high %v10675_v46, %v10679_v6 }
 0xa4a   :  { %10548 = vmatprep.subr.bf16.mxu1 %v18850_v56  ;;  %v10667_v56 = vld [vmem:[#allocation31 + $0x140] sm:$0xff] }
 0xa4d   :  { %10549 = vmatpush1.bf16.msra.mxu1 %v18848_v43  ;;  %v10671_v43 = vld [vmem:[#allocation31 + $0x160] sm:$0xff] }
 0xa4e   :  { %10550 = vmatprep.subr.bf16.mxu1 %v18856_v60  ;;  %v10795_v60 = vld [vmem:[#allocation31 + $0x540] sm:$0xff]  ;;  %v16946_v30 = vcombine.low %v10667_v56, %v10671_v43 }
 0xa51   :  { %10551 = vmatpush1.bf16.msra.mxu1 %v18854_v51  ;;  %v10799_v51 = vld [vmem:[#allocation31 + $0x560] sm:$0xff] }
 0xa52   :  { %10552 = vmatprep.subr.bf16.mxu1 %v18862_v26  ;;  %v16954_v26 = vcombine.low %v10675_v46, %v10679_v6  ;;  %v10767_v46 = vld [vmem:[#allocation31 + $0x460] sm:$0xff] }
 0xa55   :  { %10553 = vmatpush1.bf16.msra.mxu1 %v18860_v7  ;;  %v17082_v7 = vcombine.low %v10803_v2, %v10807_v59  ;;  %v10627_v59 = vld [vmem:[#allocation31] sm:$0xff] }
 0xa56   :  { %10554 = vmatprep.subr.bf16.mxu1 %v18868_v57  ;;  %v16947_v57 = vcombine.high %v10667_v56, %v10671_v43 }
 0xa59   :  { %10555 = vmatpush1.bf16.msra.mxu1 %v18866_v58  ;;  %v17075_v58 = vcombine.high %v10795_v60, %v10799_v51 }
 0xa5a   :  { %10556 = vmatprep.subr.bf16.mxu1 %v18874_v55  ;;  %v10659_v55 = vld [vmem:[#allocation31 + $0x100] sm:$0xff] }
 0xa5d   :  { %10557 = vmatpush1.bf16.msra.mxu1 %v18872_v21  ;;  %v10663_v21 = vld [vmem:[#allocation31 + $0x120] sm:$0xff] }
 0xa5e   :  { %10558 = vmatprep.subr.bf16.mxu1 %v18880_v44  ;;  %v17074_v44 = vcombine.low %v10795_v60, %v10799_v51  ;;  %v10747_v51 = vld [vmem:[#allocation31 + $0x3c0] sm:$0xff] }
 0xa61   :  { %10559 = vmatpush1.bf16.msra.mxu1 %v18878_v5  ;;  %v10651_v5 = vld [vmem:[#allocation31 + $0xc0] sm:$0xff] }
 0xa62   :  { %10560 = vmatprep.subr.bf16.mxu1 %v18886_v34  ;;  %v16938_v34 = vcombine.low %v10659_v55, %v10663_v21 }
 0xa65   :  { %10561 = vmatpush1.bf16.msra.mxu1 %v18884_v10 }
 0xa66   :  { %12204 = vmatprep.subr.bf16.mxu1 %v17091_v35  ;;  %v10775_v35 = vld [vmem:[#allocation31 + $0x4a0] sm:$0xff] }
 0xa88   :  { %v17580_v29 = vpop.f32.mrf.mxu0 }
 0xa8a   :  { %v17581_v28 = vpop.f32.mrf.mxu0 }
 0xa8b   :  { %v17582_v27 = vadd.f32 %v17581_v28, %v17580_v29  ;;  %v10787_v29 = vld [vmem:[#allocation31 + $0x500] sm:$0xff] }
 0xa8c   :  { %v17583_v32 = vpop.f32.mrf.mxu0  ;;  %v10791_v28 = vld [vmem:[#allocation31 + $0x520] sm:$0xff] }
 0xa8d   :  { %v10244_v63 = vadd.f32 %v17582_v27, %v16837_v61  ;;  %v16939_v27 = vcombine.high %v10659_v55, %v10663_v21  ;;  %v17067_v13 = vcombine.high %v10787_v29, %v10791_v28  ;;  %v10655_v32 = vld [vmem:[#allocation31 + $0xe0] sm:$0xff]  ;;  %v17066_v38 = vcombine.low %v10787_v29, %v10791_v28 }
 0xa8e   :  { %v17584_v18 = vpop.f32.mrf.mxu0  ;;  %v16931_v10 = vcombine.high %v10651_v5, %v10655_v32  ;;  %v16930_v1 = vcombine.low %v10651_v5, %v10655_v32  ;;  %v10739_v28 = vld [vmem:[#allocation31 + $0x380] sm:$0xff] }
 0xa8f   :  { %v10779_v18 = vld [vmem:[#allocation31 + $0x4c0] sm:$0xff] }
 0xa90   :  { %v17059_v22 = vcombine.high %v10779_v18, %v10783_v33  ;;  %v17058_v41 = vcombine.low %v10779_v18, %v10783_v33  ;;  %v10731_v33 = vld [vmem:[#allocation31 + $0x340] sm:$0xff] }
 0xb08   :  { %v17602_v19 = vpop.f32.mrf.mxu1 }
 0xb0a   :  { %v17603_v62 = vpop.f32.mrf.mxu1 }
 0xb0b   :  { %v17604_v40 = vadd.f32 %v17603_v62, %v17602_v19  ;;  %v17050_v19 = vcombine.low %v10771_v47, %v10775_v35  ;;  %v17051_v62 = vcombine.high %v10771_v47, %v10775_v35  ;;  %v10727_v47 = vld [vmem:[#allocation31 + $0x320] sm:$0xff] }
 0xb0c   :  { %v17605_v0 = vpop.f32.mrf.mxu1 }
 0xb0d   :  { %v10284_v37 = vadd.f32 %v17604_v40, %v10244_v63  ;;  %v10635_v63 = vld [vmem:[#allocation31 + $0x40] sm:$0xff] }
 0xb0e   :  { %v17606_v3 = vpop.f32.mrf.mxu1  ;;  %v10639_v40 = vld [vmem:[#allocation31 + $0x60] sm:$0xff] }
 0xb0f   :  { %v10289_v12 = vmax.f32 %v10284_v37, 0.0  ;;  %v10763_v0 = vld [vmem:[#allocation31 + $0x440] sm:$0xff]  ;;  %v16915_v37 = vcombine.high %v10635_v63, %v10639_v40  ;;  %v16914_v3 = vcombine.low %v10635_v63, %v10639_v40 }
 0xb10   :  { %v17042_v6 = vcombine.low %v10763_v0, %v10767_v46  ;;  %v17043_v2 = vcombine.high %v10763_v0, %v10767_v46  ;;  %v10719_v63 = vld [vmem:[#allocation31 + $0x2e0] sm:$0xff] }
 0xb11   :  { %v10290_v36 = vpack.c.bf16 %v10289_v12, %v10289_v12  ;;  %v10631_v12 = vld [vmem:[#allocation31 + $0x20] sm:$0xff] }
 0xb12   :  { %v16906_v56 = vcombine.low %v10627_v59, %v10631_v12  ;;  %v10843_v46 = vld [vmem:[#allocation31 + $0x6c0] sm:$0xff] }
 0xb13   :  { %10538 = vmatmul.mubr.bf16.vlgmr.msra.gmra.mxu0 %v10290_v36  ;;  %10579 = vmatmul.mubr.bf16.vlgmr.msra.gmra.mxu1 %v10290_v36  ;;  %v10755_v36 = vld [vmem:[#allocation31 + $0x400] sm:$0xff] }
 0xb14   :  { %12164 = vmatpush1.bf16.msra.mxu0 %v16962_v54  ;;  %12205 = vmatpush1.bf16.msra.mxu1 %v17090_v8  ;;  %v10643_v54 = vld [vmem:[#allocation31 + $0x80] sm:$0xff] }
 0xb15   :  { %12165 = vmatprep.subr.bf16.mxu0 %v16955_v23  ;;  %12206 = vmatprep.subr.bf16.mxu1 %v17083_v52  ;;  %v16923_v8 = vcombine.high %v10643_v54, %v10647_v31  ;;  %v16922_v61 = vcombine.low %v10643_v54, %v10647_v31  ;;  %v16907_v23 = vcombine.high %v10627_v59, %v10631_v12  ;;  %v10759_v52 = vld [vmem:[#allocation31 + $0x420] sm:$0xff] }
 0xb16   :  { %v17034_v43 = vcombine.low %v10755_v36, %v10759_v52  ;;  %v17035_v60 = vcombine.high %v10755_v36, %v10759_v52  ;;  %v10723_v31 = vld [vmem:[#allocation31 + $0x300] sm:$0xff] }
 0xb17   :  { %v17002_v35 = vcombine.low %v10723_v31, %v10727_v47  ;;  %v10711_v59 = vld [vmem:[#allocation31 + $0x2a0] sm:$0xff] }
 0xb18   :  { %12166 = vmatpush1.bf16.msra.mxu0 %v16954_v26  ;;  %12207 = vmatpush1.bf16.msra.mxu1 %v17082_v7  ;;  %v10751_v26 = vld [vmem:[#allocation31 + $0x3e0] sm:$0xff] }
 0xb19   :  { %12167 = vmatprep.subr.bf16.mxu0 %v16947_v57  ;;  %12208 = vmatprep.subr.bf16.mxu1 %v17075_v58  ;;  %v10875_v7 = vld [vmem:[#allocation31 + $0x7c0] sm:$0xff]  ;;  %v17027_v57 = vcombine.high %v10747_v51, %v10751_v26  ;;  %v17026_v55 = vcombine.low %v10747_v51, %v10751_v26 }
 0xb1a   :  { %v10879_v58 = vld [vmem:[#allocation31 + $0x7e0] sm:$0xff] }
 0xb1b   :  { %v17154_v21 = vcombine.low %v10875_v7, %v10879_v58  ;;  %v17155_v29 = vcombine.high %v10875_v7, %v10879_v58  ;;  %v10835_v12 = vld [vmem:[#allocation31 + $0x680] sm:$0xff] }
 0xb1c   :  { %12168 = vmatpush1.bf16.msra.mxu0 %v16946_v30  ;;  %12209 = vmatpush1.bf16.msra.mxu1 %v17074_v44  ;;  %v10743_v30 = vld [vmem:[#allocation31 + $0x3a0] sm:$0xff] }
 0xb1d   :  { %12169 = vmatprep.subr.bf16.mxu0 %v16939_v27  ;;  %12210 = vmatprep.subr.bf16.mxu1 %v17067_v13  ;;  %v10867_v44 = vld [vmem:[#allocation31 + $0x780] sm:$0xff]  ;;  %v17019_v27 = vcombine.high %v10739_v28, %v10743_v30  ;;  %v17018_v5 = vcombine.low %v10739_v28, %v10743_v30 }
 0xb1e   :  { %v10871_v13 = vld [vmem:[#allocation31 + $0x7a0] sm:$0xff] }
 0xb1f   :  { %v17146_v32 = vcombine.low %v10867_v44, %v10871_v13  ;;  %v17147_v18 = vcombine.high %v10867_v44, %v10871_v13  ;;  %v10839_v36 = vld [vmem:[#allocation31 + $0x6a0] sm:$0xff] }
 0xb20   :  { %12170 = vmatpush1.bf16.msra.mxu0 %v16938_v34  ;;  %12211 = vmatpush1.bf16.msra.mxu1 %v17066_v38  ;;  %v10735_v34 = vld [vmem:[#allocation31 + $0x360] sm:$0xff]  ;;  %v17114_v58 = vcombine.low %v10835_v12, %v10839_v36 }
 0xb21   :  { %12171 = vmatprep.subr.bf16.mxu0 %v16931_v10  ;;  %12212 = vmatprep.subr.bf16.mxu1 %v17059_v22  ;;  %v10859_v38 = vld [vmem:[#allocation31 + $0x740] sm:$0xff]  ;;  %v17011_v10 = vcombine.high %v10731_v33, %v10735_v34 }
 0xb22   :  { %v10863_v22 = vld [vmem:[#allocation31 + $0x760] sm:$0xff] }
 0xb23   :  { %v17139_v54 = vcombine.high %v10859_v38, %v10863_v22  ;;  %v10703_v51 = vld [vmem:[#allocation31 + $0x260] sm:$0xff] }
 0xb24   :  { %12172 = vmatpush1.bf16.msra.mxu0 %v16930_v1  ;;  %12213 = vmatpush1.bf16.msra.mxu1 %v17058_v41  ;;  %v17010_v1 = vcombine.low %v10731_v33, %v10735_v34  ;;  %v17138_v41 = vcombine.low %v10859_v38, %v10863_v22  ;;  %v10827_v26 = vld [vmem:[#allocation31 + $0x640] sm:$0xff]  ;;  %v20821_v34 = vld [vmem:[#allocation31 + $0x1c8] sm:$0xff] }
 0xb25   :  { %12173 = vmatprep.subr.bf16.mxu0 %v16923_v8  ;;  %12214 = vmatprep.subr.bf16.mxu1 %v17051_v62  ;;  %v10851_v8 = vld [vmem:[#allocation31 + $0x700] sm:$0xff]  ;;  %v20823_v38 = vld [vmem:[#allocation31 + $0x1e8] sm:$0xff] }
 0xb26   :  { %v10715_v62 = vld [vmem:[#allocation31 + $0x2c0] sm:$0xff]  ;;  %v16965_v22 = vcombine.high %v20821_v34, %v20823_v38 }
 0xb27   :  { %v10831_v7 = vld [vmem:[#allocation31 + $0x660] sm:$0xff] }
 0xb28   :  { %12174 = vmatpush1.bf16.msra.mxu0 %v16922_v61  ;;  %12215 = vmatpush1.bf16.msra.mxu1 %v17050_v19  ;;  %v17003_v61 = vcombine.high %v10723_v31, %v10727_v47  ;;  %v10855_v19 = vld [vmem:[#allocation31 + $0x720] sm:$0xff]  ;;  %v17106_v13 = vcombine.low %v10827_v26, %v10831_v7  ;;  %v10323_v47 = vld [vmem:[#allocation29] sm:$0xf] }
 0xb29   :  { %12175 = vmatprep.subr.bf16.mxu0 %v16915_v37  ;;  %12216 = vmatprep.subr.bf16.mxu1 %v17043_v2  ;;  %v17130_v40 = vcombine.low %v10851_v8, %v10855_v19  ;;  %v17131_v0 = vcombine.high %v10851_v8, %v10855_v19  ;;  %v16995_v37 = vcombine.high %v10715_v62, %v10719_v63  ;;  %v10695_v28 = vld [vmem:[#allocation31 + $0x220] sm:$0xff] }
 0xb2a   :  { %v10819_v30 = vld [vmem:[#allocation31 + $0x600] sm:$0xff]  ;;  %v10328_v8 = vrot.slane %v10323_v47, %v20406_v24  ;;  %v10340_v19 = vrot.slane %v10323_v47, %v20437_v45 }
 0xb2b   :  { %v10823_v44 = vld [vmem:[#allocation31 + $0x620] sm:$0xff] }
 0xb2c   :  { %12176 = vmatpush1.bf16.msra.mxu0 %v16914_v3  ;;  %12217 = vmatpush1.bf16.msra.mxu1 %v17042_v6  ;;  %v10847_v3 = vld [vmem:[#allocation31 + $0x6e0] sm:$0xff]  ;;  %v17098_v33 = vcombine.low %v10819_v30, %v10823_v44 }
 0xb2d   :  { %12177 = vmatprep.subr.bf16.mxu0 %v16907_v23  ;;  %12218 = vmatprep.subr.bf16.mxu1 %v17035_v60  ;;  %v10707_v6 = vld [vmem:[#allocation31 + $0x280] sm:$0xff]  ;;  %v17123_v2 = vcombine.high %v10843_v46, %v10847_v3  ;;  %v16994_v23 = vcombine.low %v10715_v62, %v10719_v63  ;;  %v17122_v52 = vcombine.low %v10843_v46, %v10847_v3 }
 0xb2e   :  { %v10699_v60 = vld [vmem:[#allocation31 + $0x240] sm:$0xff] }
 0xb30   :  { %12178 = vmatpush1.bf16.msra.mxu0 %v16906_v56  ;;  %12219 = vmatpush1.bf16.msra.mxu1 %v17034_v43  ;;  %v16987_v56 = vcombine.high %v10707_v6, %v10711_v59  ;;  %v17115_v43 = vcombine.high %v10835_v12, %v10839_v36 }
 0xb31   :  { %12179 = vmatprep.subr.bf16.mxu0 %v17027_v57  ;;  %12220 = vmatprep.subr.bf16.mxu1 %v17155_v29  ;;  %v16986_v57 = vcombine.low %v10707_v6, %v10711_v59  ;;  %v10691_v29 = vld [vmem:[#allocation31 + $0x200] sm:$0xff] }
 0xb34   :  { %12180 = vmatpush2.bf16.msra.mxu0 %v17026_v55  ;;  %12221 = vmatpush2.bf16.msra.mxu1 %v17154_v21  ;;  %v16979_v55 = vcombine.high %v10699_v60, %v10703_v51  ;;  %v17107_v21 = vcombine.high %v10827_v26, %v10831_v7 }
 0xb35   :  { %12181 = vmatprep.subr.bf16.mxu0 %v17019_v27  ;;  %12222 = vmatprep.subr.bf16.mxu1 %v17147_v18  ;;  %v16978_v27 = vcombine.low %v10699_v60, %v10703_v51  ;;  %v16970_v18 = vcombine.low %v10691_v29, %v10695_v28 }
 0xb38   :  { %12182 = vmatpush2.bf16.msra.mxu0 %v17018_v5  ;;  %12223 = vmatpush2.bf16.msra.mxu1 %v17146_v32  ;;  %v16971_v5 = vcombine.high %v10691_v29, %v10695_v28  ;;  %v17099_v32 = vcombine.high %v10819_v30, %v10823_v44 }
 0xb39   :  { %12183 = vmatprep.subr.bf16.mxu0 %v17011_v10  ;;  %12224 = vmatprep.subr.bf16.mxu1 %v17139_v54  ;;  %v20825_v10 = vld [vmem:[#allocation31 + $0x5c8] sm:$0xff] }
 0xb3c   :  { %12184 = vmatpush2.bf16.msra.mxu0 %v17010_v1  ;;  %12225 = vmatpush2.bf16.msra.mxu1 %v17138_v41  ;;  %v20829_v1 = vld [vmem:[#allocation31 + $0x5e8] sm:$0xff]  ;;  %v16964_v41 = vcombine.low %v20821_v34, %v20823_v38 }
 0xb3d   :  { %12185 = vmatprep.subr.bf16.mxu0 %v17003_v61  ;;  %12226 = vmatprep.subr.bf16.mxu1 %v17131_v0  ;;  %v17092_v54 = vcombine.low %v20825_v10, %v20829_v1  ;;  %v17093_v31 = vcombine.high %v20825_v10, %v20829_v1  ;;  %v10332_v61 = vrot.slane %v10323_v47, %v20409_v25 }
 0xb40   :  { %12186 = vmatpush2.bf16.msra.mxu0 %v17002_v35  ;;  %12227 = vmatpush2.bf16.msra.mxu1 %v17130_v40  ;;  %v10336_v35 = vrot.slane %v10323_v47, %v20434_v39 }
 0xb41   :  { %12187 = vmatprep.subr.bf16.mxu0 %v16995_v37  ;;  %12228 = vmatprep.subr.bf16.mxu1 %v17123_v2 }
 0xb44   :  { %12188 = vmatpush2.bf16.msra.mxu0 %v16994_v23  ;;  %12229 = vmatpush2.bf16.msra.mxu1 %v17122_v52 }
 0xb45   :  { %12189 = vmatprep.subr.bf16.mxu0 %v16987_v56  ;;  %12230 = vmatprep.subr.bf16.mxu1 %v17115_v43 }
 0xb48   :  { %12190 = vmatpush2.bf16.msra.mxu0 %v16986_v57  ;;  %12231 = vmatpush2.bf16.msra.mxu1 %v17114_v58 }
 0xb49   :  { %12191 = vmatprep.subr.bf16.mxu0 %v16979_v55  ;;  %12232 = vmatprep.subr.bf16.mxu1 %v17107_v21 }
 0xb4c   :  { %12192 = vmatpush2.bf16.msra.mxu0 %v16978_v27  ;;  %12233 = vmatpush2.bf16.msra.mxu1 %v17106_v13 }
 0xb4d   :  { %12193 = vmatprep.subr.bf16.mxu0 %v16971_v5  ;;  %12234 = vmatprep.subr.bf16.mxu1 %v17099_v32 }
 0xb50   :  { %12194 = vmatpush2.bf16.msra.mxu0 %v16970_v18  ;;  %12235 = vmatpush2.bf16.msra.mxu1 %v17098_v33 }
 0xb51   :  { %12245 = vmatprep.subr.bf16.mxu0 %v16965_v22  ;;  %12286 = vmatprep.subr.bf16.mxu1 %v17093_v31 }
 0xbd3   :  { %v10539_v62 = vpop.f32.mrf.mxu0  ;;  %v10580_v63 = vpop.f32.mrf.mxu1 }
 0xbd4   :  { %v10540_v40 = vadd.f32 %v10539_v62, %v10328_v8  ;;  %v10581_v0 = vadd.f32 %v10580_v63, %v10336_v35  ;;  %v10676_v35 = vld [vmem:[#allocation31 + $0x188] sm:$0xff] }
 0xbd5   :  { %v10541_v37 = vpop.f32.mrf.mxu0  ;;  %v10582_v46 = vpop.f32.mrf.mxu1  ;;  %v10668_v62 = vld [vmem:[#allocation31 + $0x148] sm:$0xff] }
 0xbd6   :  { %v16902_v3 = vmul.f32 -1.442695, %v10540_v40  ;;  %v16904_v6 = vmul.f32 -1.442695, %v10581_v0  ;;  %v10542_v2 = vadd.f32 %v10541_v37, %v10332_v61  ;;  %v10583_v59 = vadd.f32 %v10582_v46, %v10340_v19  ;;  %v10804_v61 = vld [vmem:[#allocation31 + $0x588] sm:$0xff] }
 0xbd7   :  { %v10543_v12 = vpop.f32.mrf.mxu0  ;;  %v10584_v36 = vpop.f32.mrf.mxu1  ;;  %v10808_v19 = vld [vmem:[#allocation31 + $0x5a8] sm:$0xff] }
 0xbd8   :  { %19399 = vpow2.f32 %v16902_v3  ;;  %v16903_v23 = vmul.f32 -1.442695, %v10542_v2  ;;  %v16905_v52 = vmul.f32 -1.442695, %v10583_v59  ;;  %v10672_v63 = vld [vmem:[#allocation31 + $0x168] sm:$0xff]  ;;  %v17085_v40 = vcombine.high %v10804_v61, %v10808_v19 }
 0xbd9   :  { %19401 = vpow2.f32 %v16904_v6  ;;  %v10544_v56 = vpop.f32.mrf.mxu0  ;;  %v10585_v43 = vpop.f32.mrf.mxu1  ;;  %v10796_v0 = vld [vmem:[#allocation31 + $0x548] sm:$0xff]  ;;  %v17084_v3 = vcombine.low %v10804_v61, %v10808_v19  ;;  %v16949_v6 = vcombine.high %v10668_v62, %v10672_v63  ;;  %v16948_v34 = vcombine.low %v10668_v62, %v10672_v63 }
 0xbda   :  { %19403 = vpow2.f32 %v16903_v23  ;;  %v10800_v37 = vld [vmem:[#allocation31 + $0x568] sm:$0xff] }
 0xbdb   :  { %19405 = vpow2.f32 %v16905_v52  ;;  %v17077_v2 = vcombine.high %v10796_v0, %v10800_v37  ;;  %v10660_v59 = vld [vmem:[#allocation31 + $0x108] sm:$0xff]  ;;  %v17076_v38 = vcombine.low %v10796_v0, %v10800_v37 }
 0xbdc   :  { %v10664_v12 = vld [vmem:[#allocation31 + $0x128] sm:$0xff] }
 0xbdd   :  { %v10788_v36 = vld [vmem:[#allocation31 + $0x508] sm:$0xff]  ;;  %v16941_v10 = vcombine.high %v10660_v59, %v10664_v12  ;;  %v16940_v43 = vcombine.low %v10660_v59, %v10664_v12 }
 0xbde   :  { %v10792_v23 = vld [vmem:[#allocation31 + $0x528] sm:$0xff] }
 0xbdf   :  { %v17069_v1 = vcombine.high %v10788_v36, %v10792_v23  ;;  %v10780_v52 = vld [vmem:[#allocation31 + $0x4c8] sm:$0xff] }
 0xbe0   :  { %v10784_v56 = vld [vmem:[#allocation31 + $0x4e8] sm:$0xff] }
 0xbe1   :  { %v10760_v61 = vld [vmem:[#allocation31 + $0x428] sm:$0xff] }
 0xbe2   :  { %v10752_v0 = vld [vmem:[#allocation31 + $0x3e8] sm:$0xff] }
 0xbe3   :  { %v10876_v37 = vld [vmem:[#allocation31 + $0x7c8] sm:$0xff] }
 0xbe4   :  { %v10740_v12 = vld [vmem:[#allocation31 + $0x388] sm:$0xff] }
 0xbe5   :  { %v19400_v60 = vpop.eup %19399 }
 0xbe6   :  { %v19402_v51 = vpop.eup %19401  ;;  %v10599_v26 = vadd.f32 1.0, %v19400_v60  ;;  %v17068_v60 = vcombine.low %v10788_v36, %v10792_v23  ;;  %v10744_v36 = vld [vmem:[#allocation31 + $0x3a8] sm:$0xff] }
 0xbe7   :  { %v19404_v7 = vpop.eup %19403  ;;  %v10601_v57 = vadd.f32 1.0, %v19402_v51  ;;  %v10868_v23 = vld [vmem:[#allocation31 + $0x788] sm:$0xff] }
 0xbe8   :  { %v19406_v58 = vpop.eup %19405  ;;  %19407 = vrcp.f32 %v10599_v26  ;;  %v10600_v55 = vadd.f32 1.0, %v19404_v7  ;;  %v17061_v26 = vcombine.high %v10780_v52, %v10784_v56  ;;  %v10644_v7 = vld [vmem:[#allocation31 + $0x88] sm:$0xff] }
 0xbe9   :  { %19409 = vrcp.f32 %v10601_v57  ;;  %v10602_v21 = vadd.f32 1.0, %v19406_v58  ;;  %v10648_v57 = vld [vmem:[#allocation31 + $0xa8] sm:$0xff] }
 0xbea   :  { %19411 = vrcp.f32 %v10600_v55  ;;  %v10772_v58 = vld [vmem:[#allocation31 + $0x488] sm:$0xff] }
 0xbeb   :  { %19413 = vrcp.f32 %v10602_v21  ;;  %v10776_v55 = vld [vmem:[#allocation31 + $0x4a8] sm:$0xff] }
 0xbf5   :  { %v19408_v29 = vpop.eup %19407 }
 0xbf6   :  { %v19410_v28 = vpop.eup %19409  ;;  %v10611_v30 = vmul.f32 %v19408_v29, %v20794_v17  ;;  %v17060_v29 = vcombine.low %v10780_v52, %v10784_v56  ;;  %v10736_v52 = vld [vmem:[#allocation31 + $0x368] sm:$0xff] }
 0xbf7   :  { %v19412_v44 = vpop.eup %19411  ;;  %v10613_v27 = vmul.f32 %v19410_v28, %v20811_v15  ;;  %v16925_v28 = vcombine.high %v10644_v7, %v10648_v57  ;;  %v10860_v56 = vld [vmem:[#allocation31 + $0x748] sm:$0xff] }
 0xbf8   :  { %v19414_v13 = vpop.eup %19413  ;;  %v10612_v5 = vmul.f32 %v19412_v44, %v20796_v11  ;;  %v10615_v32 = vmax.f32 %v10611_v30, 0.0  ;;  %v10680_v11 = vld [vmem:[#allocation31 + $0x1a8] sm:$0xff]  ;;  %v17053_v30 = vcombine.high %v10772_v58, %v10776_v55 }
 0xbf9   :  { %v10614_v18 = vmul.f32 %v19414_v13, %v20813_v50  ;;  %v10617_v33 = vmax.f32 %v10613_v27, 0.0  ;;  %v16956_v46 = vcombine.low %v10676_v35, %v10680_v11  ;;  %v10636_v44 = vld [vmem:[#allocation31 + $0x48] sm:$0xff] }
 0xbfa   :  { %v10616_v22 = vmax.f32 %v10612_v5, 0.0  ;;  %v20846_v47 = vadd.f32 %v10615_v32, %v20650_v14  ;;  %v10640_v27 = vld [vmem:[#allocation31 + $0x68] sm:$0xff]  ;;  %v16924_v32 = vcombine.low %v10644_v7, %v10648_v57 }
 0xbfb   :  { %v10618_v31 = vmax.f32 %v10614_v18, 0.0  ;;  %v20852_v17 = vadd.f32 %v10617_v33, %v20656_v16  ;;  %v10764_v13 = vld [vmem:[#allocation31 + $0x448] sm:$0xff]  ;;  %v17052_v18 = vcombine.low %v10772_v58, %v10776_v55  ;;  %v16917_v33 = vcombine.high %v10636_v44, %v10640_v27 }
 0xbfc   :  { %v20849_v8 = vadd.f32 %v10616_v22, %v20653_v49  ;;  %v20867_v49 = vpack.c.bf16 %v20846_v47, %v20846_v47  ;;  %v10768_v5 = vld [vmem:[#allocation31 + $0x468] sm:$0xff]  ;;  %v16916_v19 = vcombine.low %v10636_v44, %v10640_v27 }
 0xbfd   :  { %v20855_v15 = vadd.f32 %v10618_v31, %v20659_v4  ;;  %v20872_v16 = vpack.c.bf16 %v20852_v17, %v20852_v17  ;;  %v16957_v4 = vcombine.high %v10676_v35, %v10680_v11  ;;  %v17045_v22 = vcombine.high %v10764_v13, %v10768_v5  ;;  %v10628_v31 = vld [vmem:[#allocation31 + $0x8] sm:$0xff] }
 0xbfe   :  { %v20859_v50 = vpack.c.bf16 %v20849_v8, %v20849_v8  ;;  %v10632_v35 = vld [vmem:[#allocation31 + $0x28] sm:$0xff] }
 0xbff   :  { %v20863_v14 = vpack.c.bf16 %v20855_v15, %v20855_v15  ;;  %v10756_v11 = vld [vmem:[#allocation31 + $0x408] sm:$0xff]  ;;  %v16909_v62 = vcombine.high %v10628_v31, %v10632_v35 }
 0xc00   :  { %12195 = vmatprep.mubr.bf16.mxu0 %v20859_v50  ;;  %v17037_v63 = vcombine.high %v10756_v11, %v10760_v61  ;;  %v10724_v57 = vld [vmem:[#allocation31 + $0x308] sm:$0xff] }
 0xc01   :  { %12236 = vmatprep.mubr.bf16.mxu1 %v20863_v14  ;;  %12196 = vmatmul.mubr.bf16.vlgmr.msra.gmra.mxu0 %v20867_v49  ;;  %v10728_v58 = vld [vmem:[#allocation31 + $0x328] sm:$0xff] }
 0xc02   :  { %12237 = vmatmul.mubr.bf16.vlgmr.msra.gmra.mxu1 %v20872_v16  ;;  %12246 = vmatpush1.bf16.msra.mxu0 %v16964_v41  ;;  %v10652_v41 = vld [vmem:[#allocation31 + $0xc8] sm:$0xff] }
 0xc03   :  { %12287 = vmatpush1.bf16.msra.mxu1 %v17092_v54  ;;  %12277 = vmatprep.mubr.bf16.mxu0 %v20859_v50  ;;  %v10656_v54 = vld [vmem:[#allocation31 + $0xe8] sm:$0xff] }
 0xc04   :  { %12318 = vmatprep.mubr.bf16.mxu1 %v20863_v14  ;;  %12247 = vmatprep.subr.bf16.mxu0 %v16957_v4  ;;  %v16933_v51 = vcombine.high %v10652_v41, %v10656_v54  ;;  %v16932_v21 = vcombine.low %v10652_v41, %v10656_v54  ;;  %v17044_v4 = vcombine.low %v10764_v13, %v10768_v5  ;;  %v10732_v54 = vld [vmem:[#allocation31 + $0x348] sm:$0xff] }
 0xc05   :  { %12288 = vmatprep.subr.bf16.mxu1 %v17085_v40  ;;  %v10748_v40 = vld [vmem:[#allocation31 + $0x3c8] sm:$0xff] }
 0xc06   :  { %12248 = vmatpush1.bf16.msra.mxu0 %v16956_v46  ;;  %v10880_v46 = vld [vmem:[#allocation31 + $0x7e8] sm:$0xff] }
 0xc07   :  { %12289 = vmatpush1.bf16.msra.mxu1 %v17084_v3  ;;  %12249 = vmatprep.subr.bf16.mxu0 %v16949_v6  ;;  %v16908_v3 = vcombine.low %v10628_v31, %v10632_v35  ;;  %v17036_v6 = vcombine.low %v10756_v11, %v10760_v61  ;;  %v17157_v59 = vcombine.high %v10876_v37, %v10880_v46  ;;  %v10852_v55 = vld [vmem:[#allocation31 + $0x708] sm:$0xff] }
 0xc08   :  { %12290 = vmatprep.subr.bf16.mxu1 %v17077_v2  ;;  %v17029_v2 = vcombine.high %v10748_v40, %v10752_v0  ;;  %v10716_v27 = vld [vmem:[#allocation31 + $0x2c8] sm:$0xff] }
 0xc09   :  { %v10720_v13 = vld [vmem:[#allocation31 + $0x2e8] sm:$0xff] }
 0xc0a   :  { %12250 = vmatpush1.bf16.msra.mxu0 %v16948_v34  ;;  %v10872_v34 = vld [vmem:[#allocation31 + $0x7a8] sm:$0xff] }
 0xc0b   :  { %12291 = vmatpush1.bf16.msra.mxu1 %v17076_v38  ;;  %12251 = vmatprep.subr.bf16.mxu0 %v16941_v10  ;;  %v17028_v38 = vcombine.low %v10748_v40, %v10752_v0  ;;  %v17156_v10 = vcombine.low %v10876_v37, %v10880_v46  ;;  %v17149_v41 = vcombine.high %v10868_v23, %v10872_v34  ;;  %v10844_v5 = vld [vmem:[#allocation31 + $0x6c8] sm:$0xff] }
 0xc0c   :  { %12292 = vmatprep.subr.bf16.mxu1 %v17069_v1  ;;  %v17021_v1 = vcombine.high %v10740_v12, %v10744_v36  ;;  %v10708_v35 = vld [vmem:[#allocation31 + $0x288] sm:$0xff] }
 0xc0d   :  { %v10712_v11 = vld [vmem:[#allocation31 + $0x2a8] sm:$0xff] }
 0xc0e   :  { %12252 = vmatpush1.bf16.msra.mxu0 %v16940_v43  ;;  %v10864_v43 = vld [vmem:[#allocation31 + $0x768] sm:$0xff] }
 0xc0f   :  { %12293 = vmatpush1.bf16.msra.mxu1 %v17068_v60  ;;  %12253 = vmatprep.subr.bf16.mxu0 %v16933_v51  ;;  %v17020_v60 = vcombine.low %v10740_v12, %v10744_v36  ;;  %v17148_v51 = vcombine.low %v10868_v23, %v10872_v34  ;;  %v17141_v7 = vcombine.high %v10860_v56, %v10864_v43  ;;  %v10836_v61 = vld [vmem:[#allocation31 + $0x688] sm:$0xff] }
 0xc10   :  { %12294 = vmatprep.subr.bf16.mxu1 %v17061_v26  ;;  %v17013_v26 = vcombine.high %v10732_v54, %v10736_v52  ;;  %v10700_v0 = vld [vmem:[#allocation31 + $0x248] sm:$0xff] }
 0xc11   :  { %v10704_v37 = vld [vmem:[#allocation31 + $0x268] sm:$0xff] }
 0xc12   :  { %12254 = vmatpush1.bf16.msra.mxu0 %v16932_v21  ;;  %v10856_v21 = vld [vmem:[#allocation31 + $0x728] sm:$0xff] }
 0xc13   :  { %12295 = vmatpush1.bf16.msra.mxu1 %v17060_v29  ;;  %12255 = vmatprep.subr.bf16.mxu0 %v16925_v28  ;;  %v17012_v29 = vcombine.low %v10732_v54, %v10736_v52  ;;  %v17140_v28 = vcombine.low %v10860_v56, %v10864_v43  ;;  %v17133_v44 = vcombine.high %v10852_v55, %v10856_v21  ;;  %v10828_v46 = vld [vmem:[#allocation31 + $0x648] sm:$0xff]  ;;  %v10685_v52 = vld [vmem:[#allocation31 + $0x1d0] sm:$0xff] }
 0xc14   :  { %12296 = vmatprep.subr.bf16.mxu1 %v17053_v30  ;;  %v17005_v30 = vcombine.high %v10724_v57, %v10728_v58  ;;  %v10692_v36 = vld [vmem:[#allocation31 + $0x208] sm:$0xff]  ;;  %v10689_v56 = vld [vmem:[#allocation31 + $0x1f0] sm:$0xff] }
 0xc15   :  { %v10696_v23 = vld [vmem:[#allocation31 + $0x228] sm:$0xff]  ;;  %v10813_v43 = vld [vmem:[#allocation31 + $0x5d0] sm:$0xff] }
 0xc16   :  { %12256 = vmatpush1.bf16.msra.mxu0 %v16924_v32  ;;  %v10848_v32 = vld [vmem:[#allocation31 + $0x6e8] sm:$0xff] }
 0xc17   :  { %12297 = vmatpush1.bf16.msra.mxu1 %v17052_v18  ;;  %12257 = vmatprep.subr.bf16.mxu0 %v16917_v33  ;;  %v17004_v18 = vcombine.low %v10724_v57, %v10728_v58  ;;  %v17132_v33 = vcombine.low %v10852_v55, %v10856_v21  ;;  %v17125_v31 = vcombine.high %v10844_v5, %v10848_v32  ;;  %v10820_v34 = vld [vmem:[#allocation31 + $0x608] sm:$0xff]  ;;  %v10677_v58 = vld [vmem:[#allocation31 + $0x190] sm:$0xff] }
 0xc18   :  { %12298 = vmatprep.subr.bf16.mxu1 %v17045_v22  ;;  %v16997_v22 = vcombine.high %v10716_v27, %v10720_v13  ;;  %v10681_v55 = vld [vmem:[#allocation31 + $0x1b0] sm:$0xff]  ;;  %v16966_v21 = vcombine.low %v10685_v52, %v10689_v56 }
 0xc1a   :  { %12258 = vmatpush1.bf16.msra.mxu0 %v16916_v19  ;;  %v10840_v19 = vld [vmem:[#allocation31 + $0x6a8] sm:$0xff] }
 0xc1b   :  { %12299 = vmatpush1.bf16.msra.mxu1 %v17044_v4  ;;  %12259 = vmatprep.subr.bf16.mxu0 %v16909_v62  ;;  %v16996_v4 = vcombine.low %v10716_v27, %v10720_v13  ;;  %v17124_v62 = vcombine.low %v10844_v5, %v10848_v32  ;;  %v17117_v40 = vcombine.high %v10836_v61, %v10840_v19  ;;  %v10669_v27 = vld [vmem:[#allocation31 + $0x150] sm:$0xff] }
 0xc1c   :  { %12300 = vmatprep.subr.bf16.mxu1 %v17037_v63  ;;  %v16989_v63 = vcombine.high %v10708_v35, %v10712_v11  ;;  %v10673_v13 = vld [vmem:[#allocation31 + $0x170] sm:$0xff] }
 0xc1d   :  { %v10797_v32 = vld [vmem:[#allocation31 + $0x550] sm:$0xff] }
 0xc1e   :  { %12260 = vmatpush1.bf16.msra.mxu0 %v16908_v3  ;;  %v10832_v3 = vld [vmem:[#allocation31 + $0x668] sm:$0xff] }
 0xc1f   :  { %12301 = vmatpush1.bf16.msra.mxu1 %v17036_v6  ;;  %12261 = vmatprep.subr.bf16.mxu0 %v17029_v2  ;;  %v16988_v6 = vcombine.low %v10708_v35, %v10712_v11  ;;  %v17116_v2 = vcombine.low %v10836_v61, %v10840_v19  ;;  %v17109_v12 = vcombine.high %v10828_v46, %v10832_v3  ;;  %v10661_v11 = vld [vmem:[#allocation31 + $0x110] sm:$0xff] }
 0xc20   :  { %12302 = vmatprep.subr.bf16.mxu1 %v17157_v59  ;;  %v16981_v59 = vcombine.high %v10700_v0, %v10704_v37  ;;  %v10665_v61 = vld [vmem:[#allocation31 + $0x130] sm:$0xff] }
 0xc21   :  { %v10789_v19 = vld [vmem:[#allocation31 + $0x510] sm:$0xff] }
 0xc22   :  { %12262 = vmatpush2.bf16.msra.mxu0 %v17028_v38  ;;  %v10824_v38 = vld [vmem:[#allocation31 + $0x628] sm:$0xff] }
 0xc23   :  { %12303 = vmatpush2.bf16.msra.mxu1 %v17156_v10  ;;  %12263 = vmatprep.subr.bf16.mxu0 %v17021_v1  ;;  %v16980_v10 = vcombine.low %v10700_v0, %v10704_v37  ;;  %v17108_v1 = vcombine.low %v10828_v46, %v10832_v3  ;;  %v17101_v54 = vcombine.high %v10820_v34, %v10824_v38  ;;  %v10653_v37 = vld [vmem:[#allocation31 + $0xd0] sm:$0xff] }
 0xc24   :  { %12304 = vmatprep.subr.bf16.mxu1 %v17149_v41  ;;  %v16973_v41 = vcombine.high %v10692_v36, %v10696_v23  ;;  %v10657_v46 = vld [vmem:[#allocation31 + $0xf0] sm:$0xff] }
 0xc25   :  { %v10781_v3 = vld [vmem:[#allocation31 + $0x4d0] sm:$0xff] }
 0xc26   :  { %12264 = vmatpush2.bf16.msra.mxu0 %v17020_v60  ;;  %v10817_v60 = vld [vmem:[#allocation31 + $0x5f0] sm:$0xff] }
 0xc27   :  { %12305 = vmatpush2.bf16.msra.mxu1 %v17148_v51  ;;  %12265 = vmatprep.subr.bf16.mxu0 %v17013_v26  ;;  %v16972_v51 = vcombine.low %v10692_v36, %v10696_v23  ;;  %v17100_v26 = vcombine.low %v10820_v34, %v10824_v38  ;;  %v17095_v57 = vcombine.high %v10813_v43, %v10817_v60  ;;  %v10645_v23 = vld [vmem:[#allocation31 + $0x90] sm:$0xff] }
 0xc28   :  { %12306 = vmatprep.subr.bf16.mxu1 %v17141_v7  ;;  %v16967_v7 = vcombine.high %v10685_v52, %v10689_v56  ;;  %v10649_v34 = vld [vmem:[#allocation31 + $0xb0] sm:$0xff] }
 0xc29   :  { %v10773_v38 = vld [vmem:[#allocation31 + $0x490] sm:$0xff] }
 0xc2a   :  { %12266 = vmatpush2.bf16.msra.mxu0 %v17012_v29  ;;  %v10805_v29 = vld [vmem:[#allocation31 + $0x590] sm:$0xff] }
 0xc2b   :  { %12307 = vmatpush2.bf16.msra.mxu1 %v17140_v28  ;;  %12267 = vmatprep.subr.bf16.mxu0 %v17005_v30  ;;  %v10809_v28 = vld [vmem:[#allocation31 + $0x5b0] sm:$0xff]  ;;  %v17094_v30 = vcombine.low %v10813_v43, %v10817_v60 }
 0xc2c   :  { %12308 = vmatprep.subr.bf16.mxu1 %v17133_v44  ;;  %v16959_v44 = vcombine.high %v10677_v58, %v10681_v55  ;;  %v17087_v5 = vcombine.high %v10805_v29, %v10809_v28  ;;  %v10637_v56 = vld [vmem:[#allocation31 + $0x50] sm:$0xff] }
 0xc2d   :  { %v10641_v43 = vld [vmem:[#allocation31 + $0x70] sm:$0xff] }
 0xc2e   :  { %12268 = vmatpush2.bf16.msra.mxu0 %v17004_v18  ;;  %v10801_v18 = vld [vmem:[#allocation31 + $0x570] sm:$0xff] }
 0xc2f   :  { %12309 = vmatpush2.bf16.msra.mxu1 %v17132_v33  ;;  %12269 = vmatprep.subr.bf16.mxu0 %v16997_v22  ;;  %v16958_v33 = vcombine.low %v10677_v58, %v10681_v55  ;;  %v17086_v22 = vcombine.low %v10805_v29, %v10809_v28  ;;  %v17079_v35 = vcombine.high %v10797_v32, %v10801_v18  ;;  %v10765_v60 = vld [vmem:[#allocation31 + $0x450] sm:$0xff] }
 0xc30   :  { %12310 = vmatprep.subr.bf16.mxu1 %v17125_v31  ;;  %v16951_v31 = vcombine.high %v10669_v27, %v10673_v13  ;;  %v10629_v55 = vld [vmem:[#allocation31 + $0x10] sm:$0xff] }
 0xc31   :  { %v10757_v29 = vld [vmem:[#allocation31 + $0x410] sm:$0xff] }
 0xc32   :  { %12270 = vmatpush2.bf16.msra.mxu0 %v16996_v4  ;;  %v10793_v4 = vld [vmem:[#allocation31 + $0x530] sm:$0xff] }
 0xc33   :  { %12311 = vmatpush2.bf16.msra.mxu1 %v17124_v62  ;;  %12271 = vmatprep.subr.bf16.mxu0 %v16989_v63  ;;  %v16950_v62 = vcombine.low %v10669_v27, %v10673_v13  ;;  %v17078_v63 = vcombine.low %v10797_v32, %v10801_v18  ;;  %v17071_v0 = vcombine.high %v10789_v19, %v10793_v4  ;;  %v10761_v28 = vld [vmem:[#allocation31 + $0x430] sm:$0xff] }
 0xc34   :  { %12312 = vmatprep.subr.bf16.mxu1 %v17117_v40  ;;  %v16943_v40 = vcombine.high %v10661_v11, %v10665_v61  ;;  %v17039_v13 = vcombine.high %v10757_v29, %v10761_v28  ;;  %v10753_v32 = vld [vmem:[#allocation31 + $0x3f0] sm:$0xff] }
 0xc35   :  { %v10877_v18 = vld [vmem:[#allocation31 + $0x7d0] sm:$0xff] }
 0xc36   :  { %12272 = vmatpush2.bf16.msra.mxu0 %v16988_v6  ;;  %v10785_v6 = vld [vmem:[#allocation31 + $0x4f0] sm:$0xff] }
 0xc37   :  { %12313 = vmatpush2.bf16.msra.mxu1 %v17116_v2  ;;  %12273 = vmatprep.subr.bf16.mxu0 %v16981_v59  ;;  %v16942_v2 = vcombine.low %v10661_v11, %v10665_v61  ;;  %v17070_v59 = vcombine.low %v10789_v19, %v10793_v4  ;;  %v17063_v36 = vcombine.high %v10781_v3, %v10785_v6  ;;  %v10741_v61 = vld [vmem:[#allocation31 + $0x390] sm:$0xff] }
 0xc38   :  { %12314 = vmatprep.subr.bf16.mxu1 %v17109_v12  ;;  %v16935_v12 = vcombine.high %v10653_v37, %v10657_v46  ;;  %v10745_v19 = vld [vmem:[#allocation31 + $0x3b0] sm:$0xff] }
 0xc39   :  { %v10869_v4 = vld [vmem:[#allocation31 + $0x790] sm:$0xff] }
 0xc3a   :  { %12274 = vmatpush2.bf16.msra.mxu0 %v16980_v10  ;;  %v10777_v10 = vld [vmem:[#allocation31 + $0x4b0] sm:$0xff] }
 0xc3b   :  { %12315 = vmatpush2.bf16.msra.mxu1 %v17108_v1  ;;  %12275 = vmatprep.subr.bf16.mxu0 %v16973_v41  ;;  %v16934_v1 = vcombine.low %v10653_v37, %v10657_v46  ;;  %v17062_v41 = vcombine.low %v10781_v3, %v10785_v6  ;;  %v17055_v52 = vcombine.high %v10773_v38, %v10777_v10  ;;  %v10733_v46 = vld [vmem:[#allocation31 + $0x350] sm:$0xff] }
 0xc3c   :  { %12316 = vmatprep.subr.bf16.mxu1 %v17101_v54  ;;  %v16927_v54 = vcombine.high %v10645_v23, %v10649_v34  ;;  %v10737_v3 = vld [vmem:[#allocation31 + $0x370] sm:$0xff] }
 0xc3d   :  { %v10861_v6 = vld [vmem:[#allocation31 + $0x750] sm:$0xff] }
 0xc3e   :  { %12276 = vmatpush2.bf16.msra.mxu0 %v16972_v51  ;;  %v10769_v51 = vld [vmem:[#allocation31 + $0x470] sm:$0xff] }
 0xc3f   :  { %12317 = vmatpush2.bf16.msra.mxu1 %v17100_v26  ;;  %12327 = vmatprep.subr.bf16.mxu0 %v16967_v7  ;;  %v16926_v26 = vcombine.low %v10645_v23, %v10649_v34  ;;  %v17054_v7 = vcombine.low %v10773_v38, %v10777_v10  ;;  %v17047_v58 = vcombine.high %v10765_v60, %v10769_v51  ;;  %v10725_v34 = vld [vmem:[#allocation31 + $0x310] sm:$0xff] }
 0xc40   :  { %12368 = vmatprep.subr.bf16.mxu1 %v17095_v57  ;;  %v16919_v57 = vcombine.high %v10637_v56, %v10641_v43  ;;  %v10729_v38 = vld [vmem:[#allocation31 + $0x330] sm:$0xff] }
 0xc41   :  { %12278 = vmatmul.mubr.bf16.vlgmr.msra.gmra.mxu0 %v20867_v49  ;;  %v10853_v10 = vld [vmem:[#allocation31 + $0x710] sm:$0xff] }
 0xc42   :  { %12319 = vmatmul.mubr.bf16.vlgmr.msra.gmra.mxu1 %v20872_v16  ;;  %12328 = vmatpush1.bf16.msra.mxu0 %v16966_v21  ;;  %v10633_v21 = vld [vmem:[#allocation31 + $0x30] sm:$0xff] }
 0xc43   :  { %12359 = vmatprep.mubr.bf16.mxu0 %v20859_v50  ;;  %12369 = vmatpush1.bf16.msra.mxu1 %v17094_v30  ;;  %v16918_v30 = vcombine.low %v10637_v56, %v10641_v43  ;;  %v16911_v27 = vcombine.high %v10629_v55, %v10633_v21  ;;  %v10717_v43 = vld [vmem:[#allocation31 + $0x2d0] sm:$0xff] }
 0xc44   :  { %12400 = vmatprep.mubr.bf16.mxu1 %v20863_v14  ;;  %12329 = vmatprep.subr.bf16.mxu0 %v16959_v44  ;;  %v17046_v44 = vcombine.low %v10765_v60, %v10769_v51  ;;  %v10721_v60 = vld [vmem:[#allocation31 + $0x2f0] sm:$0xff] }
 0xc45   :  { %12370 = vmatprep.subr.bf16.mxu1 %v17087_v5  ;;  %v10749_v5 = vld [vmem:[#allocation31 + $0x3d0] sm:$0xff] }
 0xc46   :  { %12330 = vmatpush1.bf16.msra.mxu0 %v16958_v33  ;;  %v10881_v33 = vld [vmem:[#allocation31 + $0x7f0] sm:$0xff] }
 0xc47   :  { %12371 = vmatpush1.bf16.msra.mxu1 %v17086_v22  ;;  %12331 = vmatprep.subr.bf16.mxu0 %v16951_v31  ;;  %v16910_v22 = vcombine.low %v10629_v55, %v10633_v21  ;;  %v17038_v31 = vcombine.low %v10757_v29, %v10761_v28  ;;  %v17159_v11 = vcombine.high %v10877_v18, %v10881_v33  ;;  %v10845_v51 = vld [vmem:[#allocation31 + $0x6d0] sm:$0xff] }
 0xc48   :  { %12372 = vmatprep.subr.bf16.mxu1 %v17079_v35  ;;  %v17031_v35 = vcombine.high %v10749_v5, %v10753_v32  ;;  %v10709_v21 = vld [vmem:[#allocation31 + $0x290] sm:$0xff] }
 0xc49   :  { %v10713_v29 = vld [vmem:[#allocation31 + $0x2b0] sm:$0xff] }
 0xc4a   :  { %12332 = vmatpush1.bf16.msra.mxu0 %v16950_v62  ;;  %v10873_v62 = vld [vmem:[#allocation31 + $0x7b0] sm:$0xff] }
 0xc4b   :  { %12373 = vmatpush1.bf16.msra.mxu1 %v17078_v63  ;;  %12333 = vmatprep.subr.bf16.mxu0 %v16943_v40  ;;  %v17030_v63 = vcombine.low %v10749_v5, %v10753_v32  ;;  %v17158_v40 = vcombine.low %v10877_v18, %v10881_v33  ;;  %v17151_v37 = vcombine.high %v10869_v4, %v10873_v62  ;;  %v10837_v28 = vld [vmem:[#allocation31 + $0x690] sm:$0xff] }
 0xc4c   :  { %12374 = vmatprep.subr.bf16.mxu1 %v17071_v0  ;;  %v17023_v0 = vcombine.high %v10741_v61, %v10745_v19  ;;  %v10701_v32 = vld [vmem:[#allocation31 + $0x250] sm:$0xff] }
 0xc4d   :  { %v10705_v18 = vld [vmem:[#allocation31 + $0x270] sm:$0xff] }
 0xc4e   :  { %12334 = vmatpush1.bf16.msra.mxu0 %v16942_v2  ;;  %v10865_v2 = vld [vmem:[#allocation31 + $0x770] sm:$0xff] }
 0xc4f   :  { %12375 = vmatpush1.bf16.msra.mxu1 %v17070_v59  ;;  %12335 = vmatprep.subr.bf16.mxu0 %v16935_v12  ;;  %v17022_v59 = vcombine.low %v10741_v61, %v10745_v19  ;;  %v17150_v12 = vcombine.low %v10869_v4, %v10873_v62  ;;  %v17143_v23 = vcombine.high %v10861_v6, %v10865_v2  ;;  %v10829_v33 = vld [vmem:[#allocation31 + $0x650] sm:$0xff] }
 0xc50   :  { %12376 = vmatprep.subr.bf16.mxu1 %v17063_v36  ;;  %v17015_v36 = vcombine.high %v10733_v46, %v10737_v3  ;;  %v10693_v19 = vld [vmem:[#allocation31 + $0x210] sm:$0xff] }
 0xc51   :  { %v10697_v4 = vld [vmem:[#allocation31 + $0x230] sm:$0xff] }
 0xc52   :  { %12336 = vmatpush1.bf16.msra.mxu0 %v16934_v1  ;;  %v10857_v1 = vld [vmem:[#allocation31 + $0x730] sm:$0xff] }
 0xc53   :  { %12377 = vmatpush1.bf16.msra.mxu1 %v17062_v41  ;;  %12337 = vmatprep.subr.bf16.mxu0 %v16927_v54  ;;  %v17014_v41 = vcombine.low %v10733_v46, %v10737_v3  ;;  %v17142_v54 = vcombine.low %v10861_v6, %v10865_v2  ;;  %v17135_v56 = vcombine.high %v10853_v10, %v10857_v1  ;;  %v10821_v62 = vld [vmem:[#allocation31 + $0x610] sm:$0xff]  ;;  %v10686_v3 = vld [vmem:[#allocation31 + $0x1d8] sm:$0xff] }
 0xc54   :  { %12378 = vmatprep.subr.bf16.mxu1 %v17055_v52  ;;  %v17007_v52 = vcombine.high %v10725_v34, %v10729_v38  ;;  %v10690_v6 = vld [vmem:[#allocation31 + $0x1f8] sm:$0xff] }
 0xc55   :  { %v10814_v2 = vld [vmem:[#allocation31 + $0x5d8] sm:$0xff] }
 0xc56   :  { %12338 = vmatpush1.bf16.msra.mxu0 %v16926_v26  ;;  %v10849_v26 = vld [vmem:[#allocation31 + $0x6f0] sm:$0xff] }
 0xc57   :  { %12379 = vmatpush1.bf16.msra.mxu1 %v17054_v7  ;;  %12339 = vmatprep.subr.bf16.mxu0 %v16919_v57  ;;  %v17006_v7 = vcombine.low %v10725_v34, %v10729_v38  ;;  %v17134_v57 = vcombine.low %v10853_v10, %v10857_v1  ;;  %v17127_v55 = vcombine.high %v10845_v51, %v10849_v26  ;;  %v10678_v38 = vld [vmem:[#allocation31 + $0x198] sm:$0xff] }
 0xc58   :  { %12380 = vmatprep.subr.bf16.mxu1 %v17047_v58  ;;  %v16999_v58 = vcombine.high %v10717_v43, %v10721_v60  ;;  %v10682_v10 = vld [vmem:[#allocation31 + $0x1b8] sm:$0xff]  ;;  %v16968_v1 = vcombine.low %v10686_v3, %v10690_v6 }
 0xc5a   :  { %12340 = vmatpush1.bf16.msra.mxu0 %v16918_v30  ;;  %v10841_v30 = vld [vmem:[#allocation31 + $0x6b0] sm:$0xff] }
 0xc5b   :  { %12381 = vmatpush1.bf16.msra.mxu1 %v17046_v44  ;;  %12341 = vmatprep.subr.bf16.mxu0 %v16911_v27  ;;  %v16998_v44 = vcombine.low %v10717_v43, %v10721_v60  ;;  %v17126_v27 = vcombine.low %v10845_v51, %v10849_v26  ;;  %v17119_v5 = vcombine.high %v10837_v28, %v10841_v30  ;;  %v10670_v43 = vld [vmem:[#allocation31 + $0x158] sm:$0xff] }
 0xc5c   :  { %12382 = vmatprep.subr.bf16.mxu1 %v17039_v13  ;;  %v16991_v13 = vcombine.high %v10709_v21, %v10713_v29  ;;  %v10674_v60 = vld [vmem:[#allocation31 + $0x178] sm:$0xff] }
 0xc5d   :  { %v10798_v26 = vld [vmem:[#allocation31 + $0x558] sm:$0xff] }
 0xc5e   :  { %12342 = vmatpush1.bf16.msra.mxu0 %v16910_v22  ;;  %v10833_v22 = vld [vmem:[#allocation31 + $0x670] sm:$0xff] }
 0xc5f   :  { %12383 = vmatpush1.bf16.msra.mxu1 %v17038_v31  ;;  %12343 = vmatprep.subr.bf16.mxu0 %v17031_v35  ;;  %v16990_v31 = vcombine.low %v10709_v21, %v10713_v29  ;;  %v17118_v35 = vcombine.low %v10837_v28, %v10841_v30  ;;  %v17111_v61 = vcombine.high %v10829_v33, %v10833_v22  ;;  %v10662_v29 = vld [vmem:[#allocation31 + $0x118] sm:$0xff] }
 0xc60   :  { %12384 = vmatprep.subr.bf16.mxu1 %v17159_v11  ;;  %v16983_v11 = vcombine.high %v10701_v32, %v10705_v18  ;;  %v10666_v28 = vld [vmem:[#allocation31 + $0x138] sm:$0xff] }
 0xc61   :  { %v10790_v30 = vld [vmem:[#allocation31 + $0x518] sm:$0xff] }
 0xc62   :  { %12344 = vmatpush2.bf16.msra.mxu0 %v17030_v63  ;;  %v10825_v63 = vld [vmem:[#allocation31 + $0x630] sm:$0xff] }
 0xc63   :  { %12385 = vmatpush2.bf16.msra.mxu1 %v17158_v40  ;;  %12345 = vmatprep.subr.bf16.mxu0 %v17023_v0  ;;  %v16982_v40 = vcombine.low %v10701_v32, %v10705_v18  ;;  %v17110_v0 = vcombine.low %v10829_v33, %v10833_v22  ;;  %v17103_v46 = vcombine.high %v10821_v62, %v10825_v63  ;;  %v10654_v32 = vld [vmem:[#allocation31 + $0xd8] sm:$0xff] }
 0xc64   :  { %12386 = vmatprep.subr.bf16.mxu1 %v17151_v37  ;;  %v16975_v37 = vcombine.high %v10693_v19, %v10697_v4  ;;  %v10658_v18 = vld [vmem:[#allocation31 + $0xf8] sm:$0xff] }
 0xc65   :  { %v10782_v33 = vld [vmem:[#allocation31 + $0x4d8] sm:$0xff] }
 0xc66   :  { %12346 = vmatpush2.bf16.msra.mxu0 %v17022_v59  ;;  %v10818_v59 = vld [vmem:[#allocation31 + $0x5f8] sm:$0xff] }
 0xc67   :  { %12387 = vmatpush2.bf16.msra.mxu1 %v17150_v12  ;;  %12347 = vmatprep.subr.bf16.mxu0 %v17015_v36  ;;  %v16974_v12 = vcombine.low %v10693_v19, %v10697_v4  ;;  %v17102_v36 = vcombine.low %v10821_v62, %v10825_v63  ;;  %v17097_v34 = vcombine.high %v10814_v2, %v10818_v59  ;;  %v10786_v22 = vld [vmem:[#allocation31 + $0x4f8] sm:$0xff] }
 0xc68   :  { %12388 = vmatprep.subr.bf16.mxu1 %v17143_v23  ;;  %v16969_v23 = vcombine.high %v10686_v3, %v10690_v6  ;;  %v10650_v19 = vld [vmem:[#allocation31 + $0xb8] sm:$0xff]  ;;  %v16936_v63 = vcombine.low %v10654_v32, %v10658_v18 }
 0xc69   :  { %v10774_v4 = vld [vmem:[#allocation31 + $0x498] sm:$0xff] }
 0xc6a   :  { %12348 = vmatpush2.bf16.msra.mxu0 %v17014_v41  ;;  %v10806_v41 = vld [vmem:[#allocation31 + $0x598] sm:$0xff] }
 0xc6b   :  { %12389 = vmatpush2.bf16.msra.mxu1 %v17142_v54  ;;  %12349 = vmatprep.subr.bf16.mxu0 %v17007_v52  ;;  %v10810_v54 = vld [vmem:[#allocation31 + $0x5b8] sm:$0xff]  ;;  %v17096_v52 = vcombine.low %v10814_v2, %v10818_v59 }
 0xc6c   :  { %12390 = vmatprep.subr.bf16.mxu1 %v17135_v56  ;;  %v16961_v56 = vcombine.high %v10678_v38, %v10682_v10  ;;  %v17089_v51 = vcombine.high %v10806_v41, %v10810_v54  ;;  %v10778_v62 = vld [vmem:[#allocation31 + $0x4b8] sm:$0xff] }
 0xc6d   :  { %v10642_v3 = vld [vmem:[#allocation31 + $0x78] sm:$0xff] }
 0xc6e   :  { %12350 = vmatpush2.bf16.msra.mxu0 %v17006_v7  ;;  %v10802_v7 = vld [vmem:[#allocation31 + $0x578] sm:$0xff] }
 0xc6f   :  { %12391 = vmatpush2.bf16.msra.mxu1 %v17134_v57  ;;  %12351 = vmatprep.subr.bf16.mxu0 %v16999_v58  ;;  %v16960_v57 = vcombine.low %v10678_v38, %v10682_v10  ;;  %v17088_v58 = vcombine.low %v10806_v41, %v10810_v54  ;;  %v17081_v21 = vcombine.high %v10798_v26, %v10802_v7  ;;  %v10766_v6 = vld [vmem:[#allocation31 + $0x458] sm:$0xff] }
 0xc70   :  { %12392 = vmatprep.subr.bf16.mxu1 %v17127_v55  ;;  %v16953_v55 = vcombine.high %v10670_v43, %v10674_v60  ;;  %v10770_v2 = vld [vmem:[#allocation31 + $0x478] sm:$0xff] }
 0xc71   :  { %v10634_v38 = vld [vmem:[#allocation31 + $0x38] sm:$0xff]  ;;  %v17048_v54 = vcombine.low %v10766_v6, %v10770_v2 }
 0xc72   :  { %12352 = vmatpush2.bf16.msra.mxu0 %v16998_v44  ;;  %v10794_v44 = vld [vmem:[#allocation31 + $0x538] sm:$0xff] }
 0xc73   :  { %12393 = vmatpush2.bf16.msra.mxu1 %v17126_v27  ;;  %12353 = vmatprep.subr.bf16.mxu0 %v16991_v13  ;;  %v16952_v27 = vcombine.low %v10670_v43, %v10674_v60  ;;  %v17080_v13 = vcombine.low %v10798_v26, %v10802_v7  ;;  %v10758_v10 = vld [vmem:[#allocation31 + $0x418] sm:$0xff] }
 0xc74   :  { %12394 = vmatprep.subr.bf16.mxu1 %v17119_v5  ;;  %v16945_v5 = vcombine.high %v10662_v29, %v10666_v28  ;;  %v10750_v43 = vld [vmem:[#allocation31 + $0x3d8] sm:$0xff] }
 0xc75   :  { %v10754_v60 = vld [vmem:[#allocation31 + $0x3f8] sm:$0xff] }
 0xc76   :  { %12354 = vmatpush2.bf16.msra.mxu0 %v16990_v31  ;;  %v17072_v31 = vcombine.low %v10790_v30, %v10794_v44  ;;  %v10882_v26 = vld [vmem:[#allocation31 + $0x7f8] sm:$0xff] }
 0xc77   :  { %12395 = vmatpush2.bf16.msra.mxu1 %v17118_v35  ;;  %12355 = vmatprep.subr.bf16.mxu0 %v16983_v11  ;;  %v16937_v35 = vcombine.high %v10654_v32, %v10658_v18  ;;  %v17065_v11 = vcombine.high %v10782_v33, %v10786_v22  ;;  %v10738_v32 = vld [vmem:[#allocation31 + $0x378] sm:$0xff] }
 0xc78   :  { %12396 = vmatprep.subr.bf16.mxu1 %v17111_v61  ;;  %v10646_v61 = vld [vmem:[#allocation31 + $0x98] sm:$0xff] }
 0xc79   :  { %v16928_v59 = vcombine.low %v10646_v61, %v10650_v19  ;;  %v10862_v18 = vld [vmem:[#allocation31 + $0x758] sm:$0xff] }
 0xc7a   :  { %12356 = vmatpush2.bf16.msra.mxu0 %v16982_v40  ;;  %v17064_v40 = vcombine.low %v10782_v33, %v10786_v22  ;;  %v10866_v33 = vld [vmem:[#allocation31 + $0x778] sm:$0xff] }
 0xc7b   :  { %12397 = vmatpush2.bf16.msra.mxu1 %v17110_v0  ;;  %12357 = vmatprep.subr.bf16.mxu0 %v16975_v37  ;;  %v16929_v0 = vcombine.high %v10646_v61, %v10650_v19  ;;  %v17057_v37 = vcombine.high %v10774_v4, %v10778_v62  ;;  %v10730_v61 = vld [vmem:[#allocation31 + $0x338] sm:$0xff] }
 0xc7c   :  { %12398 = vmatprep.subr.bf16.mxu1 %v17103_v46  ;;  %v10638_v46 = vld [vmem:[#allocation31 + $0x58] sm:$0xff] }
 0xc7d   :  { %v16920_v41 = vcombine.low %v10638_v46, %v10642_v3  ;;  %v10854_v19 = vld [vmem:[#allocation31 + $0x718] sm:$0xff] }
 0xc7e   :  { %12358 = vmatpush2.bf16.msra.mxu0 %v16974_v12  ;;  %v17056_v12 = vcombine.low %v10774_v4, %v10778_v62  ;;  %v10858_v4 = vld [vmem:[#allocation31 + $0x738] sm:$0xff] }
 0xc7f   :  { %12399 = vmatpush2.bf16.msra.mxu1 %v17102_v36  ;;  %12409 = vmatprep.subr.bf16.mxu0 %v16969_v23  ;;  %v16921_v36 = vcombine.high %v10638_v46, %v10642_v3  ;;  %v17049_v23 = vcombine.high %v10766_v6, %v10770_v2  ;;  %v10722_v46 = vld [vmem:[#allocation31 + $0x2f8] sm:$0xff] }
 0xc80   :  { %12450 = vmatprep.subr.bf16.mxu1 %v17097_v34  ;;  %v10630_v34 = vld [vmem:[#allocation31 + $0x18] sm:$0xff] }
 0xc81   :  { %12360 = vmatmul.mubr.bf16.vlgmr.msra.gmra.mxu0 %v20867_v49  ;;  %v16912_v7 = vcombine.low %v10630_v34, %v10634_v38  ;;  %v10846_v3 = vld [vmem:[#allocation31 + $0x6d8] sm:$0xff] }
 0xc82   :  { %12401 = vmatmul.mubr.bf16.vlgmr.msra.gmra.mxu1 %v20872_v16  ;;  %12410 = vmatpush1.bf16.msra.mxu0 %v16968_v1  ;;  %v10762_v1 = vld [vmem:[#allocation31 + $0x438] sm:$0xff] }
 0xc83   :  { %12441 = vmatprep.mubr.bf16.mxu0 %v20859_v50  ;;  %12451 = vmatpush1.bf16.msra.mxu1 %v17096_v52  ;;  %v17073_v50 = vcombine.high %v10790_v30, %v10794_v44  ;;  %v16913_v52 = vcombine.high %v10630_v34, %v10634_v38  ;;  %v10874_v30 = vld [vmem:[#allocation31 + $0x7b8] sm:$0xff]  ;;  %v17032_v44 = vcombine.low %v10750_v43, %v10754_v60 }
 0xc84   :  { %12482 = vmatprep.mubr.bf16.mxu1 %v20863_v14  ;;  %12411 = vmatprep.subr.bf16.mxu0 %v16961_v56  ;;  %v16944_v14 = vcombine.low %v10662_v29, %v10666_v28  ;;  %v17041_v56 = vcombine.high %v10758_v10, %v10762_v1  ;;  %v10746_v29 = vld [vmem:[#allocation31 + $0x3b8] sm:$0xff] }
 0xc85   :  { %12452 = vmatprep.subr.bf16.mxu1 %v17089_v51  ;;  %v10878_v51 = vld [vmem:[#allocation31 + $0x7d8] sm:$0xff] }
 0xc86   :  { %12412 = vmatpush1.bf16.msra.mxu0 %v16960_v57  ;;  %v17040_v57 = vcombine.low %v10758_v10, %v10762_v1  ;;  %v10870_v28 = vld [vmem:[#allocation31 + $0x798] sm:$0xff] }
 0xc87   :  { %12453 = vmatpush1.bf16.msra.mxu1 %v17088_v58  ;;  %12413 = vmatprep.subr.bf16.mxu0 %v16953_v55  ;;  %v17033_v58 = vcombine.high %v10750_v43, %v10754_v60  ;;  %v17161_v55 = vcombine.high %v10878_v51, %v10882_v26  ;;  %v10850_v6 = vld [vmem:[#allocation31 + $0x6f8] sm:$0xff] }
 0xc88   :  { %12454 = vmatprep.subr.bf16.mxu1 %v17081_v21  ;;  %v10742_v21 = vld [vmem:[#allocation31 + $0x398] sm:$0xff] }
 0xc89   :  { %v17024_v22 = vcombine.low %v10742_v21, %v10746_v29  ;;  %v10714_v34 = vld [vmem:[#allocation31 + $0x2b8] sm:$0xff] }
 0xc8a   :  { %12414 = vmatpush1.bf16.msra.mxu0 %v16952_v27  ;;  %v17160_v27 = vcombine.low %v10878_v51, %v10882_v26  ;;  %v10838_v38 = vld [vmem:[#allocation31 + $0x698] sm:$0xff] }
 0xc8b   :  { %12455 = vmatpush1.bf16.msra.mxu1 %v17080_v13  ;;  %12415 = vmatprep.subr.bf16.mxu0 %v16945_v5  ;;  %v17025_v13 = vcombine.high %v10742_v21, %v10746_v29  ;;  %v17153_v5 = vcombine.high %v10870_v28, %v10874_v30  ;;  %v10842_v10 = vld [vmem:[#allocation31 + $0x6b8] sm:$0xff] }
 0xc8c   :  { %12456 = vmatprep.subr.bf16.mxu1 %v17073_v50  ;;  %v10734_v50 = vld [vmem:[#allocation31 + $0x358] sm:$0xff] }
 0xc8d   :  { %v17016_v62 = vcombine.low %v10734_v50, %v10738_v32  ;;  %v10706_v43 = vld [vmem:[#allocation31 + $0x278] sm:$0xff] }
 0xc8e   :  { %12416 = vmatpush1.bf16.msra.mxu0 %v16944_v14  ;;  %v17152_v14 = vcombine.low %v10870_v28, %v10874_v30  ;;  %v10830_v60 = vld [vmem:[#allocation31 + $0x658] sm:$0xff] }
 0xc8f   :  { %12457 = vmatpush1.bf16.msra.mxu1 %v17072_v31  ;;  %12417 = vmatprep.subr.bf16.mxu0 %v16937_v35  ;;  %v17017_v31 = vcombine.high %v10734_v50, %v10738_v32  ;;  %v17145_v35 = vcombine.high %v10862_v18, %v10866_v33  ;;  %v10834_v51 = vld [vmem:[#allocation31 + $0x678] sm:$0xff] }
 0xc90   :  { %12458 = vmatprep.subr.bf16.mxu1 %v17065_v11  ;;  %v10726_v11 = vld [vmem:[#allocation31 + $0x318] sm:$0xff] }
 0xc91   :  { %v17008_v2 = vcombine.low %v10726_v11, %v10730_v61  ;;  %v10698_v21 = vld [vmem:[#allocation31 + $0x238] sm:$0xff] }
 0xc92   :  { %12418 = vmatpush1.bf16.msra.mxu0 %v16936_v63  ;;  %v17144_v63 = vcombine.low %v10862_v18, %v10866_v33  ;;  %v10822_v29 = vld [vmem:[#allocation31 + $0x618] sm:$0xff] }
 0xc93   :  { %12459 = vmatpush1.bf16.msra.mxu1 %v17064_v40  ;;  %12419 = vmatprep.subr.bf16.mxu0 %v16929_v0  ;;  %v17009_v40 = vcombine.high %v10726_v11, %v10730_v61  ;;  %v17137_v0 = vcombine.high %v10854_v19, %v10858_v4  ;;  %v10826_v28 = vld [vmem:[#allocation31 + $0x638] sm:$0xff] }
 0xc94   :  { %12460 = vmatprep.subr.bf16.mxu1 %v17057_v37  ;;  %v10718_v37 = vld [vmem:[#allocation31 + $0x2d8] sm:$0xff]  ;;  %v17104_v50 = vcombine.low %v10822_v29, %v10826_v28 }
 0xc95   :  { %v17000_v1 = vcombine.low %v10718_v37, %v10722_v46  ;;  %v18889_v32 = vld [vmem:[#allocation34 + $0xe4] ss:$16 sps:$4 sm:$0xff]   ;;  %v18887_v33 = vld [vmem:[#allocation34 + $0xe0] ss:$16 sps:$4 sm:$0xff]  }
 0xc96   :  { %12420 = vmatpush1.bf16.msra.mxu0 %v16928_v59  ;;  %v17136_v59 = vcombine.low %v10854_v19, %v10858_v4  ;;  %v18901_v18 = vld [vmem:[#allocation34 + $0x2e4] ss:$16 sps:$4 sm:$0xff]   ;;  %v18890_v19 = vld [vmem:[#allocation34 + $0xc0] ss:$16 sps:$4 sm:$0xff]  }
 0xc97   :  { %12461 = vmatpush1.bf16.msra.mxu1 %v17056_v12  ;;  %12421 = vmatprep.subr.bf16.mxu0 %v16921_v36  ;;  %v17001_v12 = vcombine.high %v10718_v37, %v10722_v46  ;;  %v17129_v36 = vcombine.high %v10846_v3, %v10850_v6  ;;  %v20900_v61 = vld [vmem:[%s21064_s21] sm:$0xff] }
 0xc98   :  { %12462 = vmatprep.subr.bf16.mxu1 %v17049_v23  ;;  %v10710_v23 = vld [vmem:[#allocation31 + $0x298] sm:$0xff] }
 0xc99   :  { %v16992_v26 = vcombine.low %v10710_v23, %v10714_v34  ;;  %v18913_v37 = vld [vmem:[#allocation34 + $0x2a4] ss:$16 sps:$4 sm:$0xff]  }
 0xc9a   :  { %12422 = vmatpush1.bf16.msra.mxu0 %v16920_v41  ;;  %v17128_v41 = vcombine.low %v10846_v3, %v10850_v6 }
 0xc9b   :  { %12463 = vmatpush1.bf16.msra.mxu1 %v17048_v54  ;;  %12423 = vmatprep.subr.bf16.mxu0 %v16913_v52  ;;  %v16993_v54 = vcombine.high %v10710_v23, %v10714_v34  ;;  %v17121_v52 = vcombine.high %v10838_v38, %v10842_v10  ;;  %v18911_v23 = vld [vmem:[#allocation34 + $0x2a0] ss:$16 sps:$4 sm:$0xff]  }
 0xc9c   :  { %12464 = vmatprep.subr.bf16.mxu1 %v17041_v56  ;;  %v10702_v56 = vld [vmem:[#allocation31 + $0x258] sm:$0xff] }
 0xc9d   :  { %v16984_v30 = vcombine.low %v10702_v56, %v10706_v43 }
 0xc9e   :  { %12424 = vmatpush1.bf16.msra.mxu0 %v16912_v7  ;;  %v17120_v7 = vcombine.low %v10838_v38, %v10842_v10  ;;  %v18919_v38 = vld [vmem:[#allocation34 + $0x284] ss:$16 sps:$4 sm:$0xff]  }
 0xc9f   :  { %12465 = vmatpush1.bf16.msra.mxu1 %v17040_v57  ;;  %12425 = vmatprep.subr.bf16.mxu0 %v17033_v58  ;;  %v16985_v57 = vcombine.high %v10702_v56, %v10706_v43  ;;  %v17113_v58 = vcombine.high %v10830_v60, %v10834_v51  ;;  %v18925_v43 = vld [vmem:[#allocation34 + $0x264] ss:$16 sps:$4 sm:$0xff]  }
 0xca0   :  { %12466 = vmatprep.subr.bf16.mxu1 %v17161_v55  ;;  %v10694_v55 = vld [vmem:[#allocation31 + $0x218] sm:$0xff] }
 0xca2   :  { %12426 = vmatpush2.bf16.msra.mxu0 %v17032_v44  ;;  %v17112_v44 = vcombine.low %v10830_v60, %v10834_v51  ;;  %v18902_v60 = vld [vmem:[#allocation34 + $0x60] ss:$16 sps:$4 sm:$0xff]   ;;  %v18910_v51 = vld [vmem:[#allocation34 + $0x44] ss:$16 sps:$4 sm:$0xff]  }
 0xca3   :  { %12467 = vmatpush2.bf16.msra.mxu1 %v17160_v27  ;;  %12427 = vmatprep.subr.bf16.mxu0 %v17025_v13  ;;  %v16977_v27 = vcombine.high %v10694_v55, %v10698_v21  ;;  %v17105_v13 = vcombine.high %v10822_v29, %v10826_v28  ;;  %v18914_v29 = vld [vmem:[#allocation34 + $0x20] ss:$16 sps:$4 sm:$0xff]   ;;  %v18922_v28 = vld [vmem:[#allocation34 + $0x4] ss:$16 sps:$4 sm:$0xff]  }
 0xca4   :  { %12468 = vmatprep.subr.bf16.mxu1 %v17153_v5  ;;  %v16976_v5 = vcombine.low %v10694_v55, %v10698_v21  ;;  %v18929_v55 = vld [vmem:[#allocation34 + $0x240] ss:$16 sps:$4 sm:$0xff]   ;;  %v18937_v21 = vld [vmem:[#allocation34 + $0x224] ss:$16 sps:$4 sm:$0xff]  }
 0xca6   :  { %12428 = vmatpush2.bf16.msra.mxu0 %v17024_v22  ;;  %v18892_v22 = vld [vmem:[#allocation34 + $0xc4] ss:$16 sps:$4 sm:$0xff]  }
 0xca7   :  { %12469 = vmatpush2.bf16.msra.mxu1 %v17152_v14  ;;  %12429 = vmatprep.subr.bf16.mxu0 %v17017_v31  ;;  %v18899_v14 = vld [vmem:[#allocation34 + $0x2e0] ss:$16 sps:$4 sm:$0xff]   ;;  %v18907_v31 = vld [vmem:[#allocation34 + $0x2c4] ss:$16 sps:$4 sm:$0xff]  }
 0xca8   :  { %12470 = vmatprep.subr.bf16.mxu1 %v17145_v35 }
 0xcaa   :  { %12430 = vmatpush2.bf16.msra.mxu0 %v17016_v62  ;;  %v12500_v62 = vrot.slane %v20900_v61, %v20409_v25 }
 0xcab   :  { %12471 = vmatpush2.bf16.msra.mxu1 %v17144_v63  ;;  %12431 = vmatprep.subr.bf16.mxu0 %v17009_v40  ;;  %v18895_v63 = vld [vmem:[#allocation34 + $0xa4] ss:$16 sps:$4 sm:$0xff]   ;;  %v18905_v40 = vld [vmem:[#allocation34 + $0x2c0] ss:$16 sps:$4 sm:$0xff]  }
 0xcac   :  { %12472 = vmatprep.subr.bf16.mxu1 %v17137_v0  ;;  %v20904_v0 = vld [vmem:[#allocation32] sm:$0xff] }
 0xcad   :  { %v12550_v46 = vrot.slane %v20904_v0, %v20409_v25 }
 0xcae   :  { %12432 = vmatpush2.bf16.msra.mxu0 %v17008_v2  ;;  %v18893_v2 = vld [vmem:[#allocation34 + $0xa0] ss:$16 sps:$4 sm:$0xff]  }
 0xcaf   :  { %12473 = vmatpush2.bf16.msra.mxu1 %v17136_v59  ;;  %12433 = vmatprep.subr.bf16.mxu0 %v17001_v12 }
 0xcb0   :  { %12474 = vmatprep.subr.bf16.mxu1 %v17129_v36  ;;  %v18898_v36 = vld [vmem:[#allocation34 + $0x84] ss:$16 sps:$4 sm:$0xff]  }
 0xcb2   :  { %12434 = vmatpush2.bf16.msra.mxu0 %v17000_v1  ;;  %v18896_v1 = vld [vmem:[#allocation34 + $0x80] ss:$16 sps:$4 sm:$0xff]  }
 0xcb3   :  { %12475 = vmatpush2.bf16.msra.mxu1 %v17128_v41  ;;  %12435 = vmatprep.subr.bf16.mxu0 %v16993_v54  ;;  %v18904_v54 = vld [vmem:[#allocation34 + $0x64] ss:$16 sps:$4 sm:$0xff]  }
 0xcb4   :  { %12476 = vmatprep.subr.bf16.mxu1 %v17121_v52  ;;  %v18917_v52 = vld [vmem:[#allocation34 + $0x280] ss:$16 sps:$4 sm:$0xff]  }
 0xcb6   :  { %12436 = vmatpush2.bf16.msra.mxu0 %v16992_v26  ;;  %v18923_v26 = vld [vmem:[#allocation34 + $0x260] ss:$16 sps:$4 sm:$0xff]  }
 0xcb7   :  { %12477 = vmatpush2.bf16.msra.mxu1 %v17120_v7  ;;  %12437 = vmatprep.subr.bf16.mxu0 %v16985_v57  ;;  %v18931_v7 = vld [vmem:[#allocation34 + $0x244] ss:$16 sps:$4 sm:$0xff]   ;;  %v18908_v57 = vld [vmem:[#allocation34 + $0x40] ss:$16 sps:$4 sm:$0xff]  }
 0xcb8   :  { %12478 = vmatprep.subr.bf16.mxu1 %v17113_v58  ;;  %v18916_v58 = vld [vmem:[#allocation34 + $0x24] ss:$16 sps:$4 sm:$0xff]  }
 0xcba   :  { %12438 = vmatpush2.bf16.msra.mxu0 %v16984_v30  ;;  %v18935_v30 = vld [vmem:[#allocation34 + $0x220] ss:$16 sps:$4 sm:$0xff]  }
 0xcbb   :  { %12479 = vmatpush2.bf16.msra.mxu1 %v17112_v44  ;;  %12439 = vmatprep.subr.bf16.mxu0 %v16977_v27  ;;  %v18943_v44 = vld [vmem:[#allocation34 + $0x204] ss:$16 sps:$4 sm:$0xff]   ;;  %v18920_v27 = vld [vmem:[#allocation34] ss:$16 sps:$4 sm:$0xff]  }
 0xcbc   :  { %12480 = vmatprep.subr.bf16.mxu1 %v17105_v13  ;;  %v18928_v13 = vld [vmem:[#allocation34 + $0x1e4] ss:$16 sps:$4 sm:$0xff]  }
 0xcbe   :  { %12440 = vmatpush2.bf16.msra.mxu0 %v16976_v5  ;;  %v18941_v5 = vld [vmem:[#allocation34 + $0x200] ss:$16 sps:$4 sm:$0xff]  }
 0xcbf   :  { %12481 = vmatpush2.bf16.msra.mxu1 %v17104_v50  ;;  %14143 = vmatprep.subr.bf16.mxu0 %v18889_v32  ;;  %v18949_v50 = vld [vmem:[#allocation34 + $0x3e4] ss:$16 sps:$4 sm:$0xff]   ;;  %v18926_v32 = vld [vmem:[#allocation34 + $0x1e0] ss:$16 sps:$4 sm:$0xff]  }
 0xcc0   :  { %14184 = vmatprep.subr.bf16.mxu1 %v18901_v18  ;;  %v18934_v18 = vld [vmem:[#allocation34 + $0x1c4] ss:$16 sps:$4 sm:$0xff]  }
 0xcc1   :  { %12442 = vmatmul.mubr.bf16.vlgmr.msra.gmra.mxu0 %v20867_v49  ;;  %v20894_v35 = vpop.f32.mrf.mxu0 }
 0xcc2   :  { %12483 = vmatmul.mubr.bf16.vlgmr.msra.gmra.mxu1 %v20872_v16  ;;  %v20897_v11 = vpop.f32.mrf.mxu1  ;;  %14144 = vmatpush1.bf16.msra.mxu0 %v18887_v33  ;;  %v18947_v33 = vld [vmem:[#allocation34 + $0x3e0] ss:$16 sps:$4 sm:$0xff]  }
 0xcc3   :  { %v12199_v4 = vpop.f32.mrf.mxu0  ;;  %14145 = vmatprep.subr.bf16.mxu0 %v18892_v22  ;;  %14185 = vmatpush1.bf16.msra.mxu1 %v18899_v14  ;;  %v18955_v22 = vld [vmem:[#allocation34 + $0x3c4] ss:$16 sps:$4 sm:$0xff]   ;;  %v18932_v14 = vld [vmem:[#allocation34 + $0x1c0] ss:$16 sps:$4 sm:$0xff]  }
 0xcc4   :  { %v12240_v49 = vpop.f32.mrf.mxu1  ;;  %14186 = vmatprep.subr.bf16.mxu1 %v18907_v31  ;;  %v18940_v31 = vld [vmem:[#allocation34 + $0x1a4] ss:$16 sps:$4 sm:$0xff]  }
 0xcc5   :  { %v12241_v16 = vadd.f32 %v12240_v49, %v12199_v4  ;;  %v12201_v3 = vpop.f32.mrf.mxu0  ;;  %v18961_v4 = vld [vmem:[#allocation34 + $0x3a4] ss:$16 sps:$4 sm:$0xff]  }
 0xcc6   :  { %v12242_v6 = vpop.f32.mrf.mxu1  ;;  %14146 = vmatpush1.bf16.msra.mxu0 %v18890_v19  ;;  %v18953_v19 = vld [vmem:[#allocation34 + $0x3c0] ss:$16 sps:$4 sm:$0xff]   ;;  %v18967_v49 = vld [vmem:[#allocation34 + $0x384] ss:$16 sps:$4 sm:$0xff]  }
 0xcc7   :  { %v12534_v59 = vmul.f32 %v12500_v62, %v12241_v16  ;;  %v12202_v12 = vpop.f32.mrf.mxu0  ;;  %14147 = vmatprep.subr.bf16.mxu0 %v18895_v63  ;;  %14187 = vmatpush1.bf16.msra.mxu1 %v18905_v40  ;;  %v18938_v62 = vld [vmem:[#allocation34 + $0x1a0] ss:$16 sps:$4 sm:$0xff]   ;;  %v18946_v63 = vld [vmem:[#allocation34 + $0x184] ss:$16 sps:$4 sm:$0xff]  }
 0xcc8   :  { %v12243_v34 = vpop.f32.mrf.mxu1  ;;  %14188 = vmatprep.subr.bf16.mxu1 %v18913_v37  ;;  %v18959_v40 = vld [vmem:[#allocation34 + $0x3a0] ss:$16 sps:$4 sm:$0xff]   ;;  %v18952_v16 = vld [vmem:[#allocation34 + $0x164] ss:$16 sps:$4 sm:$0xff]  }
 0xcc9   :  { %v12584_v10 = vadd.f32 %v12550_v46, %v12534_v59  ;;  %v18944_v37 = vld [vmem:[#allocation34 + $0x180] ss:$16 sps:$4 sm:$0xff]   ;;  %v18973_v3 = vld [vmem:[#allocation34 + $0x364] ss:$16 sps:$4 sm:$0xff]   ;;  %v12496_v59 = vrot.slane %v20900_v61, %v20406_v24 }
 0xcca   :  { %14148 = vmatpush1.bf16.msra.mxu0 %v18893_v2  ;;  %v18965_v46 = vld [vmem:[#allocation34 + $0x380] ss:$16 sps:$4 sm:$0xff]   ;;  %v12239_v2 = vadd.f32 %v20897_v11, %v20894_v35  ;;  %v18958_v12 = vld [vmem:[#allocation34 + $0x144] ss:$16 sps:$4 sm:$0xff]  }
 0xccb   :  { %14149 = vmatprep.subr.bf16.mxu0 %v18898_v36  ;;  %v12592_v41 = vmax.f32 %v12584_v10, 0.0  ;;  %14189 = vmatpush1.bf16.msra.mxu1 %v18911_v23  ;;  %v18950_v6 = vld [vmem:[#allocation34 + $0x160] ss:$16 sps:$4 sm:$0xff]   ;;  %v18976_v23 = vld [vmem:[#allocation34 + $0x344] ss:$16 sps:$4 sm:$0xff]   ;;  %v12546_v10 = vrot.slane %v20904_v0, %v20406_v24 }
 0xccc   :  { %14190 = vmatprep.subr.bf16.mxu1 %v18919_v38  ;;  %v18971_v36 = vld [vmem:[#allocation34 + $0x360] ss:$16 sps:$4 sm:$0xff]   ;;  %v12533_v38 = vmul.f32 %v12496_v59, %v12239_v2  ;;  %v18979_v35 = vld [vmem:[#allocation34 + $0x324] ss:$16 sps:$4 sm:$0xff]  }
 0xccd   :  { %v20908_v56 = vpack.c.bf16 %v12592_v41, %v12592_v41  ;;  %v18956_v34 = vld [vmem:[#allocation34 + $0x140] ss:$16 sps:$4 sm:$0xff]   ;;  %v18997_v59 = vld [vmem:[#allocation34 + $0x464] ss:$16 sps:$4 sm:$0xff]  }
 0xcce   :  { %14150 = vmatpush1.bf16.msra.mxu0 %v18896_v1  ;;  %v18964_v1 = vld [vmem:[#allocation34 + $0x124] ss:$16 sps:$4 sm:$0xff]   ;;  %v18974_v41 = vld [vmem:[#allocation34 + $0x340] ss:$16 sps:$4 sm:$0xff]  }
 0xccf   :  { %14175 = vmatprep.mubr.bf16.mxu0 %v20908_v56  ;;  %14151 = vmatprep.subr.bf16.mxu0 %v18904_v54  ;;  %v18962_v11 = vld [vmem:[#allocation34 + $0x120] ss:$16 sps:$4 sm:$0xff]   ;;  %v12583_v54 = vadd.f32 %v12546_v10, %v12533_v38  ;;  %v19039_v38 = vld [vmem:[#allocation34 + $0x6c4] ss:$16 sps:$4 sm:$0xff]  }
 0xcd0   :  { %14191 = vmatpush1.bf16.msra.mxu1 %v18917_v52  ;;  %v18970_v52 = vld [vmem:[#allocation34 + $0x104] ss:$16 sps:$4 sm:$0xff]  }
 0xcd1   :  { %14192 = vmatprep.subr.bf16.mxu1 %v18925_v43  ;;  %v18977_v43 = vld [vmem:[#allocation34 + $0x320] ss:$16 sps:$4 sm:$0xff]   ;;  %v19000_v10 = vld [vmem:[#allocation34 + $0x444] ss:$16 sps:$4 sm:$0xff]  }
 0xcd2   :  { %14152 = vmatpush1.bf16.msra.mxu0 %v18902_v60  ;;  %v18982_v60 = vld [vmem:[#allocation34 + $0x304] ss:$16 sps:$4 sm:$0xff]  }
 0xcd3   :  { %14153 = vmatprep.subr.bf16.mxu0 %v18910_v51  ;;  %v18968_v51 = vld [vmem:[#allocation34 + $0x100] ss:$16 sps:$4 sm:$0xff]  }
 0xcd4   :  { %14193 = vmatpush1.bf16.msra.mxu1 %v18923_v26  ;;  %v12591_v26 = vmax.f32 %v12583_v54, 0.0  ;;  %v19043_v54 = vld [vmem:[#allocation34 + $0x6a0] ss:$16 sps:$4 sm:$0xff]  }
 0xcd5   :  { %14194 = vmatprep.subr.bf16.mxu1 %v18931_v7  ;;  %v18985_v7 = vld [vmem:[#allocation34 + $0x4e4] ss:$16 sps:$4 sm:$0xff]  }
 0xcd6   :  { %14154 = vmatpush1.bf16.msra.mxu0 %v18908_v57  ;;  %v18980_v57 = vld [vmem:[#allocation34 + $0x300] ss:$16 sps:$4 sm:$0xff]  }
 0xcd7   :  { %14155 = vmatprep.subr.bf16.mxu0 %v18916_v58  ;;  %v19033_v58 = vld [vmem:[#allocation34 + $0x6e4] ss:$16 sps:$4 sm:$0xff]  }
 0xcd8   :  { %14195 = vmatpush1.bf16.msra.mxu1 %v18929_v55  ;;  %v18983_v55 = vld [vmem:[#allocation34 + $0x4e0] ss:$16 sps:$4 sm:$0xff]  }
 0xcd9   :  { %14196 = vmatprep.subr.bf16.mxu1 %v18937_v21  ;;  %v20917_v21 = vpack.c.bf16 %v12591_v26, %v12591_v26  ;;  %v19004_v26 = vld [vmem:[#allocation34 + $0x400] ss:$16 sps:$4 sm:$0xff]  }
 0xcda   :  { %14156 = vmatpush1.bf16.msra.mxu0 %v18914_v29  ;;  %v18988_v29 = vld [vmem:[#allocation34 + $0x4c4] ss:$16 sps:$4 sm:$0xff]  }
 0xcdb   :  { %14157 = vmatprep.subr.bf16.mxu0 %v18922_v28 }
 0xcdc   :  { %14197 = vmatpush1.bf16.msra.mxu1 %v18935_v30  ;;  %v12504_v30 = vrot.slane %v20900_v61, %v20434_v39 }
 0xcdd   :  { %14198 = vmatprep.subr.bf16.mxu1 %v18943_v44 }
 0xcde   :  { %14158 = vmatpush1.bf16.msra.mxu0 %v18920_v27  ;;  %v18986_v27 = vld [vmem:[#allocation34 + $0x4c0] ss:$16 sps:$4 sm:$0xff]  }
 0xcdf   :  { %14159 = vmatprep.subr.bf16.mxu0 %v18928_v13 }
 0xce0   :  { %14199 = vmatpush1.bf16.msra.mxu1 %v18941_v5  ;;  %v12554_v5 = vrot.slane %v20904_v0, %v20434_v39 }
 0xce1   :  { %14200 = vmatprep.subr.bf16.mxu1 %v18949_v50 }
 0xce2   :  { %14160 = vmatpush2.bf16.msra.mxu0 %v18926_v32  ;;  %v12508_v32 = vrot.slane %v20900_v61, %v20437_v45 }
 0xce3   :  { %14161 = vmatprep.subr.bf16.mxu0 %v18934_v18  ;;  %v18991_v18 = vld [vmem:[#allocation34 + $0x4a4] ss:$16 sps:$4 sm:$0xff]  }
 0xce4   :  { %14201 = vmatpush2.bf16.msra.mxu1 %v18947_v33 }
 0xce5   :  { %14202 = vmatprep.subr.bf16.mxu1 %v18955_v22 }
 0xce6   :  { %14162 = vmatpush2.bf16.msra.mxu0 %v18932_v14 }
 0xce7   :  { %14163 = vmatprep.subr.bf16.mxu0 %v18940_v31  ;;  %v12558_v31 = vrot.slane %v20904_v0, %v20437_v45 }
 0xce8   :  { %14203 = vmatpush2.bf16.msra.mxu1 %v18953_v19 }
 0xce9   :  { %14204 = vmatprep.subr.bf16.mxu1 %v18961_v4 }
 0xcea   :  { %14164 = vmatpush2.bf16.msra.mxu0 %v18938_v62  ;;  %v18989_v62 = vld [vmem:[#allocation34 + $0x4a0] ss:$16 sps:$4 sm:$0xff]  }
 0xceb   :  { %14165 = vmatprep.subr.bf16.mxu0 %v18946_v63 }
 0xcec   :  { %14205 = vmatpush2.bf16.msra.mxu1 %v18959_v40 }
 0xced   :  { %14206 = vmatprep.subr.bf16.mxu1 %v18967_v49 }
 0xcee   :  { %14166 = vmatpush2.bf16.msra.mxu0 %v18944_v37  ;;  %v18994_v37 = vld [vmem:[#allocation34 + $0x484] ss:$16 sps:$4 sm:$0xff]  }
 0xcef   :  { %14167 = vmatprep.subr.bf16.mxu0 %v18952_v16 }
 0xcf0   :  { %14207 = vmatpush2.bf16.msra.mxu1 %v18965_v46 }
 0xcf1   :  { %14208 = vmatprep.subr.bf16.mxu1 %v18973_v3 }
 0xcf2   :  { %14168 = vmatpush2.bf16.msra.mxu0 %v18950_v6  ;;  %v18992_v6 = vld [vmem:[#allocation34 + $0x480] ss:$16 sps:$4 sm:$0xff]  }
 0xcf3   :  { %14169 = vmatprep.subr.bf16.mxu0 %v18958_v12 }
 0xcf4   :  { %14209 = vmatpush2.bf16.msra.mxu1 %v18971_v36  ;;  %v19031_v36 = vld [vmem:[#allocation34 + $0x6e0] ss:$16 sps:$4 sm:$0xff]  }
 0xcf5   :  { %14210 = vmatprep.subr.bf16.mxu1 %v18976_v23 }
 0xcf6   :  { %14170 = vmatpush2.bf16.msra.mxu0 %v18956_v34  ;;  %v18995_v34 = vld [vmem:[#allocation34 + $0x460] ss:$16 sps:$4 sm:$0xff]  }
 0xcf7   :  { %14171 = vmatprep.subr.bf16.mxu0 %v18964_v1  ;;  %v19037_v1 = vld [vmem:[#allocation34 + $0x6c0] ss:$16 sps:$4 sm:$0xff]  }
 0xcf8   :  { %14211 = vmatpush2.bf16.msra.mxu1 %v18974_v41  ;;  %v18998_v41 = vld [vmem:[#allocation34 + $0x440] ss:$16 sps:$4 sm:$0xff]  }
 0xcf9   :  { %14212 = vmatprep.subr.bf16.mxu1 %v18979_v35  ;;  %v19045_v35 = vld [vmem:[#allocation34 + $0x6a4] ss:$16 sps:$4 sm:$0xff]  }
 0xcfa   :  { %14172 = vmatpush2.bf16.msra.mxu0 %v18962_v11  ;;  %v19003_v11 = vld [vmem:[#allocation34 + $0x424] ss:$16 sps:$4 sm:$0xff]  }
 0xcfb   :  { %14173 = vmatprep.subr.bf16.mxu0 %v18970_v52  ;;  %v19001_v52 = vld [vmem:[#allocation34 + $0x420] ss:$16 sps:$4 sm:$0xff]  }
 0xcfc   :  { %14213 = vmatpush2.bf16.msra.mxu1 %v18977_v43  ;;  %v19051_v43 = vld [vmem:[#allocation34 + $0x684] ss:$16 sps:$4 sm:$0xff]  }
 0xcfd   :  { %14214 = vmatprep.subr.bf16.mxu1 %v18982_v60  ;;  %v19006_v60 = vld [vmem:[#allocation34 + $0x404] ss:$16 sps:$4 sm:$0xff]  }
 0xcfe   :  { %14174 = vmatpush2.bf16.msra.mxu0 %v18968_v51  ;;  %v19049_v51 = vld [vmem:[#allocation34 + $0x680] ss:$16 sps:$4 sm:$0xff]  }
 0xcff   :  { %14225 = vmatprep.subr.bf16.mxu0 %v18985_v7  ;;  %v19057_v7 = vld [vmem:[#allocation34 + $0x664] ss:$16 sps:$4 sm:$0xff]  }
 0xd00   :  { %14215 = vmatpush2.bf16.msra.mxu1 %v18980_v57  ;;  %v19009_v57 = vld [vmem:[#allocation34 + $0x5e4] ss:$16 sps:$4 sm:$0xff]  }
 0xd01   :  { %v12279_v28 = vpop.f32.mrf.mxu0  ;;  %14176 = vmatmul.mubr.bf16.vlgmr.msra.gmra.mxu0 %v20917_v21  ;;  %14266 = vmatprep.subr.bf16.mxu1 %v19033_v58  ;;  %v19055_v58 = vld [vmem:[#allocation34 + $0x660] ss:$16 sps:$4 sm:$0xff]  }
 0xd02   :  { %v12320_v44 = vpop.f32.mrf.mxu1  ;;  %14226 = vmatpush1.bf16.msra.mxu0 %v18983_v55  ;;  %v19007_v55 = vld [vmem:[#allocation34 + $0x5e0] ss:$16 sps:$4 sm:$0xff]  }
 0xd03   :  { %v12321_v13 = vadd.f32 %v12320_v44, %v12279_v28  ;;  %v12281_v50 = vpop.f32.mrf.mxu0  ;;  %14227 = vmatprep.subr.bf16.mxu0 %v18988_v29  ;;  %v19063_v29 = vld [vmem:[#allocation34 + $0x644] ss:$16 sps:$4 sm:$0xff]   ;;  %v19010_v44 = vld [vmem:[#allocation34 + $0x5c0] ss:$16 sps:$4 sm:$0xff]  }
 0xd04   :  { %v12322_v33 = vpop.f32.mrf.mxu1  ;;  %v19012_v28 = vld [vmem:[#allocation34 + $0x5c4] ss:$16 sps:$4 sm:$0xff]  }
 0xd05   :  { %v12535_v22 = vmul.f32 %v12504_v30, %v12321_v13  ;;  %v12323_v14 = vadd.f32 %v12322_v33, %v12281_v50  ;;  %v12283_v19 = vpop.f32.mrf.mxu0  ;;  %v19061_v30 = vld [vmem:[#allocation34 + $0x640] ss:$16 sps:$4 sm:$0xff]   ;;  %v19015_v13 = vld [vmem:[#allocation34 + $0x5a4] ss:$16 sps:$4 sm:$0xff]  }
 0xd06   :  { %v12324_v4 = vpop.f32.mrf.mxu1  ;;  %14228 = vmatpush1.bf16.msra.mxu0 %v18986_v27  ;;  %v19069_v27 = vld [vmem:[#allocation34 + $0x624] ss:$16 sps:$4 sm:$0xff]   ;;  %v19013_v50 = vld [vmem:[#allocation34 + $0x5a0] ss:$16 sps:$4 sm:$0xff]  }
 0xd07   :  { %v12585_v63 = vadd.f32 %v12554_v5, %v12535_v22  ;;  %v12536_v40 = vmul.f32 %v12508_v32, %v12323_v14  ;;  %v12284_v49 = vpop.f32.mrf.mxu0  ;;  %14229 = vmatprep.subr.bf16.mxu0 %v18991_v18  ;;  %v19067_v5 = vld [vmem:[#allocation34 + $0x620] ss:$16 sps:$4 sm:$0xff]   ;;  %v19075_v32 = vld [vmem:[#allocation34 + $0x604] ss:$16 sps:$4 sm:$0xff]  }
 0xd08   :  { %v12325_v16 = vpop.f32.mrf.mxu1  ;;  %v19018_v18 = vld [vmem:[#allocation34 + $0x584] ss:$16 sps:$4 sm:$0xff]   ;;  %v19073_v33 = vld [vmem:[#allocation34 + $0x600] ss:$16 sps:$4 sm:$0xff]  }
 0xd09   :  { %v12586_v46 = vadd.f32 %v12558_v31, %v12536_v40  ;;  %v12593_v3 = vmax.f32 %v12585_v63, 0.0  ;;  %v19016_v22 = vld [vmem:[#allocation34 + $0x580] ss:$16 sps:$4 sm:$0xff]   ;;  %v19081_v14 = vld [vmem:[#allocation34 + $0x7e4] ss:$16 sps:$4 sm:$0xff]  }
 0xd0a   :  { %14230 = vmatpush1.bf16.msra.mxu0 %v18989_v62  ;;  %v19021_v31 = vld [vmem:[#allocation34 + $0x564] ss:$16 sps:$4 sm:$0xff]   ;;  %v19079_v19 = vld [vmem:[#allocation34 + $0x7e0] ss:$16 sps:$4 sm:$0xff]  }
 0xd0b   :  { %v12594_v2 = vmax.f32 %v12586_v46, 0.0  ;;  %14231 = vmatprep.subr.bf16.mxu0 %v18994_v37  ;;  %v20930_v23 = vpack.c.bf16 %v12593_v3, %v12593_v3  ;;  %v19019_v4 = vld [vmem:[#allocation34 + $0x560] ss:$16 sps:$4 sm:$0xff]   ;;  %v19087_v62 = vld [vmem:[#allocation34 + $0x7c4] ss:$16 sps:$4 sm:$0xff]  }
 0xd0c   :  { %v19024_v63 = vld [vmem:[#allocation34 + $0x544] ss:$16 sps:$4 sm:$0xff]   ;;  %v19085_v40 = vld [vmem:[#allocation34 + $0x7c0] ss:$16 sps:$4 sm:$0xff]  }
 0xd0d   :  { %v20928_v12 = vpack.c.bf16 %v12594_v2, %v12594_v2  ;;  %v19022_v49 = vld [vmem:[#allocation34 + $0x540] ss:$16 sps:$4 sm:$0xff]   ;;  %v19093_v37 = vld [vmem:[#allocation34 + $0x7a4] ss:$16 sps:$4 sm:$0xff]  }
 0xd0e   :  { %14232 = vmatpush1.bf16.msra.mxu0 %v18992_v6  ;;  %v19027_v16 = vld [vmem:[#allocation34 + $0x524] ss:$16 sps:$4 sm:$0xff]   ;;  %v19091_v46 = vld [vmem:[#allocation34 + $0x7a0] ss:$16 sps:$4 sm:$0xff]  }
 0xd0f   :  { %14216 = vmatprep.mubr.bf16.mxu1 %v20928_v12  ;;  %14233 = vmatprep.subr.bf16.mxu0 %v18997_v59  ;;  %v19025_v3 = vld [vmem:[#allocation34 + $0x520] ss:$16 sps:$4 sm:$0xff]   ;;  %v19099_v6 = vld [vmem:[#allocation34 + $0x784] ss:$16 sps:$4 sm:$0xff]  }
 0xd10   :  { %14217 = vmatmul.mubr.bf16.vlgmr.msra.gmra.mxu1 %v20930_v23  ;;  %v19030_v2 = vld [vmem:[#allocation34 + $0x504] ss:$16 sps:$4 sm:$0xff]   ;;  %v19097_v59 = vld [vmem:[#allocation34 + $0x780] ss:$16 sps:$4 sm:$0xff]  }
 0xd11   :  { %14267 = vmatpush1.bf16.msra.mxu1 %v19031_v36  ;;  %v19028_v36 = vld [vmem:[#allocation34 + $0x500] ss:$16 sps:$4 sm:$0xff]  }
 0xd12   :  { %14234 = vmatpush1.bf16.msra.mxu0 %v18995_v34  ;;  %14268 = vmatprep.subr.bf16.mxu1 %v19039_v38  ;;  %v19105_v34 = vld [vmem:[#allocation34 + $0x764] ss:$16 sps:$4 sm:$0xff]   ;;  %v19036_v38 = vld [vmem:[#allocation34 + $0xec] ss:$16 sps:$4 sm:$0xff]  }
 0xd13   :  { %14235 = vmatprep.subr.bf16.mxu0 %v19000_v10  ;;  %v19103_v10 = vld [vmem:[#allocation34 + $0x760] ss:$16 sps:$4 sm:$0xff]  }
 0xd15   :  { %14269 = vmatpush1.bf16.msra.mxu1 %v19037_v1  ;;  %v19111_v1 = vld [vmem:[#allocation34 + $0x744] ss:$16 sps:$4 sm:$0xff]  }
 0xd16   :  { %14236 = vmatpush1.bf16.msra.mxu0 %v18998_v41  ;;  %14270 = vmatprep.subr.bf16.mxu1 %v19045_v35  ;;  %v12512_v35 = vrot.slane %v20900_v61, %v20520_v9 }
 0xd17   :  { %14237 = vmatprep.subr.bf16.mxu0 %v19003_v11  ;;  %v19109_v11 = vld [vmem:[#allocation34 + $0x740] ss:$16 sps:$4 sm:$0xff]  }
 0xd19   :  { %14271 = vmatpush1.bf16.msra.mxu1 %v19043_v54 }
 0xd1a   :  { %14238 = vmatpush1.bf16.msra.mxu0 %v19001_v52  ;;  %14272 = vmatprep.subr.bf16.mxu1 %v19051_v43  ;;  %v19117_v52 = vld [vmem:[#allocation34 + $0x724] ss:$16 sps:$4 sm:$0xff]  }
 0xd1b   :  { %14239 = vmatprep.subr.bf16.mxu0 %v19006_v60  ;;  %v12562_v60 = vrot.slane %v20904_v0, %v20520_v9 }
 0xd1d   :  { %14273 = vmatpush1.bf16.msra.mxu1 %v19049_v51 }
 0xd1e   :  { %14240 = vmatpush1.bf16.msra.mxu0 %v19004_v26  ;;  %14274 = vmatprep.subr.bf16.mxu1 %v19057_v7  ;;  %v12516_v26 = vrot.slane %v20900_v61, %v20523_v20 }
 0xd1f   :  { %14241 = vmatprep.subr.bf16.mxu0 %v19009_v57 }
 0xd21   :  { %14275 = vmatpush1.bf16.msra.mxu1 %v19055_v58 }
 0xd22   :  { %14242 = vmatpush2.bf16.msra.mxu0 %v19007_v55  ;;  %14276 = vmatprep.subr.bf16.mxu1 %v19063_v29  ;;  %v12566_v55 = vrot.slane %v20904_v0, %v20523_v20  ;;  %v19034_v20 = vld [vmem:[#allocation34 + $0xe8] ss:$16 sps:$4 sm:$0xff]  }
 0xd23   :  { %14243 = vmatprep.subr.bf16.mxu0 %v19012_v28  ;;  %v19115_v28 = vld [vmem:[#allocation34 + $0x720] ss:$16 sps:$4 sm:$0xff]  }
 0xd25   :  { %14277 = vmatpush1.bf16.msra.mxu1 %v19061_v30 }
 0xd26   :  { %14244 = vmatpush2.bf16.msra.mxu0 %v19010_v44  ;;  %14278 = vmatprep.subr.bf16.mxu1 %v19069_v27  ;;  %v19123_v44 = vld [vmem:[#allocation34 + $0x704] ss:$16 sps:$4 sm:$0xff]  }
 0xd27   :  { %14245 = vmatprep.subr.bf16.mxu0 %v19015_v13 }
 0xd29   :  { %14279 = vmatpush1.bf16.msra.mxu1 %v19067_v5 }
 0xd2a   :  { %14246 = vmatpush2.bf16.msra.mxu0 %v19013_v50  ;;  %14280 = vmatprep.subr.bf16.mxu1 %v19075_v32  ;;  %v19121_v32 = vld [vmem:[#allocation34 + $0x700] ss:$16 sps:$4 sm:$0xff]  }
 0xd2b   :  { %14247 = vmatprep.subr.bf16.mxu0 %v19018_v18 }
 0xd2d   :  { %14281 = vmatpush1.bf16.msra.mxu1 %v19073_v33  ;;  %v19129_v33 = vld [vmem:[#allocation34 + $0x2ec] ss:$16 sps:$4 sm:$0xff]  }
 0xd2e   :  { %14248 = vmatpush2.bf16.msra.mxu0 %v19016_v22  ;;  %14282 = vmatprep.subr.bf16.mxu1 %v19081_v14 }
 0xd2f   :  { %14249 = vmatprep.subr.bf16.mxu0 %v19021_v31 }
 0xd31   :  { %14283 = vmatpush2.bf16.msra.mxu1 %v19079_v19  ;;  %v19042_v19 = vld [vmem:[#allocation34 + $0xcc] ss:$16 sps:$4 sm:$0xff]  }
 0xd32   :  { %14250 = vmatpush2.bf16.msra.mxu0 %v19019_v4  ;;  %14284 = vmatprep.subr.bf16.mxu1 %v19087_v62  ;;  %v19040_v4 = vld [vmem:[#allocation34 + $0xc8] ss:$16 sps:$4 sm:$0xff]   ;;  %v19048_v62 = vld [vmem:[#allocation34 + $0xac] ss:$16 sps:$4 sm:$0xff]  }
 0xd33   :  { %14251 = vmatprep.subr.bf16.mxu0 %v19024_v63  ;;  %v19046_v63 = vld [vmem:[#allocation34 + $0xa8] ss:$16 sps:$4 sm:$0xff]  }
 0xd35   :  { %14285 = vmatpush2.bf16.msra.mxu1 %v19085_v40  ;;  %v19054_v40 = vld [vmem:[#allocation34 + $0x8c] ss:$16 sps:$4 sm:$0xff]  }
 0xd36   :  { %14252 = vmatpush2.bf16.msra.mxu0 %v19022_v49  ;;  %14286 = vmatprep.subr.bf16.mxu1 %v19093_v37  ;;  %v19052_v49 = vld [vmem:[#allocation34 + $0x88] ss:$16 sps:$4 sm:$0xff]   ;;  %v19060_v37 = vld [vmem:[#allocation34 + $0x6c] ss:$16 sps:$4 sm:$0xff]  }
 0xd37   :  { %14253 = vmatprep.subr.bf16.mxu0 %v19027_v16  ;;  %v19058_v16 = vld [vmem:[#allocation34 + $0x68] ss:$16 sps:$4 sm:$0xff]  }
 0xd39   :  { %14287 = vmatpush2.bf16.msra.mxu1 %v19091_v46  ;;  %v19066_v46 = vld [vmem:[#allocation34 + $0x4c] ss:$16 sps:$4 sm:$0xff]  }
 0xd3a   :  { %14254 = vmatpush2.bf16.msra.mxu0 %v19025_v3  ;;  %14288 = vmatprep.subr.bf16.mxu1 %v19099_v6  ;;  %v19064_v3 = vld [vmem:[#allocation34 + $0x48] ss:$16 sps:$4 sm:$0xff]   ;;  %v19072_v6 = vld [vmem:[#allocation34 + $0x2c] ss:$16 sps:$4 sm:$0xff]  }
 0xd3b   :  { %14255 = vmatprep.subr.bf16.mxu0 %v19030_v2  ;;  %v19078_v2 = vld [vmem:[#allocation34 + $0xc] ss:$16 sps:$4 sm:$0xff]  }
 0xd3d   :  { %14289 = vmatpush2.bf16.msra.mxu1 %v19097_v59  ;;  %v19076_v59 = vld [vmem:[#allocation34 + $0x8] ss:$16 sps:$4 sm:$0xff]  }
 0xd3e   :  { %14256 = vmatpush2.bf16.msra.mxu0 %v19028_v36  ;;  %14290 = vmatprep.subr.bf16.mxu1 %v19105_v34  ;;  %v19084_v36 = vld [vmem:[#allocation34 + $0x1ec] ss:$16 sps:$4 sm:$0xff]   ;;  %v19082_v34 = vld [vmem:[#allocation34 + $0x1e8] ss:$16 sps:$4 sm:$0xff]  }
 0xd3f   :  { %14307 = vmatprep.subr.bf16.mxu0 %v19036_v38  ;;  %v19090_v38 = vld [vmem:[#allocation34 + $0x1cc] ss:$16 sps:$4 sm:$0xff]  }
 0xd41   :  { %v12361_v41 = vpop.f32.mrf.mxu0  ;;  %14291 = vmatpush2.bf16.msra.mxu1 %v19103_v10  ;;  %v19088_v10 = vld [vmem:[#allocation34 + $0x1c8] ss:$16 sps:$4 sm:$0xff]  }
 0xd42   :  { %v12402_v54 = vpop.f32.mrf.mxu1  ;;  %14292 = vmatprep.subr.bf16.mxu1 %v19111_v1  ;;  %v19096_v1 = vld [vmem:[#allocation34 + $0x1ac] ss:$16 sps:$4 sm:$0xff]  }
 0xd43   :  { %v12403_v43 = vadd.f32 %v12402_v54, %v12361_v41  ;;  %v12363_v51 = vpop.f32.mrf.mxu0  ;;  %v19094_v41 = vld [vmem:[#allocation34 + $0x1a8] ss:$16 sps:$4 sm:$0xff]   ;;  %v19108_v54 = vld [vmem:[#allocation34 + $0x16c] ss:$16 sps:$4 sm:$0xff]  }
 0xd44   :  { %v12404_v7 = vpop.f32.mrf.mxu1 }
 0xd45   :  { %v12537_v57 = vmul.f32 %v12512_v35, %v12403_v43  ;;  %v12405_v58 = vadd.f32 %v12404_v7, %v12363_v51  ;;  %v12365_v29 = vpop.f32.mrf.mxu0  ;;  %14293 = vmatpush2.bf16.msra.mxu1 %v19109_v11  ;;  %v19102_v35 = vld [vmem:[#allocation34 + $0x18c] ss:$16 sps:$4 sm:$0xff]   ;;  %v19100_v11 = vld [vmem:[#allocation34 + $0x188] ss:$16 sps:$4 sm:$0xff]   ;;  %v12520_v51 = vrot.slane %v20900_v61, %v20547_v42 }
 0xd46   :  { %v12406_v30 = vpop.f32.mrf.mxu1  ;;  %14294 = vmatprep.subr.bf16.mxu1 %v19117_v52  ;;  %v19106_v52 = vld [vmem:[#allocation34 + $0x168] ss:$16 sps:$4 sm:$0xff]   ;;  %v19114_v43 = vld [vmem:[#allocation34 + $0x14c] ss:$16 sps:$4 sm:$0xff]  }
 0xd47   :  { %v12587_v27 = vadd.f32 %v12562_v60, %v12537_v57  ;;  %v12538_v13 = vmul.f32 %v12516_v26, %v12405_v58  ;;  %v12366_v5 = vpop.f32.mrf.mxu0  ;;  %v19112_v26 = vld [vmem:[#allocation34 + $0x148] ss:$16 sps:$4 sm:$0xff]   ;;  %v19120_v57 = vld [vmem:[#allocation34 + $0x12c] ss:$16 sps:$4 sm:$0xff]  }
 0xd48   :  { %v12407_v9 = vpop.f32.mrf.mxu1 }
 0xd49   :  { %v12588_v50 = vadd.f32 %v12566_v55, %v12538_v13  ;;  %14295 = vmatpush2.bf16.msra.mxu1 %v19115_v28  ;;  %v12595_v18 = vmax.f32 %v12587_v27, 0.0  ;;  %v12570_v55 = vrot.slane %v20904_v0, %v20547_v42  ;;  %v12524_v28 = vrot.slane %v20900_v61, %v20550_v48  ;;  %v19118_v9 = vld [vmem:[#allocation34 + $0x128] ss:$16 sps:$4 sm:$0xff]  }
 0xd4a   :  { %14296 = vmatprep.subr.bf16.mxu1 %v19123_v44  ;;  %v12574_v13 = vrot.slane %v20904_v0, %v20550_v48  ;;  %v19127_v48 = vld [vmem:[#allocation34 + $0x2e8] ss:$16 sps:$4 sm:$0xff]  }
 0xd4b   :  { %v12596_v22 = vmax.f32 %v12588_v50, 0.0  ;;  %v20944_v31 = vpack.c.bf16 %v12595_v18, %v12595_v18  ;;  %v19130_v0 = vld [vmem:[#allocation34 + $0x4e8] ss:$16 sps:$4 sm:$0xff]  }
 0xd4d   :  { %v20942_v14 = vpack.c.bf16 %v12596_v22, %v12596_v22  ;;  %14297 = vmatpush2.bf16.msra.mxu1 %v19121_v32  ;;  %v19126_v32 = vld [vmem:[#allocation34 + $0x10c] ss:$16 sps:$4 sm:$0xff]  }
 0xd4e   :  { %14348 = vmatprep.subr.bf16.mxu1 %v19129_v33 }
 0xd4f   :  { %14257 = vmatprep.mubr.bf16.mxu0 %v20942_v14 }
 0xd50   :  { %14258 = vmatmul.mubr.bf16.vlgmr.msra.gmra.mxu0 %v20944_v31 }
 0xd51   :  { %14308 = vmatpush1.bf16.msra.mxu0 %v19034_v20  ;;  %14339 = vmatprep.mubr.bf16.mxu0 %v20908_v56  ;;  %v19070_v56 = vld [vmem:[#allocation34 + $0x28] ss:$16 sps:$4 sm:$0xff]  }
 0xd52   :  { %14309 = vmatprep.subr.bf16.mxu0 %v19042_v19  ;;  %v19124_v19 = vld [vmem:[#allocation34 + $0x108] ss:$16 sps:$4 sm:$0xff]  }
 0xd55   :  { %14310 = vmatpush1.bf16.msra.mxu0 %v19040_v4  ;;  %v19132_v4 = vld [vmem:[#allocation34 + $0x4ec] ss:$16 sps:$4 sm:$0xff]  }
 0xd56   :  { %14311 = vmatprep.subr.bf16.mxu0 %v19048_v62 }
 0xd59   :  { %14312 = vmatpush1.bf16.msra.mxu0 %v19046_v63 }
 0xd5a   :  { %14313 = vmatprep.subr.bf16.mxu0 %v19054_v40 }
 0xd5d   :  { %14314 = vmatpush1.bf16.msra.mxu0 %v19052_v49  ;;  %v19135_v49 = vld [vmem:[#allocation34 + $0x2cc] ss:$16 sps:$4 sm:$0xff]  }
 0xd5e   :  { %14315 = vmatprep.subr.bf16.mxu0 %v19060_v37  ;;  %v19138_v37 = vld [vmem:[#allocation34 + $0x4cc] ss:$16 sps:$4 sm:$0xff]  }
 0xd61   :  { %14316 = vmatpush1.bf16.msra.mxu0 %v19058_v16  ;;  %v19133_v16 = vld [vmem:[#allocation34 + $0x2c8] ss:$16 sps:$4 sm:$0xff]  }
 0xd62   :  { %14317 = vmatprep.subr.bf16.mxu0 %v19066_v46  ;;  %v19136_v46 = vld [vmem:[#allocation34 + $0x4c8] ss:$16 sps:$4 sm:$0xff]  }
 0xd65   :  { %14318 = vmatpush1.bf16.msra.mxu0 %v19064_v3  ;;  %v19141_v3 = vld [vmem:[#allocation34 + $0x2ac] ss:$16 sps:$4 sm:$0xff]  }
 0xd66   :  { %14319 = vmatprep.subr.bf16.mxu0 %v19072_v6  ;;  %v19144_v6 = vld [vmem:[#allocation34 + $0x4ac] ss:$16 sps:$4 sm:$0xff]  }
 0xd69   :  { %14320 = vmatpush1.bf16.msra.mxu0 %v19070_v56  ;;  %v19139_v56 = vld [vmem:[#allocation34 + $0x2a8] ss:$16 sps:$4 sm:$0xff]  }
 0xd6a   :  { %14321 = vmatprep.subr.bf16.mxu0 %v19078_v2  ;;  %v19142_v2 = vld [vmem:[#allocation34 + $0x4a8] ss:$16 sps:$4 sm:$0xff]  }
 0xd6d   :  { %14322 = vmatpush1.bf16.msra.mxu0 %v19076_v59  ;;  %v19150_v59 = vld [vmem:[#allocation34 + $0x48c] ss:$16 sps:$4 sm:$0xff]  }
 0xd6e   :  { %14323 = vmatprep.subr.bf16.mxu0 %v19084_v36  ;;  %v19145_v36 = vld [vmem:[#allocation34 + $0x288] ss:$16 sps:$4 sm:$0xff]  }
 0xd71   :  { %14324 = vmatpush2.bf16.msra.mxu0 %v19082_v34  ;;  %v19148_v34 = vld [vmem:[#allocation34 + $0x488] ss:$16 sps:$4 sm:$0xff]  }
 0xd72   :  { %14325 = vmatprep.subr.bf16.mxu0 %v19090_v38  ;;  %v19151_v38 = vld [vmem:[#allocation34 + $0x268] ss:$16 sps:$4 sm:$0xff]  }
 0xd75   :  { %14326 = vmatpush2.bf16.msra.mxu0 %v19088_v10  ;;  %v19154_v10 = vld [vmem:[#allocation34 + $0x468] ss:$16 sps:$4 sm:$0xff]  }
 0xd76   :  { %14327 = vmatprep.subr.bf16.mxu0 %v19096_v1  ;;  %v19159_v1 = vld [vmem:[#allocation34 + $0x24c] ss:$16 sps:$4 sm:$0xff]  }
 0xd79   :  { %14328 = vmatpush2.bf16.msra.mxu0 %v19094_v41  ;;  %v19162_v41 = vld [vmem:[#allocation34 + $0x44c] ss:$16 sps:$4 sm:$0xff]  }
 0xd7a   :  { %14329 = vmatprep.subr.bf16.mxu0 %v19102_v35  ;;  %v19157_v35 = vld [vmem:[#allocation34 + $0x248] ss:$16 sps:$4 sm:$0xff]  }
 0xd7d   :  { %14330 = vmatpush2.bf16.msra.mxu0 %v19100_v11  ;;  %v19160_v11 = vld [vmem:[#allocation34 + $0x448] ss:$16 sps:$4 sm:$0xff]  }
 0xd7e   :  { %14331 = vmatprep.subr.bf16.mxu0 %v19108_v54  ;;  %v19165_v54 = vld [vmem:[#allocation34 + $0x22c] ss:$16 sps:$4 sm:$0xff]  }
 0xd81   :  { %14332 = vmatpush2.bf16.msra.mxu0 %v19106_v52  ;;  %v12443_v60 = vpop.f32.mrf.mxu0  ;;  %v19168_v52 = vld [vmem:[#allocation34 + $0x42c] ss:$16 sps:$4 sm:$0xff]  }
 0xd82   :  { %v12484_v7 = vpop.f32.mrf.mxu1  ;;  %14333 = vmatprep.subr.bf16.mxu0 %v19114_v43  ;;  %v19163_v43 = vld [vmem:[#allocation34 + $0x228] ss:$16 sps:$4 sm:$0xff]  }
 0xd83   :  { %v12485_v58 = vadd.f32 %v12484_v7, %v12443_v60  ;;  %v12445_v29 = vpop.f32.mrf.mxu0  ;;  %v19166_v60 = vld [vmem:[#allocation34 + $0x428] ss:$16 sps:$4 sm:$0xff]  }
 0xd84   :  { %v12486_v30 = vpop.f32.mrf.mxu1  ;;  %v19169_v7 = vld [vmem:[#allocation34 + $0x208] ss:$16 sps:$4 sm:$0xff]  }
 0xd85   :  { %v12539_v44 = vmul.f32 %v12520_v51, %v12485_v58  ;;  %v12487_v27 = vadd.f32 %v12486_v30, %v12445_v29  ;;  %14334 = vmatpush2.bf16.msra.mxu0 %v19112_v26  ;;  %v12447_v5 = vpop.f32.mrf.mxu0  ;;  %v19171_v51 = vld [vmem:[#allocation34 + $0x20c] ss:$16 sps:$4 sm:$0xff]   ;;  %v19175_v29 = vld [vmem:[#allocation34 + $0x3e8] ss:$16 sps:$4 sm:$0xff]  }
 0xd86   :  { %v12488_v50 = vpop.f32.mrf.mxu1  ;;  %14335 = vmatprep.subr.bf16.mxu0 %v19120_v57  ;;  %v19174_v26 = vld [vmem:[#allocation34 + $0x40c] ss:$16 sps:$4 sm:$0xff]   ;;  %v19172_v57 = vld [vmem:[#allocation34 + $0x408] ss:$16 sps:$4 sm:$0xff]  }
 0xd87   :  { %v12589_v18 = vadd.f32 %v12570_v55, %v12539_v44  ;;  %v12540_v33 = vmul.f32 %v12524_v28, %v12487_v27  ;;  %v12448_v22 = vpop.f32.mrf.mxu0  ;;  %v19177_v58 = vld [vmem:[#allocation34 + $0x3ec] ss:$16 sps:$4 sm:$0xff]   ;;  %v19178_v28 = vld [vmem:[#allocation34 + $0x5e8] ss:$16 sps:$4 sm:$0xff]  }
 0xd88   :  { %v12489_v42 = vpop.f32.mrf.mxu1  ;;  %v19180_v55 = vld [vmem:[#allocation34 + $0x5ec] ss:$16 sps:$4 sm:$0xff]   ;;  %v19181_v27 = vld [vmem:[#allocation34 + $0x3c8] ss:$16 sps:$4 sm:$0xff]  }
 0xd89   :  { %v12590_v20 = vadd.f32 %v12574_v13, %v12540_v33  ;;  %14336 = vmatpush2.bf16.msra.mxu0 %v19118_v9  ;;  %v12597_v61 = vmax.f32 %v12589_v18, 0.0  ;;  %v19183_v30 = vld [vmem:[#allocation34 + $0x3cc] ss:$16 sps:$4 sm:$0xff]   ;;  %v19184_v13 = vld [vmem:[#allocation34 + $0x5c8] ss:$16 sps:$4 sm:$0xff]  }
 0xd8a   :  { %14337 = vmatprep.subr.bf16.mxu0 %v19126_v32  ;;  %v19186_v44 = vld [vmem:[#allocation34 + $0x5cc] ss:$16 sps:$4 sm:$0xff]   ;;  %v19187_v50 = vld [vmem:[#allocation34 + $0x3a8] ss:$16 sps:$4 sm:$0xff]  }
 0xd8b   :  { %v12598_v62 = vmax.f32 %v12590_v20, 0.0  ;;  %v20959_v40 = vpack.c.bf16 %v12597_v61, %v12597_v61  ;;  %v19189_v5 = vld [vmem:[#allocation34 + $0x3ac] ss:$16 sps:$4 sm:$0xff]   ;;  %v19190_v32 = vld [vmem:[#allocation34 + $0x5a8] ss:$16 sps:$4 sm:$0xff]  }
 0xd8c   :  { %v19192_v9 = vld [vmem:[#allocation34 + $0x5ac] ss:$16 sps:$4 sm:$0xff]   ;;  %v19193_v22 = vld [vmem:[#allocation34 + $0x388] ss:$16 sps:$4 sm:$0xff]  }
 0xd8d   :  { %14338 = vmatpush2.bf16.msra.mxu0 %v19124_v19  ;;  %v20957_v63 = vpack.c.bf16 %v12598_v62, %v12598_v62  ;;  %v19195_v18 = vld [vmem:[#allocation34 + $0x38c] ss:$16 sps:$4 sm:$0xff]   ;;  %v19196_v42 = vld [vmem:[#allocation34 + $0x588] ss:$16 sps:$4 sm:$0xff]  }
 0xd8e   :  { %14389 = vmatprep.subr.bf16.mxu0 %v19132_v4  ;;  %v19198_v33 = vld [vmem:[#allocation34 + $0x58c] ss:$16 sps:$4 sm:$0xff]   ;;  %v19199_v61 = vld [vmem:[#allocation34 + $0x368] ss:$16 sps:$4 sm:$0xff]  }
 0xd8f   :  { %14298 = vmatprep.mubr.bf16.mxu1 %v20957_v63  ;;  %v19201_v20 = vld [vmem:[#allocation34 + $0x36c] ss:$16 sps:$4 sm:$0xff]   ;;  %v19202_v4 = vld [vmem:[#allocation34 + $0x568] ss:$16 sps:$4 sm:$0xff]  }
 0xd90   :  { %14340 = vmatmul.mubr.bf16.vlgmr.msra.gmra.mxu0 %v20917_v21  ;;  %14299 = vmatmul.mubr.bf16.vlgmr.msra.gmra.mxu1 %v20959_v40  ;;  %v19147_v21 = vld [vmem:[#allocation34 + $0x28c] ss:$16 sps:$4 sm:$0xff]  }
 0xd91   :  { %14349 = vmatpush1.bf16.msra.mxu1 %v19127_v48  ;;  %14390 = vmatpush1.bf16.msra.mxu0 %v19130_v0  ;;  %v19204_v19 = vld [vmem:[#allocation34 + $0x56c] ss:$16 sps:$4 sm:$0xff]  }
 0xd92   :  { %14421 = vmatprep.mubr.bf16.mxu0 %v20942_v14  ;;  %14380 = vmatprep.mubr.bf16.mxu1 %v20928_v12  ;;  %v19153_v14 = vld [vmem:[#allocation34 + $0x26c] ss:$16 sps:$4 sm:$0xff]  }
 0xd93   :  { %14350 = vmatprep.subr.bf16.mxu1 %v19135_v49  ;;  %14391 = vmatprep.subr.bf16.mxu0 %v19138_v37  ;;  %v19156_v12 = vld [vmem:[#allocation34 + $0x46c] ss:$16 sps:$4 sm:$0xff]   ;;  %v19205_v49 = vld [vmem:[#allocation34 + $0x348] ss:$16 sps:$4 sm:$0xff]  }
 0xd94   :  { %v19207_v62 = vld [vmem:[#allocation34 + $0x34c] ss:$16 sps:$4 sm:$0xff]   ;;  %v19208_v37 = vld [vmem:[#allocation34 + $0x548] ss:$16 sps:$4 sm:$0xff]  }
 0xd95   :  { %14351 = vmatpush1.bf16.msra.mxu1 %v19133_v16  ;;  %14392 = vmatpush1.bf16.msra.mxu0 %v19136_v46  ;;  %v19210_v48 = vld [vmem:[#allocation34 + $0x54c] ss:$16 sps:$4 sm:$0xff]  }
 0xd96   :  { %14352 = vmatprep.subr.bf16.mxu1 %v19141_v3  ;;  %14393 = vmatprep.subr.bf16.mxu0 %v19144_v6  ;;  %v19213_v16 = vld [vmem:[#allocation34 + $0x32c] ss:$16 sps:$4 sm:$0xff]  }
 0xd97   :  { %v19216_v46 = vld [vmem:[#allocation34 + $0x52c] ss:$16 sps:$4 sm:$0xff]  }
 0xd99   :  { %14353 = vmatpush1.bf16.msra.mxu1 %v19139_v56  ;;  %14394 = vmatpush1.bf16.msra.mxu0 %v19142_v2  ;;  %v19211_v56 = vld [vmem:[#allocation34 + $0x328] ss:$16 sps:$4 sm:$0xff]  }
 0xd9a   :  { %14354 = vmatprep.subr.bf16.mxu1 %v19147_v21  ;;  %14395 = vmatprep.subr.bf16.mxu0 %v19150_v59  ;;  %v19214_v2 = vld [vmem:[#allocation34 + $0x528] ss:$16 sps:$4 sm:$0xff]   ;;  %v19219_v21 = vld [vmem:[#allocation34 + $0x30c] ss:$16 sps:$4 sm:$0xff]  }
 0xd9b   :  { %v19222_v59 = vld [vmem:[#allocation34 + $0x50c] ss:$16 sps:$4 sm:$0xff]  }
 0xd9d   :  { %14355 = vmatpush1.bf16.msra.mxu1 %v19145_v36  ;;  %14396 = vmatpush1.bf16.msra.mxu0 %v19148_v34  ;;  %v19217_v34 = vld [vmem:[#allocation34 + $0x308] ss:$16 sps:$4 sm:$0xff]  }
 0xd9e   :  { %14356 = vmatprep.subr.bf16.mxu1 %v19153_v14  ;;  %14397 = vmatprep.subr.bf16.mxu0 %v19156_v12  ;;  %v19220_v14 = vld [vmem:[#allocation34 + $0x508] ss:$16 sps:$4 sm:$0xff]   ;;  %v19225_v12 = vld [vmem:[#allocation34 + $0x6ec] ss:$16 sps:$4 sm:$0xff]  }
 0xda1   :  { %14357 = vmatpush1.bf16.msra.mxu1 %v19151_v38  ;;  %14398 = vmatpush1.bf16.msra.mxu0 %v19154_v10  ;;  %v19271_v38 = vld [vmem:[#allocation38 + $0x78] sm:$0xff]   ;;  %v19223_v10 = vld [vmem:[#allocation34 + $0x6e8] ss:$16 sps:$4 sm:$0xff]  }
 0xda2   :  { %14358 = vmatprep.subr.bf16.mxu1 %v19159_v1  ;;  %14399 = vmatprep.subr.bf16.mxu0 %v19162_v41  ;;  %v19228_v1 = vld [vmem:[#allocation34 + $0x6cc] ss:$16 sps:$4 sm:$0xff]   ;;  %v19272_v41 = vld [vmem:[#allocation38 + $0x38] sm:$0xff]  }
 0xda5   :  { %14359 = vmatpush1.bf16.msra.mxu1 %v19157_v35  ;;  %14400 = vmatpush1.bf16.msra.mxu0 %v19160_v11  ;;  %v19273_v35 = vld [vmem:[#allocation38 + $0x70] sm:$0xff]  }
 0xda6   :  { %14360 = vmatprep.subr.bf16.mxu1 %v19165_v54  ;;  %14401 = vmatprep.subr.bf16.mxu0 %v19168_v52  ;;  %v19226_v52 = vld [vmem:[#allocation34 + $0x6c8] ss:$16 sps:$4 sm:$0xff]  }
 0xda9   :  { %14361 = vmatpush1.bf16.msra.mxu1 %v19163_v43  ;;  %14402 = vmatpush1.bf16.msra.mxu0 %v19166_v60  ;;  %v19231_v60 = vld [vmem:[#allocation34 + $0x6ac] ss:$16 sps:$4 sm:$0xff]  }
 0xdaa   :  { %14362 = vmatprep.subr.bf16.mxu1 %v19171_v51  ;;  %14403 = vmatprep.subr.bf16.mxu0 %v19174_v26  ;;  %v19274_v51 = vld [vmem:[#allocation38 + $0x30] sm:$0xff]  }
 0xdad   :  { %14363 = vmatpush1.bf16.msra.mxu1 %v19169_v7  ;;  %14404 = vmatpush1.bf16.msra.mxu0 %v19172_v57  ;;  %v19275_v7 = vld [vmem:[#allocation38 + $0x68] sm:$0xff]  }
 0xdae   :  { %14364 = vmatprep.subr.bf16.mxu1 %v19177_v58  ;;  %14405 = vmatprep.subr.bf16.mxu0 %v19180_v55  ;;  %v19234_v58 = vld [vmem:[#allocation34 + $0x68c] ss:$16 sps:$4 sm:$0xff]   ;;  %v19276_v55 = vld [vmem:[#allocation38 + $0x28] sm:$0xff]  }
 0xdb1   :  { %14365 = vmatpush2.bf16.msra.mxu1 %v19175_v29  ;;  %14406 = vmatpush2.bf16.msra.mxu0 %v19178_v28  ;;  %v19232_v29 = vld [vmem:[#allocation34 + $0x688] ss:$16 sps:$4 sm:$0xff]   ;;  %v19237_v28 = vld [vmem:[#allocation34 + $0x66c] ss:$16 sps:$4 sm:$0xff]  }
 0xdb2   :  { %14366 = vmatprep.subr.bf16.mxu1 %v19183_v30  ;;  %14407 = vmatprep.subr.bf16.mxu0 %v19186_v44  ;;  %v19278_v30 = vld [vmem:[#allocation38 + $0x20] sm:$0xff]   ;;  %v19279_v44 = vld [vmem:[#allocation38 + $0x58] sm:$0xff]  }
 0xdb5   :  { %14367 = vmatpush2.bf16.msra.mxu1 %v19181_v27  ;;  %14408 = vmatpush2.bf16.msra.mxu0 %v19184_v13  ;;  %v19235_v27 = vld [vmem:[#allocation34 + $0x668] ss:$16 sps:$4 sm:$0xff]   ;;  %v19240_v13 = vld [vmem:[#allocation34 + $0x64c] ss:$16 sps:$4 sm:$0xff]  }
 0xdb6   :  { %14368 = vmatprep.subr.bf16.mxu1 %v19189_v5  ;;  %14409 = vmatprep.subr.bf16.mxu0 %v19192_v9  ;;  %v19280_v5 = vld [vmem:[#allocation38 + $0x18] sm:$0xff]   ;;  %v19281_v9 = vld [vmem:[#allocation38 + $0x50] sm:$0xff]  }
 0xdb9   :  { %14369 = vmatpush2.bf16.msra.mxu1 %v19187_v50  ;;  %14410 = vmatpush2.bf16.msra.mxu0 %v19190_v32  ;;  %v19238_v50 = vld [vmem:[#allocation34 + $0x648] ss:$16 sps:$4 sm:$0xff]   ;;  %v19243_v32 = vld [vmem:[#allocation34 + $0x62c] ss:$16 sps:$4 sm:$0xff]  }
 0xdba   :  { %14370 = vmatprep.subr.bf16.mxu1 %v19195_v18  ;;  %14411 = vmatprep.subr.bf16.mxu0 %v19198_v33  ;;  %v19282_v18 = vld [vmem:[#allocation38 + $0x10] sm:$0xff]   ;;  %v19283_v33 = vld [vmem:[#allocation38 + $0x48] sm:$0xff]  }
 0xdbd   :  { %14371 = vmatpush2.bf16.msra.mxu1 %v19193_v22  ;;  %14412 = vmatpush2.bf16.msra.mxu0 %v19196_v42  ;;  %v19241_v22 = vld [vmem:[#allocation34 + $0x628] ss:$16 sps:$4 sm:$0xff]   ;;  %v19246_v42 = vld [vmem:[#allocation34 + $0x60c] ss:$16 sps:$4 sm:$0xff]  }
 0xdbe   :  { %14372 = vmatprep.subr.bf16.mxu1 %v19201_v20  ;;  %14413 = vmatprep.subr.bf16.mxu0 %v19204_v19  ;;  %v19284_v20 = vld [vmem:[#allocation38 + $0x8] sm:$0xff]   ;;  %v19285_v19 = vld [vmem:[#allocation38 + $0x40] sm:$0xff]  }
 0xdc1   :  { %14373 = vmatpush2.bf16.msra.mxu1 %v19199_v61  ;;  %14414 = vmatpush2.bf16.msra.mxu0 %v19202_v4  ;;  %v14177_v0 = vpop.f32.mrf.mxu0  ;;  %v19244_v61 = vld [vmem:[#allocation34 + $0x608] ss:$16 sps:$4 sm:$0xff]   ;;  %v19249_v4 = vld [vmem:[#allocation34 + $0x7ec] ss:$16 sps:$4 sm:$0xff]  }
 0xdc2   :  { %14374 = vmatprep.subr.bf16.mxu1 %v19207_v62  ;;  %14415 = vmatprep.subr.bf16.mxu0 %v19210_v48  ;;  %v19286_v62 = vld [vmem:[#allocation38] sm:$0xff]  }
 0xdc3   :  { %v14179_v3 = vpop.f32.mrf.mxu0  ;;  %v19247_v48 = vld [vmem:[#allocation34 + $0x7e8] ss:$16 sps:$4 sm:$0xff]  }
 0xdc5   :  { %14375 = vmatpush2.bf16.msra.mxu1 %v19205_v49  ;;  %14416 = vmatpush2.bf16.msra.mxu0 %v19208_v37  ;;  %v14181_v6 = vpop.f32.mrf.mxu0  ;;  %v19250_v49 = vld [vmem:[#allocation34 + $0x7c8] ss:$16 sps:$4 sm:$0xff]   ;;  %v19255_v37 = vld [vmem:[#allocation34 + $0x7ac] ss:$16 sps:$4 sm:$0xff]  }
 0xdc6   :  { %14376 = vmatprep.subr.bf16.mxu1 %v19213_v16  ;;  %14417 = vmatprep.subr.bf16.mxu0 %v19216_v46  ;;  %v19253_v16 = vld [vmem:[#allocation34 + $0x7a8] ss:$16 sps:$4 sm:$0xff]   ;;  %v19258_v46 = vld [vmem:[#allocation34 + $0x78c] ss:$16 sps:$4 sm:$0xff]  }
 0xdc7   :  { %v14182_v36 = vpop.f32.mrf.mxu0  ;;  %v19261_v6 = vld [vmem:[#allocation34 + $0x76c] ss:$16 sps:$4 sm:$0xff]  }
 0xdc8   :  { %v19265_v36 = vld [vmem:[#allocation34 + $0x728] ss:$16 sps:$4 sm:$0xff]  }
 0xdc9   :  { %14377 = vmatpush2.bf16.msra.mxu1 %v19211_v56  ;;  %14418 = vmatpush2.bf16.msra.mxu0 %v19214_v2  ;;  %v19259_v56 = vld [vmem:[#allocation34 + $0x768] ss:$16 sps:$4 sm:$0xff]   ;;  %v19264_v2 = vld [vmem:[#allocation34 + $0x74c] ss:$16 sps:$4 sm:$0xff]  }
 0xdca   :  { %14378 = vmatprep.subr.bf16.mxu1 %v19219_v21  ;;  %14419 = vmatprep.subr.bf16.mxu0 %v19222_v59  ;;  %v19262_v21 = vld [vmem:[#allocation34 + $0x748] ss:$16 sps:$4 sm:$0xff]   ;;  %v19267_v59 = vld [vmem:[#allocation34 + $0x72c] ss:$16 sps:$4 sm:$0xff]  }
 0xdcd   :  { %14379 = vmatpush2.bf16.msra.mxu1 %v19217_v34  ;;  %14420 = vmatpush2.bf16.msra.mxu0 %v19220_v14  ;;  %v19270_v34 = vld [vmem:[#allocation34 + $0x70c] ss:$16 sps:$4 sm:$0xff]   ;;  %v19268_v14 = vld [vmem:[#allocation34 + $0x708] ss:$16 sps:$4 sm:$0xff]  }
 0xdce   :  { %14430 = vmatprep.subr.bf16.mxu1 %v19225_v12  ;;  %17608 = vmatprep.subr.bf16.mxu0 %v19271_v38 }
 0xdd0   :  { %14381 = vmatmul.mubr.bf16.vlgmr.msra.gmra.mxu1 %v20930_v23  ;;  %14422 = vmatmul.mubr.bf16.vlgmr.msra.gmra.mxu0 %v20944_v31  ;;  %v14218_v11 = vpop.f32.mrf.mxu1  ;;  %v19229_v23 = vld [vmem:[#allocation34 + $0x6a8] ss:$16 sps:$4 sm:$0xff]  }
 0xdd1   :  { %v20968_v54 = vadd.f32 %v14218_v11, %v14177_v0  ;;  %14431 = vmatpush1.bf16.msra.mxu1 %v19223_v10  ;;  %14462 = vmatprep.mubr.bf16.mxu1 %v20957_v63  ;;  %v19277_v63 = vld [vmem:[#allocation38 + $0x60] sm:$0xff]   ;;  %v19288_v11 = vld [vmem:[#allocation38 + $0xb8] sm:$0xff]  }
 0xdd2   :  { %v14220_v43 = vpop.f32.mrf.mxu1  ;;  %14432 = vmatprep.subr.bf16.mxu1 %v19228_v1  ;;  %17609 = vmatpush3.bf16.msra.mxu0 %v19272_v41  ;;  %v19252_v0 = vld [vmem:[#allocation34 + $0x7cc] ss:$16 sps:$4 sm:$0xff]  }
 0xdd3   :  { %v20971_v26 = vadd.f32 %v14220_v43, %v14179_v3  ;;  %17610 = vmatprep.subr.bf16.mxu0 %v19273_v35  ;;  %v19256_v3 = vld [vmem:[#allocation34 + $0x788] ss:$16 sps:$4 sm:$0xff]   ;;  %v19287_v35 = vld [vmem:[#allocation38 + $0xf8] sm:$0xff]  }
 0xdd4   :  { %v14222_v57 = vpop.f32.mrf.mxu1  ;;  %v19290_v43 = vld [vmem:[#allocation38 + $0xb0] sm:$0xff]  }
 0xdd5   :  { %14433 = vmatpush1.bf16.msra.mxu1 %v19226_v52  ;;  %v19289_v52 = vld [vmem:[#allocation38 + $0xf0] sm:$0xff]   ;;  %v19295_v57 = vld [vmem:[#allocation38 + $0xd8] sm:$0xff]  }
 0xdd6   :  { %v14223_v31 = vpop.f32.mrf.mxu1  ;;  %14434 = vmatprep.subr.bf16.mxu1 %v19231_v60  ;;  %17611 = vmatpush3.bf16.msra.mxu0 %v19274_v51  ;;  %v19291_v60 = vld [vmem:[#allocation38 + $0xe8] sm:$0xff]  }
 0xdd7   :  { %17612 = vmatprep.subr.bf16.mxu0 %v19275_v7  ;;  %v19292_v51 = vld [vmem:[#allocation38 + $0xa8] sm:$0xff]   ;;  %v19293_v7 = vld [vmem:[#allocation38 + $0xe0] sm:$0xff]  }
 0xdd9   :  { %14435 = vmatpush1.bf16.msra.mxu1 %v19229_v23  ;;  %v20975_v23 = vld [vmem:[#allocation35] sm:$0xf] }
 0xdda   :  { %14436 = vmatprep.subr.bf16.mxu1 %v19234_v58  ;;  %17613 = vmatpush3.bf16.msra.mxu0 %v19276_v55  ;;  %v14476_v31 = vrot.slane %v20975_v23, %v20406_v24  ;;  %v20979_v58 = vld [vmem:[#allocation37] sm:$0xf]  ;;  %v19297_v55 = vld [vmem:[#allocation38 + $0xd0] sm:$0xff]  }
 0xddb   :  { %17614 = vmatprep.subr.bf16.mxu0 %v19277_v63 }
 0xddd   :  { %14437 = vmatpush1.bf16.msra.mxu1 %v19232_v29 }
 0xdde   :  { %14438 = vmatprep.subr.bf16.mxu1 %v19237_v28  ;;  %17615 = vmatpush3.bf16.msra.mxu0 %v19278_v30  ;;  %v19298_v28 = vld [vmem:[#allocation38 + $0x90] sm:$0xff]  }
 0xddf   :  { %17616 = vmatprep.subr.bf16.mxu0 %v19279_v44 }
 0xde1   :  { %14439 = vmatpush1.bf16.msra.mxu1 %v19235_v27  ;;  %v14480_v27 = vrot.slane %v20975_v23, %v20409_v25 }
 0xde2   :  { %14440 = vmatprep.subr.bf16.mxu1 %v19240_v13  ;;  %17617 = vmatpush3.bf16.msra.mxu0 %v19280_v5  ;;  %v14502_v13 = vrot.slane %v20979_v58, %v20406_v24 }
 0xde3   :  { %17618 = vmatprep.subr.bf16.mxu0 %v19281_v9 }
 0xde5   :  { %14441 = vmatpush1.bf16.msra.mxu1 %v19238_v50 }
 0xde6   :  { %14442 = vmatprep.subr.bf16.mxu1 %v19243_v32  ;;  %17619 = vmatpush3.bf16.msra.mxu0 %v19282_v18  ;;  %v14506_v18 = vrot.slane %v20979_v58, %v20409_v25 }
 0xde7   :  { %17620 = vmatprep.subr.bf16.mxu0 %v19283_v33  ;;  %v19299_v33 = vld [vmem:[#allocation38 + $0xc8] sm:$0xff]  }
 0xde9   :  { %14443 = vmatpush1.bf16.msra.mxu1 %v19241_v22 }
 0xdea   :  { %14444 = vmatprep.subr.bf16.mxu1 %v19246_v42  ;;  %17621 = vmatpush3.bf16.msra.mxu0 %v19284_v20 }
 0xdeb   :  { %17622 = vmatprep.subr.bf16.mxu0 %v19285_v19 }
 0xded   :  { %14445 = vmatpush1.bf16.msra.mxu1 %v19244_v61 }
 0xdee   :  { %14446 = vmatprep.subr.bf16.mxu1 %v19249_v4  ;;  %17623 = vmatpush3.bf16.msra.mxu0 %v19286_v62 }
 0xdf1   :  { %14447 = vmatpush2.bf16.msra.mxu1 %v19247_v48  ;;  %v19301_v48 = vld [vmem:[#allocation38 + $0xc0] sm:$0xff]  }
 0xdf2   :  { %14448 = vmatprep.subr.bf16.mxu1 %v19252_v0  ;;  %v19302_v0 = vld [vmem:[#allocation38 + $0x80] sm:$0xff]  }
 0xdf5   :  { %14449 = vmatpush2.bf16.msra.mxu1 %v19250_v49 }
 0xdf6   :  { %14450 = vmatprep.subr.bf16.mxu1 %v19255_v37 }
 0xdf9   :  { %14451 = vmatpush2.bf16.msra.mxu1 %v19253_v16 }
 0xdfa   :  { %14452 = vmatprep.subr.bf16.mxu1 %v19258_v46 }
 0xdfd   :  { %14453 = vmatpush2.bf16.msra.mxu1 %v19256_v3 }
 0xdfe   :  { %14454 = vmatprep.subr.bf16.mxu1 %v19261_v6 }
 0xe01   :  { %14455 = vmatpush2.bf16.msra.mxu1 %v19259_v56 }
 0xe02   :  { %14456 = vmatprep.subr.bf16.mxu1 %v19264_v2 }
 0xe05   :  { %14457 = vmatpush2.bf16.msra.mxu1 %v19262_v21 }
 0xe06   :  { %14458 = vmatprep.subr.bf16.mxu1 %v19267_v59 }
 0xe09   :  { %14459 = vmatpush2.bf16.msra.mxu1 %v19265_v36 }
 0xe0a   :  { %14460 = vmatprep.subr.bf16.mxu1 %v19270_v34 }
 0xe0d   :  { %14461 = vmatpush2.bf16.msra.mxu1 %v19268_v14  ;;  %v19303_v14 = vld [vmem:[#allocation40 + $0xe0] ss:$16 sps:$4 sm:$0xff]  }
 0xe0e   :  { %17630 = vmatprep.subr.bf16.mxu1 %v19287_v35  ;;  %v19315_v35 = vld [vmem:[#allocation40 + $0xa0] ss:$16 sps:$4 sm:$0xff]  }
 0xe10   :  { %14463 = vmatmul.mubr.bf16.vlgmr.msra.gmra.mxu1 %v20959_v40  ;;  %v14259_v12 = vpop.f32.mrf.mxu0  ;;  %v19294_v40 = vld [vmem:[#allocation38 + $0xa0] sm:$0xff]  }
 0xe11   :  { %v14260_v38 = vadd.f32 %v14259_v12, %v20968_v54  ;;  %17631 = vmatpush3.bf16.msra.mxu1 %v19288_v11  ;;  %v19296_v54 = vld [vmem:[#allocation38 + $0x98] sm:$0xff]   ;;  %v19305_v12 = vld [vmem:[#allocation40 + $0xe4] ss:$16 sps:$4 sm:$0xff]  }
 0xe12   :  { %v14261_v10 = vpop.f32.mrf.mxu0  ;;  %17632 = vmatprep.subr.bf16.mxu1 %v19289_v52  ;;  %15086 = vmatprep.subr.bf16.mxu0 %v19305_v12  ;;  %v19323_v11 = vld [vmem:[#allocation40 + $0x84] ss:$16 sps:$4 sm:$0xff]   ;;  %v19321_v52 = vld [vmem:[#allocation40 + $0x80] ss:$16 sps:$4 sm:$0xff]  }
 0xe13   :  { %v14262_v30 = vadd.f32 %v14261_v10, %v20971_v26  ;;  %v19300_v26 = vld [vmem:[#allocation38 + $0x88] sm:$0xff]   ;;  %v19311_v10 = vld [vmem:[#allocation40 + $0xc4] ss:$16 sps:$4 sm:$0xff]  }
 0xe14   :  { %v14263_v1 = vpop.f32.mrf.mxu0  ;;  %v17418_v12 = vld [vmem:[%s21065_s23] ss:$0 sm:$0xff] }
 0xe15   :  { %17633 = vmatpush3.bf16.msra.mxu1 %v19290_v43  ;;  %v19309_v1 = vld [vmem:[#allocation40 + $0xc0] ss:$16 sps:$4 sm:$0xff]   ;;  %v19329_v43 = vld [vmem:[#allocation40 + $0x64] ss:$16 sps:$4 sm:$0xff]  }
 0xe16   :  { %v14264_v41 = vpop.f32.mrf.mxu0  ;;  %17634 = vmatprep.subr.bf16.mxu1 %v19291_v60  ;;  %v19327_v60 = vld [vmem:[#allocation40 + $0x60] ss:$16 sps:$4 sm:$0xff]  }
 0xe17   :  { %v19317_v41 = vld [vmem:[#allocation40 + $0xa4] ss:$16 sps:$4 sm:$0xff]  }
 0xe19   :  { %17635 = vmatpush3.bf16.msra.mxu1 %v19292_v51  ;;  %v19335_v51 = vld [vmem:[#allocation40 + $0x44] ss:$16 sps:$4 sm:$0xff]  }
 0xe1a   :  { %17636 = vmatprep.subr.bf16.mxu1 %v19293_v7  ;;  %v19333_v7 = vld [vmem:[#allocation40 + $0x40] ss:$16 sps:$4 sm:$0xff]  }
 0xe1d   :  { %17637 = vmatpush3.bf16.msra.mxu1 %v19294_v40 }
 0xe1e   :  { %17638 = vmatprep.subr.bf16.mxu1 %v19295_v57  ;;  %v14484_v57 = vrot.slane %v20975_v23, %v20434_v39 }
 0xe21   :  { %17639 = vmatpush3.bf16.msra.mxu1 %v19296_v54 }
 0xe22   :  { %17640 = vmatprep.subr.bf16.mxu1 %v19297_v55 }
 0xe25   :  { %17641 = vmatpush3.bf16.msra.mxu1 %v19298_v28 }
 0xe26   :  { %17642 = vmatprep.subr.bf16.mxu1 %v19299_v33 }
 0xe29   :  { %17643 = vmatpush3.bf16.msra.mxu1 %v19300_v26  ;;  %v19318_v26 = vld [vmem:[#allocation40 + $0xa8] ss:$16 sps:$4 sm:$0xff]  }
 0xe2a   :  { %17644 = vmatprep.subr.bf16.mxu1 %v19301_v48  ;;  %v19330_v48 = vld [vmem:[#allocation40 + $0x68] ss:$16 sps:$4 sm:$0xff]  }
 0xe2d   :  { %17645 = vmatpush3.bf16.msra.mxu1 %v19302_v0  ;;  %v19338_v0 = vld [vmem:[#allocation40 + $0x4c] ss:$16 sps:$4 sm:$0xff]  }
 0xe50   :  { %v14341_v63 = vpop.f32.mrf.mxu0  ;;  %v14300_v29 = vpop.f32.mrf.mxu1 }
 0xe51   :  { %v14301_v44 = vadd.f32 %v14300_v29, %v14260_v38  ;;  %v19308_v38 = vld [vmem:[#allocation40 + $0xec] ss:$16 sps:$4 sm:$0xff]   ;;  %v14510_v29 = vrot.slane %v20979_v58, %v20434_v39 }
 0xe52   :  { %v14343_v5 = vpop.f32.mrf.mxu0  ;;  %v14302_v9 = vpop.f32.mrf.mxu1  ;;  %15127 = vmatprep.subr.bf16.mxu1 %v19308_v38 }
 0xe53   :  { %v14493_v50 = vmul.f32 %v14476_v31, %v14301_v44  ;;  %v14303_v32 = vadd.f32 %v14302_v9, %v14262_v30 }
 0xe54   :  { %v14345_v22 = vpop.f32.mrf.mxu0  ;;  %v14304_v42 = vpop.f32.mrf.mxu1 }
 0xe55   :  { %v14494_v20 = vmul.f32 %v14480_v27, %v14303_v32  ;;  %v20988_v19 = vadd.f32 %v14502_v13, %v14493_v50  ;;  %v14514_v27 = vrot.slane %v20979_v58, %v20437_v45  ;;  %v19314_v22 = vld [vmem:[#allocation40 + $0xcc] ss:$16 sps:$4 sm:$0xff]   ;;  %v19312_v42 = vld [vmem:[#allocation40 + $0xc8] ss:$16 sps:$4 sm:$0xff]  }
 0xe56   :  { %v14346_v61 = vpop.f32.mrf.mxu0  ;;  %v14305_v4 = vpop.f32.mrf.mxu1  ;;  %v19320_v58 = vld [vmem:[#allocation40 + $0xac] ss:$16 sps:$4 sm:$0xff]  }
 0xe57   :  { %v20990_v62 = vadd.f32 %v14506_v18, %v14494_v20  ;;  %v14523_v37 = vpack.c.bf16 %v20988_v19, %v20988_v19  ;;  %v19326_v20 = vld [vmem:[#allocation40 + $0x8c] ss:$16 sps:$4 sm:$0xff]   ;;  %v19324_v61 = vld [vmem:[#allocation40 + $0x88] ss:$16 sps:$4 sm:$0xff]  }
 0xe58   :  { %v19332_v4 = vld [vmem:[#allocation40 + $0x6c] ss:$16 sps:$4 sm:$0xff]  }
 0xe59   :  { %v14524_v49 = vpack.c.bf16 %v20990_v62, %v20990_v62 }
 0xe5b   :  { %14822 = vmatprep.mubr.bf16.mxu0 %v14524_v49  ;;  %v19336_v49 = vld [vmem:[#allocation40 + $0x48] ss:$16 sps:$4 sm:$0xff]  }
 0xe5c   :  { %14823 = vmatmul.mubr.bf16.vlgmr.msra.gmra.mxu0 %v14523_v37 }
 0xe5d   :  { %15118 = vmatprep.mubr.bf16.mxu0 %v20112_v53  ;;  %15087 = vmatpush1.bf16.msra.mxu0 %v19303_v14  ;;  %v19348_v14 = vld [vmem:[#allocation40 + $0x8] ss:$16 sps:$4 sm:$0xff]  }
 0xe5e   :  { %15088 = vmatprep.subr.bf16.mxu0 %v19311_v10 }
 0xe61   :  { %15089 = vmatpush1.bf16.msra.mxu0 %v19309_v1 }
 0xe62   :  { %15090 = vmatprep.subr.bf16.mxu0 %v19317_v41 }
 0xe65   :  { %15091 = vmatpush1.bf16.msra.mxu0 %v19315_v35 }
 0xe66   :  { %15092 = vmatprep.subr.bf16.mxu0 %v19323_v11 }
 0xe69   :  { %15093 = vmatpush1.bf16.msra.mxu0 %v19321_v52 }
 0xe6a   :  { %15094 = vmatprep.subr.bf16.mxu0 %v19329_v43 }
 0xe6d   :  { %15095 = vmatpush1.bf16.msra.mxu0 %v19327_v60 }
 0xe6e   :  { %15096 = vmatprep.subr.bf16.mxu0 %v19335_v51  ;;  %v19351_v51 = vld [vmem:[#allocation43 + $0x78] sm:$0xff]  }
 0xe71   :  { %15097 = vmatpush1.bf16.msra.mxu0 %v19333_v7  ;;  %v19352_v7 = vld [vmem:[#allocation43 + $0xf8] sm:$0xff]  }
 0xe90   :  { %v14382_v16 = vpop.f32.mrf.mxu1  ;;  %v14423_v46 = vpop.f32.mrf.mxu0 }
 0xe91   :  { %v14383_v3 = vadd.f32 %v14382_v16, %v14341_v63  ;;  %v14488_v63 = vrot.slane %v20975_v23, %v20437_v45  ;;  %v19306_v23 = vld [vmem:[#allocation40 + $0xe8] ss:$16 sps:$4 sm:$0xff]   ;;  %v19341_v16 = vld [vmem:[#allocation40 + $0x24] ss:$16 sps:$4 sm:$0xff]  }
 0xe92   :  { %v14384_v6 = vpop.f32.mrf.mxu1  ;;  %v14425_v56 = vpop.f32.mrf.mxu0  ;;  %15098 = vmatprep.subr.bf16.mxu0 %v19341_v16  ;;  %v19382_v16 = vld [vmem:[#allocation43 + $0x80] sm:$0xff]  }
 0xe93   :  { %v14424_v2 = vadd.f32 %v14423_v46, %v14383_v3  ;;  %v14385_v40 = vadd.f32 %v14384_v6, %v14343_v5  ;;  %v19344_v46 = vld [vmem:[#allocation40 + $0x2c] ss:$16 sps:$4 sm:$0xff]   ;;  %v19339_v6 = vld [vmem:[#allocation40 + $0x20] ss:$16 sps:$4 sm:$0xff]  }
 0xe94   :  { %v14386_v21 = vpop.f32.mrf.mxu1  ;;  %v14427_v59 = vpop.f32.mrf.mxu0  ;;  %15099 = vmatpush1.bf16.msra.mxu0 %v19339_v6 }
 0xe95   :  { %v14426_v31 = vadd.f32 %v14425_v56, %v14385_v40  ;;  %v19342_v56 = vld [vmem:[#allocation40 + $0x28] ss:$16 sps:$4 sm:$0xff]   ;;  %v19347_v59 = vld [vmem:[#allocation40 + $0x4] ss:$16 sps:$4 sm:$0xff]   ;;  %v19353_v40 = vld [vmem:[#allocation43 + $0x38] sm:$0xff]  }
 0xe96   :  { %v14387_v36 = vpop.f32.mrf.mxu1  ;;  %v14428_v34 = vpop.f32.mrf.mxu0  ;;  %15100 = vmatprep.subr.bf16.mxu0 %v19347_v59 }
 0xe97   :  { %v19350_v36 = vld [vmem:[#allocation40 + $0xc] ss:$16 sps:$4 sm:$0xff]   ;;  %v19345_v34 = vld [vmem:[#allocation40] ss:$16 sps:$4 sm:$0xff]  }
 0xe98   :  { %15101 = vmatpush1.bf16.msra.mxu0 %v19345_v34 }
 0xe99   :  { %17652 = vmatprep.subr.bf16.mxu0 %v19351_v51 }
 0xed0   :  { %v14464_v54 = vpop.f32.mrf.mxu1 }
 0xed1   :  { %v14465_v55 = vadd.f32 %v14464_v54, %v14424_v2  ;;  %v19355_v54 = vld [vmem:[#allocation43 + $0x70] sm:$0xff]  }
 0xed2   :  { %v14466_v28 = vpop.f32.mrf.mxu1 }
 0xed3   :  { %v14495_v30 = vmul.f32 %v14484_v57, %v14465_v55  ;;  %v14467_v44 = vadd.f32 %v14466_v28, %v14426_v31  ;;  %v19354_v57 = vld [vmem:[#allocation43 + $0xb8] sm:$0xff]   ;;  %v19356_v31 = vld [vmem:[#allocation43 + $0xf0] sm:$0xff]   ;;  %v19360_v28 = vld [vmem:[#allocation43 + $0xe8] sm:$0xff]  }
 0xed4   :  { %v14468_v13 = vpop.f32.mrf.mxu1  ;;  %v19357_v55 = vld [vmem:[#allocation43 + $0x30] sm:$0xff]  }
 0xed5   :  { %v14496_v5 = vmul.f32 %v14488_v63, %v14467_v44  ;;  %v21005_v9 = vadd.f32 %v14510_v29, %v14495_v30  ;;  %v19358_v63 = vld [vmem:[#allocation43 + $0xb0] sm:$0xff]   ;;  %v19359_v29 = vld [vmem:[#allocation43 + $0x68] sm:$0xff]   ;;  %v19364_v13 = vld [vmem:[#allocation43 + $0xe0] sm:$0xff]  }
 0xed6   :  { %v14469_v50 = vpop.f32.mrf.mxu1  ;;  %v19361_v30 = vld [vmem:[#allocation43 + $0x28] sm:$0xff]  }
 0xed7   :  { %v21007_v32 = vadd.f32 %v14514_v27, %v14496_v5  ;;  %v14525_v33 = vpack.c.bf16 %v21005_v9, %v21005_v9  ;;  %v19362_v44 = vld [vmem:[#allocation43 + $0xa8] sm:$0xff]   ;;  %v19363_v27 = vld [vmem:[#allocation43 + $0x60] sm:$0xff]  }
 0xed8   :  { %v19365_v5 = vld [vmem:[#allocation43 + $0x20] sm:$0xff]  }
 0xed9   :  { %v14526_v18 = vpack.c.bf16 %v21007_v32, %v21007_v32  ;;  %v19366_v50 = vld [vmem:[#allocation43 + $0xa0] sm:$0xff]  }
 0xedb   :  { %14862 = vmatprep.mubr.bf16.mxu1 %v14526_v18  ;;  %v19367_v18 = vld [vmem:[#allocation43 + $0x58] sm:$0xff]  }
 0xedc   :  { %14863 = vmatmul.mubr.bf16.vlgmr.msra.gmra.mxu1 %v14525_v33  ;;  %v19369_v33 = vld [vmem:[#allocation43 + $0x18] sm:$0xff]  }
 0xedd   :  { %15128 = vmatpush1.bf16.msra.mxu1 %v19306_v23  ;;  %15159 = vmatprep.mubr.bf16.mxu1 %v20112_v53  ;;  %v19368_v23 = vld [vmem:[#allocation43 + $0xd8] sm:$0xff]  }
 0xede   :  { %15129 = vmatprep.subr.bf16.mxu1 %v19314_v22  ;;  %v19370_v22 = vld [vmem:[#allocation43 + $0x98] sm:$0xff]  }
 0xee1   :  { %15130 = vmatpush1.bf16.msra.mxu1 %v19312_v42  ;;  %v19371_v42 = vld [vmem:[#allocation43 + $0x50] sm:$0xff]  }
 0xee2   :  { %15131 = vmatprep.subr.bf16.mxu1 %v19320_v58  ;;  %v19372_v58 = vld [vmem:[#allocation43 + $0xd0] sm:$0xff]  }
 0xee5   :  { %15132 = vmatpush1.bf16.msra.mxu1 %v19318_v26  ;;  %v19373_v26 = vld [vmem:[#allocation43 + $0x10] sm:$0xff]  }
 0xee6   :  { %15133 = vmatprep.subr.bf16.mxu1 %v19326_v20  ;;  %v19374_v20 = vld [vmem:[#allocation43 + $0x90] sm:$0xff]  }
 0xee9   :  { %15134 = vmatpush1.bf16.msra.mxu1 %v19324_v61  ;;  %v19375_v61 = vld [vmem:[#allocation43 + $0x48] sm:$0xff]  }
 0xeea   :  { %15135 = vmatprep.subr.bf16.mxu1 %v19332_v4  ;;  %v19376_v4 = vld [vmem:[#allocation43 + $0xc8] sm:$0xff]  }
 0xeed   :  { %15136 = vmatpush1.bf16.msra.mxu1 %v19330_v48  ;;  %v19377_v48 = vld [vmem:[#allocation43 + $0x8] sm:$0xff]  }
 0xeee   :  { %15137 = vmatprep.subr.bf16.mxu1 %v19338_v0  ;;  %v19378_v0 = vld [vmem:[#allocation43 + $0x88] sm:$0xff]  }
 0xef1   :  { %15138 = vmatpush1.bf16.msra.mxu1 %v19336_v49  ;;  %v19379_v49 = vld [vmem:[#allocation43 + $0x40] sm:$0xff]  }
 0xef2   :  { %15139 = vmatprep.subr.bf16.mxu1 %v19344_v46  ;;  %v14904_v46 = vld [vmem:[#allocation41] sm:$0xf] }
 0xef3   :  { %v14917_v6 = vrot.slane %v14904_v46, %v20434_v39 }
 0xef5   :  { %15140 = vmatpush1.bf16.msra.mxu1 %v19342_v56  ;;  %v14913_v56 = vrot.slane %v14904_v46, %v20409_v25 }
 0xef6   :  { %15141 = vmatprep.subr.bf16.mxu1 %v19350_v36 }
 0xef9   :  { %15142 = vmatpush1.bf16.msra.mxu1 %v19348_v14 }
 0xefa   :  { %17674 = vmatprep.subr.bf16.mxu1 %v19352_v7 }
 0xf1c   :  { %v17624_v37 = vpop.f32.mrf.mxu0 }
 0xf1e   :  { %v17625_v53 = vpop.f32.mrf.mxu0 }
 0xf1f   :  { %v17626_v3 = vadd.f32 %v17625_v53, %v17624_v37  ;;  %v19380_v37 = vld [vmem:[#allocation43 + $0xc0] sm:$0xff]  }
 0xf20   :  { %v17627_v2 = vpop.f32.mrf.mxu0  ;;  %v19381_v53 = vld [vmem:[#allocation43] sm:$0xff]  }
 0xf21   :  { %v14825_v1 = vadd.f32 %v17626_v3, %v17418_v12  ;;  %v14909_v3 = vrot.slane %v14904_v46, %v20406_v24  ;;  %v14921_v2 = vrot.slane %v14904_v46, %v20437_v45 }
 0xf22   :  { %v17628_v21 = vpop.f32.mrf.mxu0 }
 0xf9c   :  { %v17646_v38 = vpop.f32.mrf.mxu1 }
 0xf9e   :  { %v17647_v10 = vpop.f32.mrf.mxu1 }
 0xf9f   :  { %v17648_v41 = vadd.f32 %v17647_v10, %v17646_v38 }
 0xfa0   :  { %v17649_v35 = vpop.f32.mrf.mxu1 }
 0xfa1   :  { %v14865_v11 = vadd.f32 %v17648_v41, %v14825_v1 }
 0xfa2   :  { %v17650_v52 = vpop.f32.mrf.mxu1 }
 0xfa3   :  { %v14870_v43 = vmax.f32 %v14865_v11, 0.0 }
 0xfa5   :  { %v14871_v60 = vpack.c.bf16 %v14870_v43, %v14870_v43 }
 0xfa7   :  { %15119 = vmatmul.mubr.bf16.vlgmr.msra.gmra.mxu0 %v14871_v60  ;;  %15160 = vmatmul.mubr.bf16.vlgmr.msra.gmra.mxu1 %v14871_v60 }
 0xfa8   :  { %17653 = vmatpush3.bf16.msra.mxu0 %v19353_v40  ;;  %17675 = vmatpush3.bf16.msra.mxu1 %v19354_v57 }
 0xfa9   :  { %17654 = vmatprep.subr.bf16.mxu0 %v19355_v54  ;;  %17676 = vmatprep.subr.bf16.mxu1 %v19356_v31 }
 0xfac   :  { %17655 = vmatpush3.bf16.msra.mxu0 %v19357_v55  ;;  %17677 = vmatpush3.bf16.msra.mxu1 %v19358_v63 }
 0xfad   :  { %17656 = vmatprep.subr.bf16.mxu0 %v19359_v29  ;;  %17678 = vmatprep.subr.bf16.mxu1 %v19360_v28 }
 0xfb0   :  { %17657 = vmatpush3.bf16.msra.mxu0 %v19361_v30  ;;  %17679 = vmatpush3.bf16.msra.mxu1 %v19362_v44 }
 0xfb1   :  { %17658 = vmatprep.subr.bf16.mxu0 %v19363_v27  ;;  %17680 = vmatprep.subr.bf16.mxu1 %v19364_v13 }
 0xfb4   :  { %17659 = vmatpush3.bf16.msra.mxu0 %v19365_v5  ;;  %17681 = vmatpush3.bf16.msra.mxu1 %v19366_v50 }
 0xfb5   :  { %17660 = vmatprep.subr.bf16.mxu0 %v19367_v18  ;;  %17682 = vmatprep.subr.bf16.mxu1 %v19368_v23 }
 0xfb8   :  { %17661 = vmatpush3.bf16.msra.mxu0 %v19369_v33  ;;  %17683 = vmatpush3.bf16.msra.mxu1 %v19370_v22 }
 0xfb9   :  { %17662 = vmatprep.subr.bf16.mxu0 %v19371_v42  ;;  %17684 = vmatprep.subr.bf16.mxu1 %v19372_v58 }
 0xfbc   :  { %17663 = vmatpush3.bf16.msra.mxu0 %v19373_v26  ;;  %17685 = vmatpush3.bf16.msra.mxu1 %v19374_v20  ;;  %v17487_v20 = vld [vmem:[#allocation44] ss:$0 sm:$0xff] }
 0xfbd   :  { %17664 = vmatprep.subr.bf16.mxu0 %v19375_v61  ;;  %17686 = vmatprep.subr.bf16.mxu1 %v19376_v4 }
 0xfc0   :  { %17665 = vmatpush3.bf16.msra.mxu0 %v19377_v48  ;;  %17687 = vmatpush3.bf16.msra.mxu1 %v19378_v0 }
 0xfc1   :  { %17666 = vmatprep.subr.bf16.mxu0 %v19379_v49  ;;  %17688 = vmatprep.subr.bf16.mxu1 %v19380_v37 }
 0xfc4   :  { %17667 = vmatpush3.bf16.msra.mxu0 %v19381_v53  ;;  %17689 = vmatpush3.bf16.msra.mxu1 %v19382_v16 }
0x1067   :  { %v15120_v21 = vpop.f32.mrf.mxu0  ;;  %v15161_v59 = vpop.f32.mrf.mxu1 }
0x1068   :  { %v15121_v36 = vadd.f32 %v15120_v21, %v14909_v3  ;;  %v15162_v34 = vadd.f32 %v15161_v59, %v14917_v6 }
0x1069   :  { %v15122_v14 = vpop.f32.mrf.mxu0  ;;  %v15163_v12 = vpop.f32.mrf.mxu1 }
0x106a   :  { %v17483_v38 = vmul.f32 -1.442695, %v15121_v36  ;;  %v17485_v10 = vmul.f32 -1.442695, %v15162_v34  ;;  %v15123_v1 = vadd.f32 %v15122_v14, %v14913_v56  ;;  %v15164_v41 = vadd.f32 %v15163_v12, %v14921_v2 }
0x106b   :  { %v15124_v35 = vpop.f32.mrf.mxu0  ;;  %v15165_v11 = vpop.f32.mrf.mxu1 }
0x106c   :  { %19415 = vpow2.f32 %v17483_v38  ;;  %v17484_v24 = vmul.f32 -1.442695, %v15123_v1  ;;  %v17486_v52 = vmul.f32 -1.442695, %v15164_v41 }
0x106d   :  { %19417 = vpow2.f32 %v17485_v10  ;;  %v15125_v39 = vpop.f32.mrf.mxu0  ;;  %v15166_v25 = vpop.f32.mrf.mxu1 }
0x106e   :  { %19419 = vpow2.f32 %v17484_v24 }
0x106f   :  { %19421 = vpow2.f32 %v17486_v52 }
0x1079   :  { %v19416_v45 = vpop.eup %19415 }
0x107a   :  { %v19418_v43 = vpop.eup %19417  ;;  %v15180_v60 = vadd.f32 1.0, %v19416_v45 }
0x107b   :  { %v19420_v51 = vpop.eup %19419  ;;  %v15182_v7 = vadd.f32 1.0, %v19418_v43 }
0x107c   :  { %v19422_v40 = vpop.eup %19421  ;;  %19423 = vrcp.f32 %v15180_v60  ;;  %v15181_v57 = vadd.f32 1.0, %v19420_v51 }
0x107d   :  { %19425 = vrcp.f32 %v15182_v7  ;;  %v15183_v54 = vadd.f32 1.0, %v19422_v40 }
0x107e   :  { %19427 = vrcp.f32 %v15181_v57 }
0x107f   :  { %19429 = vrcp.f32 %v15183_v54 }
0x1089   :  { %v19424_v31 = vpop.eup %19423 }
0x108a   :  { %v19426_v55 = vpop.eup %19425  ;;  %v15192_v63 = vmul.f32 %v19424_v31, %v20988_v19 }
0x108b   :  { %v19428_v29 = vpop.eup %19427  ;;  %v15194_v28 = vmul.f32 %v19426_v55, %v21005_v9 }
0x108c   :  { %v19430_v30 = vpop.eup %19429  ;;  %v15193_v44 = vmul.f32 %v19428_v29, %v20990_v62  ;;  %v15196_v27 = vmax.f32 %v15192_v63, 0.0 }
0x108d   :  { %v15195_v13 = vmul.f32 %v19430_v30, %v21007_v32  ;;  %v15198_v5 = vmax.f32 %v15194_v28, 0.0 }
0x108e   :  { %v15197_v50 = vmax.f32 %v15193_v44, 0.0  ;;  %v15200_v23 = vadd.f32 %v15196_v27, %v20846_v47 }
0x108f   :  { %v15199_v18 = vmax.f32 %v15195_v13, 0.0  ;;  %v15202_v22 = vadd.f32 %v15198_v5, %v20852_v17 }
0x1090   :  { %v15201_v33 = vadd.f32 %v15197_v50, %v20849_v8  ;;  %v15204_v9 = vpack.c.bf16 %v15200_v23, %v15200_v23 }
0x1091   :  { %v15203_v19 = vadd.f32 %v15199_v18, %v20855_v15  ;;  %v15206_v26 = vpack.c.bf16 %v15202_v22, %v15202_v22 }
0x1092   :  { %v15205_v42 = vpack.c.bf16 %v15201_v33, %v15201_v33 }
0x1093   :  { %v15207_v58 = vpack.c.bf16 %v15203_v19, %v15203_v19 }
0x1094   :  { %15503 = vmatprep.mubr.bf16.mxu0 %v15205_v42 }
0x1095   :  { %15543 = vmatprep.mubr.bf16.mxu1 %v15207_v58  ;;  %15504 = vmatmul.mubr.bf16.vlgmr.msra.gmra.mxu0 %v15204_v9 }
0x1096   :  { %15544 = vmatmul.mubr.bf16.vlgmr.msra.gmra.mxu1 %v15206_v26 }
0x1155   :  { %v17668_v62 = vpop.f32.mrf.mxu0 }
0x1156   :  { %v17690_v32 = vpop.f32.mrf.mxu1 }
0x1157   :  { %v17669_v61 = vpop.f32.mrf.mxu0 }
0x1158   :  { %v17670_v4 = vadd.f32 %v17669_v61, %v17668_v62  ;;  %v17691_v47 = vpop.f32.mrf.mxu1 }
0x1159   :  { %v17671_v48 = vpop.f32.mrf.mxu0  ;;  %v17692_v17 = vadd.f32 %v17691_v47, %v17690_v32 }
0x115a   :  { %v15506_v8 = vadd.f32 %v17670_v4, %v17487_v20  ;;  %v17693_v15 = vpop.f32.mrf.mxu1 }
0x115b   :  { %v17672_v0 = vpop.f32.mrf.mxu0 }
0x115c   :  { %v15546_v49 = vadd.f32 %v17692_v17, %v15506_v8  ;;  %v17694_v37 = vpop.f32.mrf.mxu1 }
0x115e   :  { %15551 = vst [vmem:[#allocation46] sm:$0xff] %v15546_v49 }
0x115f   :  { %20002 = shalt.err (!%p19999_p4)
}
0x1160   :  { %15561 = dma.vmem_to_hbm [thread:$0]  %s15559_s17, 128, %s20297_s3, [#allocation4]  }
0x1161   :  { %20041 = dma.done.wait [#allocation4], 128  }
0x1162   :  { %20042 = vsyncadd [#allocation4], 4294967168 }
0x1163   :  { %15565 = vsyncpa [#allocation3], 1 }
0x1164   :  { %15566 = vsyncpa [#allocation6], 1 }
0x1165   :  { %15567 = vsyncpa [#allocation9], 1 }
0x1166   :  { %15568 = vsyncpa [#allocation12], 1 }
0x1167   :  { %15569 = vsyncpa [#allocation15], 1 }
0x1168   :  { %15570 = vsyncpa [#allocation18], 1 }
0x1169   :  { %15571 = vsyncpa [#allocation21], 1 }
0x116a   :  { %15572 = vsyncpa [#allocation24], 1 }
0x116b   :  { %15573 = vsyncpa [#allocation27], 1 }
0x116c   :  { %15574 = vsyncpa [#allocation30], 1 }
0x116d   :  { %15575 = vsyncpa [#allocation33], 1 }
0x116e   :  { %15576 = vsyncpa [#allocation36], 1 }
0x116f   :  { %15577 = vsyncpa [#allocation39], 1 }
0x1170   :  { %15578 = vsyncpa [#allocation42], 1 }
0x1171   :  { %15579 = vsyncpa [#allocation45], 1 }
0x1172   :  { %15580 = vsyncpa [#allocation4], 1 }

</bundles_post_ra>
